<compile_context>
chip_gen: v6e
topology: v6e:2x2x1
jax: 0.10.0
libtpu: 0.0.40
codegen_flags: <defaults>
</compile_context>

<pallas_src>
import functools

import jax
import jax.numpy as jnp
from jax.experimental import pallas as pl
from jax.experimental.pallas import tpu as pltpu


_VMEM_LIMIT = 32 * 1024 * 1024


def _round_up(x, m):
    return (x + m - 1) // m * m


# ----------------------------------------------------------------------------
# Pallas kernels
# ----------------------------------------------------------------------------
def _convt_bn_matmul_kernel(a_ref, w_ref, mask_ref, b_ref, sum_ref, sq_ref,
                            acc_ref, *, masked, Cout):
    """One (m, k) grid step of B = A @ Wbig (bf16 MXU, f32 accumulate) with the
    per-channel batch-norm statistics fused into the epilogue as per-M-tile
    partial sums.  mask_ref is a (tm, 4) f32 block: column ph says whether this
    row contributes an output pixel of phase ph (boundary rows of the padded
    phase grid must not enter the batch statistics)."""
    k = pl.program_id(1)
    last_k = pl.num_programs(1) - 1

    @pl.when(k == 0)
    def _():
        acc_ref[...] = jnp.zeros_like(acc_ref)

    acc_ref[...] += jnp.dot(a_ref[...], w_ref[...],
                            preferred_element_type=jnp.float32)

    @pl.when(k == last_k)
    def _():
        y = acc_ref[...]                              # (tm, C4) f32
        b_ref[...] = y.astype(b_ref.dtype)

        tm, C4 = y.shape
        if masked:
            # Columns are ordered (phase, co); expand the per-row phase mask
            # over channels with lane-range indicators (no div/mod, no
            # program_id needed -- robust in interpret mode).
            c = jax.lax.broadcasted_iota(jnp.int32, (1, C4), 1)
            p0 = (c < Cout).astype(jnp.float32)
            p1 = ((c >= Cout) & (c < 2 * Cout)).astype(jnp.float32)
            p2 = ((c >= 2 * Cout) & (c < 3 * Cout)).astype(jnp.float32)
            p3 = (c >= 3 * Cout).astype(jnp.float32)
            m = (mask_ref[:, 0:1] * p0 + mask_ref[:, 1:2] * p1
                 + mask_ref[:, 2:3] * p2 + mask_ref[:, 3:4] * p3)
            ym = y * m
        else:
            ym = y
        s = jnp.sum(ym, axis=0, keepdims=True)        # (1, C4) masked sum
        q = jnp.sum(ym * y, axis=0, keepdims=True)    # masked sum of squares
        row = jax.lax.broadcasted_iota(jnp.int32, (8, C4), 0)
        sum_ref[...] = jnp.where(row == 0, jnp.broadcast_to(s, (8, C4)), 0.0)
        sq_ref[...] = jnp.where(row == 0, jnp.broadcast_to(q, (8, C4)), 0.0)


def _convt_tanh_matmul_kernel(a_ref, w_ref, bias_ref, o_ref, acc_ref):
    """Final layer: matmul with fused bias add + tanh in the epilogue."""
    k = pl.program_id(1)
    last_k = pl.num_programs(1) - 1

    @pl.when(k == 0)
    def _():
        acc_ref[...] = jnp.zeros_like(acc_ref)

    acc_ref[...] += jnp.dot(a_ref[...], w_ref[...],
                            preferred_element_type=jnp.float32)

    @pl.when(k == last_k)
    def _():
        o_ref[...] = jnp.tanh(acc_ref[...] + bias_ref[...]).astype(o_ref.dtype)


def _affine_relu_kernel(y_ref, scale_ref, shift_ref, o_ref):
    """Fused batch-norm affine + ReLU (f32 math, bf16 output)."""
    y = y_ref[...].astype(jnp.float32)
    o_ref[...] = jnp.maximum(
        y * scale_ref[...] + shift_ref[...], 0.0).astype(o_ref.dtype)


# ----------------------------------------------------------------------------
# pallas_call wrappers
# ----------------------------------------------------------------------------
def convt_bn_matmul(a, wmat, mask, *, masked, Cout, tm, tk):
    Mp, Ktot = a.shape
    C4 = wmat.shape[1]
    nmt = Mp // tm
    nkt = Ktot // tk
    kernel = functools.partial(_convt_bn_matmul_kernel,
                               masked=masked, Cout=Cout)
    return pl.pallas_call(
        kernel,
        out_shape=(
            jax.ShapeDtypeStruct((Mp, C4), jnp.bfloat16),      # pre-BN activations
            jax.ShapeDtypeStruct((nmt * 8, C4), jnp.float32),  # partial sums
            jax.ShapeDtypeStruct((nmt * 8, C4), jnp.float32),  # partial sum of squares
        ),
        grid=(nmt, nkt),
        in_specs=[
            pl.BlockSpec((tm, tk), lambda m, k: (m, k)),
            pl.BlockSpec((tk, C4), lambda m, k: (k, 0)),
            pl.BlockSpec((tm, 4), lambda m, k: (m, 0)),
        ],
        out_specs=(
            pl.BlockSpec((tm, C4), lambda m, k: (m, 0)),
            pl.BlockSpec((8, C4), lambda m, k: (m, 0)),
            pl.BlockSpec((8, C4), lambda m, k: (m, 0)),
        ),
        scratch_shapes=[pltpu.VMEM((tm, C4), jnp.float32)],
        compiler_params=pltpu.CompilerParams(
            dimension_semantics=("parallel", "arbitrary"),
            vmem_limit_bytes=_VMEM_LIMIT),
    )(a, wmat, mask)


def convt_tanh_matmul(a, wmat, bias4, *, tm, tk):
    Mp, Ktot = a.shape
    C4 = wmat.shape[1]
    nmt = Mp // tm
    nkt = Ktot // tk
    return pl.pallas_call(
        _convt_tanh_matmul_kernel,
        out_shape=jax.ShapeDtypeStruct((Mp, C4), jnp.float32),
        grid=(nmt, nkt),
        in_specs=[
            pl.BlockSpec((tm, tk), lambda m, k: (m, k)),
            pl.BlockSpec((tk, C4), lambda m, k: (k, 0)),
            pl.BlockSpec((1, C4), lambda m, k: (0, 0)),
        ],
        out_specs=pl.BlockSpec((tm, C4), lambda m, k: (m, 0)),
        scratch_shapes=[pltpu.VMEM((tm, C4), jnp.float32)],
        compiler_params=pltpu.CompilerParams(
            dimension_semantics=("parallel", "arbitrary"),
            vmem_limit_bytes=_VMEM_LIMIT),
    )(a, wmat, bias4)


def affine_relu(y, scale, shift, *, tm):
    Mp, C4 = y.shape
    return pl.pallas_call(
        _affine_relu_kernel,
        out_shape=jax.ShapeDtypeStruct((Mp, C4), jnp.bfloat16),
        grid=(Mp // tm,),
        in_specs=[
            pl.BlockSpec((tm, C4), lambda m: (m, 0)),
            pl.BlockSpec((1, C4), lambda m: (0, 0)),
            pl.BlockSpec((1, C4), lambda m: (0, 0)),
        ],
        out_specs=pl.BlockSpec((tm, C4), lambda m: (m, 0)),
        compiler_params=pltpu.CompilerParams(
            dimension_semantics=("parallel",),
            vmem_limit_bytes=_VMEM_LIMIT),
    )(y, scale, shift)


# ----------------------------------------------------------------------------
# JAX glue (pure data movement / tiny reductions)
# ----------------------------------------------------------------------------
def _build_phase_patches(x):
    """x: (N, H, W, Cin) NHWC bf16.  Returns the 4-tap patch matrix of the
    K=4 / stride=2 / pad=1 transposed conv:
      A2[(n,i,j), (a,b,ci)] = xpad[n, i+a, j+b, ci],  (i, j) on the (H+1, W+1) grid.
    Only a 4x bf16 blow-up of the input (vs the 16x f32 full im2col)."""
    N, H, W, C = x.shape
    xp = jnp.pad(x, ((0, 0), (1, 1), (1, 1), (0, 0)))
    cols = [xp[:, a:a + H + 1, b:b + W + 1, :] for a in (0, 1) for b in (0, 1)]
    a2 = jnp.concatenate(cols, axis=-1)               # (N, H+1, W+1, 4*C)
    return a2.reshape(N * (H + 1) * (W + 1), 4 * C)


def _phase_row_mask(N, H, W, Mp):
    """mask[r, ph] = 1 iff row r of the (N*(H+1)*(W+1))-row phase-patch matrix
    contributes an output pixel for phase ph = 2*dy + dx:
      dy == 0 -> i < H,  dy == 1 -> i >= 1   (same for dx / j).
    Padded rows (r >= #real rows) get 0 (their values are 0 anyway)."""
    r = jnp.arange(Mp, dtype=jnp.int32)
    i = (r // (W + 1)) % (H + 1)
    j = r % (W + 1)
    in_range = r < N * (H + 1) * (W + 1)
    vh = [(i < H), (i >= 1)]
    vw = [(j < W), (j >= 1)]
    cols = [vh[dy] & vw[dx] & in_range for dy in (0, 1) for dx in (0, 1)]
    return jnp.stack(cols, axis=1).astype(jnp.float32)


def _interleave_phases(bact, N, H, W, Cout):
    """Scatter the 4 output phases (dy, dx) of B onto the (2H, 2W) grid via
    stack + reshape (no scatter updates): every output pixel receives exactly
    one phase value."""
    b = bact.reshape(N, H + 1, W + 1, 4, Cout)
    p00 = b[:, :H, :W, 0, :]
    p01 = b[:, :H, 1:, 1, :]
    p10 = b[:, 1:, :W, 2, :]
    p11 = b[:, 1:, 1:, 3, :]
    top = jnp.stack([p00, p01], axis=3)               # (N, H, W, 2, C)
    bot = jnp.stack([p10, p11], axis=3)               # (N, H, W, 2, C)
    y = jnp.stack([top, bot], axis=2)                 # (N, H, 2, W, 2, C)
    return y.reshape(N, 2 * H, 2 * W, Cout)


def _bn_scale_shift(psum, psq, gamma, beta, *, count, groups, cout, eps):
    """Finalize BN batch statistics from the per-tile partial sums (tiny)."""
    s = psum.sum(axis=0).reshape(groups, cout).sum(axis=0)
    q = psq.sum(axis=0).reshape(groups, cout).sum(axis=0)
    mean = s / count
    var = jnp.maximum(q / count - mean * mean, 0.0)   # biased var (PyTorch BN fwd)
    inv = jax.lax.rsqrt(var + eps)
    scale = gamma * inv
    shift = beta - mean * scale
    return (jnp.tile(scale, groups).reshape(1, groups * cout),
            jnp.tile(shift, groups).reshape(1, groups * cout))


def _tiles(M, Ktot):
    tm = min(512, _round_up(M, 8))
    Mp = _round_up(M, tm)
    tk = 512 if (Ktot > 512 and Ktot % 512 == 0) else Ktot
    return tm, Mp, tk


# ----------------------------------------------------------------------------
# Generator forward
# ----------------------------------------------------------------------------
def generator_forward(z_nchw, prep):
    eps = 1e-5
    N = z_nchw.shape[0]

    # ---- layer 0: ConvT(nz, 8g, 4, 1, 0) on 1x1 input == dense matmul ----
    p = prep[0]
    c0 = p["wmat"].shape[1] // 16
    z2 = z_nchw.reshape(N, -1).astype(jnp.bfloat16)
    tm, Mp, tk = _tiles(N, z2.shape[1])
    a = jnp.pad(z2, ((0, Mp - N), (0, 0)))
    ones_mask = jnp.ones((Mp, 4), jnp.float32)
    y, ps, pq = convt_bn_matmul(a, p["wmat"], ones_mask, masked=False,
                                Cout=c0, tm=tm, tk=tk)
    sc, sh = _bn_scale_shift(ps, pq, p["gamma"], p["beta"],
                             count=N * 16, groups=16, cout=c0, eps=eps)
    act = affine_relu(y, sc, sh, tm=(Mp if Mp <= 2048 else tm))
    x = act[:N].reshape(N, 4, 4, c0)                   # NHWC, bf16

    # ---- layers 1..3: ConvT(.., 4, 2, 1) + BN(batch stats) + ReLU ----
    for li in (1, 2, 3):
        p = prep[li]
        cout = p["wmat"].shape[1] // 4
        Nb, H, W, _ = x.shape
        a2 = _build_phase_patches(x)
        M2 = a2.shape[0]
        tm, Mp, tk = _tiles(M2, a2.shape[1])
        a2 = jnp.pad(a2, ((0, Mp - M2), (0, 0)))
        mask = _phase_row_mask(Nb, H, W, Mp)
        b, ps, pq = convt_bn_matmul(a2, p["wmat"], mask, masked=True,
                                    Cout=cout, tm=tm, tk=tk)
        sc, sh = _bn_scale_shift(ps, pq, p["gamma"], p["beta"],
                                 count=Nb * (2 * H) * (2 * W), groups=4,
                                 cout=cout, eps=eps)
        bact = affine_relu(b, sc, sh, tm=(Mp if Mp <= 2048 else tm))
        x = _interleave_phases(bact[:M2], Nb, H, W, cout)   # NHWC, bf16

    # ---- layer 4: ConvT(.., 4, 2, 1) with fused bias + Tanh ----
    p = prep[4]
    cout = p["wmat"].shape[1] // 4
    Nb, H, W, _ = x.shape
    a2 = _build_phase_patches(x)
    M2 = a2.shape[0]
    tm, Mp, tk = _tiles(M2, a2.shape[1])
    a2 = jnp.pad(a2, ((0, Mp - M2), (0, 0)))
    b = convt_tanh_matmul(a2, p["wmat"], p["bias4"], tm=tm, tk=tk)
    y = _interleave_phases(b[:M2], Nb, H, W, cout)          # NHWC, f32
    return jnp.transpose(y, (0, 3, 1, 2))                   # NCHW


# ----------------------------------------------------------------------------
# One-time parameter preprocessing (hoisted out of the traced forward)
# ----------------------------------------------------------------------------
def _convt_s2_weight_matrix(w):
    """ConvTranspose2d weight (Cin, Cout, 4, 4), stride 2, pad 1 ->
    (4*Cin, 4*Cout) bf16 matrix; rows ordered (a, b, ci) to match
    _build_phase_patches, columns ordered (dy, dx, co) = output phase."""
    cin, cout = w.shape[0], w.shape[1]
    t = jnp.arange(2)
    kidx = 3 - t[None, :] - 2 * t[:, None]            # kidx[a, dy] = 3 - dy - 2a
    wt = w[:, :, kidx[:, :, None, None], kidx[None, None, :, :]]
    # wt: (Cin, Cout, a, dy, b, dx)
    wt = jnp.transpose(wt, (2, 4, 0, 3, 5, 1))        # (a, b, ci, dy, dx, co)
    return wt.reshape(4 * cin, 4 * cout).astype(jnp.bfloat16)


def prepare_params(params):
    """bf16 weight matrices; BN-layer conv biases dropped (exactly absorbed by
    the batch-norm mean subtraction); final-layer bias tiled over the 4 phases."""
    prep = []
    p0 = params[0]
    w0 = p0["w"]                                      # (nz, C0, 4, 4)
    wmat0 = jnp.transpose(w0, (0, 2, 3, 1)).reshape(
        w0.shape[0], 16 * w0.shape[1]).astype(jnp.bfloat16)
    prep.append(dict(wmat=wmat0, gamma=p0["gamma"], beta=p0["beta"]))
    for li in range(1, 5):
        p = params[li]
        d = dict(wmat=_convt_s2_weight_matrix(p["w"]))
        if li < 4:
            d["gamma"] = p["gamma"]
            d["beta"] = p["beta"]
        else:
            d["bias4"] = jnp.tile(p["b"], 4).reshape(1, -1).astype(jnp.float32)
        prep.append(d)
    return prep


# ----------------------------------------------------------------------------
# Deterministic synthetic parameters (shapes from the PyTorch __init__)
# ----------------------------------------------------------------------------
def make_params(key, nz, nch_g, nch):
    chans = [nz, nch_g * 8, nch_g * 4, nch_g * 2, nch_g, nch]
    params = []
    for li in range(5):
        cin, cout = chans[li], chans[li + 1]
        key, kw, kb, kg, kbe = jax.random.split(key, 5)
        p = {
            "w": 0.02 * jax.random.normal(kw, (cin, cout, 4, 4), jnp.float32),
            "b": 0.02 * jax.random.normal(kb, (cout,), jnp.float32),
        }
        if li < 4:
            p["gamma"] = 1.0 + 0.1 * jax.random.normal(kg, (cout,), jnp.float32)
            p["beta"] = 0.1 * jax.random.normal(kbe, (cout,), jnp.float32)
        params.append(p)
    return params


if __name__ == "__main__":
    # Small shapes consistent with the module: nz=16, nch_g=8, nch=3, batch=2.
    nz, nch_g, nch, batch = 16, 8, 3, 2

    key = jax.random.PRNGKey(0)
    key, kz = jax.random.split(key)
    z = jax.random.normal(kz, (batch, nz, 1, 1), jnp.float32)  # NCHW, like PyTorch

    params = make_params(key, nz, nch_g, nch)
    prep = prepare_params(params)

    fwd = jax.jit(generator_forward)
    out = jax.block_until_ready(fwd(z, prep))

    assert out.shape == (batch, nch, 64, 64), out.shape
    assert out.dtype == jnp.float32
    assert bool(jnp.all(jnp.isfinite(out)))
    assert bool(jnp.all(jnp.abs(out) <= 1.0))  # tanh range
    print("KERNEL_OK")
</pallas_src>

<mosaic_0001>
module attributes {stable_mosaic.version = 11 : i64} {
  func.func @_convt_bn_matmul_kernel(%arg0: i32, %arg1: i32, %arg2: memref<8x16xbf16, #tpu.memory_space<vmem>>, %arg3: memref<16x1024xbf16, #tpu.memory_space<vmem>>, %arg4: memref<8x4xf32, #tpu.memory_space<vmem>>, %arg5: memref<8x1024xbf16, #tpu.memory_space<vmem>>, %arg6: memref<8x1024xf32, #tpu.memory_space<vmem>>, %arg7: memref<8x1024xf32, #tpu.memory_space<vmem>>, %arg8: memref<8x1024xf32, #tpu.memory_space<vmem>>) attributes {dimension_semantics = [#tpu.dimension_semantics<parallel>, #tpu.dimension_semantics<arbitrary>], iteration_bounds = array<i64: 1, 1>, scalar_prefetch = 0 : i64, scratch_operands = 1 : i64, tpu.core_type = #tpu.core_type<tc>, window_params = [{transform_indices = @transform_0, window_bounds = array<i64: 8, 16>}, {transform_indices = @transform_1, window_bounds = array<i64: 16, 1024>}, {transform_indices = @transform_2, window_bounds = array<i64: 8, 4>}, {transform_indices = @transform_3, window_bounds = array<i64: 8, 1024>}, {transform_indices = @transform_4, window_bounds = array<i64: 8, 1024>}, {transform_indices = @transform_5, window_bounds = array<i64: 8, 1024>}]} {
    %c0_i32 = arith.constant 0 : i32
    %0 = arith.cmpi eq, %arg1, %c0_i32 : i32
    %1 = arith.extui %0 : i1 to i32
    %c0_i32_0 = arith.constant 0 : i32
    %2 = arith.cmpi ne, %1, %c0_i32_0 : i32
    scf.if %2 {
      %cst_10 = arith.constant 0.000000e+00 : f32
      %12 = vector.broadcast %cst_10 : f32 to vector<8x1024xf32>
      %c0_11 = arith.constant 0 : index
      %c0_12 = arith.constant 0 : index
      %13 = vector.load %arg8[%c0_11, %c0_12] : memref<8x1024xf32, #tpu.memory_space<vmem>>, vector<8x1024xf32>
      tpu.vector_store %arg8[%c0_11, %c0_12], %12 {strides = array<i32>} : memref<8x1024xf32, #tpu.memory_space<vmem>>, vector<8x1024xf32>,
    } else {
    }
    %c0 = arith.constant 0 : index
    %c0_1 = arith.constant 0 : index
    %3 = vector.load %arg8[%c0, %c0_1] : memref<8x1024xf32, #tpu.memory_space<vmem>>, vector<8x1024xf32>
    %c0_2 = arith.constant 0 : index
    %c0_3 = arith.constant 0 : index
    %4 = vector.load %arg2[%c0_2, %c0_3] : memref<8x16xbf16, #tpu.memory_space<vmem>>, vector<8x16xbf16>
    %c0_4 = arith.constant 0 : index
    %c0_5 = arith.constant 0 : index
    %5 = vector.load %arg3[%c0_4, %c0_5] : memref<16x1024xbf16, #tpu.memory_space<vmem>>, vector<16x1024xbf16>
    %cst = arith.constant dense<0.000000e+00> : vector<8x1024xf32>
    %6 = tpu.matmul %4, %5, %cst {dimension_numbers = #tpu.dot_dimension_numbers<[1], [0], [0], [1], [0, 0, 1, 1], [], []>} : vector<8x16xbf16>, vector<16x1024xbf16>, vector<8x1024xf32> -> vector<8x1024xf32>
    %7 = arith.addf %3, %6 : vector<8x1024xf32>
    %c0_6 = arith.constant 0 : index
    %c0_7 = arith.constant 0 : index
    %8 = vector.load %arg8[%c0_6, %c0_7] : memref<8x1024xf32, #tpu.memory_space<vmem>>, vector<8x1024xf32>
    tpu.vector_store %arg8[%c0_6, %c0_7], %7 {strides = array<i32>} : memref<8x1024xf32, #tpu.memory_space<vmem>>, vector<8x1024xf32>,
    %c0_i32_8 = arith.constant 0 : i32
    %9 = arith.cmpi eq, %arg1, %c0_i32_8 : i32
    %10 = arith.extui %9 : i1 to i32
    %c0_i32_9 = arith.constant 0 : i32
    %11 = arith.cmpi ne, %10, %c0_i32_9 : i32
    scf.if %11 {
      %c0_10 = arith.constant 0 : index
      %c0_11 = arith.constant 0 : index
      %12 = vector.load %arg8[%c0_10, %c0_11] : memref<8x1024xf32, #tpu.memory_space<vmem>>, vector<8x1024xf32>
      %13 = arith.truncf %12 : vector<8x1024xf32> to vector<8x1024xbf16>
      %c0_12 = arith.constant 0 : index
      %c0_13 = arith.constant 0 : index
      %14 = vector.load %arg5[%c0_12, %c0_13] : memref<8x1024xbf16, #tpu.memory_space<vmem>>, vector<8x1024xbf16>
      tpu.vector_store %arg5[%c0_12, %c0_13], %13 {strides = array<i32>} : memref<8x1024xbf16, #tpu.memory_space<vmem>>, vector<8x1024xbf16>,
      %cst_14 = arith.constant dense<0.000000e+00> : vector<1024xf32>
      %15 = vector.multi_reduction <add>, %12, %cst_14 [0] : vector<8x1024xf32> to vector<1024xf32>
      %16 = vector.shape_cast %15 : vector<1024xf32> to vector<1x1024xf32>
      %17 = arith.mulf %12, %12 : vector<8x1024xf32>
      %cst_15 = arith.constant dense<0.000000e+00> : vector<1024xf32>
      %18 = vector.multi_reduction <add>, %17, %cst_15 [0] : vector<8x1024xf32> to vector<1024xf32>
      %19 = vector.shape_cast %18 : vector<1024xf32> to vector<1x1024xf32>
      %20 = tpu.iota {dimensions = array<i32: 0>} : vector<8x1024xi32>
      %c0_i32_16 = arith.constant 0 : i32
      %21 = vector.broadcast %c0_i32_16 : i32 to vector<8x1024xi32>
      %22 = arith.cmpi eq, %20, %21 : vector<8x1024xi32>
      %23 = vector.shape_cast %16 : vector<1x1024xf32> to vector<1x1024xf32>
      %24 = vector.broadcast %23 : vector<1x1024xf32> to vector<8x1024xf32>
      %cst_17 = arith.constant 0.000000e+00 : f32
      %25 = vector.broadcast %cst_17 : f32 to vector<8x1024xf32>
      %26 = arith.select %22, %24, %25 : vector<8x1024xi1>, vector<8x1024xf32>
      %c0_18 = arith.constant 0 : index
      %c0_19 = arith.constant 0 : index
      %27 = vector.load %arg6[%c0_18, %c0_19] : memref<8x1024xf32, #tpu.memory_space<vmem>>, vector<8x1024xf32>
      tpu.vector_store %arg6[%c0_18, %c0_19], %26 {strides = array<i32>} : memref<8x1024xf32, #tpu.memory_space<vmem>>, vector<8x1024xf32>,
      %c0_i32_20 = arith.constant 0 : i32
      %28 = vector.broadcast %c0_i32_20 : i32 to vector<8x1024xi32>
      %29 = arith.cmpi eq, %20, %28 : vector<8x1024xi32>
      %30 = vector.shape_cast %19 : vector<1x1024xf32> to vector<1x1024xf32>
      %31 = vector.broadcast %30 : vector<1x1024xf32> to vector<8x1024xf32>
      %cst_21 = arith.constant 0.000000e+00 : f32
      %32 = vector.broadcast %cst_21 : f32 to vector<8x1024xf32>
      %33 = arith.select %29, %31, %32 : vector<8x1024xi1>, vector<8x1024xf32>
      %c0_22 = arith.constant 0 : index
      %c0_23 = arith.constant 0 : index
      %34 = vector.load %arg7[%c0_22, %c0_23] : memref<8x1024xf32, #tpu.memory_space<vmem>>, vector<8x1024xf32>
      tpu.vector_store %arg7[%c0_22, %c0_23], %33 {strides = array<i32>} : memref<8x1024xf32, #tpu.memory_space<vmem>>, vector<8x1024xf32>,
    } else {
    }
    return
  }
  func.func @transform_0(%arg0: i32, %arg1: i32) -> (i32, i32) {
    %c0_i32 = arith.constant 0 : i32
    return %arg0, %arg1 : i32, i32
  }
  func.func @transform_1(%arg0: i32, %arg1: i32) -> (i32, i32) {
    %c0_i32 = arith.constant 0 : i32
    %c0_i32_0 = arith.constant 0 : i32
    return %arg1, %c0_i32 : i32, i32
  }
  func.func @transform_2(%arg0: i32, %arg1: i32) -> (i32, i32) {
    %c0_i32 = arith.constant 0 : i32
    %c0_i32_0 = arith.constant 0 : i32
    return %arg0, %c0_i32 : i32, i32
  }
  func.func @transform_3(%arg0: i32, %arg1: i32) -> (i32, i32) {
    %c0_i32 = arith.constant 0 : i32
    %c0_i32_0 = arith.constant 0 : i32
    return %arg0, %c0_i32 : i32, i32
  }
  func.func @transform_4(%arg0: i32, %arg1: i32) -> (i32, i32) {
    %c0_i32 = arith.constant 0 : i32
    %c0_i32_0 = arith.constant 0 : i32
    return %arg0, %c0_i32 : i32, i32
  }
  func.func @transform_5(%arg0: i32, %arg1: i32) -> (i32, i32) {
    %c0_i32 = arith.constant 0 : i32
    %c0_i32_0 = arith.constant 0 : i32
    return %arg0, %c0_i32 : i32, i32
  }
}

module attributes {stable_mosaic.version = 11 : i64} {
  func.func @_affine_relu_kernel(%arg0: i32, %arg1: memref<8x1024xbf16, #tpu.memory_space<vmem>>, %arg2: memref<1x1024xf32, #tpu.memory_space<vmem>>, %arg3: memref<1x1024xf32, #tpu.memory_space<vmem>>, %arg4: memref<8x1024xbf16, #tpu.memory_space<vmem>>) attributes {dimension_semantics = [#tpu.dimension_semantics<parallel>], iteration_bounds = array<i64: 1>, scalar_prefetch = 0 : i64, scratch_operands = 0 : i64, tpu.core_type = #tpu.core_type<tc>, window_params = [{transform_indices = @transform_0, window_bounds = array<i64: 8, 1024>}, {pipeline_mode = #tpu.pipeline_mode<synchronous>, transform_indices = @transform_1, window_bounds = array<i64: 1, 1024>}, {pipeline_mode = #tpu.pipeline_mode<synchronous>, transform_indices = @transform_2, window_bounds = array<i64: 1, 1024>}, {transform_indices = @transform_3, window_bounds = array<i64: 8, 1024>}]} {
    %c0 = arith.constant 0 : index
    %c0_0 = arith.constant 0 : index
    %0 = vector.load %arg1[%c0, %c0_0] : memref<8x1024xbf16, #tpu.memory_space<vmem>>, vector<8x1024xbf16>
    %1 = arith.extf %0 : vector<8x1024xbf16> to vector<8x1024xf32>
    %c0_1 = arith.constant 0 : index
    %c0_2 = arith.constant 0 : index
    %2 = vector.load %arg2[%c0_1, %c0_2] : memref<1x1024xf32, #tpu.memory_space<vmem>>, vector<1x1024xf32>
    %3 = vector.broadcast %2 : vector<1x1024xf32> to vector<8x1024xf32>
    %4 = arith.mulf %1, %3 : vector<8x1024xf32>
    %c0_3 = arith.constant 0 : index
    %c0_4 = arith.constant 0 : index
    %5 = vector.load %arg3[%c0_3, %c0_4] : memref<1x1024xf32, #tpu.memory_space<vmem>>, vector<1x1024xf32>
    %6 = vector.broadcast %5 : vector<1x1024xf32> to vector<8x1024xf32>
    %7 = arith.addf %4, %6 : vector<8x1024xf32>
    %cst = arith.constant 0.000000e+00 : f32
    %8 = vector.broadcast %cst : f32 to vector<8x1024xf32>
    %9 = arith.maximumf %7, %8 : vector<8x1024xf32>
    %10 = arith.truncf %9 : vector<8x1024xf32> to vector<8x1024xbf16>
    %c0_5 = arith.constant 0 : index
    %c0_6 = arith.constant 0 : index
    %11 = vector.load %arg4[%c0_5, %c0_6] : memref<8x1024xbf16, #tpu.memory_space<vmem>>, vector<8x1024xbf16>
    tpu.vector_store %arg4[%c0_5, %c0_6], %10 {strides = array<i32>} : memref<8x1024xbf16, #tpu.memory_space<vmem>>, vector<8x1024xbf16>,
    return
  }
  func.func @transform_0(%arg0: i32) -> (i32, i32) {
    %c0_i32 = arith.constant 0 : i32
    %c0_i32_0 = arith.constant 0 : i32
    return %arg0, %c0_i32 : i32, i32
  }
  func.func @transform_1(%arg0: i32) -> (i32, i32) {
    %c0_i32 = arith.constant 0 : i32
    %c0_i32_0 = arith.constant 0 : i32
    %c0_i32_1 = arith.constant 0 : i32
    return %c0_i32, %c0_i32_0 : i32, i32
  }
  func.func @transform_2(%arg0: i32) -> (i32, i32) {
    %c0_i32 = arith.constant 0 : i32
    %c0_i32_0 = arith.constant 0 : i32
    %c0_i32_1 = arith.constant 0 : i32
    return %c0_i32, %c0_i32_0 : i32, i32
  }
  func.func @transform_3(%arg0: i32) -> (i32, i32) {
    %c0_i32 = arith.constant 0 : i32
    %c0_i32_0 = arith.constant 0 : i32
    return %arg0, %c0_i32 : i32, i32
  }
}

module attributes {stable_mosaic.version = 11 : i64} {
  func.func @_convt_bn_matmul_kernel(%arg0: i32, %arg1: i32, %arg2: memref<56x256xbf16, #tpu.memory_space<vmem>>, %arg3: memref<256x128xbf16, #tpu.memory_space<vmem>>, %arg4: memref<56x4xf32, #tpu.memory_space<vmem>>, %arg5: memref<56x128xbf16, #tpu.memory_space<vmem>>, %arg6: memref<8x128xf32, #tpu.memory_space<vmem>>, %arg7: memref<8x128xf32, #tpu.memory_space<vmem>>, %arg8: memref<56x128xf32, #tpu.memory_space<vmem>>) attributes {dimension_semantics = [#tpu.dimension_semantics<parallel>, #tpu.dimension_semantics<arbitrary>], iteration_bounds = array<i64: 1, 1>, scalar_prefetch = 0 : i64, scratch_operands = 1 : i64, tpu.core_type = #tpu.core_type<tc>, window_params = [{transform_indices = @transform_0, window_bounds = array<i64: 56, 256>}, {transform_indices = @transform_1, window_bounds = array<i64: 256, 128>}, {transform_indices = @transform_2, window_bounds = array<i64: 56, 4>}, {transform_indices = @transform_3, window_bounds = array<i64: 56, 128>}, {transform_indices = @transform_4, window_bounds = array<i64: 8, 128>}, {transform_indices = @transform_5, window_bounds = array<i64: 8, 128>}]} {
    %c0_i32 = arith.constant 0 : i32
    %0 = arith.cmpi eq, %arg1, %c0_i32 : i32
    %1 = arith.extui %0 : i1 to i32
    %c0_i32_0 = arith.constant 0 : i32
    %2 = arith.cmpi ne, %1, %c0_i32_0 : i32
    scf.if %2 {
      %cst_10 = arith.constant 0.000000e+00 : f32
      %12 = vector.broadcast %cst_10 : f32 to vector<56x128xf32>
      %c0_11 = arith.constant 0 : index
      %c0_12 = arith.constant 0 : index
      %13 = vector.load %arg8[%c0_11, %c0_12] : memref<56x128xf32, #tpu.memory_space<vmem>>, vector<56x128xf32>
      tpu.vector_store %arg8[%c0_11, %c0_12], %12 {strides = array<i32>} : memref<56x128xf32, #tpu.memory_space<vmem>>, vector<56x128xf32>,
    } else {
    }
    %c0 = arith.constant 0 : index
    %c0_1 = arith.constant 0 : index
    %3 = vector.load %arg8[%c0, %c0_1] : memref<56x128xf32, #tpu.memory_space<vmem>>, vector<56x128xf32>
    %c0_2 = arith.constant 0 : index
    %c0_3 = arith.constant 0 : index
    %4 = vector.load %arg2[%c0_2, %c0_3] : memref<56x256xbf16, #tpu.memory_space<vmem>>, vector<56x256xbf16>
    %c0_4 = arith.constant 0 : index
    %c0_5 = arith.constant 0 : index
    %5 = vector.load %arg3[%c0_4, %c0_5] : memref<256x128xbf16, #tpu.memory_space<vmem>>, vector<256x128xbf16>
    %cst = arith.constant dense<0.000000e+00> : vector<56x128xf32>
    %6 = tpu.matmul %4, %5, %cst {dimension_numbers = #tpu.dot_dimension_numbers<[1], [0], [0], [1], [0, 0, 1, 1], [], []>} : vector<56x256xbf16>, vector<256x128xbf16>, vector<56x128xf32> -> vector<56x128xf32>
    %7 = arith.addf %3, %6 : vector<56x128xf32>
    %c0_6 = arith.constant 0 : index
    %c0_7 = arith.constant 0 : index
    %8 = vector.load %arg8[%c0_6, %c0_7] : memref<56x128xf32, #tpu.memory_space<vmem>>, vector<56x128xf32>
    tpu.vector_store %arg8[%c0_6, %c0_7], %7 {strides = array<i32>} : memref<56x128xf32, #tpu.memory_space<vmem>>, vector<56x128xf32>,
    %c0_i32_8 = arith.constant 0 : i32
    %9 = arith.cmpi eq, %arg1, %c0_i32_8 : i32
    %10 = arith.extui %9 : i1 to i32
    %c0_i32_9 = arith.constant 0 : i32
    %11 = arith.cmpi ne, %10, %c0_i32_9 : i32
    scf.if %11 {
      %c0_10 = arith.constant 0 : index
      %c0_11 = arith.constant 0 : index
      %12 = vector.load %arg8[%c0_10, %c0_11] : memref<56x128xf32, #tpu.memory_space<vmem>>, vector<56x128xf32>
      %13 = arith.truncf %12 : vector<56x128xf32> to vector<56x128xbf16>
      %c0_12 = arith.constant 0 : index
      %c0_13 = arith.constant 0 : index
      %14 = vector.load %arg5[%c0_12, %c0_13] : memref<56x128xbf16, #tpu.memory_space<vmem>>, vector<56x128xbf16>
      tpu.vector_store %arg5[%c0_12, %c0_13], %13 {strides = array<i32>} : memref<56x128xbf16, #tpu.memory_space<vmem>>, vector<56x128xbf16>,
      %15 = tpu.iota {dimensions = array<i32: 1>} : vector<1x128xi32>
      %c32_i32 = arith.constant 32 : i32
      %16 = vector.broadcast %c32_i32 : i32 to vector<1x128xi32>
      %17 = arith.cmpi slt, %15, %16 : vector<1x128xi32>
      %18 = arith.extui %17 : vector<1x128xi1> to vector<1x128xi32>
      %19 = arith.sitofp %18 : vector<1x128xi32> to vector<1x128xf32>
      %c32_i32_14 = arith.constant 32 : i32
      %20 = vector.broadcast %c32_i32_14 : i32 to vector<1x128xi32>
      %21 = arith.cmpi sge, %15, %20 : vector<1x128xi32>
      %c64_i32 = arith.constant 64 : i32
      %22 = vector.broadcast %c64_i32 : i32 to vector<1x128xi32>
      %23 = arith.cmpi slt, %15, %22 : vector<1x128xi32>
      %24 = arith.andi %21, %23 : vector<1x128xi1>
      %25 = arith.extui %24 : vector<1x128xi1> to vector<1x128xi32>
      %26 = arith.sitofp %25 : vector<1x128xi32> to vector<1x128xf32>
      %c64_i32_15 = arith.constant 64 : i32
      %27 = vector.broadcast %c64_i32_15 : i32 to vector<1x128xi32>
      %28 = arith.cmpi sge, %15, %27 : vector<1x128xi32>
      %c96_i32 = arith.constant 96 : i32
      %29 = vector.broadcast %c96_i32 : i32 to vector<1x128xi32>
      %30 = arith.cmpi slt, %15, %29 : vector<1x128xi32>
      %31 = arith.andi %28, %30 : vector<1x128xi1>
      %32 = arith.extui %31 : vector<1x128xi1> to vector<1x128xi32>
      %33 = arith.sitofp %32 : vector<1x128xi32> to vector<1x128xf32>
      %c96_i32_16 = arith.constant 96 : i32
      %34 = vector.broadcast %c96_i32_16 : i32 to vector<1x128xi32>
      %35 = arith.cmpi sge, %15, %34 : vector<1x128xi32>
      %36 = arith.extui %35 : vector<1x128xi1> to vector<1x128xi32>
      %37 = arith.sitofp %36 : vector<1x128xi32> to vector<1x128xf32>
      %c0_17 = arith.constant 0 : index
      %c0_18 = arith.constant 0 : index
      %38 = vector.load %arg4[%c0_17, %c0_18] : memref<56x4xf32, #tpu.memory_space<vmem>>, vector<56x1xf32>
      %39 = vector.broadcast %38 : vector<56x1xf32> to vector<56x128xf32>
      %40 = vector.broadcast %19 : vector<1x128xf32> to vector<56x128xf32>
      %41 = arith.mulf %39, %40 : vector<56x128xf32>
      %c0_19 = arith.constant 0 : index
      %c1 = arith.constant 1 : index
      %42 = vector.load %arg4[%c0_19, %c1] : memref<56x4xf32, #tpu.memory_space<vmem>>, vector<56x1xf32>
      %43 = vector.broadcast %42 : vector<56x1xf32> to vector<56x128xf32>
      %44 = vector.broadcast %26 : vector<1x128xf32> to vector<56x128xf32>
      %45 = arith.mulf %43, %44 : vector<56x128xf32>
      %46 = arith.addf %41, %45 : vector<56x128xf32>
      %c0_20 = arith.constant 0 : index
      %c2 = arith.constant 2 : index
      %47 = vector.load %arg4[%c0_20, %c2] : memref<56x4xf32, #tpu.memory_space<vmem>>, vector<56x1xf32>
      %48 = vector.broadcast %47 : vector<56x1xf32> to vector<56x128xf32>
      %49 = vector.broadcast %33 : vector<1x128xf32> to vector<56x128xf32>
      %50 = arith.mulf %48, %49 : vector<56x128xf32>
      %51 = arith.addf %46, %50 : vector<56x128xf32>
      %c0_21 = arith.constant 0 : index
      %c3 = arith.constant 3 : index
      %52 = vector.load %arg4[%c0_21, %c3] : memref<56x4xf32, #tpu.memory_space<vmem>>, vector<56x1xf32>
      %53 = vector.broadcast %52 : vector<56x1xf32> to vector<56x128xf32>
      %54 = vector.broadcast %37 : vector<1x128xf32> to vector<56x128xf32>
      %55 = arith.mulf %53, %54 : vector<56x128xf32>
      %56 = arith.addf %51, %55 : vector<56x128xf32>
      %57 = arith.mulf %12, %56 : vector<56x128xf32>
      %cst_22 = arith.constant dense<0.000000e+00> : vector<128xf32>
      %58 = vector.multi_reduction <add>, %57, %cst_22 [0] : vector<56x128xf32> to vector<128xf32>
      %59 = vector.shape_cast %58 : vector<128xf32> to vector<1x128xf32>
      %60 = arith.mulf %57, %12 : vector<56x128xf32>
      %cst_23 = arith.constant dense<0.000000e+00> : vector<128xf32>
      %61 = vector.multi_reduction <add>, %60, %cst_23 [0] : vector<56x128xf32> to vector<128xf32>
      %62 = vector.shape_cast %61 : vector<128xf32> to vector<1x128xf32>
      %63 = tpu.iota {dimensions = array<i32: 0>} : vector<8x128xi32>
      %c0_i32_24 = arith.constant 0 : i32
      %64 = vector.broadcast %c0_i32_24 : i32 to vector<8x128xi32>
      %65 = arith.cmpi eq, %63, %64 : vector<8x128xi32>
      %66 = vector.shape_cast %59 : vector<1x128xf32> to vector<1x128xf32>
      %67 = vector.broadcast %66 : vector<1x128xf32> to vector<8x128xf32>
      %cst_25 = arith.constant 0.000000e+00 : f32
      %68 = vector.broadcast %cst_25 : f32 to vector<8x128xf32>
      %69 = arith.select %65, %67, %68 : vector<8x128xi1>, vector<8x128xf32>
      %c0_26 = arith.constant 0 : index
      %c0_27 = arith.constant 0 : index
      %70 = vector.load %arg6[%c0_26, %c0_27] : memref<8x128xf32, #tpu.memory_space<vmem>>, vector<8x128xf32>
      tpu.vector_store %arg6[%c0_26, %c0_27], %69 {strides = array<i32>} : memref<8x128xf32, #tpu.memory_space<vmem>>, vector<8x128xf32>,
      %c0_i32_28 = arith.constant 0 : i32
      %71 = vector.broadcast %c0_i32_28 : i32 to vector<8x128xi32>
      %72 = arith.cmpi eq, %63, %71 : vector<8x128xi32>
      %73 = vector.shape_cast %62 : vector<1x128xf32> to vector<1x128xf32>
      %74 = vector.broadcast %73 : vector<1x128xf32> to vector<8x128xf32>
      %cst_29 = arith.constant 0.000000e+00 : f32
      %75 = vector.broadcast %cst_29 : f32 to vector<8x128xf32>
      %76 = arith.select %72, %74, %75 : vector<8x128xi1>, vector<8x128xf32>
      %c0_30 = arith.constant 0 : index
      %c0_31 = arith.constant 0 : index
      %77 = vector.load %arg7[%c0_30, %c0_31] : memref<8x128xf32, #tpu.memory_space<vmem>>, vector<8x128xf32>
      tpu.vector_store %arg7[%c0_30, %c0_31], %76 {strides = array<i32>} : memref<8x128xf32, #tpu.memory_space<vmem>>, vector<8x128xf32>,
    } else {
    }
    return
  }
  func.func @transform_0(%arg0: i32, %arg1: i32) -> (i32, i32) {
    %c0_i32 = arith.constant 0 : i32
    return %arg0, %arg1 : i32, i32
  }
  func.func @transform_1(%arg0: i32, %arg1: i32) -> (i32, i32) {
    %c0_i32 = arith.constant 0 : i32
    %c0_i32_0 = arith.constant 0 : i32
    return %arg1, %c0_i32 : i32, i32
  }
  func.func @transform_2(%arg0: i32, %arg1: i32) -> (i32, i32) {
    %c0_i32 = arith.constant 0 : i32
    %c0_i32_0 = arith.constant 0 : i32
    return %arg0, %c0_i32 : i32, i32
  }
  func.func @transform_3(%arg0: i32, %arg1: i32) -> (i32, i32) {
    %c0_i32 = arith.constant 0 : i32
    %c0_i32_0 = arith.constant 0 : i32
    return %arg0, %c0_i32 : i32, i32
  }
  func.func @transform_4(%arg0: i32, %arg1: i32) -> (i32, i32) {
    %c0_i32 = arith.constant 0 : i32
    %c0_i32_0 = arith.constant 0 : i32
    return %arg0, %c0_i32 : i32, i32
  }
  func.func @transform_5(%arg0: i32, %arg1: i32) -> (i32, i32) {
    %c0_i32 = arith.constant 0 : i32
    %c0_i32_0 = arith.constant 0 : i32
    return %arg0, %c0_i32 : i32, i32
  }
}

module attributes {stable_mosaic.version = 11 : i64} {
  func.func @_affine_relu_kernel(%arg0: i32, %arg1: memref<56x128xbf16, #tpu.memory_space<vmem>>, %arg2: memref<1x128xf32, #tpu.memory_space<vmem>>, %arg3: memref<1x128xf32, #tpu.memory_space<vmem>>, %arg4: memref<56x128xbf16, #tpu.memory_space<vmem>>) attributes {dimension_semantics = [#tpu.dimension_semantics<parallel>], iteration_bounds = array<i64: 1>, scalar_prefetch = 0 : i64, scratch_operands = 0 : i64, tpu.core_type = #tpu.core_type<tc>, window_params = [{transform_indices = @transform_0, window_bounds = array<i64: 56, 128>}, {pipeline_mode = #tpu.pipeline_mode<synchronous>, transform_indices = @transform_1, window_bounds = array<i64: 1, 128>}, {pipeline_mode = #tpu.pipeline_mode<synchronous>, transform_indices = @transform_2, window_bounds = array<i64: 1, 128>}, {transform_indices = @transform_3, window_bounds = array<i64: 56, 128>}]} {
    %c0 = arith.constant 0 : index
    %c0_0 = arith.constant 0 : index
    %0 = vector.load %arg1[%c0, %c0_0] : memref<56x128xbf16, #tpu.memory_space<vmem>>, vector<56x128xbf16>
    %1 = arith.extf %0 : vector<56x128xbf16> to vector<56x128xf32>
    %c0_1 = arith.constant 0 : index
    %c0_2 = arith.constant 0 : index
    %2 = vector.load %arg2[%c0_1, %c0_2] : memref<1x128xf32, #tpu.memory_space<vmem>>, vector<1x128xf32>
    %3 = vector.broadcast %2 : vector<1x128xf32> to vector<56x128xf32>
    %4 = arith.mulf %1, %3 : vector<56x128xf32>
    %c0_3 = arith.constant 0 : index
    %c0_4 = arith.constant 0 : index
    %5 = vector.load %arg3[%c0_3, %c0_4] : memref<1x128xf32, #tpu.memory_space<vmem>>, vector<1x128xf32>
    %6 = vector.broadcast %5 : vector<1x128xf32> to vector<56x128xf32>
    %7 = arith.addf %4, %6 : vector<56x128xf32>
    %cst = arith.constant 0.000000e+00 : f32
    %8 = vector.broadcast %cst : f32 to vector<56x128xf32>
    %9 = arith.maximumf %7, %8 : vector<56x128xf32>
    %10 = arith.truncf %9 : vector<56x128xf32> to vector<56x128xbf16>
    %c0_5 = arith.constant 0 : index
    %c0_6 = arith.constant 0 : index
    %11 = vector.load %arg4[%c0_5, %c0_6] : memref<56x128xbf16, #tpu.memory_space<vmem>>, vector<56x128xbf16>
    tpu.vector_store %arg4[%c0_5, %c0_6], %10 {strides = array<i32>} : memref<56x128xbf16, #tpu.memory_space<vmem>>, vector<56x128xbf16>,
    return
  }
  func.func @transform_0(%arg0: i32) -> (i32, i32) {
    %c0_i32 = arith.constant 0 : i32
    %c0_i32_0 = arith.constant 0 : i32
    return %arg0, %c0_i32 : i32, i32
  }
  func.func @transform_1(%arg0: i32) -> (i32, i32) {
    %c0_i32 = arith.constant 0 : i32
    %c0_i32_0 = arith.constant 0 : i32
    %c0_i32_1 = arith.constant 0 : i32
    return %c0_i32, %c0_i32_0 : i32, i32
  }
  func.func @transform_2(%arg0: i32) -> (i32, i32) {
    %c0_i32 = arith.constant 0 : i32
    %c0_i32_0 = arith.constant 0 : i32
    %c0_i32_1 = arith.constant 0 : i32
    return %c0_i32, %c0_i32_0 : i32, i32
  }
  func.func @transform_3(%arg0: i32) -> (i32, i32) {
    %c0_i32 = arith.constant 0 : i32
    %c0_i32_0 = arith.constant 0 : i32
    return %arg0, %c0_i32 : i32, i32
  }
}

module attributes {stable_mosaic.version = 11 : i64} {
  func.func @_convt_bn_matmul_kernel(%arg0: i32, %arg1: i32, %arg2: memref<168x128xbf16, #tpu.memory_space<vmem>>, %arg3: memref<128x64xbf16, #tpu.memory_space<vmem>>, %arg4: memref<168x4xf32, #tpu.memory_space<vmem>>, %arg5: memref<168x64xbf16, #tpu.memory_space<vmem>>, %arg6: memref<8x64xf32, #tpu.memory_space<vmem>>, %arg7: memref<8x64xf32, #tpu.memory_space<vmem>>, %arg8: memref<168x64xf32, #tpu.memory_space<vmem>>) attributes {dimension_semantics = [#tpu.dimension_semantics<parallel>, #tpu.dimension_semantics<arbitrary>], iteration_bounds = array<i64: 1, 1>, scalar_prefetch = 0 : i64, scratch_operands = 1 : i64, tpu.core_type = #tpu.core_type<tc>, window_params = [{transform_indices = @transform_0, window_bounds = array<i64: 168, 128>}, {transform_indices = @transform_1, window_bounds = array<i64: 128, 64>}, {transform_indices = @transform_2, window_bounds = array<i64: 168, 4>}, {transform_indices = @transform_3, window_bounds = array<i64: 168, 64>}, {transform_indices = @transform_4, window_bounds = array<i64: 8, 64>}, {transform_indices = @transform_5, window_bounds = array<i64: 8, 64>}]} {
    %c0_i32 = arith.constant 0 : i32
    %0 = arith.cmpi eq, %arg1, %c0_i32 : i32
    %1 = arith.extui %0 : i1 to i32
    %c0_i32_0 = arith.constant 0 : i32
    %2 = arith.cmpi ne, %1, %c0_i32_0 : i32
    scf.if %2 {
      %cst_10 = arith.constant 0.000000e+00 : f32
      %12 = vector.broadcast %cst_10 : f32 to vector<168x64xf32>
      %c0_11 = arith.constant 0 : index
      %c0_12 = arith.constant 0 : index
      %13 = vector.load %arg8[%c0_11, %c0_12] : memref<168x64xf32, #tpu.memory_space<vmem>>, vector<168x64xf32>
      tpu.vector_store %arg8[%c0_11, %c0_12], %12 {strides = array<i32>} : memref<168x64xf32, #tpu.memory_space<vmem>>, vector<168x64xf32>,
    } else {
    }
    %c0 = arith.constant 0 : index
    %c0_1 = arith.constant 0 : index
    %3 = vector.load %arg8[%c0, %c0_1] : memref<168x64xf32, #tpu.memory_space<vmem>>, vector<168x64xf32>
    %c0_2 = arith.constant 0 : index
    %c0_3 = arith.constant 0 : index
    %4 = vector.load %arg2[%c0_2, %c0_3] : memref<168x128xbf16, #tpu.memory_space<vmem>>, vector<168x128xbf16>
    %c0_4 = arith.constant 0 : index
    %c0_5 = arith.constant 0 : index
    %5 = vector.load %arg3[%c0_4, %c0_5] : memref<128x64xbf16, #tpu.memory_space<vmem>>, vector<128x64xbf16>
    %cst = arith.constant dense<0.000000e+00> : vector<168x64xf32>
    %6 = tpu.matmul %4, %5, %cst {dimension_numbers = #tpu.dot_dimension_numbers<[1], [0], [0], [1], [0, 0, 1, 1], [], []>} : vector<168x128xbf16>, vector<128x64xbf16>, vector<168x64xf32> -> vector<168x64xf32>
    %7 = arith.addf %3, %6 : vector<168x64xf32>
    %c0_6 = arith.constant 0 : index
    %c0_7 = arith.constant 0 : index
    %8 = vector.load %arg8[%c0_6, %c0_7] : memref<168x64xf32, #tpu.memory_space<vmem>>, vector<168x64xf32>
    tpu.vector_store %arg8[%c0_6, %c0_7], %7 {strides = array<i32>} : memref<168x64xf32, #tpu.memory_space<vmem>>, vector<168x64xf32>,
    %c0_i32_8 = arith.constant 0 : i32
    %9 = arith.cmpi eq, %arg1, %c0_i32_8 : i32
    %10 = arith.extui %9 : i1 to i32
    %c0_i32_9 = arith.constant 0 : i32
    %11 = arith.cmpi ne, %10, %c0_i32_9 : i32
    scf.if %11 {
      %c0_10 = arith.constant 0 : index
      %c0_11 = arith.constant 0 : index
      %12 = vector.load %arg8[%c0_10, %c0_11] : memref<168x64xf32, #tpu.memory_space<vmem>>, vector<168x64xf32>
      %13 = arith.truncf %12 : vector<168x64xf32> to vector<168x64xbf16>
      %c0_12 = arith.constant 0 : index
      %c0_13 = arith.constant 0 : index
      %14 = vector.load %arg5[%c0_12, %c0_13] : memref<168x64xbf16, #tpu.memory_space<vmem>>, vector<168x64xbf16>
      tpu.vector_store %arg5[%c0_12, %c0_13], %13 {strides = array<i32>} : memref<168x64xbf16, #tpu.memory_space<vmem>>, vector<168x64xbf16>,
      %15 = tpu.iota {dimensions = array<i32: 1>} : vector<1x64xi32>
      %c16_i32 = arith.constant 16 : i32
      %16 = vector.broadcast %c16_i32 : i32 to vector<1x64xi32>
      %17 = arith.cmpi slt, %15, %16 : vector<1x64xi32>
      %18 = arith.extui %17 : vector<1x64xi1> to vector<1x64xi32>
      %19 = arith.sitofp %18 : vector<1x64xi32> to vector<1x64xf32>
      %c16_i32_14 = arith.constant 16 : i32
      %20 = vector.broadcast %c16_i32_14 : i32 to vector<1x64xi32>
      %21 = arith.cmpi sge, %15, %20 : vector<1x64xi32>
      %c32_i32 = arith.constant 32 : i32
      %22 = vector.broadcast %c32_i32 : i32 to vector<1x64xi32>
      %23 = arith.cmpi slt, %15, %22 : vector<1x64xi32>
      %24 = arith.andi %21, %23 : vector<1x64xi1>
      %25 = arith.extui %24 : vector<1x64xi1> to vector<1x64xi32>
      %26 = arith.sitofp %25 : vector<1x64xi32> to vector<1x64xf32>
      %c32_i32_15 = arith.constant 32 : i32
      %27 = vector.broadcast %c32_i32_15 : i32 to vector<1x64xi32>
      %28 = arith.cmpi sge, %15, %27 : vector<1x64xi32>
      %c48_i32 = arith.constant 48 : i32
      %29 = vector.broadcast %c48_i32 : i32 to vector<1x64xi32>
      %30 = arith.cmpi slt, %15, %29 : vector<1x64xi32>
      %31 = arith.andi %28, %30 : vector<1x64xi1>
      %32 = arith.extui %31 : vector<1x64xi1> to vector<1x64xi32>
      %33 = arith.sitofp %32 : vector<1x64xi32> to vector<1x64xf32>
      %c48_i32_16 = arith.constant 48 : i32
      %34 = vector.broadcast %c48_i32_16 : i32 to vector<1x64xi32>
      %35 = arith.cmpi sge, %15, %34 : vector<1x64xi32>
      %36 = arith.extui %35 : vector<1x64xi1> to vector<1x64xi32>
      %37 = arith.sitofp %36 : vector<1x64xi32> to vector<1x64xf32>
      %c0_17 = arith.constant 0 : index
      %c0_18 = arith.constant 0 : index
      %38 = vector.load %arg4[%c0_17, %c0_18] : memref<168x4xf32, #tpu.memory_space<vmem>>, vector<168x1xf32>
      %39 = vector.broadcast %38 : vector<168x1xf32> to vector<168x64xf32>
      %40 = vector.broadcast %19 : vector<1x64xf32> to vector<168x64xf32>
      %41 = arith.mulf %39, %40 : vector<168x64xf32>
      %c0_19 = arith.constant 0 : index
      %c1 = arith.constant 1 : index
      %42 = vector.load %arg4[%c0_19, %c1] : memref<168x4xf32, #tpu.memory_space<vmem>>, vector<168x1xf32>
      %43 = vector.broadcast %42 : vector<168x1xf32> to vector<168x64xf32>
      %44 = vector.broadcast %26 : vector<1x64xf32> to vector<168x64xf32>
      %45 = arith.mulf %43, %44 : vector<168x64xf32>
      %46 = arith.addf %41, %45 : vector<168x64xf32>
      %c0_20 = arith.constant 0 : index
      %c2 = arith.constant 2 : index
      %47 = vector.load %arg4[%c0_20, %c2] : memref<168x4xf32, #tpu.memory_space<vmem>>, vector<168x1xf32>
      %48 = vector.broadcast %47 : vector<168x1xf32> to vector<168x64xf32>
      %49 = vector.broadcast %33 : vector<1x64xf32> to vector<168x64xf32>
      %50 = arith.mulf %48, %49 : vector<168x64xf32>
      %51 = arith.addf %46, %50 : vector<168x64xf32>
      %c0_21 = arith.constant 0 : index
      %c3 = arith.constant 3 : index
      %52 = vector.load %arg4[%c0_21, %c3] : memref<168x4xf32, #tpu.memory_space<vmem>>, vector<168x1xf32>
      %53 = vector.broadcast %52 : vector<168x1xf32> to vector<168x64xf32>
      %54 = vector.broadcast %37 : vector<1x64xf32> to vector<168x64xf32>
      %55 = arith.mulf %53, %54 : vector<168x64xf32>
      %56 = arith.addf %51, %55 : vector<168x64xf32>
      %57 = arith.mulf %12, %56 : vector<168x64xf32>
      %cst_22 = arith.constant dense<0.000000e+00> : vector<64xf32>
      %58 = vector.multi_reduction <add>, %57, %cst_22 [0] : vector<168x64xf32> to vector<64xf32>
      %59 = vector.shape_cast %58 : vector<64xf32> to vector<1x64xf32>
      %60 = arith.mulf %57, %12 : vector<168x64xf32>
      %cst_23 = arith.constant dense<0.000000e+00> : vector<64xf32>
      %61 = vector.multi_reduction <add>, %60, %cst_23 [0] : vector<168x64xf32> to vector<64xf32>
      %62 = vector.shape_cast %61 : vector<64xf32> to vector<1x64xf32>
      %63 = tpu.iota {dimensions = array<i32: 0>} : vector<8x64xi32>
      %c0_i32_24 = arith.constant 0 : i32
      %64 = vector.broadcast %c0_i32_24 : i32 to vector<8x64xi32>
      %65 = arith.cmpi eq, %63, %64 : vector<8x64xi32>
      %66 = vector.shape_cast %59 : vector<1x64xf32> to vector<1x64xf32>
      %67 = vector.broadcast %66 : vector<1x64xf32> to vector<8x64xf32>
      %cst_25 = arith.constant 0.000000e+00 : f32
      %68 = vector.broadcast %cst_25 : f32 to vector<8x64xf32>
      %69 = arith.select %65, %67, %68 : vector<8x64xi1>, vector<8x64xf32>
      %c0_26 = arith.constant 0 : index
      %c0_27 = arith.constant 0 : index
      %70 = vector.load %arg6[%c0_26, %c0_27] : memref<8x64xf32, #tpu.memory_space<vmem>>, vector<8x64xf32>
      tpu.vector_store %arg6[%c0_26, %c0_27], %69 {strides = array<i32>} : memref<8x64xf32, #tpu.memory_space<vmem>>, vector<8x64xf32>,
      %c0_i32_28 = arith.constant 0 : i32
      %71 = vector.broadcast %c0_i32_28 : i32 to vector<8x64xi32>
      %72 = arith.cmpi eq, %63, %71 : vector<8x64xi32>
      %73 = vector.shape_cast %62 : vector<1x64xf32> to vector<1x64xf32>
      %74 = vector.broadcast %73 : vector<1x64xf32> to vector<8x64xf32>
      %cst_29 = arith.constant 0.000000e+00 : f32
      %75 = vector.broadcast %cst_29 : f32 to vector<8x64xf32>
      %76 = arith.select %72, %74, %75 : vector<8x64xi1>, vector<8x64xf32>
      %c0_30 = arith.constant 0 : index
      %c0_31 = arith.constant 0 : index
      %77 = vector.load %arg7[%c0_30, %c0_31] : memref<8x64xf32, #tpu.memory_space<vmem>>, vector<8x64xf32>
      tpu.vector_store %arg7[%c0_30, %c0_31], %76 {strides = array<i32>} : memref<8x64xf32, #tpu.memory_space<vmem>>, vector<8x64xf32>,
    } else {
    }
    return
  }
  func.func @transform_0(%arg0: i32, %arg1: i32) -> (i32, i32) {
    %c0_i32 = arith.constant 0 : i32
    return %arg0, %arg1 : i32, i32
  }
  func.func @transform_1(%arg0: i32, %arg1: i32) -> (i32, i32) {
    %c0_i32 = arith.constant 0 : i32
    %c0_i32_0 = arith.constant 0 : i32
    return %arg1, %c0_i32 : i32, i32
  }
  func.func @transform_2(%arg0: i32, %arg1: i32) -> (i32, i32) {
    %c0_i32 = arith.constant 0 : i32
    %c0_i32_0 = arith.constant 0 : i32
    return %arg0, %c0_i32 : i32, i32
  }
  func.func @transform_3(%arg0: i32, %arg1: i32) -> (i32, i32) {
    %c0_i32 = arith.constant 0 : i32
    %c0_i32_0 = arith.constant 0 : i32
    return %arg0, %c0_i32 : i32, i32
  }
  func.func @transform_4(%arg0: i32, %arg1: i32) -> (i32, i32) {
    %c0_i32 = arith.constant 0 : i32
    %c0_i32_0 = arith.constant 0 : i32
    return %arg0, %c0_i32 : i32, i32
  }
  func.func @transform_5(%arg0: i32, %arg1: i32) -> (i32, i32) {
    %c0_i32 = arith.constant 0 : i32
    %c0_i32_0 = arith.constant 0 : i32
    return %arg0, %c0_i32 : i32, i32
  }
}

module attributes {stable_mosaic.version = 11 : i64} {
  func.func @_affine_relu_kernel(%arg0: i32, %arg1: memref<168x64xbf16, #tpu.memory_space<vmem>>, %arg2: memref<1x64xf32, #tpu.memory_space<vmem>>, %arg3: memref<1x64xf32, #tpu.memory_space<vmem>>, %arg4: memref<168x64xbf16, #tpu.memory_space<vmem>>) attributes {dimension_semantics = [#tpu.dimension_semantics<parallel>], iteration_bounds = array<i64: 1>, scalar_prefetch = 0 : i64, scratch_operands = 0 : i64, tpu.core_type = #tpu.core_type<tc>, window_params = [{transform_indices = @transform_0, window_bounds = array<i64: 168, 64>}, {pipeline_mode = #tpu.pipeline_mode<synchronous>, transform_indices = @transform_1, window_bounds = array<i64: 1, 64>}, {pipeline_mode = #tpu.pipeline_mode<synchronous>, transform_indices = @transform_2, window_bounds = array<i64: 1, 64>}, {transform_indices = @transform_3, window_bounds = array<i64: 168, 64>}]} {
    %c0 = arith.constant 0 : index
    %c0_0 = arith.constant 0 : index
    %0 = vector.load %arg1[%c0, %c0_0] : memref<168x64xbf16, #tpu.memory_space<vmem>>, vector<168x64xbf16>
    %1 = arith.extf %0 : vector<168x64xbf16> to vector<168x64xf32>
    %c0_1 = arith.constant 0 : index
    %c0_2 = arith.constant 0 : index
    %2 = vector.load %arg2[%c0_1, %c0_2] : memref<1x64xf32, #tpu.memory_space<vmem>>, vector<1x64xf32>
    %3 = vector.broadcast %2 : vector<1x64xf32> to vector<168x64xf32>
    %4 = arith.mulf %1, %3 : vector<168x64xf32>
    %c0_3 = arith.constant 0 : index
    %c0_4 = arith.constant 0 : index
    %5 = vector.load %arg3[%c0_3, %c0_4] : memref<1x64xf32, #tpu.memory_space<vmem>>, vector<1x64xf32>
    %6 = vector.broadcast %5 : vector<1x64xf32> to vector<168x64xf32>
    %7 = arith.addf %4, %6 : vector<168x64xf32>
    %cst = arith.constant 0.000000e+00 : f32
    %8 = vector.broadcast %cst : f32 to vector<168x64xf32>
    %9 = arith.maximumf %7, %8 : vector<168x64xf32>
    %10 = arith.truncf %9 : vector<168x64xf32> to vector<168x64xbf16>
    %c0_5 = arith.constant 0 : index
    %c0_6 = arith.constant 0 : index
    %11 = vector.load %arg4[%c0_5, %c0_6] : memref<168x64xbf16, #tpu.memory_space<vmem>>, vector<168x64xbf16>
    tpu.vector_store %arg4[%c0_5, %c0_6], %10 {strides = array<i32>} : memref<168x64xbf16, #tpu.memory_space<vmem>>, vector<168x64xbf16>,
    return
  }
  func.func @transform_0(%arg0: i32) -> (i32, i32) {
    %c0_i32 = arith.constant 0 : i32
    %c0_i32_0 = arith.constant 0 : i32
    return %arg0, %c0_i32 : i32, i32
  }
  func.func @transform_1(%arg0: i32) -> (i32, i32) {
    %c0_i32 = arith.constant 0 : i32
    %c0_i32_0 = arith.constant 0 : i32
    %c0_i32_1 = arith.constant 0 : i32
    return %c0_i32, %c0_i32_0 : i32, i32
  }
  func.func @transform_2(%arg0: i32) -> (i32, i32) {
    %c0_i32 = arith.constant 0 : i32
    %c0_i32_0 = arith.constant 0 : i32
    %c0_i32_1 = arith.constant 0 : i32
    return %c0_i32, %c0_i32_0 : i32, i32
  }
  func.func @transform_3(%arg0: i32) -> (i32, i32) {
    %c0_i32 = arith.constant 0 : i32
    %c0_i32_0 = arith.constant 0 : i32
    return %arg0, %c0_i32 : i32, i32
  }
}

module attributes {stable_mosaic.version = 11 : i64} {
  func.func @_convt_bn_matmul_kernel(%arg0: i32, %arg1: i32, %arg2: memref<512x64xbf16, #tpu.memory_space<vmem>>, %arg3: memref<64x32xbf16, #tpu.memory_space<vmem>>, %arg4: memref<512x4xf32, #tpu.memory_space<vmem>>, %arg5: memref<512x32xbf16, #tpu.memory_space<vmem>>, %arg6: memref<8x32xf32, #tpu.memory_space<vmem>>, %arg7: memref<8x32xf32, #tpu.memory_space<vmem>>, %arg8: memref<512x32xf32, #tpu.memory_space<vmem>>) attributes {dimension_semantics = [#tpu.dimension_semantics<parallel>, #tpu.dimension_semantics<arbitrary>], iteration_bounds = array<i64: 2, 1>, scalar_prefetch = 0 : i64, scratch_operands = 1 : i64, tpu.core_type = #tpu.core_type<tc>, window_params = [{transform_indices = @transform_0, window_bounds = array<i64: 512, 64>}, {transform_indices = @transform_1, window_bounds = array<i64: 64, 32>}, {transform_indices = @transform_2, window_bounds = array<i64: 512, 4>}, {transform_indices = @transform_3, window_bounds = array<i64: 512, 32>}, {transform_indices = @transform_4, window_bounds = array<i64: 8, 32>}, {transform_indices = @transform_5, window_bounds = array<i64: 8, 32>}]} {
    %c0_i32 = arith.constant 0 : i32
    %0 = arith.cmpi eq, %arg1, %c0_i32 : i32
    %1 = arith.extui %0 : i1 to i32
    %c0_i32_0 = arith.constant 0 : i32
    %2 = arith.cmpi ne, %1, %c0_i32_0 : i32
    scf.if %2 {
      %cst_10 = arith.constant 0.000000e+00 : f32
      %12 = vector.broadcast %cst_10 : f32 to vector<512x32xf32>
      %c0_11 = arith.constant 0 : index
      %c0_12 = arith.constant 0 : index
      %13 = vector.load %arg8[%c0_11, %c0_12] : memref<512x32xf32, #tpu.memory_space<vmem>>, vector<512x32xf32>
      tpu.vector_store %arg8[%c0_11, %c0_12], %12 {strides = array<i32>} : memref<512x32xf32, #tpu.memory_space<vmem>>, vector<512x32xf32>,
    } else {
    }
    %c0 = arith.constant 0 : index
    %c0_1 = arith.constant 0 : index
    %3 = vector.load %arg8[%c0, %c0_1] : memref<512x32xf32, #tpu.memory_space<vmem>>, vector<512x32xf32>
    %c0_2 = arith.constant 0 : index
    %c0_3 = arith.constant 0 : index
    %4 = vector.load %arg2[%c0_2, %c0_3] : memref<512x64xbf16, #tpu.memory_space<vmem>>, vector<512x64xbf16>
    %c0_4 = arith.constant 0 : index
    %c0_5 = arith.constant 0 : index
    %5 = vector.load %arg3[%c0_4, %c0_5] : memref<64x32xbf16, #tpu.memory_space<vmem>>, vector<64x32xbf16>
    %cst = arith.constant dense<0.000000e+00> : vector<512x32xf32>
    %6 = tpu.matmul %4, %5, %cst {dimension_numbers = #tpu.dot_dimension_numbers<[1], [0], [0], [1], [0, 0, 1, 1], [], []>} : vector<512x64xbf16>, vector<64x32xbf16>, vector<512x32xf32> -> vector<512x32xf32>
    %7 = arith.addf %3, %6 : vector<512x32xf32>
    %c0_6 = arith.constant 0 : index
    %c0_7 = arith.constant 0 : index
    %8 = vector.load %arg8[%c0_6, %c0_7] : memref<512x32xf32, #tpu.memory_space<vmem>>, vector<512x32xf32>
    tpu.vector_store %arg8[%c0_6, %c0_7], %7 {strides = array<i32>} : memref<512x32xf32, #tpu.memory_space<vmem>>, vector<512x32xf32>,
    %c0_i32_8 = arith.constant 0 : i32
    %9 = arith.cmpi eq, %arg1, %c0_i32_8 : i32
    %10 = arith.extui %9 : i1 to i32
    %c0_i32_9 = arith.constant 0 : i32
    %11 = arith.cmpi ne, %10, %c0_i32_9 : i32
    scf.if %11 {
      %c0_10 = arith.constant 0 : index
      %c0_11 = arith.constant 0 : index
      %12 = vector.load %arg8[%c0_10, %c0_11] : memref<512x32xf32, #tpu.memory_space<vmem>>, vector<512x32xf32>
      %13 = arith.truncf %12 : vector<512x32xf32> to vector<512x32xbf16>
      %c0_12 = arith.constant 0 : index
      %c0_13 = arith.constant 0 : index
      %14 = vector.load %arg5[%c0_12, %c0_13] : memref<512x32xbf16, #tpu.memory_space<vmem>>, vector<512x32xbf16>
      tpu.vector_store %arg5[%c0_12, %c0_13], %13 {strides = array<i32>} : memref<512x32xbf16, #tpu.memory_space<vmem>>, vector<512x32xbf16>,
      %15 = tpu.iota {dimensions = array<i32: 1>} : vector<1x32xi32>
      %c8_i32 = arith.constant 8 : i32
      %16 = vector.broadcast %c8_i32 : i32 to vector<1x32xi32>
      %17 = arith.cmpi slt, %15, %16 : vector<1x32xi32>
      %18 = arith.extui %17 : vector<1x32xi1> to vector<1x32xi32>
      %19 = arith.sitofp %18 : vector<1x32xi32> to vector<1x32xf32>
      %c8_i32_14 = arith.constant 8 : i32
      %20 = vector.broadcast %c8_i32_14 : i32 to vector<1x32xi32>
      %21 = arith.cmpi sge, %15, %20 : vector<1x32xi32>
      %c16_i32 = arith.constant 16 : i32
      %22 = vector.broadcast %c16_i32 : i32 to vector<1x32xi32>
      %23 = arith.cmpi slt, %15, %22 : vector<1x32xi32>
      %24 = arith.andi %21, %23 : vector<1x32xi1>
      %25 = arith.extui %24 : vector<1x32xi1> to vector<1x32xi32>
      %26 = arith.sitofp %25 : vector<1x32xi32> to vector<1x32xf32>
      %c16_i32_15 = arith.constant 16 : i32
      %27 = vector.broadcast %c16_i32_15 : i32 to vector<1x32xi32>
      %28 = arith.cmpi sge, %15, %27 : vector<1x32xi32>
      %c24_i32 = arith.constant 24 : i32
      %29 = vector.broadcast %c24_i32 : i32 to vector<1x32xi32>
      %30 = arith.cmpi slt, %15, %29 : vector<1x32xi32>
      %31 = arith.andi %28, %30 : vector<1x32xi1>
      %32 = arith.extui %31 : vector<1x32xi1> to vector<1x32xi32>
      %33 = arith.sitofp %32 : vector<1x32xi32> to vector<1x32xf32>
      %c24_i32_16 = arith.constant 24 : i32
      %34 = vector.broadcast %c24_i32_16 : i32 to vector<1x32xi32>
      %35 = arith.cmpi sge, %15, %34 : vector<1x32xi32>
      %36 = arith.extui %35 : vector<1x32xi1> to vector<1x32xi32>
      %37 = arith.sitofp %36 : vector<1x32xi32> to vector<1x32xf32>
      %c0_17 = arith.constant 0 : index
      %c0_18 = arith.constant 0 : index
      %38 = vector.load %arg4[%c0_17, %c0_18] : memref<512x4xf32, #tpu.memory_space<vmem>>, vector<512x1xf32>
      %39 = vector.broadcast %38 : vector<512x1xf32> to vector<512x32xf32>
      %40 = vector.broadcast %19 : vector<1x32xf32> to vector<512x32xf32>
      %41 = arith.mulf %39, %40 : vector<512x32xf32>
      %c0_19 = arith.constant 0 : index
      %c1 = arith.constant 1 : index
      %42 = vector.load %arg4[%c0_19, %c1] : memref<512x4xf32, #tpu.memory_space<vmem>>, vector<512x1xf32>
      %43 = vector.broadcast %42 : vector<512x1xf32> to vector<512x32xf32>
      %44 = vector.broadcast %26 : vector<1x32xf32> to vector<512x32xf32>
      %45 = arith.mulf %43, %44 : vector<512x32xf32>
      %46 = arith.addf %41, %45 : vector<512x32xf32>
      %c0_20 = arith.constant 0 : index
      %c2 = arith.constant 2 : index
      %47 = vector.load %arg4[%c0_20, %c2] : memref<512x4xf32, #tpu.memory_space<vmem>>, vector<512x1xf32>
      %48 = vector.broadcast %47 : vector<512x1xf32> to vector<512x32xf32>
      %49 = vector.broadcast %33 : vector<1x32xf32> to vector<512x32xf32>
      %50 = arith.mulf %48, %49 : vector<512x32xf32>
      %51 = arith.addf %46, %50 : vector<512x32xf32>
      %c0_21 = arith.constant 0 : index
      %c3 = arith.constant 3 : index
      %52 = vector.load %arg4[%c0_21, %c3] : memref<512x4xf32, #tpu.memory_space<vmem>>, vector<512x1xf32>
      %53 = vector.broadcast %52 : vector<512x1xf32> to vector<512x32xf32>
      %54 = vector.broadcast %37 : vector<1x32xf32> to vector<512x32xf32>
      %55 = arith.mulf %53, %54 : vector<512x32xf32>
      %56 = arith.addf %51, %55 : vector<512x32xf32>
      %57 = arith.mulf %12, %56 : vector<512x32xf32>
      %cst_22 = arith.constant dense<0.000000e+00> : vector<32xf32>
      %58 = vector.multi_reduction <add>, %57, %cst_22 [0] : vector<512x32xf32> to vector<32xf32>
      %59 = vector.shape_cast %58 : vector<32xf32> to vector<1x32xf32>
      %60 = arith.mulf %57, %12 : vector<512x32xf32>
      %cst_23 = arith.constant dense<0.000000e+00> : vector<32xf32>
      %61 = vector.multi_reduction <add>, %60, %cst_23 [0] : vector<512x32xf32> to vector<32xf32>
      %62 = vector.shape_cast %61 : vector<32xf32> to vector<1x32xf32>
      %63 = tpu.iota {dimensions = array<i32: 0>} : vector<8x32xi32>
      %c0_i32_24 = arith.constant 0 : i32
      %64 = vector.broadcast %c0_i32_24 : i32 to vector<8x32xi32>
      %65 = arith.cmpi eq, %63, %64 : vector<8x32xi32>
      %66 = vector.shape_cast %59 : vector<1x32xf32> to vector<1x32xf32>
      %67 = vector.broadcast %66 : vector<1x32xf32> to vector<8x32xf32>
      %cst_25 = arith.constant 0.000000e+00 : f32
      %68 = vector.broadcast %cst_25 : f32 to vector<8x32xf32>
      %69 = arith.select %65, %67, %68 : vector<8x32xi1>, vector<8x32xf32>
      %c0_26 = arith.constant 0 : index
      %c0_27 = arith.constant 0 : index
      %70 = vector.load %arg6[%c0_26, %c0_27] : memref<8x32xf32, #tpu.memory_space<vmem>>, vector<8x32xf32>
      tpu.vector_store %arg6[%c0_26, %c0_27], %69 {strides = array<i32>} : memref<8x32xf32, #tpu.memory_space<vmem>>, vector<8x32xf32>,
      %c0_i32_28 = arith.constant 0 : i32
      %71 = vector.broadcast %c0_i32_28 : i32 to vector<8x32xi32>
      %72 = arith.cmpi eq, %63, %71 : vector<8x32xi32>
      %73 = vector.shape_cast %62 : vector<1x32xf32> to vector<1x32xf32>
      %74 = vector.broadcast %73 : vector<1x32xf32> to vector<8x32xf32>
      %cst_29 = arith.constant 0.000000e+00 : f32
      %75 = vector.broadcast %cst_29 : f32 to vector<8x32xf32>
      %76 = arith.select %72, %74, %75 : vector<8x32xi1>, vector<8x32xf32>
      %c0_30 = arith.constant 0 : index
      %c0_31 = arith.constant 0 : index
      %77 = vector.load %arg7[%c0_30, %c0_31] : memref<8x32xf32, #tpu.memory_space<vmem>>, vector<8x32xf32>
      tpu.vector_store %arg7[%c0_30, %c0_31], %76 {strides = array<i32>} : memref<8x32xf32, #tpu.memory_space<vmem>>, vector<8x32xf32>,
    } else {
    }
    return
  }
  func.func @transform_0(%arg0: i32, %arg1: i32) -> (i32, i32) {
    %c0_i32 = arith.constant 0 : i32
    return %arg0, %arg1 : i32, i32
  }
  func.func @transform_1(%arg0: i32, %arg1: i32) -> (i32, i32) {
    %c0_i32 = arith.constant 0 : i32
    %c0_i32_0 = arith.constant 0 : i32
    return %arg1, %c0_i32 : i32, i32
  }
  func.func @transform_2(%arg0: i32, %arg1: i32) -> (i32, i32) {
    %c0_i32 = arith.constant 0 : i32
    %c0_i32_0 = arith.constant 0 : i32
    return %arg0, %c0_i32 : i32, i32
  }
  func.func @transform_3(%arg0: i32, %arg1: i32) -> (i32, i32) {
    %c0_i32 = arith.constant 0 : i32
    %c0_i32_0 = arith.constant 0 : i32
    return %arg0, %c0_i32 : i32, i32
  }
  func.func @transform_4(%arg0: i32, %arg1: i32) -> (i32, i32) {
    %c0_i32 = arith.constant 0 : i32
    %c0_i32_0 = arith.constant 0 : i32
    return %arg0, %c0_i32 : i32, i32
  }
  func.func @transform_5(%arg0: i32, %arg1: i32) -> (i32, i32) {
    %c0_i32 = arith.constant 0 : i32
    %c0_i32_0 = arith.constant 0 : i32
    return %arg0, %c0_i32 : i32, i32
  }
}

module attributes {stable_mosaic.version = 11 : i64} {
  func.func @_affine_relu_kernel(%arg0: i32, %arg1: memref<1024x32xbf16, #tpu.memory_space<vmem>>, %arg2: memref<1x32xf32, #tpu.memory_space<vmem>>, %arg3: memref<1x32xf32, #tpu.memory_space<vmem>>, %arg4: memref<1024x32xbf16, #tpu.memory_space<vmem>>) attributes {dimension_semantics = [#tpu.dimension_semantics<parallel>], iteration_bounds = array<i64: 1>, scalar_prefetch = 0 : i64, scratch_operands = 0 : i64, tpu.core_type = #tpu.core_type<tc>, window_params = [{transform_indices = @transform_0, window_bounds = array<i64: 1024, 32>}, {pipeline_mode = #tpu.pipeline_mode<synchronous>, transform_indices = @transform_1, window_bounds = array<i64: 1, 32>}, {pipeline_mode = #tpu.pipeline_mode<synchronous>, transform_indices = @transform_2, window_bounds = array<i64: 1, 32>}, {transform_indices = @transform_3, window_bounds = array<i64: 1024, 32>}]} {
    %c0 = arith.constant 0 : index
    %c0_0 = arith.constant 0 : index
    %0 = vector.load %arg1[%c0, %c0_0] : memref<1024x32xbf16, #tpu.memory_space<vmem>>, vector<1024x32xbf16>
    %1 = arith.extf %0 : vector<1024x32xbf16> to vector<1024x32xf32>
    %c0_1 = arith.constant 0 : index
    %c0_2 = arith.constant 0 : index
    %2 = vector.load %arg2[%c0_1, %c0_2] : memref<1x32xf32, #tpu.memory_space<vmem>>, vector<1x32xf32>
    %3 = vector.broadcast %2 : vector<1x32xf32> to vector<1024x32xf32>
    %4 = arith.mulf %1, %3 : vector<1024x32xf32>
    %c0_3 = arith.constant 0 : index
    %c0_4 = arith.constant 0 : index
    %5 = vector.load %arg3[%c0_3, %c0_4] : memref<1x32xf32, #tpu.memory_space<vmem>>, vector<1x32xf32>
    %6 = vector.broadcast %5 : vector<1x32xf32> to vector<1024x32xf32>
    %7 = arith.addf %4, %6 : vector<1024x32xf32>
    %cst = arith.constant 0.000000e+00 : f32
    %8 = vector.broadcast %cst : f32 to vector<1024x32xf32>
    %9 = arith.maximumf %7, %8 : vector<1024x32xf32>
    %10 = arith.truncf %9 : vector<1024x32xf32> to vector<1024x32xbf16>
    %c0_5 = arith.constant 0 : index
    %c0_6 = arith.constant 0 : index
    %11 = vector.load %arg4[%c0_5, %c0_6] : memref<1024x32xbf16, #tpu.memory_space<vmem>>, vector<1024x32xbf16>
    tpu.vector_store %arg4[%c0_5, %c0_6], %10 {strides = array<i32>} : memref<1024x32xbf16, #tpu.memory_space<vmem>>, vector<1024x32xbf16>,
    return
  }
  func.func @transform_0(%arg0: i32) -> (i32, i32) {
    %c0_i32 = arith.constant 0 : i32
    %c0_i32_0 = arith.constant 0 : i32
    return %arg0, %c0_i32 : i32, i32
  }
  func.func @transform_1(%arg0: i32) -> (i32, i32) {
    %c0_i32 = arith.constant 0 : i32
    %c0_i32_0 = arith.constant 0 : i32
    %c0_i32_1 = arith.constant 0 : i32
    return %c0_i32, %c0_i32_0 : i32, i32
  }
  func.func @transform_2(%arg0: i32) -> (i32, i32) {
    %c0_i32 = arith.constant 0 : i32
    %c0_i32_0 = arith.constant 0 : i32
    %c0_i32_1 = arith.constant 0 : i32
    return %c0_i32, %c0_i32_0 : i32, i32
  }
  func.func @transform_3(%arg0: i32) -> (i32, i32) {
    %c0_i32 = arith.constant 0 : i32
    %c0_i32_0 = arith.constant 0 : i32
    return %arg0, %c0_i32 : i32, i32
  }
}

module attributes {stable_mosaic.version = 11 : i64} {
  func.func @_convt_tanh_matmul_kernel(%arg0: i32, %arg1: i32, %arg2: memref<512x32xbf16, #tpu.memory_space<vmem>>, %arg3: memref<32x12xbf16, #tpu.memory_space<vmem>>, %arg4: memref<1x12xf32, #tpu.memory_space<vmem>>, %arg5: memref<512x12xf32, #tpu.memory_space<vmem>>, %arg6: memref<512x12xf32, #tpu.memory_space<vmem>>) attributes {dimension_semantics = [#tpu.dimension_semantics<parallel>, #tpu.dimension_semantics<arbitrary>], iteration_bounds = array<i64: 5, 1>, scalar_prefetch = 0 : i64, scratch_operands = 1 : i64, tpu.core_type = #tpu.core_type<tc>, window_params = [{transform_indices = @transform_0, window_bounds = array<i64: 512, 32>}, {transform_indices = @transform_1, window_bounds = array<i64: 32, 12>}, {pipeline_mode = #tpu.pipeline_mode<synchronous>, transform_indices = @transform_2, window_bounds = array<i64: 1, 12>}, {transform_indices = @transform_3, window_bounds = array<i64: 512, 12>}]} {
    %c0_i32 = arith.constant 0 : i32
    %0 = arith.cmpi eq, %arg1, %c0_i32 : i32
    %1 = arith.extui %0 : i1 to i32
    %c0_i32_0 = arith.constant 0 : i32
    %2 = arith.cmpi ne, %1, %c0_i32_0 : i32
    scf.if %2 {
      %cst_10 = arith.constant 0.000000e+00 : f32
      %12 = vector.broadcast %cst_10 : f32 to vector<512x12xf32>
      %c0_11 = arith.constant 0 : index
      %c0_12 = arith.constant 0 : index
      %13 = vector.load %arg6[%c0_11, %c0_12] : memref<512x12xf32, #tpu.memory_space<vmem>>, vector<512x12xf32>
      tpu.vector_store %arg6[%c0_11, %c0_12], %12 {strides = array<i32>} : memref<512x12xf32, #tpu.memory_space<vmem>>, vector<512x12xf32>,
    } else {
    }
    %c0 = arith.constant 0 : index
    %c0_1 = arith.constant 0 : index
    %3 = vector.load %arg6[%c0, %c0_1] : memref<512x12xf32, #tpu.memory_space<vmem>>, vector<512x12xf32>
    %c0_2 = arith.constant 0 : index
    %c0_3 = arith.constant 0 : index
    %4 = vector.load %arg2[%c0_2, %c0_3] : memref<512x32xbf16, #tpu.memory_space<vmem>>, vector<512x32xbf16>
    %c0_4 = arith.constant 0 : index
    %c0_5 = arith.constant 0 : index
    %5 = vector.load %arg3[%c0_4, %c0_5] : memref<32x12xbf16, #tpu.memory_space<vmem>>, vector<32x12xbf16>
    %cst = arith.constant dense<0.000000e+00> : vector<512x12xf32>
    %6 = tpu.matmul %4, %5, %cst {dimension_numbers = #tpu.dot_dimension_numbers<[1], [0], [0], [1], [0, 0, 1, 1], [], []>} : vector<512x32xbf16>, vector<32x12xbf16>, vector<512x12xf32> -> vector<512x12xf32>
    %7 = arith.addf %3, %6 : vector<512x12xf32>
    %c0_6 = arith.constant 0 : index
    %c0_7 = arith.constant 0 : index
    %8 = vector.load %arg6[%c0_6, %c0_7] : memref<512x12xf32, #tpu.memory_space<vmem>>, vector<512x12xf32>
    tpu.vector_store %arg6[%c0_6, %c0_7], %7 {strides = array<i32>} : memref<512x12xf32, #tpu.memory_space<vmem>>, vector<512x12xf32>,
    %c0_i32_8 = arith.constant 0 : i32
    %9 = arith.cmpi eq, %arg1, %c0_i32_8 : i32
    %10 = arith.extui %9 : i1 to i32
    %c0_i32_9 = arith.constant 0 : i32
    %11 = arith.cmpi ne, %10, %c0_i32_9 : i32
    scf.if %11 {
      %c0_10 = arith.constant 0 : index
      %c0_11 = arith.constant 0 : index
      %12 = vector.load %arg6[%c0_10, %c0_11] : memref<512x12xf32, #tpu.memory_space<vmem>>, vector<512x12xf32>
      %c0_12 = arith.constant 0 : index
      %c0_13 = arith.constant 0 : index
      %13 = vector.load %arg4[%c0_12, %c0_13] : memref<1x12xf32, #tpu.memory_space<vmem>>, vector<1x12xf32>
      %14 = vector.broadcast %13 : vector<1x12xf32> to vector<512x12xf32>
      %15 = arith.addf %12, %14 : vector<512x12xf32>
      %16 = math.tanh %15 : vector<512x12xf32>
      %c0_14 = arith.constant 0 : index
      %c0_15 = arith.constant 0 : index
      %17 = vector.load %arg5[%c0_14, %c0_15] : memref<512x12xf32, #tpu.memory_space<vmem>>, vector<512x12xf32>
      tpu.vector_store %arg5[%c0_14, %c0_15], %16 {strides = array<i32>} : memref<512x12xf32, #tpu.memory_space<vmem>>, vector<512x12xf32>,
    } else {
    }
    return
  }
  func.func @transform_0(%arg0: i32, %arg1: i32) -> (i32, i32) {
    %c0_i32 = arith.constant 0 : i32
    return %arg0, %arg1 : i32, i32
  }
  func.func @transform_1(%arg0: i32, %arg1: i32) -> (i32, i32) {
    %c0_i32 = arith.constant 0 : i32
    %c0_i32_0 = arith.constant 0 : i32
    return %arg1, %c0_i32 : i32, i32
  }
  func.func @transform_2(%arg0: i32, %arg1: i32) -> (i32, i32) {
    %c0_i32 = arith.constant 0 : i32
    %c0_i32_0 = arith.constant 0 : i32
    %c0_i32_1 = arith.constant 0 : i32
    return %c0_i32, %c0_i32_0 : i32, i32
  }
  func.func @transform_3(%arg0: i32, %arg1: i32) -> (i32, i32) {
    %c0_i32 = arith.constant 0 : i32
    %c0_i32_0 = arith.constant 0 : i32
    return %arg0, %c0_i32 : i32, i32
  }
}

</mosaic_0001>

<bundles_post_ra>
// kernel: tile.48
= control target key start
LH: loop header
LB: loop body
LE: loop exit
PB: predicated region body
PF: predicated region fallthrough
CT: control target
= control target key end

     0   :  { %s28_s0 = inlined_call_operand.vmem [shape: f32[64], index: 0, kind: input, shape index: {}]   ;;  %s29_s1 = inlined_call_operand.vmem [shape: f32[16,64], index: 1, kind: output, shape index: {}]  }
   0x1   :  { %v4_v0 = vld [vmem:[%s28_s0] ss:$0 sm:$0xff] }
   0x2   :  { %5 = vst [vmem:[%s29_s1] sm:$0xff] %v4_v0  ;;  %8 = vst [vmem:[%s29_s1 + $0x8] sm:$0xff] %v4_v0 }

// kernel: tile.49
= control target key start
LH: loop header
LB: loop body
LE: loop exit
PB: predicated region body
PF: predicated region fallthrough
CT: control target
= control target key end

     0   :  { %vm3_vm0 = vcmask 523264   ;;  %vm10_vm1 = vcmask 1048064   ;;  %s125_s0 = inlined_call_operand.vmem [shape: f32[16,64], index: 0, kind: input, shape index: {}]   ;;  %s126_s1 = inlined_call_operand.vmem [shape: f32[1,1024], index: 1, kind: output, shape index: {}]  }
   0x1   :  { %v75_v0 = vld [vmem:[%s125_s0 + $0x1] ss:$2 sm:$0xff]   ;;  %v2_v1 = vld [vmem:[%s125_s0] ss:$2 sm:$0xff]   ;;  %s84_s0 = smov 64  }
   0x2   :  { %8 = vrot.lane.b32.xlu0 %v75_v0, %s84_s0  ;;  %4 = vst.msk [vmem:[#allocation0] ss:$8 sm:$0xf] %vm3_vm0, %v2_v1   ;;  %5 = vst.msk [vmem:[#allocation0] ss:$8 sm:$0xf0] %vm3_vm0, %v2_v1  }
  0x74   :  { %v9_v2 = vpop.permute.xlu0 %8  }
  0x75   :  { %11 = vst.msk [vmem:[#allocation0] ss:$8 sm:$0xf] %vm10_vm1, %v9_v2   ;;  %12 = vst.msk [vmem:[#allocation0] ss:$8 sm:$0xf0] %vm10_vm1, %v9_v2  }
  0x7c   :  { %v17_v3 = vld [vmem:[#allocation0] sm:$0x1]  ;;  %v22_v4 = vld [vmem:[#allocation0 + $0x8] sm:$0x1]  ;;  %v28_v5 = vld [vmem:[#allocation0 + $0x10] sm:$0x1] }
  0x7d   :  { %20 = vst [vmem:[%s126_s1] sm:$0x1] %v17_v3  ;;  %76 = vst [vmem:[%s126_s1 + $0x1] sm:$0x1] %v22_v4  ;;  %v35_v6 = vld [vmem:[#allocation0 + $0x18] sm:$0x1] }
  0x7e   :  { %77 = vst [vmem:[%s126_s1 + $0x2] sm:$0x1] %v28_v5  ;;  %v42_v7 = vld [vmem:[#allocation0 + $0x20] sm:$0x1]  ;;  %v49_v8 = vld [vmem:[#allocation0 + $0x28] sm:$0x1] }
  0x7f   :  { %78 = vst [vmem:[%s126_s1 + $0x3] sm:$0x1] %v35_v6  ;;  %79 = vst [vmem:[%s126_s1 + $0x4] sm:$0x1] %v42_v7  ;;  %v56_v9 = vld [vmem:[#allocation0 + $0x30] sm:$0x1] }
  0x80   :  { %80 = vst [vmem:[%s126_s1 + $0x5] sm:$0x1] %v49_v8  ;;  %v63_v10 = vld [vmem:[#allocation0 + $0x38] sm:$0x1]  ;;  %81 = vst [vmem:[%s126_s1 + $0x6] sm:$0x1] %v56_v9 }
  0x81   :  { %82 = vst [vmem:[%s126_s1 + $0x7] sm:$0x1] %v63_v10 }

// kernel: tile.58
= control target key start
LH: loop header
LB: loop body
LE: loop exit
PB: predicated region body
PF: predicated region fallthrough
CT: control target
= control target key end

     0   :  { %s22_s0 = inlined_call_operand.vmem [shape: f32[32], index: 0, kind: input, shape index: {}]   ;;  %s23_s1 = inlined_call_operand.vmem [shape: f32[4,32], index: 1, kind: output, shape index: {}]  }
   0x1   :  { %v4_v0 = vld [vmem:[%s22_s0] ss:$0 sm:$0xff] }
   0x2   :  { %5 = vst [vmem:[%s23_s1] sm:$0xf] %v4_v0 }

// kernel: tile.59
= control target key start
LH: loop header
LB: loop body
LE: loop exit
PB: predicated region body
PF: predicated region fallthrough
CT: control target
= control target key end

     0   :  { %vm8_vm0 = vcmask 261120   ;;  %s40_s8 = smov 32   ;;  %s41_s9 = smov 64   ;;  %vm14_vm1 = vcmask 1048320   ;;  %vm20_vm2 = vcmask 785920   ;;  %vm26_vm3 = vcmask 523520   ;;  %s58_s0 = inlined_call_operand.vmem [shape: f32[4,32], index: 0, kind: input, shape index: {}]   ;;  %s59_s1 = inlined_call_operand.vmem [shape: f32[1,128], index: 1, kind: output, shape index: {}]  }
   0x1   :  { %v5_v0 = vld [vmem:[%s58_s0] sm:$0xf]  ;;  %s39_s0 = smov 96  }
   0x2   :  { %6 = vst [vmem:[#allocation1] sm:$0xf] %v5_v0 }
   0x9   :  { %v11_v1 = vld [vmem:[#allocation1 + $0x3] sm:$0x1]   ;;  %v23_v2 = vld [vmem:[#allocation1 + $0x1] sm:$0x1]   ;;  %v7_v3 = vld [vmem:[#allocation1] sm:$0x1]  }
   0xa   :  { %12 = vrot.lane.b32.xlu0 %v11_v1, %s39_s0  ;;  %24 = vrot.lane.b32.xlu1 %v23_v2, %s40_s8  ;;  %v17_v4 = vld [vmem:[#allocation1 + $0x2] sm:$0x1]   ;;  %9 = vst.msk [vmem:[#allocation0] sm:$0x1] %vm8_vm0, %v7_v3  }
   0xe   :  { %18 = vrot.lane.b32.xlu0 %v17_v4, %s41_s9 }
  0x7c   :  { %v13_v5 = vpop.permute.xlu0 %12   ;;  %v25_v6 = vpop.permute.xlu1 %24  }
  0x7d   :  { %15 = vst.msk [vmem:[#allocation0] sm:$0x1] %vm14_vm1, %v13_v5  }
  0x80   :  { %v19_v7 = vpop.permute.xlu0 %18  }
  0x81   :  { %21 = vst.msk [vmem:[#allocation0] sm:$0x1] %vm20_vm2, %v19_v7  }
  0x82   :  { %27 = vst.msk [vmem:[#allocation0] sm:$0x1] %vm26_vm3, %v25_v6  }
  0x89   :  { %v32_v8 = vld [vmem:[#allocation0] sm:$0x1] }
  0x8a   :  { %35 = vst [vmem:[%s59_s1] sm:$0x1] %v32_v8 }

// kernel: generator_forward.10
= control target key start
LH: loop header
LB: loop body
LE: loop exit
PB: predicated region body
PF: predicated region fallthrough
CT: control target
= control target key end

     0   :  { %v28_v0 = vlaneseq  ;;  %s232_s0 = inlined_call_operand.vmem [shape: bf16[8,1024], index: 0, kind: input, shape index: {}]   ;;  %s233_s1 = inlined_call_operand.vmem [shape: f32[1,1024], index: 1, kind: input, shape index: {}]   ;;  %s234_s2 = inlined_call_operand.vmem [shape: f32[1,1024], index: 2, kind: input, shape index: {}]   ;;  %s235_s3 = inlined_call_operand.vmem [shape: bf16[8,1024], index: 3, kind: output, shape index: {}]  }
   0x1   :  { %v14_v1 = vld [vmem:[%s232_s0] sm:$0xff]  ;;  %v15_v5 = vld [vmem:[%s232_s0 + $0x8] sm:$0xff]  ;;  %v16_v6 = vld [vmem:[%s232_s0 + $0x10] sm:$0xff] }
   0x2   :  { %v18_v2 = vunpack.c.l.bf16 %v14_v1  ;;  %v19_v3 = vunpack.c.h.bf16 %v14_v1  ;;  %v29_v4 = vshrl.u32 %v28_v0, 7  ;;  %v17_v7 = vld [vmem:[%s232_s0 + $0x18] sm:$0xff]  ;;  %v26_v8 = vld [vmem:[%s233_s1] sm:$0xff]  ;;  %v20_v10 = vunpack.c.l.bf16 %v15_v5 }
   0x3   :  { %v76_v9 = vld [vmem:[%s234_s2] sm:$0xff]  ;;  %v21_v11 = vunpack.c.h.bf16 %v15_v5  ;;  %v22_v12 = vunpack.c.l.bf16 %v16_v6  ;;  %v23_v13 = vunpack.c.h.bf16 %v16_v6  ;;  %v24_v20 = vunpack.c.l.bf16 %v17_v7 }
   0x4   :  { %v30_v14 = vsub.s32 0, %v29_v4  ;;  %v34_v15 = vsub.s32 1, %v29_v4  ;;  %v38_v16 = vsub.s32 2, %v29_v4  ;;  %v42_v17 = vsub.s32 3, %v29_v4 }
   0x5   :  { %v46_v18 = vsub.s32 4, %v29_v4  ;;  %v50_v19 = vsub.s32 5, %v29_v4  ;;  %v25_v21 = vunpack.c.h.bf16 %v17_v7  ;;  %v54_v44 = vsub.s32 6, %v29_v4 }
   0x6   :  { %v31_v22 = vrot.slane %v26_v8, %v30_v14  ;;  %v35_v23 = vrot.slane %v26_v8, %v34_v15  ;;  %v81_v24 = vrot.slane %v76_v9, %v30_v14  ;;  %v85_v25 = vrot.slane %v76_v9, %v34_v15 }
   0x7   :  { %v39_v26 = vrot.slane %v26_v8, %v38_v16  ;;  %v43_v27 = vrot.slane %v26_v8, %v42_v17  ;;  %v89_v28 = vrot.slane %v76_v9, %v38_v16  ;;  %v93_v29 = vrot.slane %v76_v9, %v42_v17 }
   0x8   :  { %v68_v30 = vmul.f32 %v31_v22, %v18_v2  ;;  %v69_v31 = vmul.f32 %v35_v23, %v19_v3  ;;  %v47_v32 = vrot.slane %v26_v8, %v46_v18  ;;  %v51_v33 = vrot.slane %v26_v8, %v50_v19 }
   0x9   :  { %v70_v34 = vmul.f32 %v39_v26, %v20_v10  ;;  %v71_v35 = vmul.f32 %v43_v27, %v21_v11  ;;  %v97_v36 = vrot.slane %v76_v9, %v46_v18  ;;  %v101_v37 = vrot.slane %v76_v9, %v50_v19 }
   0xa   :  { %v118_v38 = vadd.f32 %v81_v24, %v68_v30  ;;  %v119_v39 = vadd.f32 %v85_v25, %v69_v31  ;;  %v72_v40 = vmul.f32 %v47_v32, %v22_v12  ;;  %v73_v41 = vmul.f32 %v51_v33, %v23_v13 }
   0xb   :  { %v120_v42 = vadd.f32 %v89_v28, %v70_v34  ;;  %v121_v43 = vadd.f32 %v93_v29, %v71_v35  ;;  %v58_v45 = vsub.s32 7, %v29_v4  ;;  %v55_v52 = vrot.slane %v26_v8, %v54_v44 }
   0xc   :  { %v126_v46 = vmax.f32 %v118_v38, 0.0  ;;  %v127_v47 = vmax.f32 %v119_v39, 0.0  ;;  %v122_v48 = vadd.f32 %v97_v36, %v72_v40  ;;  %v123_v49 = vadd.f32 %v101_v37, %v73_v41 }
   0xd   :  { %v128_v50 = vmax.f32 %v120_v42, 0.0  ;;  %v129_v51 = vmax.f32 %v121_v43, 0.0  ;;  %v59_v53 = vrot.slane %v26_v8, %v58_v45  ;;  %v105_v57 = vrot.slane %v76_v9, %v54_v44 }
   0xe   :  { %v178_v54 = vpack.c.bf16 %v127_v47, %v126_v46  ;;  %v130_v55 = vmax.f32 %v122_v48, 0.0  ;;  %v131_v56 = vmax.f32 %v123_v49, 0.0  ;;  %v74_v59 = vmul.f32 %v55_v52, %v24_v20 }
   0xf   :  { %v179_v58 = vpack.c.bf16 %v129_v51, %v128_v50  ;;  %v75_v60 = vmul.f32 %v59_v53, %v25_v21  ;;  %v109_v61 = vrot.slane %v76_v9, %v58_v45 }
  0x10   :  { %166 = vst [vmem:[%s235_s3] sm:$0xff] %v178_v54  ;;  %v180_v62 = vpack.c.bf16 %v131_v56, %v130_v55  ;;  %v124_v63 = vadd.f32 %v105_v57, %v74_v59 }
  0x11   :  { %167 = vst [vmem:[%s235_s3 + $0x8] sm:$0xff] %v179_v58  ;;  %v125_v0 = vadd.f32 %v109_v61, %v75_v60 }
  0x12   :  { %168 = vst [vmem:[%s235_s3 + $0x10] sm:$0xff] %v180_v62  ;;  %v132_v1 = vmax.f32 %v124_v63, 0.0 }
  0x13   :  { %v133_v2 = vmax.f32 %v125_v0, 0.0 }
  0x15   :  { %v181_v3 = vpack.c.bf16 %v133_v2, %v132_v1 }
  0x17   :  { %169 = vst [vmem:[%s235_s3 + $0x18] sm:$0xff] %v181_v3 }

// kernel: generator_forward.9
= control target key start
LH: loop header
LB: loop body
LE: loop exit
PB: predicated region body
PF: predicated region fallthrough
CT: control target
= control target key end

     0   :  { %11 = vsyncpa [#allocation4], 0  ;;  %s530_s18 = smov [#allocation3]   ;;  %s679_s0 = inlined_call_operand.vmem [shape: bf16[8,16], index: 0, kind: input, shape index: {}]   ;;  %s680_s1 = inlined_call_operand.hbm [shape: bf16[16,1024], index: 1, kind: input, shape index: {}]   ;;  %s681_s2 = inlined_call_operand.vmem [shape: f32[8,4], index: 2, kind: input, shape index: {}]   ;;  %s682_s3 = inlined_call_operand.vmem [shape: bf16[8,1024], index: 3, kind: output, shape index: {0}]   ;;  %s683_s4 = inlined_call_operand.vmem [shape: f32[8,1024], index: 4, kind: output, shape index: {1}]   ;;  %s684_s5 = inlined_call_operand.vmem [shape: f32[8,1024], index: 5, kind: output, shape index: {2}]  }
   0x1   :  { %s19_s19 = sshll.u32 %s530_s18, 4  ;;  %s20_s19 = int_to_ptr.vmem [resolvable:$true] %s19_s19 }
   0x2   :  { %s516_s20 = scalar_lea.vmem %s20_s19, 1024  ;;  %p521_p1 = scmp.lt.s32.totalorder %s20_s19, %s20_s19 }
   0x3   :  { %p517_p0 = scmp.ne.s32.totalorder %s20_s19, %s516_s20  ;;  %p522_p2 = scmp.lt.s32.totalorder %s516_s20, %s516_s20 }
   0x5   :  { %p523_p3 = por %p522_p2, %p521_p1 }
   0x7   :  { %p524_p4 = pnand %p523_p3, %p517_p0 }
   0x9   :  { %527 = shalt.err (!%p524_p4)
}
   0xa   :  { %s531_s2 = smov 512   ;;  %s532_s21 = smov 32  }
   0xb   :  { %25 = dma.hbm_to_vmem [thread:$0]  %s680_s1, 1024, %s20_s19, [#allocation4], %s531_s2, %s531_s2, %s532_s21  }
   0xc   :  { %528 = dma.done.wait [#allocation4], 1024  }
   0xd   :  { %529 = vsyncadd [#allocation4], 4294966272  ;;  %v533_v0 = vmov 0   ;;  %v53_v1 = vld [vmem:[#allocation3] sm:$0xff]  ;;  %v54_v3 = vld [vmem:[#allocation3 + $0x8] sm:$0xff]  ;;  %vm101_vm0 = vcmask 130048   ;;  %v436_v18 = vlaneseq }
   0xe   :  { %137 = vmatprep.mubr.bf16.mxu0 %v533_v0  ;;  %178 = vmatprep.mubr.bf16.mxu1 %v533_v0  ;;  %v57_v2 = vld [vmem:[#allocation3 + $0x20] sm:$0xff]  ;;  %v58_v5 = vld [vmem:[#allocation3 + $0x28] sm:$0xff]  ;;  %v55_v7 = vld [vmem:[#allocation3 + $0x10] sm:$0xff] }
   0xf   :  { %v485_v4 = vcombine.high %v53_v1, %v57_v2  ;;  %v484_v6 = vcombine.low %v53_v1, %v57_v2  ;;  %v487_v8 = vcombine.high %v54_v3, %v58_v5  ;;  %v486_v9 = vcombine.low %v54_v3, %v58_v5  ;;  %v59_v10 = vld [vmem:[#allocation3 + $0x30] sm:$0xff]  ;;  %v56_v11 = vld [vmem:[#allocation3 + $0x18] sm:$0xff] }
  0x10   :  { %v60_v12 = vld [vmem:[#allocation3 + $0x38] sm:$0xff]  ;;  %v489_v13 = vcombine.high %v55_v7, %v59_v10  ;;  %v52_v15 = vld [vmem:[%s679_s0] sm:$0xf]  ;;  %v488_v16 = vcombine.low %v55_v7, %v59_v10  ;;  %v570_v19 = vshrl.u32 %v436_v18, 7 }
  0x11   :  { %119 = vmatprep.subr.bf16.mxu0 %v485_v4  ;;  %v491_v14 = vcombine.high %v56_v11, %v60_v12  ;;  %160 = vmatprep.subr.bf16.mxu1 %v487_v8  ;;  %v490_v17 = vcombine.low %v56_v11, %v60_v12 }
  0x12   :  { %120 = vmatpush1.bf16.msra.mxu0 %v484_v6  ;;  %161 = vmatpush1.bf16.msra.mxu1 %v486_v9  ;;  %vm438_vm1 = vcmp.eq.s32.totalorder %v570_v19, 0 }
  0x13   :  { %201 = vmatprep.subr.bf16.mxu0 %v489_v13  ;;  %242 = vmatprep.subr.bf16.mxu1 %v491_v14 }
  0x15   :  { %492 = vmatmul.mubr.msk.bf16.vlgmr.msra.gmra.mxu0 %vm101_vm0, %v52_v15  ;;  %493 = vmatmul.mubr.msk.bf16.vlgmr.msra.gmra.mxu1 %vm101_vm0, %v52_v15 }
  0x16   :  { %202 = vmatpush1.bf16.msra.mxu0 %v488_v16  ;;  %243 = vmatpush1.bf16.msra.mxu1 %v490_v17 }
  0x17   :  { %219 = vmatprep.mubr.bf16.mxu0 %v533_v0  ;;  %260 = vmatprep.mubr.bf16.mxu1 %v533_v0 }
  0x1d   :  { %494 = vmatmul.mubr.msk.bf16.vlgmr.msra.gmra.mxu0 %vm101_vm0, %v52_v15  ;;  %495 = vmatmul.mubr.msk.bf16.vlgmr.msra.gmra.mxu1 %vm101_vm0, %v52_v15 }
  0xd5   :  { %v139_v20 = vpop.f32.mrf.mxu0  ;;  %v180_v23 = vpop.f32.mrf.mxu1 }
  0xd6   :  { %v332_v21 = vrot.slane %v139_v20, 4  ;;  %v380_v22 = vmul.f32 %v139_v20, %v139_v20  ;;  %v344_v24 = vrot.slane %v180_v23, 4  ;;  %v382_v25 = vmul.f32 %v180_v23, %v180_v23 }
  0xd7   :  { %v141_v26 = vpop.f32.mrf.mxu0  ;;  %v182_v31 = vpop.f32.mrf.mxu1 }
  0xd8   :  { %v333_v27 = vadd.f32 %v332_v21, %v139_v20  ;;  %v388_v28 = vrot.slane %v380_v22, 4  ;;  %v500_v29 = vpack.c.bf16 %v141_v26, %v139_v20  ;;  %v338_v30 = vrot.slane %v141_v26, 4 }
  0xd9   :  { %v345_v32 = vadd.f32 %v344_v24, %v180_v23  ;;  %v400_v33 = vrot.slane %v382_v25, 4  ;;  %v381_v34 = vmul.f32 %v141_v26, %v141_v26  ;;  %v501_v35 = vpack.c.bf16 %v182_v31, %v180_v23  ;;  %v143_v36 = vpop.f32.mrf.mxu0  ;;  %v184_v41 = vpop.f32.mrf.mxu1 }
  0xda   :  { %v334_v37 = vrot.slane %v333_v27, 2  ;;  %v389_v38 = vadd.f32 %v388_v28, %v380_v22  ;;  %328 = vst [vmem:[%s682_s3] sm:$0xff] %v500_v29  ;;  %v339_v39 = vadd.f32 %v338_v30, %v141_v26  ;;  %v350_v40 = vrot.slane %v182_v31, 4 }
  0xdb   :  { %v346_v42 = vrot.slane %v345_v32, 2  ;;  %v401_v43 = vadd.f32 %v400_v33, %v382_v25  ;;  %v394_v44 = vrot.slane %v381_v34, 4  ;;  %329 = vst [vmem:[%s682_s3 + $0x8] sm:$0xff] %v501_v35  ;;  %v383_v45 = vmul.f32 %v182_v31, %v182_v31  ;;  %v144_v46 = vpop.f32.mrf.mxu0  ;;  %v185_v51 = vpop.f32.mrf.mxu1 }
  0xdc   :  { %v335_v47 = vadd.f32 %v334_v37, %v333_v27  ;;  %v390_v48 = vrot.slane %v389_v38, 2  ;;  %v340_v49 = vrot.slane %v339_v39, 2  ;;  %v351_v50 = vadd.f32 %v350_v40, %v182_v31 }
  0xdd   :  { %v347_v52 = vadd.f32 %v346_v42, %v345_v32  ;;  %v402_v53 = vrot.slane %v401_v43, 2  ;;  %v395_v54 = vadd.f32 %v394_v44, %v381_v34  ;;  %v406_v55 = vrot.slane %v383_v45, 4  ;;  %v221_v56 = vpop.f32.mrf.mxu0  ;;  %v579_v61 = vpop.f32.mrf.mxu1 }
  0xde   :  { %v336_v57 = vrot.slane %v335_v47, 1  ;;  %v391_v58 = vadd.f32 %v390_v48, %v389_v38  ;;  %v341_v59 = vadd.f32 %v340_v49, %v339_v39  ;;  %v352_v60 = vrot.slane %v351_v50, 2 }
  0xdf   :  { %v348_v62 = vrot.slane %v347_v52, 1  ;;  %v403_v63 = vadd.f32 %v402_v53, %v401_v43  ;;  %v396_v0 = vrot.slane %v395_v54, 2  ;;  %v407_v1 = vadd.f32 %v406_v55, %v383_v45  ;;  %v223_v2 = vpop.f32.mrf.mxu0  ;;  %v581_v7 = vpop.f32.mrf.mxu1 }
  0xe0   :  { %v337_v3 = vadd.f32 %v336_v57, %v335_v47  ;;  %v392_v4 = vrot.slane %v391_v58, 1  ;;  %v342_v5 = vrot.slane %v341_v59, 1  ;;  %v353_v6 = vadd.f32 %v352_v60, %v351_v50 }
  0xe1   :  { %v349_v8 = vadd.f32 %v348_v62, %v347_v52  ;;  %v404_v9 = vrot.slane %v403_v63, 1  ;;  %v397_v10 = vadd.f32 %v396_v0, %v395_v54  ;;  %v408_v11 = vrot.slane %v407_v1, 2  ;;  %v225_v12 = vpop.f32.mrf.mxu0  ;;  %v266_v17 = vpop.f32.mrf.mxu1 }
  0xe2   :  { %v393_v13 = vadd.f32 %v392_v4, %v391_v58  ;;  %v439_v14 = vsel %vm438_vm1, %v337_v3, 0.0  ;;  %v343_v15 = vadd.f32 %v342_v5, %v341_v59  ;;  %v354_v16 = vrot.slane %v353_v6, 1 }
  0xe3   :  { %447 = vst [vmem:[%s683_s4] sm:$0xff] %v439_v14  ;;  %v405_v18 = vadd.f32 %v404_v9, %v403_v63  ;;  %v441_v20 = vsel %vm438_vm1, %v349_v8, 0.0  ;;  %v398_v21 = vrot.slane %v397_v10, 1  ;;  %v409_v22 = vadd.f32 %v408_v11, %v407_v1  ;;  %v226_v23 = vpop.f32.mrf.mxu0  ;;  %v267_v28 = vpop.f32.mrf.mxu1 }
  0xe4   :  { %v455_v24 = vsel %vm438_vm1, %v393_v13, 0.0  ;;  %449 = vst [vmem:[%s683_s4 + $0x10] sm:$0xff] %v441_v20  ;;  %v440_v25 = vsel %vm438_vm1, %v343_v15, 0.0  ;;  %v355_v26 = vadd.f32 %v354_v16, %v353_v6  ;;  %v356_v27 = vrot.slane %v221_v56, 4 }
  0xe5   :  { %463 = vst [vmem:[%s684_s5] sm:$0xff] %v455_v24  ;;  %v457_v29 = vsel %vm438_vm1, %v405_v18, 0.0  ;;  %v399_v30 = vadd.f32 %v398_v21, %v397_v10  ;;  %448 = vst [vmem:[%s683_s4 + $0x8] sm:$0xff] %v440_v25  ;;  %v410_v31 = vrot.slane %v409_v22, 1  ;;  %v384_v32 = vmul.f32 %v221_v56, %v221_v56 }
  0xe6   :  { %465 = vst [vmem:[%s684_s5 + $0x10] sm:$0xff] %v457_v29  ;;  %v442_v33 = vsel %vm438_vm1, %v355_v26, 0.0  ;;  %v357_v34 = vadd.f32 %v356_v27, %v221_v56  ;;  %v368_v35 = vrot.slane %v579_v61, 4  ;;  %v386_v36 = vmul.f32 %v579_v61, %v579_v61 }
  0xe7   :  { %v456_v37 = vsel %vm438_vm1, %v399_v30, 0.0  ;;  %v411_v38 = vadd.f32 %v410_v31, %v409_v22  ;;  %450 = vst [vmem:[%s683_s4 + $0x18] sm:$0xff] %v442_v33  ;;  %v412_v39 = vrot.slane %v384_v32, 4  ;;  %v502_v40 = vpack.c.bf16 %v223_v2, %v221_v56 }
  0xe8   :  { %464 = vst [vmem:[%s684_s5 + $0x8] sm:$0xff] %v456_v37  ;;  %v358_v41 = vrot.slane %v357_v34, 2  ;;  %v369_v42 = vadd.f32 %v368_v35, %v579_v61  ;;  %v424_v43 = vrot.slane %v386_v36, 4  ;;  %v362_v44 = vrot.slane %v223_v2, 4 }
  0xe9   :  { %v458_v45 = vsel %vm438_vm1, %v411_v38, 0.0  ;;  %v413_v46 = vadd.f32 %v412_v39, %v384_v32  ;;  %330 = vst [vmem:[%s682_s3 + $0x10] sm:$0xff] %v502_v40  ;;  %v385_v47 = vmul.f32 %v223_v2, %v223_v2  ;;  %v503_v48 = vpack.c.bf16 %v581_v7, %v579_v61 }
  0xea   :  { %466 = vst [vmem:[%s684_s5 + $0x18] sm:$0xff] %v458_v45  ;;  %v359_v49 = vadd.f32 %v358_v41, %v357_v34  ;;  %v370_v50 = vrot.slane %v369_v42, 2  ;;  %v425_v51 = vadd.f32 %v424_v43, %v386_v36  ;;  %v363_v52 = vadd.f32 %v362_v44, %v223_v2 }
  0xeb   :  { %v414_v53 = vrot.slane %v413_v46, 2  ;;  %v418_v54 = vrot.slane %v385_v47, 4  ;;  %331 = vst [vmem:[%s682_s3 + $0x18] sm:$0xff] %v503_v48  ;;  %v374_v55 = vrot.slane %v581_v7, 4  ;;  %v387_v56 = vmul.f32 %v581_v7, %v581_v7 }
  0xec   :  { %v360_v57 = vrot.slane %v359_v49, 1  ;;  %v371_v58 = vadd.f32 %v370_v50, %v369_v42  ;;  %v426_v59 = vrot.slane %v425_v51, 2  ;;  %v364_v60 = vrot.slane %v363_v52, 2 }
  0xed   :  { %v415_v61 = vadd.f32 %v414_v53, %v413_v46  ;;  %v419_v62 = vadd.f32 %v418_v54, %v385_v47  ;;  %v375_v63 = vadd.f32 %v374_v55, %v581_v7  ;;  %v430_v0 = vrot.slane %v387_v56, 4 }
  0xee   :  { %v361_v1 = vadd.f32 %v360_v57, %v359_v49  ;;  %v372_v2 = vrot.slane %v371_v58, 1  ;;  %v427_v3 = vadd.f32 %v426_v59, %v425_v51  ;;  %v365_v4 = vadd.f32 %v364_v60, %v363_v52 }
  0xef   :  { %v416_v5 = vrot.slane %v415_v61, 1  ;;  %v420_v6 = vrot.slane %v419_v62, 2  ;;  %v376_v8 = vrot.slane %v375_v63, 2  ;;  %v431_v9 = vadd.f32 %v430_v0, %v387_v56 }
  0xf0   :  { %v443_v10 = vsel %vm438_vm1, %v361_v1, 0.0  ;;  %v373_v11 = vadd.f32 %v372_v2, %v371_v58  ;;  %v428_v12 = vrot.slane %v427_v3, 1  ;;  %v366_v13 = vrot.slane %v365_v4, 1 }
  0xf1   :  { %v417_v14 = vadd.f32 %v416_v5, %v415_v61  ;;  %451 = vst [vmem:[%s683_s4 + $0x20] sm:$0xff] %v443_v10  ;;  %v421_v7 = vadd.f32 %v420_v6, %v419_v62  ;;  %v377_v15 = vadd.f32 %v376_v8, %v375_v63  ;;  %v432_v16 = vrot.slane %v431_v9, 2 }
  0xf2   :  { %v429_v17 = vadd.f32 %v428_v12, %v427_v3  ;;  %v445_v18 = vsel %vm438_vm1, %v373_v11, 0.0  ;;  %v367_v20 = vadd.f32 %v366_v13, %v365_v4 }
  0xf3   :  { %v459_v21 = vsel %vm438_vm1, %v417_v14, 0.0  ;;  %453 = vst [vmem:[%s683_s4 + $0x30] sm:$0xff] %v445_v18  ;;  %v422_v22 = vrot.slane %v421_v7, 1  ;;  %v378_v23 = vrot.slane %v377_v15, 1  ;;  %v433_v24 = vadd.f32 %v432_v16, %v431_v9 }
  0xf4   :  { %467 = vst [vmem:[%s684_s5 + $0x20] sm:$0xff] %v459_v21  ;;  %v461_v25 = vsel %vm438_vm1, %v429_v17, 0.0  ;;  %v444_v26 = vsel %vm438_vm1, %v367_v20, 0.0 }
  0xf5   :  { %469 = vst [vmem:[%s684_s5 + $0x30] sm:$0xff] %v461_v25  ;;  %v423_v27 = vadd.f32 %v422_v22, %v421_v7  ;;  %452 = vst [vmem:[%s683_s4 + $0x28] sm:$0xff] %v444_v26  ;;  %v379_v28 = vadd.f32 %v378_v23, %v377_v15  ;;  %v434_v29 = vrot.slane %v433_v24, 1 }
  0xf7   :  { %v460_v30 = vsel %vm438_vm1, %v423_v27, 0.0  ;;  %v435_v31 = vadd.f32 %v434_v29, %v433_v24  ;;  %v446_v32 = vsel %vm438_vm1, %v379_v28, 0.0 }
  0xf8   :  { %468 = vst [vmem:[%s684_s5 + $0x28] sm:$0xff] %v460_v30  ;;  %454 = vst [vmem:[%s683_s4 + $0x38] sm:$0xff] %v446_v32 }
  0xf9   :  { %v462_v33 = vsel %vm438_vm1, %v435_v31, 0.0 }
  0xfa   :  { %470 = vst [vmem:[%s684_s5 + $0x38] sm:$0xff] %v462_v33 }
  0xfb   :  { %483 = vsyncpa [#allocation4], 1 }

// kernel: generator_forward.12
= control target key start
LH: loop header
LB: loop body
LE: loop exit
PB: predicated region body
PF: predicated region fallthrough
CT: control target
= control target key end

     0   :  { %s200_s0 = inlined_call_operand.vmem [shape: bf16[56,128], index: 0, kind: input, shape index: {}]   ;;  %s201_s1 = inlined_call_operand.vmem [shape: f32[1,128], index: 1, kind: input, shape index: {}]   ;;  %s202_s2 = inlined_call_operand.vmem [shape: f32[1,128], index: 2, kind: input, shape index: {}]   ;;  %s203_s3 = inlined_call_operand.vmem [shape: bf16[56,128], index: 3, kind: output, shape index: {}]  }
   0x1   :  { %v120_v0 = vld [vmem:[%s200_s0] sm:$0xff]   ;;  %v146_v4 = vld [vmem:[%s200_s0 + $0x8] sm:$0xff]   ;;  %v147_v5 = vld [vmem:[%s200_s0 + $0x10] sm:$0xff]  }
   0x2   :  { %v103_v1 = vld [vmem:[%s201_s1] ss:$0 sm:$0xff]  ;;  %v121_v2 = vunpack.c.l.bf16 %v120_v0  ;;  %v122_v3 = vunpack.c.h.bf16 %v120_v0  ;;  %v20_v6 = vld [vmem:[%s200_s0 + $0x18] sm:$0xf]  ;;  %v125_v8 = vunpack.c.l.bf16 %v146_v4  ;;  %v126_v9 = vunpack.c.h.bf16 %v146_v4 }
   0x3   :  { %v104_v7 = vld [vmem:[%s202_s2] ss:$0 sm:$0xff]  ;;  %v129_v10 = vunpack.c.l.bf16 %v147_v5  ;;  %v130_v11 = vunpack.c.h.bf16 %v147_v5  ;;  %v27_v14 = vunpack.c.l.bf16 %v20_v6 }
   0x4   :  { %v35_v12 = vmul.f32 %v121_v2, %v103_v1  ;;  %v36_v13 = vmul.f32 %v122_v3, %v103_v1  ;;  %v37_v15 = vmul.f32 %v125_v8, %v103_v1  ;;  %v38_v16 = vmul.f32 %v126_v9, %v103_v1 }
   0x5   :  { %v39_v17 = vmul.f32 %v129_v10, %v103_v1  ;;  %v40_v18 = vmul.f32 %v130_v11, %v103_v1  ;;  %v41_v21 = vmul.f32 %v103_v1, %v27_v14 }
   0x6   :  { %v49_v19 = vadd.f32 %v104_v7, %v35_v12  ;;  %v50_v20 = vadd.f32 %v104_v7, %v36_v13  ;;  %v51_v22 = vadd.f32 %v104_v7, %v37_v15  ;;  %v52_v23 = vadd.f32 %v104_v7, %v38_v16 }
   0x7   :  { %v53_v24 = vadd.f32 %v104_v7, %v39_v17  ;;  %v54_v25 = vadd.f32 %v104_v7, %v40_v18  ;;  %v55_v28 = vadd.f32 %v104_v7, %v41_v21 }
   0x8   :  { %v56_v26 = vmax.f32 %v49_v19, 0.0  ;;  %v57_v27 = vmax.f32 %v50_v20, 0.0  ;;  %v58_v29 = vmax.f32 %v51_v22, 0.0  ;;  %v59_v30 = vmax.f32 %v52_v23, 0.0 }
   0x9   :  { %v60_v31 = vmax.f32 %v53_v24, 0.0  ;;  %v61_v32 = vmax.f32 %v54_v25, 0.0  ;;  %v62_v34 = vmax.f32 %v55_v28, 0.0 }
   0xa   :  { %v134_v33 = vpack.c.bf16 %v57_v27, %v56_v26  ;;  %v139_v35 = vpack.c.bf16 %v59_v30, %v58_v29 }
   0xb   :  { %v144_v36 = vpack.c.bf16 %v61_v32, %v60_v31  ;;  %v118_v37 = vpack.c.bf16 %v62_v34, %v62_v34 }
   0xc   :  { %135 = vst [vmem:[%s203_s3] sm:$0xff] %v134_v33   ;;  %148 = vst [vmem:[%s203_s3 + $0x8] sm:$0xff] %v139_v35  }
   0xd   :  { %149 = vst [vmem:[%s203_s3 + $0x10] sm:$0xff] %v144_v36   ;;  %98 = vst [vmem:[%s203_s3 + $0x18] sm:$0xf] %v118_v37 }

// kernel: generator_forward.11
= control target key start
LH: loop header
LB: loop body
LE: loop exit
PB: predicated region body
PF: predicated region fallthrough
CT: control target
= control target key end

     0   :  { %11 = vsyncpa [#allocation4], 0  ;;  %s789_s18 = smov [#allocation3]   ;;  %s942_s0 = inlined_call_operand.vmem [shape: bf16[56,256], index: 0, kind: input, shape index: {}]   ;;  %s943_s1 = inlined_call_operand.hbm [shape: bf16[256,128], index: 1, kind: input, shape index: {}]   ;;  %s944_s2 = inlined_call_operand.vmem [shape: f32[56,4], index: 2, kind: input, shape index: {}]   ;;  %s945_s3 = inlined_call_operand.vmem [shape: bf16[56,128], index: 3, kind: output, shape index: {0}]   ;;  %s946_s4 = inlined_call_operand.vmem [shape: f32[8,128], index: 4, kind: output, shape index: {1}]   ;;  %s947_s5 = inlined_call_operand.vmem [shape: f32[8,128], index: 5, kind: output, shape index: {2}]  }
   0x1   :  { %s19_s19 = sshll.u32 %s789_s18, 4  ;;  %s20_s19 = int_to_ptr.vmem [resolvable:$true] %s19_s19 }
   0x2   :  { %s775_s20 = scalar_lea.vmem %s20_s19, 2048  ;;  %p780_p1 = scmp.lt.s32.totalorder %s20_s19, %s20_s19 }
   0x3   :  { %p776_p0 = scmp.ne.s32.totalorder %s20_s19, %s775_s20  ;;  %p781_p2 = scmp.lt.s32.totalorder %s775_s20, %s775_s20 }
   0x5   :  { %p782_p3 = por %p781_p2, %p780_p1 }
   0x7   :  { %p783_p4 = pnand %p782_p3, %p776_p0 }
   0x9   :  { %786 = shalt.err (!%p783_p4)
}
   0xa   :  { %s790_s21 = smov 64   ;;  %s791_s22 = smov 4  }
   0xb   :  { %25 = dma.hbm_to_vmem [thread:$0]  %s943_s1, 2048, %s20_s19, [#allocation4], %s790_s21, %s790_s21, %s791_s22  }
   0xc   :  { %787 = dma.done.wait [#allocation4], 2048  }
   0xd   :  { %788 = vsyncadd [#allocation4], 4294965248  ;;  %v792_v0 = vmov 0   ;;  %v793_v1 = vmov 3   ;;  %v835_v2 = vld [vmem:[%s944_s2 + $0x10] sm:$0xff]  ;;  %v740_v3 = vld [vmem:[#allocation3 + $0x78] sm:$0xff]   ;;  %v346_v52 = vlaneseq }
   0xe   :  { %720 = vset.pattern.permute.xlu1 %v792_v0  ;;  %726 = vset.pattern.permute.xlu0 %v793_v1  ;;  %v741_v4 = vld [vmem:[#allocation3 + $0x38] sm:$0xff]   ;;  %v841_v5 = vld [vmem:[%s944_s2] sm:$0xff]  ;;  %v794_v8 = vmov 1   ;;  %v744_v9 = vld [vmem:[#allocation3 + $0x68] sm:$0xff]   ;;  %v795_v15 = vmov 2   ;;  %v796_v60 = vmov 0.0  }
   0xf   :  { %383 = vperm.xlu1 %720, %v835_v2   ;;  %656 = vmatprep.subr.bf16.mxu0 %v740_v3  ;;  %v742_v6 = vld [vmem:[#allocation3 + $0x70] sm:$0xff]   ;;  %v745_v10 = vld [vmem:[#allocation3 + $0x28] sm:$0xff]   ;;  %v746_v11 = vld [vmem:[#allocation3 + $0x60] sm:$0xff]   ;;  %v347_v55 = vand.u32 127, %v346_v52 }
  0x10   :  { %696 = vmatprep.subr.bf16.mxu1 %v740_v3  ;;  %657 = vmatpush3.bf16.msra.mxu0 %v741_v4  ;;  %v743_v7 = vld [vmem:[#allocation3 + $0x30] sm:$0xff]   ;;  %v848_v12 = vld [vmem:[%s944_s2 + $0x8] sm:$0xff]  ;;  %v747_v13 = vld [vmem:[#allocation3 + $0x20] sm:$0xff]  }
  0x11   :  { %704 = vmatpush3.bf16.msra.mxu1 %v741_v4  ;;  %658 = vmatprep.subr.bf16.mxu0 %v742_v6  ;;  %v748_v14 = vld [vmem:[#allocation3 + $0x58] sm:$0xff]   ;;  %v750_v17 = vld [vmem:[#allocation3 + $0x50] sm:$0xff]   ;;  %v859_v18 = vld [vmem:[%s944_s2 + $0x18] sm:$0xff]  ;;  %vm351_vm0 = vcmp.ge.s32.totalorder %v347_v55, 32  ;;  %vm352_vm1 = vcmp.lt.s32.totalorder %v347_v55, 64  ;;  %vm348_vm2 = vcmp.lt.s32.totalorder %v347_v55, 32 }
  0x12   :  { %697 = vmatprep.subr.bf16.mxu1 %v742_v6  ;;  %502 = vperm.xlu0 %726, %v848_v12   ;;  %v749_v16 = vld [vmem:[#allocation3 + $0x18] sm:$0xff]   ;;  %v751_v21 = vld [vmem:[#allocation3 + $0x10] sm:$0xff]   ;;  %v752_v22 = vld [vmem:[#allocation3 + $0x48] sm:$0xff]   ;;  %vm356_vm4 = vcmp.ge.s32.totalorder %v347_v55, 64  ;;  %vm357_vm5 = vcmp.lt.s32.totalorder %v347_v55, 96  ;;  %v628_v61 = vsel %vm348_vm2, 1.0, %v796_v60 }
  0x13   :  { %721 = vset.pattern.permute.xlu1 %v794_v8  ;;  %v758_v19 = vld [vmem:[%s942_s0 + $0x4] ss:$8 sps:$4 sm:$0xff]   ;;  %v753_v23 = vld [vmem:[#allocation3 + $0x8] sm:$0xff]   ;;  %v754_v24 = vld [vmem:[#allocation3 + $0x40] sm:$0xff]   ;;  %vm361_vm7 = vcmp.ge.s32.totalorder %v347_v55, 96 }
  0x14   :  { %414 = vperm.xlu1 %721, %v841_v5   ;;  %659 = vmatpush3.bf16.msra.mxu0 %v743_v7  ;;  %v761_v20 = vld [vmem:[%s942_s0 + $0x24] ss:$8 sps:$4 sm:$0xff]   ;;  %v755_v25 = vld [vmem:[#allocation3] sm:$0xff]   ;;  %v756_v27 = vld [vmem:[%s942_s0] ss:$8 sps:$4 sm:$0xff]  }
  0x15   :  { %705 = vmatpush3.bf16.msra.mxu1 %v743_v7  ;;  %660 = vmatprep.subr.bf16.mxu0 %v744_v9  ;;  %v56_v26 = vld [vmem:[%s942_s0 + $0x30] sm:$0xff]  ;;  %v369_v28 = vld [vmem:[%s944_s2 + $0x28] sm:$0xff]  ;;  %v368_v30 = vld [vmem:[%s944_s2 + $0x20] sm:$0xff] }
  0x16   :  { %698 = vmatprep.subr.bf16.mxu1 %v744_v9  ;;  %727 = vset.pattern.permute.xlu0 %v795_v15  ;;  %v759_v29 = vld [vmem:[%s942_s0 + $0x20] ss:$8 sps:$4 sm:$0xff]   ;;  %v762_v31 = vld [vmem:[%s942_s0 + $0x14] ss:$8 sps:$4 sm:$0xff]   ;;  %v604_v32 = vcombine.high %v56_v26, %v56_v26  ;;  %v765_v33 = vld [vmem:[%s942_s0 + $0x10] ss:$8 sps:$4 sm:$0xff]   ;;  %v603_v34 = vcombine.low %v56_v26, %v56_v26 }
  0x17   :  { %460 = vperm.xlu0 %727, %v848_v12   ;;  %254 = vmatprep.mubr.bf16.mxu0 %v758_v19  ;;  %v370_v35 = vld [vmem:[%s944_s2 + $0x30] sm:$0xff]  ;;  %vm353_vm3 = vmand %vm351_vm0, %vm352_vm1 }
  0x18   :  { %422 = vperm.xlu1 %721, %v835_v2   ;;  %661 = vmatpush3.bf16.msra.mxu0 %v745_v10  ;;  %v629_v62 = vsel %vm353_vm3, 1.0, %v796_v60  ;;  %vm358_vm6 = vmand %vm356_vm4, %vm357_vm5 }
  0x19   :  { %706 = vmatpush3.bf16.msra.mxu1 %v745_v10  ;;  %662 = vmatprep.subr.bf16.mxu0 %v746_v11 }
  0x1a   :  { %699 = vmatprep.subr.bf16.mxu1 %v746_v11  ;;  %270 = vmatprep.mubr.bf16.mxu1 %v761_v20 }
  0x1b   :  { %464 = vperm.xlu0 %727, %v835_v2  }
  0x1c   :  { %722 = vset.pattern.permute.xlu1 %v795_v15  ;;  %663 = vmatpush3.bf16.msra.mxu0 %v747_v13 }
  0x1d   :  { %456 = vperm.xlu1 %722, %v841_v5   ;;  %707 = vmatpush3.bf16.msra.mxu1 %v747_v13  ;;  %v631_v13 = vsel %vm361_vm7, 1.0, %v796_v60 }
  0x1e   :  { %664 = vmatprep.subr.bf16.mxu0 %v748_v14  ;;  %700 = vmatprep.subr.bf16.mxu1 %v748_v14 }
  0x1f   :  { %468 = vperm.xlu0 %727, %v859_v18  }
  0x20   :  { %665 = vmatpush3.bf16.msra.mxu0 %v749_v16 }
  0x21   :  { %723 = vset.pattern.permute.xlu1 %v792_v0  ;;  %708 = vmatpush3.bf16.msra.mxu1 %v749_v16 }
  0x22   :  { %388 = vperm.xlu1 %723, %v859_v18   ;;  %666 = vmatprep.subr.bf16.mxu0 %v750_v17 }
  0x23   :  { %701 = vmatprep.subr.bf16.mxu1 %v750_v17  ;;  %730 = vset.pattern.permute.xlu0 %v794_v8 }
  0x24   :  { %667 = vmatpush3.bf16.msra.mxu0 %v751_v21  ;;  %418 = vperm.xlu0 %730, %v848_v12  }
  0x25   :  { %709 = vmatpush3.bf16.msra.mxu1 %v751_v21  ;;  %668 = vmatprep.subr.bf16.mxu0 %v752_v22 }
  0x26   :  { %724 = vset.pattern.permute.xlu1 %v794_v8  ;;  %702 = vmatprep.subr.bf16.mxu1 %v752_v22 }
  0x27   :  { %426 = vperm.xlu1 %724, %v859_v18  }
  0x28   :  { %669 = vmatpush3.bf16.msra.mxu0 %v753_v23  ;;  %434 = vperm.xlu0 %730, %v369_v28  }
  0x29   :  { %710 = vmatpush3.bf16.msra.mxu1 %v753_v23  ;;  %670 = vmatprep.subr.bf16.mxu0 %v754_v24 }
  0x2a   :  { %703 = vmatprep.subr.bf16.mxu1 %v754_v24 }
  0x2b   :  { %725 = vset.pattern.permute.xlu1 %v793_v1 }
  0x2c   :  { %498 = vperm.xlu1 %725, %v841_v5   ;;  %671 = vmatpush3.bf16.msra.mxu0 %v755_v25 }
  0x2d   :  { %711 = vmatpush3.bf16.msra.mxu1 %v755_v25  ;;  %733 = vset.pattern.permute.xlu0 %v792_v0 }
  0x2e   :  { %373 = vperm.xlu0 %733, %v841_v5   ;;  %v630_v5 = vsel %vm358_vm6, 1.0, %v796_v60 }
  0x2f   :  { %255 = vmatmul.mubr.bf16.vlgmr.msra.gmra.mxu0 %v756_v27 }
  0x30   :  { %728 = vset.pattern.permute.xlu1 %v792_v0  ;;  %271 = vmatmul.mubr.bf16.vlgmr.msra.gmra.mxu1 %v759_v29 }
  0x31   :  { %393 = vperm.xlu1 %728, %v368_v30   ;;  %262 = vmatprep.mubr.bf16.mxu0 %v762_v31 }
  0x32   :  { %278 = vmatprep.mubr.bf16.mxu1 %v604_v32  ;;  %378 = vperm.xlu0 %733, %v848_v12  }
  0x35   :  { %729 = vset.pattern.permute.xlu1 %v794_v8 }
  0x36   :  { %430 = vperm.xlu1 %729, %v368_v30   ;;  %403 = vperm.xlu0 %733, %v370_v35  }
  0x37   :  { %263 = vmatmul.mubr.bf16.gmra.mxu0 %v765_v33 }
  0x38   :  { %279 = vmatmul.mubr.bf16.gmra.mxu1 %v603_v34 }
  0x3a   :  { %731 = vset.pattern.permute.xlu1 %v793_v1  ;;  %738 = vset.pattern.permute.xlu0 %v793_v1 }
  0x3b   :  { %506 = vperm.xlu1 %731, %v835_v2   ;;  %514 = vperm.xlu0 %738, %v368_v30  }
  0x3f   :  { %732 = vset.pattern.permute.xlu1 %v792_v0  ;;  %522 = vperm.xlu0 %738, %v370_v35  }
  0x40   :  { %398 = vperm.xlu1 %732, %v369_v28  }
  0x44   :  { %734 = vset.pattern.permute.xlu1 %v795_v15 }
  0x45   :  { %472 = vperm.xlu1 %734, %v368_v30  }
  0x49   :  { %735 = vset.pattern.permute.xlu1 %v793_v1 }
  0x4a   :  { %510 = vperm.xlu1 %735, %v859_v18  }
  0x4e   :  { %736 = vset.pattern.permute.xlu1 %v794_v8 }
  0x4f   :  { %438 = vperm.xlu1 %736, %v370_v35  }
  0x53   :  { %737 = vset.pattern.permute.xlu1 %v795_v15 }
  0x54   :  { %476 = vperm.xlu1 %737, %v369_v28  }
  0x58   :  { %480 = vperm.xlu1 %737, %v370_v35  }
  0x5c   :  { %739 = vset.pattern.permute.xlu1 %v793_v1 }
  0x5d   :  { %518 = vperm.xlu1 %739, %v369_v28  }
  0x8a   :  { %v384_v36 = vpop.permute.xlu1 %383 }
  0x8b   :  { %v408_v3 = vmul.f32 %v628_v61, %v384_v36 }
  0x8d   :  { %v503_v42 = vpop.permute.xlu0 %502 }
  0x8e   :  { %v526_v26 = vmul.f32 %v631_v13, %v503_v42 }
  0x8f   :  { %v415_v37 = vpop.permute.xlu1 %414 }
  0x90   :  { %v441_v63 = vmul.f32 %v629_v62, %v415_v37 }
  0x92   :  { %v461_v44 = vpop.permute.xlu0 %460 }
  0x93   :  { %v423_v38 = vpop.permute.xlu1 %422  ;;  %v484_v11 = vmul.f32 %v630_v5, %v461_v44 }
  0x94   :  { %v443_v4 = vmul.f32 %v629_v62, %v423_v38 }
  0x96   :  { %v465_v46 = vpop.permute.xlu0 %464  ;;  %v450_v16 = vadd.f32 %v443_v4, %v408_v3 }
  0x97   :  { %v485_v17 = vmul.f32 %v630_v5, %v465_v46 }
  0x98   :  { %v457_v39 = vpop.permute.xlu1 %456 }
  0x99   :  { %v483_v7 = vmul.f32 %v630_v5, %v457_v39  ;;  %v492_v33 = vadd.f32 %v485_v17, %v450_v16 }
  0x9a   :  { %v469_v48 = vpop.permute.xlu0 %468 }
  0x9b   :  { %v486_v23 = vmul.f32 %v630_v5, %v469_v48 }
  0x9d   :  { %v389_v40 = vpop.permute.xlu1 %388 }
  0x9e   :  { %v409_v8 = vmul.f32 %v628_v61, %v389_v40 }
  0x9f   :  { %v419_v51 = vpop.permute.xlu0 %418 }
  0xa0   :  { %v442_v1 = vmul.f32 %v629_v62, %v419_v51 }
  0xa2   :  { %v427_v41 = vpop.permute.xlu1 %426 }
  0xa3   :  { %v435_v54 = vpop.permute.xlu0 %434  ;;  %v444_v9 = vmul.f32 %v629_v62, %v427_v41 }
  0xa4   :  { %v446_v30 = vmul.f32 %v629_v62, %v435_v54 }
  0xa5   :  { %v451_v21 = vadd.f32 %v444_v9, %v409_v8 }
  0xa7   :  { %v499_v43 = vpop.permute.xlu1 %498  ;;  %v493_v37 = vadd.f32 %v486_v23, %v451_v21 }
  0xa8   :  { %v525_v22 = vmul.f32 %v631_v13, %v499_v43 }
  0xa9   :  { %v374_v57 = vpop.permute.xlu0 %373 }
  0xaa   :  { %v406_v0 = vmul.f32 %v628_v61, %v374_v57 }
  0xac   :  { %v394_v45 = vpop.permute.xlu1 %393  ;;  %v448_v10 = vadd.f32 %v441_v63, %v406_v0 }
  0xad   :  { %v379_v59 = vpop.permute.xlu0 %378  ;;  %v410_v18 = vmul.f32 %v628_v61, %v394_v45 }
  0xae   :  { %v407_v2 = vmul.f32 %v628_v61, %v379_v59  ;;  %v490_v24 = vadd.f32 %v483_v7, %v448_v10 }
  0xb0   :  { %v449_v12 = vadd.f32 %v442_v1, %v407_v2  ;;  %v532_v38 = vadd.f32 %v525_v22, %v490_v24 }
  0xb1   :  { %v431_v47 = vpop.permute.xlu1 %430  ;;  %v404_v14 = vpop.permute.xlu0 %403 }
  0xb2   :  { %v445_v19 = vmul.f32 %v629_v62, %v431_v47  ;;  %v491_v27 = vadd.f32 %v484_v11, %v449_v12  ;;  %v412_v39 = vmul.f32 %v628_v61, %v404_v14 }
  0xb4   :  { %v452_v34 = vadd.f32 %v445_v19, %v410_v18  ;;  %v533_v45 = vadd.f32 %v526_v26, %v491_v27 }
  0xb6   :  { %v916_v49 = vpop.permute.xlu1 %506  ;;  %v515_v40 = vpop.permute.xlu0 %514 }
  0xb7   :  { %v527_v44 = vmul.f32 %v631_v13, %v916_v49 }
  0xb9   :  { %v534_v3 = vadd.f32 %v527_v44, %v492_v33 }
  0xba   :  { %v523_v49 = vpop.permute.xlu0 %522 }
  0xbb   :  { %v399_v50 = vpop.permute.xlu1 %398 }
  0xbc   :  { %v411_v31 = vmul.f32 %v628_v61, %v399_v50 }
  0xbe   :  { %v453_v48 = vadd.f32 %v446_v30, %v411_v31 }
  0xc0   :  { %v473_v53 = vpop.permute.xlu1 %472 }
  0xc1   :  { %v487_v35 = vmul.f32 %v630_v5, %v473_v53  ;;  %v529_v53 = vmul.f32 %v631_v13, %v515_v40 }
  0xc3   :  { %v494_v57 = vadd.f32 %v487_v35, %v452_v34 }
  0xc5   :  { %v919_v56 = vpop.permute.xlu1 %510  ;;  %v536_v16 = vadd.f32 %v529_v53, %v494_v57  ;;  %v578_v57 = vshrl.u32 %v346_v52, 7 }
  0xc7   :  { %vm579_vm8 = vcmp.eq.s32.totalorder %v578_v57, 0 }
  0xca   :  { %v439_v58 = vpop.permute.xlu1 %438 }
  0xcb   :  { %v447_v41 = vmul.f32 %v629_v62, %v439_v58  ;;  %v528_v58 = vmul.f32 %v631_v13, %v919_v56 }
  0xcd   :  { %v454_v62 = vadd.f32 %v447_v41, %v412_v39 }
  0xcf   :  { %v477_v6 = vpop.permute.xlu1 %476 }
  0xd0   :  { %v488_v51 = vmul.f32 %v630_v5, %v477_v6 }
  0xd2   :  { %v495_v8 = vadd.f32 %v488_v51, %v453_v48 }
  0xd3   :  { %v481_v28 = vpop.permute.xlu1 %480 }
  0xd4   :  { %v489_v0 = vmul.f32 %v630_v5, %v481_v28  ;;  %v531_v5 = vmul.f32 %v631_v13, %v523_v49 }
  0xd6   :  { %v496_v17 = vadd.f32 %v489_v0, %v454_v62 }
  0xd8   :  { %v519_v59 = vpop.permute.xlu1 %518  ;;  %v538_v30 = vadd.f32 %v531_v5, %v496_v17 }
  0xd9   :  { %v530_v9 = vmul.f32 %v631_v13, %v519_v59 }
  0xef   :  { %v672_v15 = vpop.f32.mrf.mxu0 }
  0xf0   :  { %v684_v20 = vpop.f32.mrf.mxu1 }
  0xf1   :  { %v673_v25 = vpop.f32.mrf.mxu0 }
  0xf2   :  { %v685_v29 = vpop.f32.mrf.mxu1  ;;  %v674_v42 = vadd.f32 %v673_v25, %v672_v15  ;;  %v535_v15 = vadd.f32 %v528_v58, %v493_v37  ;;  %v537_v25 = vadd.f32 %v530_v9, %v495_v8 }
  0xf3   :  { %v675_v32 = vpop.f32.mrf.mxu0  ;;  %v686_v50 = vadd.f32 %v685_v29, %v684_v20 }
  0xf4   :  { %v687_v36 = vpop.f32.mrf.mxu1  ;;  %v539_v4 = vmul.f32 %v674_v42, %v532_v38 }
  0xf5   :  { %v676_v43 = vpop.f32.mrf.mxu0  ;;  %v543_v26 = vmul.f32 %v686_v50, %v536_v16 }
  0xf6   :  { %v677_v46 = vadd.f32 %v676_v43, %v675_v32  ;;  %v688_v47 = vpop.f32.mrf.mxu1  ;;  %v558_v20 = vmul.f32 %v674_v42, %v539_v4 }
  0xf7   :  { %v689_v54 = vadd.f32 %v688_v47, %v687_v36  ;;  %v678_v55 = vpop.f32.mrf.mxu0  ;;  %v562_v35 = vmul.f32 %v686_v50, %v543_v26 }
  0xf8   :  { %v642_v60 = vpack.c.bf16 %v677_v46, %v674_v42  ;;  %v540_v63 = vmul.f32 %v677_v46, %v533_v45  ;;  %v690_v61 = vpop.f32.mrf.mxu1 }
  0xf9   :  { %v652_v1 = vpack.c.bf16 %v689_v54, %v686_v50  ;;  %v679_v2 = vpop.f32.mrf.mxu0  ;;  %v544_v31 = vmul.f32 %v689_v54, %v537_v25 }
  0xfa   :  { %643 = vst [vmem:[%s945_s3] sm:$0xff] %v642_v60   ;;  %v680_v6 = vadd.f32 %v679_v2, %v678_v55  ;;  %v691_v7 = vpop.f32.mrf.mxu1  ;;  %v559_v11 = vmul.f32 %v677_v46, %v540_v63  ;;  %v546_v21 = vadd.f32 %v540_v63, %v539_v4 }
  0xfb   :  { %655 = vst [vmem:[%s945_s3 + $0x10] sm:$0xff] %v652_v1   ;;  %v692_v56 = vadd.f32 %v691_v7, %v690_v61  ;;  %v681_v10 = vpop.f32.mrf.mxu0  ;;  %v563_v39 = vmul.f32 %v689_v54, %v544_v31 }
  0xfc   :  { %v541_v12 = vmul.f32 %v680_v6, %v534_v3  ;;  %v693_v14 = vpop.f32.mrf.mxu1  ;;  %v565_v13 = vadd.f32 %v559_v11, %v558_v20 }
  0xfd   :  { %v638_v18 = vpack.c.bf16 %v692_v56, %v692_v56  ;;  %v682_v19 = vpop.f32.mrf.mxu0  ;;  %v545_v36 = vmul.f32 %v692_v56, %v538_v30 }
  0xfe   :  { %v560_v22 = vmul.f32 %v680_v6, %v541_v12  ;;  %v683_v23 = vadd.f32 %v682_v19, %v681_v10  ;;  %v694_v24 = vpop.f32.mrf.mxu1  ;;  %v547_v27 = vadd.f32 %v546_v21, %v541_v12 }
  0xff   :  { %345 = vst [vmem:[%s945_s3 + $0x18] sm:$0xf] %v638_v18  ;;  %v564_v43 = vmul.f32 %v692_v56, %v545_v36 }
 0x100   :  { %v647_v28 = vpack.c.bf16 %v683_v23, %v680_v6  ;;  %v542_v29 = vmul.f32 %v683_v23, %v535_v15  ;;  %v566_v32 = vadd.f32 %v565_v13, %v560_v22 }
 0x102   :  { %654 = vst [vmem:[%s945_s3 + $0x8] sm:$0xff] %v647_v28   ;;  %v548_v33 = vadd.f32 %v547_v27, %v542_v29  ;;  %v561_v34 = vmul.f32 %v683_v23, %v542_v29 }
 0x104   :  { %v549_v37 = vadd.f32 %v548_v33, %v543_v26  ;;  %v567_v38 = vadd.f32 %v566_v32, %v561_v34 }
 0x106   :  { %v550_v40 = vadd.f32 %v549_v37, %v544_v31  ;;  %v568_v41 = vadd.f32 %v567_v38, %v562_v35 }
 0x108   :  { %v551_v44 = vadd.f32 %v550_v40, %v545_v36  ;;  %v569_v45 = vadd.f32 %v568_v41, %v563_v39 }
 0x10a   :  { %v552_v42 = vrot.slane %v551_v44, 4  ;;  %v570_v46 = vadd.f32 %v569_v45, %v564_v43 }
 0x10c   :  { %v553_v47 = vadd.f32 %v552_v42, %v551_v44  ;;  %v571_v48 = vrot.slane %v570_v46, 4 }
 0x10e   :  { %v554_v51 = vrot.slane %v553_v47, 2  ;;  %v572_v55 = vadd.f32 %v571_v48, %v570_v46 }
 0x110   :  { %v555_v53 = vadd.f32 %v554_v51, %v553_v47  ;;  %v573_v59 = vrot.slane %v572_v55, 2 }
 0x112   :  { %v556_v50 = vrot.slane %v555_v53, 1  ;;  %v574_v60 = vadd.f32 %v573_v59, %v572_v55 }
 0x114   :  { %v557_v63 = vadd.f32 %v556_v50, %v555_v53  ;;  %v575_v54 = vrot.slane %v574_v60, 1 }
 0x116   :  { %v576_v61 = vadd.f32 %v575_v54, %v574_v60  ;;  %v580_v58 = vsel %vm579_vm8, %v557_v63, 0.0 }
 0x117   :  { %581 = vst [vmem:[%s946_s4] sm:$0xff] %v580_v58 }
 0x118   :  { %v582_v62 = vsel %vm579_vm8, %v576_v61, 0.0 }
 0x119   :  { %583 = vst [vmem:[%s947_s5] sm:$0xff] %v582_v62 }
 0x11a   :  { %596 = vsyncpa [#allocation4], 1 }

// kernel: tile.68
= control target key start
LH: loop header
LB: loop body
LE: loop exit
PB: predicated region body
PF: predicated region fallthrough
CT: control target
= control target key end

     0   :  { %s22_s0 = inlined_call_operand.vmem [shape: f32[16], index: 0, kind: input, shape index: {}]   ;;  %s23_s1 = inlined_call_operand.vmem [shape: f32[4,16], index: 1, kind: output, shape index: {}]  }
   0x1   :  { %v4_v0 = vld [vmem:[%s22_s0] ss:$0 sm:$0xff] }
   0x2   :  { %5 = vst [vmem:[%s23_s1] sm:$0xf] %v4_v0 }

// kernel: tile.69
= control target key start
LH: loop header
LB: loop body
LE: loop exit
PB: predicated region body
PF: predicated region fallthrough
CT: control target
= control target key end

     0   :  { %vm8_vm0 = vcmask 130048   ;;  %s40_s8 = smov 16   ;;  %s41_s9 = smov 32   ;;  %vm14_vm1 = vcmask 523648   ;;  %vm20_vm2 = vcmask 392448   ;;  %vm26_vm3 = vcmask 261248   ;;  %s58_s0 = inlined_call_operand.vmem [shape: f32[4,16], index: 0, kind: input, shape index: {}]   ;;  %s59_s1 = inlined_call_operand.vmem [shape: f32[1,64], index: 1, kind: output, shape index: {}]  }
   0x1   :  { %v5_v0 = vld [vmem:[%s58_s0] sm:$0xf]  ;;  %s39_s0 = smov 48  }
   0x2   :  { %6 = vst [vmem:[#allocation1] sm:$0xf] %v5_v0 }
   0x9   :  { %v11_v1 = vld [vmem:[#allocation1 + $0x3] sm:$0x1]   ;;  %v23_v2 = vld [vmem:[#allocation1 + $0x1] sm:$0x1]   ;;  %v7_v3 = vld [vmem:[#allocation1] sm:$0x1]  }
   0xa   :  { %12 = vrot.lane.b32.xlu0 %v11_v1, %s39_s0  ;;  %24 = vrot.lane.b32.xlu1 %v23_v2, %s40_s8  ;;  %v17_v4 = vld [vmem:[#allocation1 + $0x2] sm:$0x1]   ;;  %9 = vst.msk [vmem:[#allocation0] sm:$0x1] %vm8_vm0, %v7_v3  }
   0xe   :  { %18 = vrot.lane.b32.xlu0 %v17_v4, %s41_s9 }
  0x7c   :  { %v13_v5 = vpop.permute.xlu0 %12   ;;  %v25_v6 = vpop.permute.xlu1 %24  }
  0x7d   :  { %15 = vst.msk [vmem:[#allocation0] sm:$0x1] %vm14_vm1, %v13_v5  }
  0x80   :  { %v19_v7 = vpop.permute.xlu0 %18  }
  0x81   :  { %21 = vst.msk [vmem:[#allocation0] sm:$0x1] %vm20_vm2, %v19_v7  }
  0x82   :  { %27 = vst.msk [vmem:[#allocation0] sm:$0x1] %vm26_vm3, %v25_v6  }
  0x89   :  { %v32_v8 = vld [vmem:[#allocation0] sm:$0x1] }
  0x8a   :  { %35 = vst [vmem:[%s59_s1] sm:$0x1] %v32_v8 }

// kernel: generator_forward.14
= control target key start
LH: loop header
LB: loop body
LE: loop exit
PB: predicated region body
PF: predicated region fallthrough
CT: control target
= control target key end

     0   :  { %vm218_vm0 = vcmask 519168   ;;  %s526_s0 = inlined_call_operand.vmem [shape: bf16[168,64], index: 0, kind: input, shape index: {}]   ;;  %s527_s1 = inlined_call_operand.vmem [shape: f32[1,64], index: 1, kind: input, shape index: {}]   ;;  %s528_s2 = inlined_call_operand.vmem [shape: f32[1,64], index: 2, kind: input, shape index: {}]   ;;  %s529_s3 = inlined_call_operand.vmem [shape: bf16[168,64], index: 3, kind: output, shape index: {}]  }
   0x1   :  { %v289_v0 = vld [vmem:[%s526_s0] sm:$0xff]   ;;  %v328_v4 = vld [vmem:[%s526_s0 + $0x8] sm:$0xff]   ;;  %v329_v5 = vld [vmem:[%s526_s0 + $0x10] sm:$0xff]  }
   0x2   :  { %v363_v1 = vld [vmem:[%s527_s1] ss:$0 sm:$0xff]  ;;  %v290_v2 = vunpack.c.l.bf16 %v289_v0  ;;  %v291_v3 = vunpack.c.h.bf16 %v289_v0  ;;  %v330_v6 = vld [vmem:[%s526_s0 + $0x18] sm:$0xff]   ;;  %v294_v8 = vunpack.c.l.bf16 %v328_v4  ;;  %v295_v9 = vunpack.c.h.bf16 %v328_v4  ;;  %v332_v41 = vld [vmem:[%s526_s0 + $0x28] sm:$0xff]  }
   0x3   :  { %v377_v7 = vld [vmem:[%s528_s2] ss:$0 sm:$0xff]  ;;  %v298_v10 = vunpack.c.l.bf16 %v329_v5  ;;  %v299_v11 = vunpack.c.h.bf16 %v329_v5  ;;  %v302_v14 = vunpack.c.l.bf16 %v330_v6  ;;  %v303_v15 = vunpack.c.h.bf16 %v330_v6  ;;  %v333_v42 = vld [vmem:[%s526_s0 + $0x30] sm:$0xff]   ;;  %v334_v47 = vld [vmem:[%s526_s0 + $0x38] sm:$0xff]  }
   0x4   :  { %v63_v12 = vmul.f32 %v290_v2, %v363_v1  ;;  %v64_v13 = vmul.f32 %v291_v3, %v363_v1  ;;  %v65_v16 = vmul.f32 %v294_v8, %v363_v1  ;;  %v66_v17 = vmul.f32 %v295_v9, %v363_v1  ;;  %v331_v36 = vld [vmem:[%s526_s0 + $0x20] sm:$0xff]  }
   0x5   :  { %v67_v18 = vmul.f32 %v298_v10, %v363_v1  ;;  %v68_v19 = vmul.f32 %v299_v11, %v363_v1  ;;  %v69_v22 = vmul.f32 %v302_v14, %v363_v1  ;;  %v70_v23 = vmul.f32 %v303_v15, %v363_v1 }
   0x6   :  { %v91_v20 = vadd.f32 %v377_v7, %v63_v12  ;;  %v92_v21 = vadd.f32 %v377_v7, %v64_v13  ;;  %v93_v24 = vadd.f32 %v377_v7, %v65_v16  ;;  %v94_v25 = vadd.f32 %v377_v7, %v66_v17 }
   0x7   :  { %v95_v26 = vadd.f32 %v377_v7, %v67_v18  ;;  %v96_v27 = vadd.f32 %v377_v7, %v68_v19  ;;  %v97_v30 = vadd.f32 %v377_v7, %v69_v22  ;;  %v98_v31 = vadd.f32 %v377_v7, %v70_v23  ;;  %v335_v18 = vld [vmem:[%s526_s0 + $0x40] sm:$0xff]   ;;  %v336_v23 = vld [vmem:[%s526_s0 + $0x48] sm:$0xff]  }
   0x8   :  { %v112_v28 = vmax.f32 %v91_v20, 0.0  ;;  %v113_v29 = vmax.f32 %v92_v21, 0.0  ;;  %v114_v32 = vmax.f32 %v93_v24, 0.0  ;;  %v115_v33 = vmax.f32 %v94_v25, 0.0  ;;  %v34_v24 = vld [vmem:[%s526_s0 + $0x50] sm:$0xf] }
   0x9   :  { %v116_v34 = vmax.f32 %v95_v26, 0.0  ;;  %v117_v35 = vmax.f32 %v96_v27, 0.0  ;;  %v118_v39 = vmax.f32 %v97_v30, 0.0  ;;  %v119_v40 = vmax.f32 %v98_v31, 0.0 }
   0xa   :  { %v267_v37 = vpack.c.bf16 %v112_v28, %v112_v28  ;;  %v268_v38 = vpack.c.bf16 %v113_v29, %v113_v29  ;;  %v269_v43 = vpack.c.bf16 %v114_v32, %v114_v32  ;;  %v270_v44 = vpack.c.bf16 %v115_v33, %v115_v33 }
   0xb   :  { %v271_v45 = vpack.c.bf16 %v116_v34, %v116_v34  ;;  %v272_v46 = vpack.c.bf16 %v117_v35, %v117_v35  ;;  %v273_v48 = vpack.c.bf16 %v118_v39, %v118_v39  ;;  %v274_v49 = vpack.c.bf16 %v119_v40, %v119_v40 }
   0xc   :  { %219 = vst.msk [vmem:[%s529_s3] sm:$0xf] %vm218_vm0, %v267_v37  ;;  %220 = vst.msk [vmem:[%s529_s3 + $0x4] sm:$0xf] %vm218_vm0, %v268_v38  ;;  %v306_v50 = vunpack.c.l.bf16 %v331_v36  ;;  %v307_v51 = vunpack.c.h.bf16 %v331_v36  ;;  %v310_v52 = vunpack.c.l.bf16 %v332_v41  ;;  %v311_v53 = vunpack.c.h.bf16 %v332_v41 }
   0xd   :  { %221 = vst.msk [vmem:[%s529_s3 + $0x8] sm:$0xf] %vm218_vm0, %v269_v43  ;;  %222 = vst.msk [vmem:[%s529_s3 + $0xc] sm:$0xf] %vm218_vm0, %v270_v44  ;;  %v314_v54 = vunpack.c.l.bf16 %v333_v42  ;;  %v315_v55 = vunpack.c.h.bf16 %v333_v42  ;;  %v318_v58 = vunpack.c.l.bf16 %v334_v47  ;;  %v319_v59 = vunpack.c.h.bf16 %v334_v47 }
   0xe   :  { %223 = vst.msk [vmem:[%s529_s3 + $0x10] sm:$0xf] %vm218_vm0, %v271_v45  ;;  %224 = vst.msk [vmem:[%s529_s3 + $0x14] sm:$0xf] %vm218_vm0, %v272_v46  ;;  %v71_v56 = vmul.f32 %v306_v50, %v363_v1  ;;  %v72_v57 = vmul.f32 %v307_v51, %v363_v1  ;;  %v73_v60 = vmul.f32 %v310_v52, %v363_v1  ;;  %v322_v31 = vunpack.c.l.bf16 %v335_v18 }
   0xf   :  { %225 = vst.msk [vmem:[%s529_s3 + $0x18] sm:$0xf] %vm218_vm0, %v273_v48  ;;  %226 = vst.msk [vmem:[%s529_s3 + $0x1c] sm:$0xf] %vm218_vm0, %v274_v49  ;;  %v74_v61 = vmul.f32 %v311_v53, %v363_v1  ;;  %v75_v62 = vmul.f32 %v314_v54, %v363_v1  ;;  %v76_v63 = vmul.f32 %v315_v55, %v363_v1  ;;  %v323_v32 = vunpack.c.h.bf16 %v335_v18 }
  0x10   :  { %v99_v0 = vadd.f32 %v377_v7, %v71_v56  ;;  %v100_v2 = vadd.f32 %v377_v7, %v72_v57  ;;  %v77_v3 = vmul.f32 %v318_v58, %v363_v1  ;;  %v78_v4 = vmul.f32 %v319_v59, %v363_v1 }
  0x11   :  { %v101_v5 = vadd.f32 %v377_v7, %v73_v60  ;;  %v102_v6 = vadd.f32 %v377_v7, %v74_v61  ;;  %v103_v8 = vadd.f32 %v377_v7, %v75_v62  ;;  %v104_v9 = vadd.f32 %v377_v7, %v76_v63 }
  0x12   :  { %v120_v10 = vmax.f32 %v99_v0, 0.0  ;;  %v121_v11 = vmax.f32 %v100_v2, 0.0  ;;  %v105_v12 = vadd.f32 %v377_v7, %v77_v3  ;;  %v106_v13 = vadd.f32 %v377_v7, %v78_v4 }
  0x13   :  { %v122_v14 = vmax.f32 %v101_v5, 0.0  ;;  %v123_v15 = vmax.f32 %v102_v6, 0.0  ;;  %v124_v16 = vmax.f32 %v103_v8, 0.0  ;;  %v125_v17 = vmax.f32 %v104_v9, 0.0 }
  0x14   :  { %v275_v19 = vpack.c.bf16 %v120_v10, %v120_v10  ;;  %v276_v20 = vpack.c.bf16 %v121_v11, %v121_v11  ;;  %v126_v21 = vmax.f32 %v105_v12, 0.0  ;;  %v127_v22 = vmax.f32 %v106_v13, 0.0 }
  0x15   :  { %v277_v25 = vpack.c.bf16 %v122_v14, %v122_v14  ;;  %v278_v26 = vpack.c.bf16 %v123_v15, %v123_v15  ;;  %v279_v27 = vpack.c.bf16 %v124_v16, %v124_v16  ;;  %v280_v28 = vpack.c.bf16 %v125_v17, %v125_v17 }
  0x16   :  { %227 = vst.msk [vmem:[%s529_s3 + $0x20] sm:$0xf] %vm218_vm0, %v275_v19  ;;  %228 = vst.msk [vmem:[%s529_s3 + $0x24] sm:$0xf] %vm218_vm0, %v276_v20  ;;  %v281_v29 = vpack.c.bf16 %v126_v21, %v126_v21  ;;  %v282_v30 = vpack.c.bf16 %v127_v22, %v127_v22  ;;  %v326_v33 = vunpack.c.l.bf16 %v336_v23  ;;  %v327_v34 = vunpack.c.h.bf16 %v336_v23 }
  0x17   :  { %229 = vst.msk [vmem:[%s529_s3 + $0x28] sm:$0xf] %vm218_vm0, %v277_v25  ;;  %230 = vst.msk [vmem:[%s529_s3 + $0x2c] sm:$0xf] %vm218_vm0, %v278_v26  ;;  %v55_v35 = vunpack.c.l.bf16 %v34_v24  ;;  %v79_v36 = vmul.f32 %v322_v31, %v363_v1  ;;  %v80_v37 = vmul.f32 %v323_v32, %v363_v1 }
  0x18   :  { %231 = vst.msk [vmem:[%s529_s3 + $0x30] sm:$0xf] %vm218_vm0, %v279_v27  ;;  %232 = vst.msk [vmem:[%s529_s3 + $0x34] sm:$0xf] %vm218_vm0, %v280_v28  ;;  %v81_v38 = vmul.f32 %v326_v33, %v363_v1  ;;  %v82_v39 = vmul.f32 %v327_v34, %v363_v1 }
  0x19   :  { %233 = vst.msk [vmem:[%s529_s3 + $0x38] sm:$0xf] %vm218_vm0, %v281_v29  ;;  %234 = vst.msk [vmem:[%s529_s3 + $0x3c] sm:$0xf] %vm218_vm0, %v282_v30  ;;  %v83_v40 = vmul.f32 %v363_v1, %v55_v35  ;;  %v107_v41 = vadd.f32 %v377_v7, %v79_v36  ;;  %v108_v42 = vadd.f32 %v377_v7, %v80_v37 }
  0x1a   :  { %v109_v43 = vadd.f32 %v377_v7, %v81_v38  ;;  %v110_v44 = vadd.f32 %v377_v7, %v82_v39 }
  0x1b   :  { %v111_v45 = vadd.f32 %v377_v7, %v83_v40  ;;  %v128_v46 = vmax.f32 %v107_v41, 0.0  ;;  %v129_v47 = vmax.f32 %v108_v42, 0.0 }
  0x1c   :  { %v130_v48 = vmax.f32 %v109_v43, 0.0  ;;  %v131_v49 = vmax.f32 %v110_v44, 0.0 }
  0x1d   :  { %v132_v50 = vmax.f32 %v111_v45, 0.0  ;;  %v283_v51 = vpack.c.bf16 %v128_v46, %v128_v46  ;;  %v284_v52 = vpack.c.bf16 %v129_v47, %v129_v47 }
  0x1e   :  { %v285_v53 = vpack.c.bf16 %v130_v48, %v130_v48  ;;  %v286_v54 = vpack.c.bf16 %v131_v49, %v131_v49 }
  0x1f   :  { %v287_v1 = vpack.c.bf16 %v132_v50, %v132_v50  ;;  %235 = vst.msk [vmem:[%s529_s3 + $0x40] sm:$0xf] %vm218_vm0, %v283_v51  ;;  %236 = vst.msk [vmem:[%s529_s3 + $0x44] sm:$0xf] %vm218_vm0, %v284_v52 }
  0x20   :  { %237 = vst.msk [vmem:[%s529_s3 + $0x48] sm:$0xf] %vm218_vm0, %v285_v53  ;;  %238 = vst.msk [vmem:[%s529_s3 + $0x4c] sm:$0xf] %vm218_vm0, %v286_v54 }
  0x21   :  { %239 = vst.msk [vmem:[%s529_s3 + $0x50] sm:$0xf] %vm218_vm0, %v287_v1 }

// kernel: generator_forward.13
= control target key start
LH: loop header
LB: loop body
LE: loop exit
PB: predicated region body
PF: predicated region fallthrough
CT: control target
= control target key end

     0   :  { %v1408_v0 = vmov 0   ;;  %v1409_v5 = vmov 0.0   ;;  %vm1410_vm0 = vmmov 0   ;;  %v1411_v35 = vmov 1   ;;  %s2264_s2 = inlined_call_operand.vmem [shape: f32[168,4], index: 2, kind: input, shape index: {}]   ;;  %s2265_s1 = inlined_call_operand.vmem [shape: bf16[128,64], index: 1, kind: input, shape index: {}]   ;;  %s2266_s0 = inlined_call_operand.vmem [shape: bf16[168,128], index: 0, kind: input, shape index: {}]   ;;  %s2267_s3 = inlined_call_operand.vmem [shape: bf16[168,64], index: 3, kind: output, shape index: {0}]   ;;  %s2268_s4 = inlined_call_operand.vmem [shape: f32[8,64], index: 4, kind: output, shape index: {1}]   ;;  %s2269_s5 = inlined_call_operand.vmem [shape: f32[8,64], index: 5, kind: output, shape index: {2}]  }
   0x1   :  { %1373 = vset.pattern.permute.xlu1 %v1408_v0  ;;  %1372 = vset.pattern.permute.xlu0 %v1408_v0  ;;  %v1447_v1 = vld [vmem:[%s2264_s2 + $0x10] sm:$0xff]  ;;  %v1452_v2 = vld [vmem:[%s2264_s2] sm:$0xff]  ;;  %v1389_v3 = vld [vmem:[%s2265_s1 + $0x38] sm:$0xff]   ;;  %v1412_v43 = vmov 2   ;;  %v1413_v44 = vmov 3   ;;  %vm22_vm1 = vcmask 523264   ;;  %v508_v59 = vlaneseq }
   0x2   :  { %559 = vperm.xlu1 %1373, %v1447_v1   ;;  %549 = vperm.xlu0 %1372, %v1452_v2   ;;  %v1462_v4 = vld [vmem:[%s2264_s2 + $0x18] sm:$0xff]  ;;  %v1468_v6 = vld [vmem:[%s2264_s2 + $0x8] sm:$0xff]  ;;  %v1390_v7 = vld [vmem:[%s2265_s1 + $0x30] sm:$0xff]   ;;  %23 = vst.msk [vmem:[#allocation2] sm:$0xff] %vm22_vm1, %v1409_v5  ;;  %vm486_vm10 = vcmask 519168  }
   0x3   :  { %1290 = vmatprep.subr.bf16.mxu0 %v1409_v5  ;;  %1350 = vmatprep.subr.bf16.mxu1 %v1409_v5  ;;  %v1481_v8 = vld [vmem:[%s2264_s2 + $0x28] sm:$0xff]  ;;  %v1486_v9 = vld [vmem:[%s2264_s2 + $0x20] sm:$0xff]  ;;  %v1502_v11 = vld [vmem:[%s2264_s2 + $0x38] sm:$0xff]  ;;  %24 = vst.msk [vmem:[#allocation2 + $0x8] sm:$0xff] %vm22_vm1, %v1409_v5  ;;  %v1795_v62 = vand.u32 127, %v508_v59 }
   0x4   :  { %1291 = vmatpush3.bf16.msra.mxu0 %v1389_v3  ;;  %1358 = vmatpush3.bf16.msra.mxu1 %v1389_v3  ;;  %v1391_v10 = vld [vmem:[%s2265_s1 + $0x28] sm:$0xff]   ;;  %v1507_v12 = vld [vmem:[%s2264_s2 + $0x30] sm:$0xff]  ;;  %v1392_v13 = vld [vmem:[%s2265_s1 + $0x20] sm:$0xff]   ;;  %25 = vst.msk [vmem:[#allocation2 + $0x10] sm:$0xff] %vm22_vm1, %v1409_v5 }
   0x5   :  { %1292 = vmatprep.subr.bf16.mxu0 %v1409_v5  ;;  %1351 = vmatprep.subr.bf16.mxu1 %v1409_v5  ;;  %v1519_v14 = vld [vmem:[%s2264_s2 + $0x48] sm:$0xff]  ;;  %v1524_v15 = vld [vmem:[%s2264_s2 + $0x40] sm:$0xff]  ;;  %v1393_v16 = vld [vmem:[%s2265_s1 + $0x18] sm:$0xff]   ;;  %26 = vst.msk [vmem:[#allocation2 + $0x18] sm:$0xff] %vm22_vm1, %v1409_v5  ;;  %vm513_vm2 = vcmp.ge.s32.totalorder %v1795_v62, 16  ;;  %vm514_vm3 = vcmp.lt.s32.totalorder %v1795_v62, 32 }
   0x6   :  { %564 = vperm.xlu1 %1373, %v1462_v4   ;;  %554 = vperm.xlu0 %1372, %v1468_v6   ;;  %v1536_v17 = vld [vmem:[%s2264_s2 + $0x58] sm:$0xff]  ;;  %v1541_v18 = vld [vmem:[%s2264_s2 + $0x50] sm:$0xff]  ;;  %v1553_v20 = vld [vmem:[%s2264_s2 + $0x68] sm:$0xff]  ;;  %27 = vst.msk [vmem:[#allocation2 + $0x20] sm:$0xff] %vm22_vm1, %v1409_v5  ;;  %vm510_vm5 = vcmp.lt.s32.totalorder %v1795_v62, 16  ;;  %vm518_vm6 = vcmp.ge.s32.totalorder %v1795_v62, 32 }
   0x7   :  { %1306 = vmatprep.mubr.msk.bf16.mxu0 %vm1410_vm0, %v1409_v5  ;;  %1330 = vmatprep.mubr.msk.bf16.mxu1 %vm1410_vm0, %v1409_v5  ;;  %v1394_v19 = vld [vmem:[%s2265_s1 + $0x10] sm:$0xff]   ;;  %v1558_v21 = vld [vmem:[%s2264_s2 + $0x60] sm:$0xff]  ;;  %v1395_v22 = vld [vmem:[%s2265_s1 + $0x8] sm:$0xff]   ;;  %28 = vst.msk [vmem:[#allocation2 + $0x28] sm:$0xff] %vm22_vm1, %v1409_v5  ;;  %vm519_vm7 = vcmp.lt.s32.totalorder %v1795_v62, 48  ;;  %vm523_vm9 = vcmp.ge.s32.totalorder %v1795_v62, 48 }
   0x8   :  { %1293 = vmatpush3.bf16.msra.mxu0 %v1390_v7  ;;  %1359 = vmatpush3.bf16.msra.mxu1 %v1390_v7  ;;  %v1570_v23 = vld [vmem:[%s2264_s2 + $0x78] sm:$0xff]  ;;  %v1575_v24 = vld [vmem:[%s2264_s2 + $0x70] sm:$0xff]  ;;  %v1396_v25 = vld [vmem:[%s2265_s1] sm:$0xff]   ;;  %29 = vst.msk [vmem:[#allocation2 + $0x30] sm:$0xff] %vm22_vm1, %v1409_v5 }
   0x9   :  { %1294 = vmatprep.subr.bf16.mxu0 %v1409_v5  ;;  %1352 = vmatprep.subr.bf16.mxu1 %v1409_v5  ;;  %v1587_v26 = vld [vmem:[%s2264_s2 + $0x88] sm:$0xff]  ;;  %v1592_v27 = vld [vmem:[%s2264_s2 + $0x80] sm:$0xff]  ;;  %v1400_v29 = vld [vmem:[%s2266_s0 + $0x30] sm:$0xff]   ;;  %30 = vst.msk [vmem:[#allocation2 + $0x38] sm:$0xff] %vm22_vm1, %v1409_v5 }
   0xa   :  { %574 = vperm.xlu1 %1373, %v1481_v8   ;;  %569 = vperm.xlu0 %1372, %v1486_v9   ;;  %v1397_v28 = vld [vmem:[%s2266_s0] sm:$0xff]   ;;  %v1605_v30 = vld [vmem:[%s2264_s2 + $0x98] sm:$0xff]  ;;  %v1610_v31 = vld [vmem:[%s2264_s2 + $0x90] sm:$0xff]  ;;  %31 = vst.msk [vmem:[#allocation2 + $0x40] sm:$0xff] %vm22_vm1, %v1409_v5 }
   0xb   :  { %v1621_v32 = vld [vmem:[%s2264_s2 + $0xa0] sm:$0xff]  ;;  %v1398_v33 = vld [vmem:[%s2266_s0 + $0x8] sm:$0xff]   ;;  %v1402_v34 = vld [vmem:[%s2266_s0 + $0x38] sm:$0xff]   ;;  %32 = vst.msk [vmem:[#allocation2 + $0x48] sm:$0xff] %vm22_vm1, %v1409_v5 }
   0xc   :  { %1295 = vmatpush3.bf16.msra.mxu0 %v1391_v10  ;;  %1360 = vmatpush3.bf16.msra.mxu1 %v1391_v10  ;;  %v1399_v36 = vld [vmem:[%s2266_s0 + $0x10] sm:$0xff]   ;;  %v1404_v37 = vld [vmem:[%s2266_s0 + $0x40] sm:$0xff]   ;;  %v1401_v38 = vld [vmem:[%s2266_s0 + $0x18] sm:$0xff]   ;;  %33 = vst.msk [vmem:[#allocation2 + $0x50] sm:$0xff] %vm22_vm1, %v1409_v5 }
   0xd   :  { %1296 = vmatprep.subr.bf16.mxu0 %v1409_v5  ;;  %1353 = vmatprep.subr.bf16.mxu1 %v1409_v5  ;;  %v1406_v39 = vld [vmem:[%s2266_s0 + $0x48] sm:$0xff]   ;;  %v1403_v40 = vld [vmem:[%s2266_s0 + $0x20] sm:$0xff]   ;;  %v1407_v41 = vld [vmem:[%s2266_s0 + $0x50] ss:$0 sps:$4 sm:$0xff]   ;;  %34 = vst.msk [vmem:[#allocation2 + $0x58] sm:$0xff] %vm22_vm1, %v1409_v5 }
   0xe   :  { %584 = vperm.xlu1 %1373, %v1502_v11   ;;  %579 = vperm.xlu0 %1372, %v1507_v12   ;;  %v1405_v42 = vld [vmem:[%s2266_s0 + $0x28] sm:$0xff]   ;;  %35 = vst.msk [vmem:[#allocation2 + $0x60] sm:$0xff] %vm22_vm1, %v1409_v5  ;;  %36 = vst.msk [vmem:[#allocation2 + $0x68] sm:$0xff] %vm22_vm1, %v1409_v5 }
   0xf   :  { %37 = vst.msk [vmem:[#allocation2 + $0x70] sm:$0xff] %vm22_vm1, %v1409_v5  ;;  %38 = vst.msk [vmem:[#allocation2 + $0x78] sm:$0xff] %vm22_vm1, %v1409_v5 }
  0x10   :  { %1297 = vmatpush3.bf16.msra.mxu0 %v1392_v13  ;;  %1361 = vmatpush3.bf16.msra.mxu1 %v1392_v13  ;;  %39 = vst.msk [vmem:[#allocation2 + $0x80] sm:$0xff] %vm22_vm1, %v1409_v5  ;;  %40 = vst.msk [vmem:[#allocation2 + $0x88] sm:$0xff] %vm22_vm1, %v1409_v5 }
  0x11   :  { %1298 = vmatprep.subr.bf16.mxu0 %v1409_v5  ;;  %1354 = vmatprep.subr.bf16.mxu1 %v1409_v5  ;;  %41 = vst.msk [vmem:[#allocation2 + $0x90] sm:$0xff] %vm22_vm1, %v1409_v5  ;;  %42 = vst.msk [vmem:[#allocation2 + $0x98] sm:$0xff] %vm22_vm1, %v1409_v5 }
  0x12   :  { %594 = vperm.xlu1 %1373, %v1519_v14   ;;  %589 = vperm.xlu0 %1372, %v1524_v15   ;;  %43 = vst.msk [vmem:[#allocation2 + $0xa0] sm:$0xff] %vm22_vm1, %v1409_v5  ;;  %vm515_vm4 = vmand %vm513_vm2, %vm514_vm3 }
  0x13   :  { %v1812_v3 = vsel %vm515_vm4, 1.0, %v1409_v5  ;;  %vm520_vm8 = vmand %vm518_vm6, %vm519_vm7 }
  0x14   :  { %1299 = vmatpush3.bf16.msra.mxu0 %v1393_v16  ;;  %1362 = vmatpush3.bf16.msra.mxu1 %v1393_v16 }
  0x15   :  { %1300 = vmatprep.subr.bf16.mxu0 %v1409_v5  ;;  %1355 = vmatprep.subr.bf16.mxu1 %v1409_v5 }
  0x16   :  { %604 = vperm.xlu1 %1373, %v1536_v17   ;;  %599 = vperm.xlu0 %1372, %v1541_v18  }
  0x18   :  { %1301 = vmatpush3.bf16.msra.mxu0 %v1394_v19  ;;  %1363 = vmatpush3.bf16.msra.mxu1 %v1394_v19 }
  0x19   :  { %1302 = vmatprep.subr.bf16.mxu0 %v1409_v5  ;;  %1356 = vmatprep.subr.bf16.mxu1 %v1409_v5 }
  0x1a   :  { %614 = vperm.xlu1 %1373, %v1553_v20   ;;  %609 = vperm.xlu0 %1372, %v1558_v21  }
  0x1c   :  { %1303 = vmatpush3.bf16.msra.mxu0 %v1395_v22  ;;  %1364 = vmatpush3.bf16.msra.mxu1 %v1395_v22 }
  0x1d   :  { %1304 = vmatprep.subr.bf16.mxu0 %v1409_v5  ;;  %1357 = vmatprep.subr.bf16.mxu1 %v1409_v5 }
  0x1e   :  { %624 = vperm.xlu1 %1373, %v1570_v23   ;;  %619 = vperm.xlu0 %1372, %v1575_v24  }
  0x20   :  { %1305 = vmatpush3.bf16.msra.mxu0 %v1396_v25  ;;  %1365 = vmatpush3.bf16.msra.mxu1 %v1396_v25 }
  0x22   :  { %634 = vperm.xlu1 %1373, %v1587_v26   ;;  %629 = vperm.xlu0 %1372, %v1592_v27  }
  0x23   :  { %1307 = vmatmul.mubr.bf16.vlgmr.msra.gmra.mxu0 %v1397_v28  ;;  %1331 = vmatmul.mubr.bf16.vlgmr.msra.gmra.mxu1 %v1400_v29 }
  0x24   :  { %1310 = vmatprep.mubr.msk.bf16.mxu0 %vm1410_vm0, %v1409_v5  ;;  %1334 = vmatprep.mubr.msk.bf16.mxu1 %vm1410_vm0, %v1409_v5 }
  0x26   :  { %644 = vperm.xlu1 %1373, %v1605_v30   ;;  %639 = vperm.xlu0 %1372, %v1610_v31  }
  0x2a   :  { %1374 = vset.pattern.permute.xlu1 %v1411_v35  ;;  %649 = vperm.xlu0 %1372, %v1621_v32  }
  0x2b   :  { %674 = vperm.xlu1 %1374, %v1452_v2   ;;  %1311 = vmatmul.mubr.bf16.gmra.mxu0 %v1398_v33 }
  0x2c   :  { %1314 = vmatprep.mubr.msk.bf16.mxu0 %vm1410_vm0, %v1409_v5  ;;  %1335 = vmatmul.mubr.bf16.gmra.mxu1 %v1402_v34 }
  0x2d   :  { %1338 = vmatprep.mubr.msk.bf16.mxu1 %vm1410_vm0, %v1409_v5 }
  0x2e   :  { %1375 = vset.pattern.permute.xlu0 %v1411_v35 }
  0x2f   :  { %682 = vperm.xlu1 %1374, %v1447_v1   ;;  %678 = vperm.xlu0 %1375, %v1468_v6  }
  0x33   :  { %686 = vperm.xlu1 %1374, %v1462_v4   ;;  %690 = vperm.xlu0 %1375, %v1486_v9  }
  0x34   :  { %1315 = vmatmul.mubr.bf16.gmra.mxu0 %v1399_v36  ;;  %1339 = vmatmul.mubr.bf16.gmra.mxu1 %v1404_v37 }
  0x35   :  { %1318 = vmatprep.mubr.msk.bf16.mxu0 %vm1410_vm0, %v1409_v5  ;;  %1342 = vmatprep.mubr.msk.bf16.mxu1 %vm1410_vm0, %v1409_v5 }
  0x37   :  { %694 = vperm.xlu1 %1374, %v1481_v8   ;;  %698 = vperm.xlu0 %1375, %v1507_v12  }
  0x3b   :  { %702 = vperm.xlu1 %1374, %v1502_v11   ;;  %706 = vperm.xlu0 %1375, %v1524_v15  }
  0x3c   :  { %1319 = vmatmul.mubr.bf16.gmra.mxu0 %v1401_v38  ;;  %1343 = vmatmul.mubr.bf16.gmra.mxu1 %v1406_v39 }
  0x3d   :  { %1322 = vmatprep.mubr.msk.bf16.mxu0 %vm1410_vm0, %v1409_v5  ;;  %1346 = vmatprep.mubr.msk.bf16.mxu1 %vm1410_vm0, %v1409_v5 }
  0x3f   :  { %710 = vperm.xlu1 %1374, %v1519_v14   ;;  %714 = vperm.xlu0 %1375, %v1541_v18  }
  0x43   :  { %718 = vperm.xlu1 %1374, %v1536_v17   ;;  %722 = vperm.xlu0 %1375, %v1558_v21  }
  0x44   :  { %1323 = vmatmul.mubr.bf16.gmra.mxu0 %v1403_v40  ;;  %1347 = vmatmul.mubr.bf16.gmra.mxu1 %v1407_v41 }
  0x45   :  { %1326 = vmatprep.mubr.msk.bf16.mxu0 %vm1410_vm0, %v1409_v5 }
  0x47   :  { %726 = vperm.xlu1 %1374, %v1553_v20   ;;  %730 = vperm.xlu0 %1375, %v1575_v24  }
  0x4b   :  { %734 = vperm.xlu1 %1374, %v1570_v23   ;;  %738 = vperm.xlu0 %1375, %v1592_v27  }
  0x4c   :  { %1327 = vmatmul.mubr.bf16.gmra.mxu0 %v1405_v42 }
  0x4f   :  { %742 = vperm.xlu1 %1374, %v1587_v26   ;;  %746 = vperm.xlu0 %1375, %v1610_v31  }
  0x53   :  { %750 = vperm.xlu1 %1374, %v1605_v30   ;;  %754 = vperm.xlu0 %1375, %v1621_v32  }
  0x57   :  { %1376 = vset.pattern.permute.xlu1 %v1412_v43  ;;  %1378 = vset.pattern.permute.xlu0 %v1413_v44 }
  0x58   :  { %800 = vperm.xlu1 %1376, %v1452_v2   ;;  %930 = vperm.xlu0 %1378, %v1468_v6  }
  0x5c   :  { %808 = vperm.xlu1 %1376, %v1447_v1   ;;  %942 = vperm.xlu0 %1378, %v1486_v9  }
  0x60   :  { %812 = vperm.xlu1 %1376, %v1462_v4   ;;  %950 = vperm.xlu0 %1378, %v1507_v12  }
  0x64   :  { %820 = vperm.xlu1 %1376, %v1481_v8   ;;  %958 = vperm.xlu0 %1378, %v1524_v15  }
  0x68   :  { %828 = vperm.xlu1 %1376, %v1502_v11   ;;  %1379 = vset.pattern.permute.xlu0 %v1412_v43 }
  0x69   :  { %804 = vperm.xlu0 %1379, %v1468_v6   ;;  %v1817_v6 = vsel %vm510_vm5, 1.0, %v1409_v5 }
  0x6c   :  { %836 = vperm.xlu1 %1376, %v1519_v14  }
  0x6d   :  { %816 = vperm.xlu0 %1379, %v1486_v9  }
  0x70   :  { %1377 = vset.pattern.permute.xlu1 %v1413_v44 }
  0x71   :  { %926 = vperm.xlu1 %1377, %v1452_v2   ;;  %824 = vperm.xlu0 %1379, %v1507_v12  }
  0x75   :  { %934 = vperm.xlu1 %1377, %v1447_v1   ;;  %832 = vperm.xlu0 %1379, %v1524_v15  }
  0x79   :  { %938 = vperm.xlu1 %1377, %v1462_v4   ;;  %840 = vperm.xlu0 %1379, %v1541_v18  }
  0x7d   :  { %v560_v45 = vpop.permute.xlu1 %559  ;;  %946 = vperm.xlu1 %1377, %v1481_v8   ;;  %844 = vperm.xlu0 %1379, %v1536_v17   ;;  %v550_v46 = vpop.permute.xlu0 %549 }
  0x7e   :  { %v652_v8 = vmul.f32 %v1817_v6, %v550_v46  ;;  %v654_v13 = vmul.f32 %v1817_v6, %v560_v45 }
  0x81   :  { %v1752_v47 = vpop.permute.xlu1 %564  ;;  %954 = vperm.xlu1 %1377, %v1502_v11   ;;  %856 = vperm.xlu0 %1379, %v1575_v24   ;;  %v555_v48 = vpop.permute.xlu0 %554 }
  0x85   :  { %v1756_v49 = vpop.permute.xlu1 %574  ;;  %962 = vperm.xlu1 %1377, %v1519_v14   ;;  %868 = vperm.xlu0 %1379, %v1587_v26   ;;  %v570_v50 = vpop.permute.xlu0 %569  ;;  %v653_v14 = vmul.f32 %v1817_v6, %v555_v48 }
  0x86   :  { %v656_v22 = vmul.f32 %v1817_v6, %v570_v50  ;;  %v657_v29 = vmul.f32 %v1817_v6, %v1756_v49 }
  0x89   :  { %v1760_v51 = vpop.permute.xlu1 %584  ;;  %966 = vperm.xlu1 %1377, %v1541_v18   ;;  %1384 = vset.pattern.permute.xlu0 %v1413_v44  ;;  %v1764_v52 = vpop.permute.xlu0 %579 }
  0x8a   :  { %970 = vperm.xlu0 %1384, %v1536_v17   ;;  %v658_v33 = vmul.f32 %v1817_v6, %v1764_v52  ;;  %v659_v40 = vmul.f32 %v1817_v6, %v1760_v51 }
  0x8d   :  { %v1767_v53 = vpop.permute.xlu1 %594  ;;  %1380 = vset.pattern.permute.xlu1 %v1412_v43  ;;  %v1770_v54 = vpop.permute.xlu0 %589 }
  0x8e   :  { %848 = vperm.xlu1 %1380, %v1558_v21   ;;  %982 = vperm.xlu0 %1384, %v1575_v24   ;;  %v660_v41 = vmul.f32 %v1817_v6, %v1770_v54  ;;  %v661_v49 = vmul.f32 %v1817_v6, %v1767_v53 }
  0x91   :  { %v1774_v55 = vpop.permute.xlu1 %604  ;;  %v1776_v56 = vpop.permute.xlu0 %599 }
  0x92   :  { %852 = vperm.xlu1 %1380, %v1553_v20   ;;  %994 = vperm.xlu0 %1384, %v1587_v26   ;;  %v662_v50 = vmul.f32 %v1817_v6, %v1776_v56 }
  0x95   :  { %v1780_v57 = vpop.permute.xlu1 %614  ;;  %v1782_v58 = vpop.permute.xlu0 %609 }
  0x96   :  { %1381 = vset.pattern.permute.xlu1 %v1413_v44  ;;  %1387 = vset.pattern.permute.xlu0 %v1412_v43  ;;  %v664_v53 = vmul.f32 %v1817_v6, %v1782_v58 }
  0x97   :  { %974 = vperm.xlu1 %1381, %v1558_v21   ;;  %880 = vperm.xlu0 %1387, %v1621_v32   ;;  %v655_v21 = vmul.f32 %v1817_v6, %v1752_v47 }
  0x99   :  { %v1788_v60 = vpop.permute.xlu1 %624  ;;  %v1790_v61 = vpop.permute.xlu0 %619 }
  0x9b   :  { %978 = vperm.xlu1 %1381, %v1553_v20   ;;  %1388 = vset.pattern.permute.xlu0 %v1413_v44 }
  0x9d   :  { %v1797_v63 = vpop.permute.xlu1 %634  ;;  %v1799_v0 = vpop.permute.xlu0 %629 }
  0x9f   :  { %1382 = vset.pattern.permute.xlu1 %v1412_v43 }
  0xa0   :  { %860 = vperm.xlu1 %1382, %v1570_v23  }
  0xa1   :  { %v1805_v1 = vpop.permute.xlu1 %644  ;;  %v1807_v2 = vpop.permute.xlu0 %639 }
  0xa4   :  { %864 = vperm.xlu1 %1382, %v1592_v27  }
  0xa5   :  { %v1814_v4 = vpop.permute.xlu0 %649 }
  0xa6   :  { %v675_v7 = vpop.permute.xlu1 %674 }
  0xa7   :  { %v757_v9 = vmul.f32 %v1812_v3, %v675_v7 }
  0xa8   :  { %1383 = vset.pattern.permute.xlu1 %v1413_v44 }
  0xa9   :  { %v1822_v10 = vadd.f32 %v757_v9, %v652_v8  ;;  %986 = vperm.xlu1 %1383, %v1570_v23   ;;  %v663_v9 = vmul.f32 %v1817_v6, %v1774_v55  ;;  %v666_v55 = vmul.f32 %v1817_v6, %v1790_v61 }
  0xaa   :  { %v683_v11 = vpop.permute.xlu1 %682  ;;  %v679_v12 = vpop.permute.xlu0 %678 }
  0xab   :  { %v759_v15 = vmul.f32 %v1812_v3, %v683_v11  ;;  %v758_v16 = vmul.f32 %v1812_v3, %v679_v12 }
  0xad   :  { %v1829_v17 = vadd.f32 %v759_v15, %v654_v13  ;;  %v1831_v18 = vadd.f32 %v758_v16, %v653_v14  ;;  %990 = vperm.xlu1 %1383, %v1592_v27   ;;  %v665_v15 = vmul.f32 %v1817_v6, %v1780_v57  ;;  %v668_v57 = vmul.f32 %v1817_v6, %v1799_v0 }
  0xae   :  { %v687_v19 = vpop.permute.xlu1 %686  ;;  %v691_v20 = vpop.permute.xlu0 %690 }
  0xaf   :  { %v760_v23 = vmul.f32 %v1812_v3, %v687_v19  ;;  %v761_v24 = vmul.f32 %v1812_v3, %v691_v20 }
  0xb1   :  { %v1839_v25 = vadd.f32 %v760_v23, %v655_v21  ;;  %v1841_v26 = vadd.f32 %v761_v24, %v656_v22  ;;  %1385 = vset.pattern.permute.xlu1 %v1412_v43  ;;  %v667_v22 = vmul.f32 %v1817_v6, %v1788_v60 }
  0xb2   :  { %872 = vperm.xlu1 %1385, %v1610_v31   ;;  %v695_v27 = vpop.permute.xlu1 %694  ;;  %v699_v28 = vpop.permute.xlu0 %698 }
  0xb3   :  { %v762_v34 = vmul.f32 %v1812_v3, %v695_v27  ;;  %v763_v35 = vmul.f32 %v1812_v3, %v699_v28 }
  0xb5   :  { %v1851_v36 = vadd.f32 %v762_v34, %v657_v29  ;;  %v1853_v37 = vadd.f32 %v763_v35, %v658_v33  ;;  %v669_v29 = vmul.f32 %v1817_v6, %v1797_v63  ;;  %v670_v33 = vmul.f32 %v1817_v6, %v1807_v2 }
  0xb6   :  { %876 = vperm.xlu1 %1385, %v1605_v30   ;;  %v703_v38 = vpop.permute.xlu1 %702  ;;  %v707_v39 = vpop.permute.xlu0 %706 }
  0xb7   :  { %v764_v42 = vmul.f32 %v1812_v3, %v703_v38  ;;  %v765_v43 = vmul.f32 %v1812_v3, %v707_v39 }
  0xb9   :  { %v1862_v45 = vadd.f32 %v764_v42, %v659_v40  ;;  %v1864_v46 = vadd.f32 %v765_v43, %v660_v41  ;;  %v671_v40 = vmul.f32 %v1817_v6, %v1805_v1  ;;  %v672_v41 = vmul.f32 %v1817_v6, %v1814_v4  ;;  %v56_v4 = vld [vmem:[#allocation2 + $0x60] sm:$0xff] }
  0xba   :  { %1386 = vset.pattern.permute.xlu1 %v1413_v44  ;;  %v711_v47 = vpop.permute.xlu1 %710  ;;  %v715_v48 = vpop.permute.xlu0 %714 }
  0xbb   :  { %v766_v51 = vmul.f32 %v1812_v3, %v711_v47  ;;  %v767_v52 = vmul.f32 %v1812_v3, %v715_v48  ;;  %998 = vperm.xlu1 %1386, %v1610_v31  }
  0xbd   :  { %v1874_v54 = vadd.f32 %v766_v51, %v661_v49  ;;  %v1876_v7 = vadd.f32 %v767_v52, %v662_v50 }
  0xbe   :  { %v719_v8 = vpop.permute.xlu1 %718  ;;  %v723_v44 = vpop.permute.xlu0 %722 }
  0xbf   :  { %v768_v56 = vmul.f32 %v1812_v3, %v719_v8  ;;  %v769_v11 = vmul.f32 %v1812_v3, %v723_v44  ;;  %1002 = vperm.xlu1 %1386, %v1605_v30  }
  0xc1   :  { %v1885_v12 = vadd.f32 %v768_v56, %v663_v9  ;;  %v1887_v31 = vadd.f32 %v769_v11, %v664_v53 }
  0xc2   :  { %v727_v13 = vpop.permute.xlu1 %726  ;;  %v731_v14 = vpop.permute.xlu0 %730 }
  0xc3   :  { %v770_v58 = vmul.f32 %v1812_v3, %v727_v13  ;;  %v771_v16 = vmul.f32 %v1812_v3, %v731_v14  ;;  %1006 = vperm.xlu1 %1386, %v1621_v32   ;;  %v45_v13 = vld [vmem:[#allocation2 + $0x8] sm:$0xff] }
  0xc5   :  { %v1896_v19 = vadd.f32 %v770_v58, %v665_v15  ;;  %v1898_v30 = vadd.f32 %v771_v16, %v666_v55  ;;  %v1943_v15 = vsel %vm520_vm8, 1.0, %v1409_v5  ;;  %v57_v58 = vld [vmem:[#allocation2 + $0x68] sm:$0xff] }
  0xc6   :  { %v735_v20 = vpop.permute.xlu1 %734  ;;  %v739_v21 = vpop.permute.xlu0 %738 }
  0xc7   :  { %v772_v61 = vmul.f32 %v1812_v3, %v735_v20  ;;  %v773_v23 = vmul.f32 %v1812_v3, %v739_v21 }
  0xc9   :  { %v1906_v24 = vadd.f32 %v772_v61, %v667_v22  ;;  %v1908_v27 = vadd.f32 %v773_v23, %v668_v57 }
  0xca   :  { %v743_v32 = vpop.permute.xlu1 %742  ;;  %v747_v28 = vpop.permute.xlu0 %746 }
  0xcb   :  { %v774_v60 = vmul.f32 %v1812_v3, %v743_v32  ;;  %v775_v0 = vmul.f32 %v1812_v3, %v747_v28  ;;  %v1955_v32 = vsel %vm523_vm9, 1.0, %v1409_v5  ;;  %v46_v28 = vld [vmem:[#allocation2 + $0x10] sm:$0xff] }
  0xcd   :  { %v1916_v34 = vadd.f32 %v774_v60, %v669_v29  ;;  %v1918_v35 = vadd.f32 %v775_v0, %v670_v33  ;;  %v58_v0 = vld [vmem:[#allocation2 + $0x70] sm:$0xff] }
  0xce   :  { %v751_v38 = vpop.permute.xlu1 %750  ;;  %v755_v39 = vpop.permute.xlu0 %754 }
  0xcf   :  { %v776_v63 = vmul.f32 %v1812_v3, %v751_v38  ;;  %v777_v2 = vmul.f32 %v1812_v3, %v755_v39  ;;  %v44_v3 = vld [vmem:[#allocation2] sm:$0xff] }
  0xd1   :  { %v1926_v42 = vadd.f32 %v776_v63, %v671_v40  ;;  %v1928_v43 = vadd.f32 %v777_v2, %v672_v41 }
  0xd3   :  { %v801_v47 = vpop.permute.xlu1 %800  ;;  %v931_v48 = vpop.permute.xlu0 %930 }
  0xd4   :  { %v883_v23 = vmul.f32 %v1943_v15, %v801_v47  ;;  %v1010_v38 = vmul.f32 %v1955_v32, %v931_v48 }
  0xd6   :  { %v904_v5 = vadd.f32 %v883_v23, %v1822_v10 }
  0xd7   :  { %v809_v49 = vpop.permute.xlu1 %808  ;;  %v1930_v50 = vpop.permute.xlu0 %942 }
  0xd8   :  { %v885_v2 = vmul.f32 %v1943_v15, %v809_v49 }
  0xdb   :  { %v813_v51 = vpop.permute.xlu1 %812  ;;  %v1932_v52 = vpop.permute.xlu0 %950 }
  0xdc   :  { %v886_v49 = vmul.f32 %v1943_v15, %v813_v51 }
  0xdf   :  { %v1934_v1 = vpop.permute.xlu1 %820  ;;  %v1936_v8 = vpop.permute.xlu0 %958 }
  0xe3   :  { %v1940_v6 = vpop.permute.xlu1 %828  ;;  %v248_v44 = vpop.f32.mrf.mxu0 }
  0xe4   :  { %v334_v9 = vadd.f32 %v248_v44, %v44_v3  ;;  %v805_v53 = vpop.permute.xlu0 %804  ;;  %v296_v56 = vpop.f32.mrf.mxu1  ;;  %v47_v44 = vld [vmem:[#allocation2 + $0x18] sm:$0xff] }
  0xe5   :  { %v1308_v11 = vpop.f32.mrf.mxu0  ;;  %v346_v14 = vadd.f32 %v296_v56, %v56_v4  ;;  %v884_v21 = vmul.f32 %v1943_v15, %v805_v53 }
  0xe6   :  { %356 = vst.msk [vmem:[#allocation2] sm:$0xff] %vm22_vm1, %v334_v9  ;;  %v1332_v55 = vpop.f32.mrf.mxu1 }
  0xe7   :  { %v1947_v16 = vpop.permute.xlu1 %836  ;;  %v251_v20 = vpop.f32.mrf.mxu0  ;;  %368 = vst.msk [vmem:[#allocation2 + $0x60] sm:$0xff] %vm22_vm1, %v346_v14  ;;  %v905_v39 = vadd.f32 %v884_v21, %v1831_v18  ;;  %v59_v14 = vld [vmem:[#allocation2 + $0x78] sm:$0xff] }
  0xe8   :  { %v335_v22 = vadd.f32 %v251_v20, %v45_v13  ;;  %v1951_v57 = vpop.permute.xlu0 %816  ;;  %v299_v61 = vpop.f32.mrf.mxu1 }
  0xe9   :  { %v1309_v62 = vpop.f32.mrf.mxu0  ;;  %v347_v29 = vadd.f32 %v299_v61, %v57_v58  ;;  %v1031_v55 = vadd.f32 %v1010_v38, %v905_v39 }
  0xea   :  { %357 = vst.msk [vmem:[#allocation2 + $0x8] sm:$0xff] %vm22_vm1, %v335_v22  ;;  %v1333_v33 = vpop.f32.mrf.mxu1  ;;  %v906_v22 = vadd.f32 %v885_v2, %v1829_v17 }
  0xeb   :  { %v256_v60 = vpop.f32.mrf.mxu0  ;;  %369 = vst.msk [vmem:[#allocation2 + $0x68] sm:$0xff] %vm22_vm1, %v347_v29 }
  0xec   :  { %v336_v40 = vadd.f32 %v256_v60, %v46_v28  ;;  %v927_v41 = vpop.permute.xlu1 %926  ;;  %v1961_v63 = vpop.permute.xlu0 %824  ;;  %v48_v60 = vld [vmem:[#allocation2 + $0x20] sm:$0xff] }
  0xed   :  { %v380_v47 = vld [vmem:[#allocation2] sm:$0xff]  ;;  %v1009_v3 = vmul.f32 %v1955_v32, %v927_v41  ;;  %v1312_v4 = vpop.f32.mrf.mxu0  ;;  %v304_v9 = vpop.f32.mrf.mxu1 }
  0xee   :  { %358 = vst.msk [vmem:[#allocation2 + $0x10] sm:$0xff] %vm22_vm1, %v336_v40  ;;  %v1250_v48 = vpack.c.bf16 %v380_v47, %v380_v47  ;;  %v348_v53 = vadd.f32 %v304_v9, %v58_v0  ;;  %v1967_v18 = vld [vmem:[#allocation2 + $0x60] sm:$0xff] }
  0xef   :  { %v1030_v56 = vadd.f32 %v1009_v3, %v904_v5  ;;  %v259_v11 = vpop.f32.mrf.mxu0  ;;  %v1336_v13 = vpop.f32.mrf.mxu1  ;;  %v1262_v10 = vpack.c.bf16 %v1967_v18, %v1967_v18  ;;  %v907_v5 = vadd.f32 %v886_v49, %v1839_v25  ;;  %v60_v9 = vld [vmem:[#allocation2 + $0x80] sm:$0xff] }
  0xf0   :  { %487 = vst.msk [vmem:[%s2267_s3] sm:$0xf] %vm486_vm10, %v1250_v48  ;;  %v337_v58 = vadd.f32 %v259_v11, %v47_v44  ;;  %v935_v20 = vpop.permute.xlu1 %934  ;;  %v1976_v21 = vpop.permute.xlu0 %832  ;;  %v887_v48 = vmul.f32 %v1943_v15, %v1951_v57 }
  0xf1   :  { %370 = vst.msk [vmem:[#allocation2 + $0x70] sm:$0xff] %vm22_vm1, %v348_v53  ;;  %v381_v61 = vld [vmem:[#allocation2 + $0x8] sm:$0xff]  ;;  %v1051_v23 = vmul.f32 %v1030_v56, %v380_v47  ;;  %v1011_v62 = vmul.f32 %v1955_v32, %v935_v20  ;;  %v1313_v28 = vpop.f32.mrf.mxu0  ;;  %v307_v51 = vpop.f32.mrf.mxu1 }
  0xf2   :  { %499 = vst.msk [vmem:[%s2267_s3 + $0x30] sm:$0xf] %vm486_vm10, %v1262_v10  ;;  %v1251_v29 = vpack.c.bf16 %v381_v61, %v381_v61  ;;  %v1052_v33 = vmul.f32 %v1031_v55, %v381_v61  ;;  %v349_v0 = vadd.f32 %v307_v51, %v59_v14  ;;  %v1987_v41 = vld [vmem:[#allocation2 + $0x68] sm:$0xff] }
  0xf3   :  { %359 = vst.msk [vmem:[#allocation2 + $0x18] sm:$0xff] %vm22_vm1, %v337_v58  ;;  %v1072_v38 = vsel %vm22_vm1, %v1051_v23, 0.0  ;;  %v1119_v17 = vmul.f32 %v1051_v23, %v380_v47  ;;  %v1032_v39 = vadd.f32 %v1011_v62, %v906_v22  ;;  %v1337_v40 = vpop.f32.mrf.mxu1  ;;  %v1263_v47 = vpack.c.bf16 %v1987_v41, %v1987_v41  ;;  %v49_v22 = vld [vmem:[#allocation2 + $0x28] sm:$0xff] }
  0xf4   :  { %488 = vst.msk [vmem:[%s2267_s3 + $0x4] sm:$0xf] %vm486_vm10, %v1251_v29  ;;  %v1073_v2 = vsel %vm22_vm1, %v1052_v33, 0.0  ;;  %v1120_v3 = vmul.f32 %v1052_v33, %v381_v61  ;;  %v264_v4 = vpop.f32.mrf.mxu0  ;;  %v939_v44 = vpop.permute.xlu1 %938 }
  0xf5   :  { %371 = vst.msk [vmem:[#allocation2 + $0x78] sm:$0xff] %vm22_vm1, %v349_v0  ;;  %v1074_v25 = vadd.f32 %v1073_v2, %v1072_v38  ;;  %v1140_v53 = vsel %vm22_vm1, %v1119_v17, 0.0  ;;  %v382_v56 = vld [vmem:[#allocation2 + $0x10] sm:$0xff]  ;;  %v338_v11 = vadd.f32 %v264_v4, %v48_v60  ;;  %v2001_v13 = vpop.permute.xlu0 %840  ;;  %v312_v14 = vpop.f32.mrf.mxu1  ;;  %v1012_v58 = vmul.f32 %v1955_v32, %v939_v44  ;;  %v61_v0 = vld [vmem:[#allocation2 + $0x88] sm:$0xff] }
  0xf6   :  { %v1141_v10 = vsel %vm22_vm1, %v1120_v3, 0.0  ;;  %v1252_v49 = vpack.c.bf16 %v382_v56, %v382_v56  ;;  %v1053_v55 = vmul.f32 %v1032_v39, %v382_v56  ;;  %v1316_v20 = vpop.f32.mrf.mxu0  ;;  %500 = vst.msk [vmem:[%s2267_s3 + $0x34] sm:$0xf] %vm486_vm10, %v1263_v47  ;;  %v350_v61 = vadd.f32 %v312_v14, %v60_v9  ;;  %v62_v14 = vld [vmem:[#allocation2 + $0x90] sm:$0xff] }
  0xf7   :  { %v1142_v57 = vadd.f32 %v1141_v10, %v1140_v53  ;;  %360 = vst.msk [vmem:[#allocation2 + $0x20] sm:$0xff] %vm22_vm1, %v338_v11  ;;  %v1340_v23 = vpop.f32.mrf.mxu1  ;;  %v1033_v29 = vadd.f32 %v1012_v58, %v907_v5  ;;  %v1013_v17 = vmul.f32 %v1955_v32, %v1930_v50  ;;  %v908_v39 = vadd.f32 %v887_v48, %v1841_v26 }
  0xf8   :  { %v2010_v62 = vld [vmem:[#allocation2 + $0x70] sm:$0xff]  ;;  %489 = vst.msk [vmem:[%s2267_s3 + $0x8] sm:$0xf] %vm486_vm10, %v1252_v49  ;;  %v1075_v28 = vsel %vm22_vm1, %v1053_v55, 0.0  ;;  %v1121_v51 = vmul.f32 %v1053_v55, %v382_v56  ;;  %v267_v33 = vpop.f32.mrf.mxu0  ;;  %v947_v60 = vpop.permute.xlu1 %946  ;;  %v888_v26 = vmul.f32 %v1943_v15, %v1934_v1  ;;  %v889_v10 = vmul.f32 %v1943_v15, %v1961_v63 }
  0xf9   :  { %v1264_v38 = vpack.c.bf16 %v2010_v62, %v2010_v62  ;;  %v1076_v40 = vadd.f32 %v1075_v28, %v1074_v25  ;;  %v339_v3 = vadd.f32 %v267_v33, %v49_v22  ;;  %v2022_v4 = vpop.permute.xlu0 %844  ;;  %372 = vst.msk [vmem:[#allocation2 + $0x80] sm:$0xff] %vm22_vm1, %v350_v61  ;;  %v315_v44 = vpop.f32.mrf.mxu1  ;;  %v50_v56 = vld [vmem:[#allocation2 + $0x30] sm:$0xff]  ;;  %v1034_v22 = vadd.f32 %v1013_v17, %v908_v39 }
  0xfa   :  { %v383_v2 = vld [vmem:[#allocation2 + $0x18] sm:$0xff]  ;;  %v1143_v5 = vsel %vm22_vm1, %v1121_v51, 0.0  ;;  %v1317_v53 = vpop.f32.mrf.mxu0  ;;  %v351_v48 = vadd.f32 %v315_v44, %v61_v0  ;;  %v1014_v61 = vmul.f32 %v1955_v32, %v947_v60  ;;  %v909_v17 = vadd.f32 %v888_v26, %v1851_v36 }
  0xfb   :  { %v1253_v9 = vpack.c.bf16 %v383_v2, %v383_v2  ;;  %v1054_v47 = vmul.f32 %v1033_v29, %v383_v2  ;;  %501 = vst.msk [vmem:[%s2267_s3 + $0x38] sm:$0xf] %vm486_vm10, %v1264_v38  ;;  %v1144_v50 = vadd.f32 %v1143_v5, %v1142_v57  ;;  %v1341_v11 = vpop.f32.mrf.mxu1  ;;  %v51_v0 = vld [vmem:[#allocation2 + $0x38] sm:$0xff]  ;;  %v1015_v44 = vmul.f32 %v1955_v32, %v1932_v52 }
  0xfc   :  { %361 = vst.msk [vmem:[#allocation2 + $0x28] sm:$0xff] %vm22_vm1, %v339_v3  ;;  %v2033_v25 = vld [vmem:[#allocation2 + $0x78] sm:$0xff]  ;;  %v272_v1 = vpop.f32.mrf.mxu0  ;;  %v955_v58 = vpop.permute.xlu1 %954  ;;  %373 = vst.msk [vmem:[#allocation2 + $0x88] sm:$0xff] %vm22_vm1, %v351_v48  ;;  %v910_v5 = vadd.f32 %v889_v10, %v1853_v37  ;;  %v1035_v36 = vadd.f32 %v1014_v61, %v909_v17  ;;  %v52_v10 = vld [vmem:[#allocation2 + $0x40] sm:$0xff] }
  0xfd   :  { %490 = vst.msk [vmem:[%s2267_s3 + $0xc] sm:$0xf] %vm486_vm10, %v1253_v9  ;;  %v1077_v49 = vsel %vm22_vm1, %v1054_v47, 0.0  ;;  %v1122_v55 = vmul.f32 %v1054_v47, %v383_v2  ;;  %v1265_v20 = vpack.c.bf16 %v2033_v25, %v2033_v25  ;;  %v340_v23 = vadd.f32 %v272_v1, %v50_v56  ;;  %v857_v28 = vpop.permute.xlu0 %856  ;;  %v320_v63 = vpop.f32.mrf.mxu1  ;;  %v63_v3 = vld [vmem:[#allocation2 + $0x98] sm:$0xff] }
  0xfe   :  { %v1078_v57 = vadd.f32 %v1077_v49, %v1076_v40  ;;  %v384_v29 = vld [vmem:[#allocation2 + $0x20] sm:$0xff]  ;;  %v1320_v33 = vpop.f32.mrf.mxu0  ;;  %v352_v38 = vadd.f32 %v320_v63, %v62_v14  ;;  %v890_v1 = vmul.f32 %v1943_v15, %v1940_v6 }
  0xff   :  { %v1145_v51 = vsel %vm22_vm1, %v1122_v55, 0.0  ;;  %502 = vst.msk [vmem:[%s2267_s3 + $0x3c] sm:$0xf] %vm486_vm10, %v1265_v20  ;;  %v1254_v60 = vpack.c.bf16 %v384_v29, %v384_v29  ;;  %v1055_v40 = vmul.f32 %v1034_v22, %v384_v29  ;;  %v1344_v2 = vpop.f32.mrf.mxu1  ;;  %v64_v63 = vld [vmem:[#allocation2 + $0xa0] sm:$0xff] }
 0x100   :  { %v1146_v39 = vadd.f32 %v1145_v51, %v1144_v50  ;;  %362 = vst.msk [vmem:[#allocation2 + $0x30] sm:$0xff] %vm22_vm1, %v340_v23  ;;  %v275_v9 = vpop.f32.mrf.mxu0  ;;  %v2056_v47 = vpop.permute.xlu1 %962  ;;  %374 = vst.msk [vmem:[#allocation2 + $0x90] sm:$0xff] %vm22_vm1, %v352_v38  ;;  %v2066_v52 = vld [vmem:[#allocation2 + $0x80] sm:$0xff]  ;;  %v1036_v51 = vadd.f32 %v1015_v44, %v910_v5  ;;  %v53_v5 = vld [vmem:[#allocation2 + $0x48] sm:$0xff] }
 0x101   :  { %491 = vst.msk [vmem:[%s2267_s3 + $0x10] sm:$0xf] %vm486_vm10, %v1254_v60  ;;  %v1079_v53 = vsel %vm22_vm1, %v1055_v40, 0.0  ;;  %v1123_v56 = vmul.f32 %v1055_v40, %v384_v29  ;;  %v341_v26 = vadd.f32 %v275_v9, %v51_v0  ;;  %v2064_v50 = vpop.permute.xlu0 %868  ;;  %v323_v37 = vpop.f32.mrf.mxu1  ;;  %v1266_v49 = vpack.c.bf16 %v2066_v52, %v2066_v52 }
 0x102   :  { %v1080_v11 = vadd.f32 %v1079_v53, %v1078_v57  ;;  %v1321_v14 = vpop.f32.mrf.mxu0  ;;  %v353_v55 = vadd.f32 %v323_v37, %v63_v3  ;;  %v891_v57 = vmul.f32 %v1943_v15, %v1976_v21  ;;  %v1016_v21 = vmul.f32 %v1955_v32, %v955_v58 }
 0x103   :  { %v385_v48 = vld [vmem:[#allocation2 + $0x28] sm:$0xff]  ;;  %v1147_v61 = vsel %vm22_vm1, %v1123_v56, 0.0  ;;  %363 = vst.msk [vmem:[#allocation2 + $0x38] sm:$0xff] %vm22_vm1, %v341_v26  ;;  %v1345_v23 = vpop.f32.mrf.mxu1  ;;  %v897_v3 = vmul.f32 %v1943_v15, %v857_v28  ;;  %v911_v56 = vadd.f32 %v890_v1, %v1862_v45  ;;  %v1017_v28 = vmul.f32 %v1955_v32, %v1936_v8 }
 0x104   :  { %v1255_v20 = vpack.c.bf16 %v385_v48, %v385_v48  ;;  %v1056_v22 = vmul.f32 %v1035_v36, %v385_v48  ;;  %v1148_v29 = vadd.f32 %v1147_v61, %v1146_v39  ;;  %v280_v33 = vpop.f32.mrf.mxu0  ;;  %v2076_v0 = vpop.permute.xlu1 %966  ;;  %503 = vst.msk [vmem:[%s2267_s3 + $0x40] sm:$0xf] %vm486_vm10, %v1266_v49  ;;  %v2091_v60 = vld [vmem:[#allocation2 + $0x88] sm:$0xff]  ;;  %v892_v61 = vmul.f32 %v1943_v15, %v1947_v16 }
 0x105   :  { %375 = vst.msk [vmem:[#allocation2 + $0x98] sm:$0xff] %vm22_vm1, %v353_v55  ;;  %v342_v17 = vadd.f32 %v280_v33, %v52_v10  ;;  %v2089_v39 = vpop.permute.xlu0 %970  ;;  %v328_v40 = vpop.f32.mrf.mxu1  ;;  %v1267_v9 = vpack.c.bf16 %v2091_v60, %v2091_v60  ;;  %v1037_v55 = vadd.f32 %v1016_v21, %v911_v56  ;;  %v918_v23 = vadd.f32 %v897_v3, %v1898_v30 }
 0x106   :  { %492 = vst.msk [vmem:[%s2267_s3 + $0x14] sm:$0xf] %vm486_vm10, %v1255_v20  ;;  %v1081_v6 = vsel %vm22_vm1, %v1056_v22, 0.0  ;;  %v1124_v38 = vmul.f32 %v1056_v22, %v385_v48  ;;  %v1324_v44 = vpop.f32.mrf.mxu0  ;;  %v354_v53 = vadd.f32 %v328_v40, %v64_v63  ;;  %v1018_v40 = vmul.f32 %v1955_v32, %v2056_v47 }
 0x107   :  { %v1082_v2 = vadd.f32 %v1081_v6, %v1080_v11  ;;  %v386_v36 = vld [vmem:[#allocation2 + $0x30] sm:$0xff]  ;;  %364 = vst.msk [vmem:[#allocation2 + $0x40] sm:$0xff] %vm22_vm1, %v342_v17  ;;  %v1348_v48 = vpop.f32.mrf.mxu1  ;;  %v912_v11 = vadd.f32 %v891_v57, %v1864_v46  ;;  %v913_v47 = vadd.f32 %v892_v61, %v1874_v54 }
 0x108   :  { %v1149_v58 = vsel %vm22_vm1, %v1124_v38, 0.0  ;;  %v1256_v26 = vpack.c.bf16 %v386_v36, %v386_v36  ;;  %v1057_v37 = vmul.f32 %v1036_v51, %v386_v36  ;;  %v2099_v14 = vld [vmem:[#allocation2 + $0x90] sm:$0xff]  ;;  %v283_v49 = vpop.f32.mrf.mxu0  ;;  %504 = vst.msk [vmem:[%s2267_s3 + $0x44] sm:$0xf] %vm486_vm10, %v1267_v9  ;;  %v893_v38 = vmul.f32 %v1943_v15, %v2001_v13 }
 0x109   :  { %v1150_v10 = vadd.f32 %v1149_v58, %v1148_v29  ;;  %376 = vst.msk [vmem:[#allocation2 + $0xa0] sm:$0xff] %vm22_vm1, %v354_v53  ;;  %v1268_v45 = vpack.c.bf16 %v2099_v14, %v2099_v14  ;;  %v343_v1 = vadd.f32 %v283_v49, %v53_v5  ;;  %v849_v20 = vpop.permute.xlu1 %848  ;;  %v983_v22 = vpop.permute.xlu0 %982  ;;  %v54_v57 = vld [vmem:[#allocation2 + $0x50] sm:$0xff] }
 0x10a   :  { %493 = vst.msk [vmem:[%s2267_s3 + $0x18] sm:$0xf] %vm486_vm10, %v1256_v26  ;;  %v1083_v46 = vsel %vm22_vm1, %v1057_v37, 0.0  ;;  %v1125_v8 = vmul.f32 %v1057_v37, %v386_v36  ;;  %v1023_v63 = vmul.f32 %v1955_v32, %v983_v22  ;;  %v1325_v51 = vpop.f32.mrf.mxu0  ;;  %v387_v29 = vld [vmem:[#allocation2 + $0x38] sm:$0xff]  ;;  %v331_v6 = vpop.f32.mrf.mxu1  ;;  %v1038_v36 = vadd.f32 %v1017_v28, %v912_v11 }
 0x10b   :  { %v1084_v33 = vadd.f32 %v1083_v46, %v1082_v2  ;;  %505 = vst.msk [vmem:[%s2267_s3 + $0x48] sm:$0xf] %vm486_vm10, %v1268_v45  ;;  %v1257_v16 = vpack.c.bf16 %v387_v29, %v387_v29  ;;  %v1058_v21 = vmul.f32 %v1037_v55, %v387_v29  ;;  %v895_v26 = vmul.f32 %v1943_v15, %v849_v20 }
 0x10c   :  { %365 = vst.msk [vmem:[#allocation2 + $0x48] sm:$0xff] %vm22_vm1, %v343_v1  ;;  %v1151_v30 = vsel %vm22_vm1, %v1125_v8, 0.0  ;;  %v2128_v17 = vld [vmem:[#allocation2 + $0x98] sm:$0xff]  ;;  %v1044_v2 = vadd.f32 %v1023_v63, %v918_v23  ;;  %v288_v3 = vpop.f32.mrf.mxu0  ;;  %v1349_v5 = vpop.f32.mrf.mxu1  ;;  %v914_v1 = vadd.f32 %v893_v38, %v1876_v7  ;;  %v1039_v20 = vadd.f32 %v1018_v40, %v913_v47 }
 0x10d   :  { %v1152_v44 = vadd.f32 %v1151_v30, %v1150_v10  ;;  %v1269_v9 = vpack.c.bf16 %v2128_v17, %v2128_v17  ;;  %v344_v13 = vadd.f32 %v288_v3, %v54_v57  ;;  %v853_v53 = vpop.permute.xlu1 %852  ;;  %494 = vst.msk [vmem:[%s2267_s3 + $0x1c] sm:$0xf] %vm486_vm10, %v1257_v16  ;;  %v1085_v56 = vsel %vm22_vm1, %v1058_v21, 0.0  ;;  %v55_v10 = vld [vmem:[#allocation2 + $0x58] sm:$0xff] }
 0x10e   :  { %v1126_v58 = vmul.f32 %v1058_v21, %v387_v29  ;;  %v2142_v37 = vmul.f32 %v1044_v2, %v2010_v62  ;;  %v1328_v48 = vpop.f32.mrf.mxu0  ;;  %v388_v28 = vld [vmem:[#allocation2 + $0x40] sm:$0xff]  ;;  %v1086_v11 = vadd.f32 %v1085_v56, %v1084_v33  ;;  %v1019_v22 = vmul.f32 %v1955_v32, %v2076_v0 }
 0x10f   :  { %506 = vst.msk [vmem:[%s2267_s3 + $0x4c] sm:$0xf] %vm486_vm10, %v1269_v9  ;;  %v1258_v49 = vpack.c.bf16 %v388_v28, %v388_v28  ;;  %v1059_v45 = vmul.f32 %v1038_v36, %v388_v28  ;;  %v894_v7 = vmul.f32 %v1943_v15, %v2022_v4  ;;  %v916_v0 = vadd.f32 %v895_v26, %v1887_v31 }
 0x110   :  { %366 = vst.msk [vmem:[#allocation2 + $0x50] sm:$0xff] %vm22_vm1, %v344_v13  ;;  %v1153_v54 = vsel %vm22_vm1, %v1126_v58, 0.0  ;;  %v2150_v55 = vld [vmem:[#allocation2 + $0xa0] sm:$0xff]  ;;  %v2157_v46 = vmul.f32 %v2142_v37, %v2010_v62  ;;  %v291_v8 = vpop.f32.mrf.mxu0  ;;  %v1020_v4 = vmul.f32 %v1955_v32, %v2089_v39  ;;  %v896_v31 = vmul.f32 %v1943_v15, %v853_v53 }
 0x111   :  { %v345_v61 = vadd.f32 %v291_v8, %v55_v10  ;;  %495 = vst.msk [vmem:[%s2267_s3 + $0x20] sm:$0xf] %vm486_vm10, %v1258_v49  ;;  %v1087_v23 = vsel %vm22_vm1, %v1059_v45, 0.0  ;;  %v1127_v63 = vmul.f32 %v1059_v45, %v388_v28  ;;  %v1154_v51 = vadd.f32 %v1153_v54, %v1152_v44 }
 0x112   :  { %v975_v57 = vpop.permute.xlu1 %974  ;;  %v1088_v62 = vadd.f32 %v1087_v23, %v1086_v11  ;;  %v1270_v33 = vpack.c.bf16 %v2150_v55, %v2150_v55  ;;  %v1329_v30 = vpop.f32.mrf.mxu0  ;;  %v1040_v2 = vadd.f32 %v1019_v22, %v914_v1  ;;  %v915_v39 = vadd.f32 %v894_v7, %v1885_v12 }
 0x113   :  { %v389_v29 = vld [vmem:[#allocation2 + $0x48] sm:$0xff]  ;;  %367 = vst.msk [vmem:[#allocation2 + $0x58] sm:$0xff] %vm22_vm1, %v345_v61  ;;  %v1021_v38 = vmul.f32 %v1955_v32, %v975_v57  ;;  %v1155_v21 = vsel %vm22_vm1, %v1127_v63, 0.0  ;;  %v917_v26 = vadd.f32 %v896_v31, %v1896_v19 }
 0x114   :  { %v1259_v6 = vpack.c.bf16 %v389_v29, %v389_v29  ;;  %v1060_v16 = vmul.f32 %v1039_v20, %v389_v29  ;;  %v1156_v40 = vadd.f32 %v1155_v21, %v1154_v51  ;;  %507 = vst.msk [vmem:[%s2267_s3 + $0x50] sm:$0xf] %vm486_vm10, %v1270_v33  ;;  %v1041_v28 = vadd.f32 %v1020_v4, %v915_v39  ;;  %v995_v33 = vpop.permute.xlu0 %994 }
 0x115   :  { %v1042_v3 = vadd.f32 %v1021_v38, %v916_v0  ;;  %v1167_v39 = vsel %vm22_vm1, %v2157_v46, 0.0 }
 0x116   :  { %496 = vst.msk [vmem:[%s2267_s3 + $0x24] sm:$0xf] %vm486_vm10, %v1259_v6  ;;  %v1089_v44 = vsel %vm22_vm1, %v1060_v16, 0.0  ;;  %v1128_v5 = vmul.f32 %v1060_v16, %v389_v29  ;;  %v979_v13 = vpop.permute.xlu1 %978 }
 0x117   :  { %v390_v9 = vld [vmem:[#allocation2 + $0x50] sm:$0xff]  ;;  %v1090_v36 = vadd.f32 %v1089_v44, %v1088_v62  ;;  %v1063_v58 = vmul.f32 %v1042_v3, %v1967_v18  ;;  %v1022_v10 = vmul.f32 %v1955_v32, %v979_v13  ;;  %v900_v62 = vmul.f32 %v1943_v15, %v2064_v50 }
 0x118   :  { %v1260_v53 = vpack.c.bf16 %v390_v9, %v390_v9  ;;  %v1061_v56 = vmul.f32 %v1040_v2, %v390_v9  ;;  %v1157_v47 = vsel %vm22_vm1, %v1128_v5, 0.0 }
 0x119   :  { %v1158_v48 = vadd.f32 %v1157_v47, %v1156_v40  ;;  %v1131_v49 = vmul.f32 %v1063_v58, %v1967_v18  ;;  %v1043_v1 = vadd.f32 %v1022_v10, %v917_v26  ;;  %v1095_v0 = vsel %vm22_vm1, %v1063_v58, 0.0 }
 0x11a   :  { %497 = vst.msk [vmem:[%s2267_s3 + $0x28] sm:$0xf] %vm486_vm10, %v1260_v53  ;;  %v1091_v12 = vsel %vm22_vm1, %v1061_v56, 0.0  ;;  %v1129_v11 = vmul.f32 %v1061_v56, %v390_v9  ;;  %v391_v45 = vld [vmem:[#allocation2 + $0x58] sm:$0xff]  ;;  %v1026_v40 = vmul.f32 %v1955_v32, %v995_v33  ;;  %v921_v50 = vadd.f32 %v900_v62, %v1916_v34 }
 0x11b   :  { %v1092_v54 = vadd.f32 %v1091_v12, %v1090_v36  ;;  %v1261_v20 = vpack.c.bf16 %v391_v45, %v391_v45  ;;  %v1062_v22 = vmul.f32 %v1041_v28, %v391_v45  ;;  %v861_v8 = vpop.permute.xlu1 %860  ;;  %v1064_v23 = vmul.f32 %v1043_v1, %v1987_v41 }
 0x11c   :  { %v1159_v19 = vsel %vm22_vm1, %v1129_v11, 0.0  ;;  %v1163_v16 = vsel %vm22_vm1, %v1131_v49, 0.0  ;;  %v898_v30 = vmul.f32 %v1943_v15, %v861_v8 }
 0x11d   :  { %v1160_v61 = vadd.f32 %v1159_v19, %v1158_v48  ;;  %498 = vst.msk [vmem:[%s2267_s3 + $0x2c] sm:$0xf] %vm486_vm10, %v1261_v20  ;;  %v1093_v63 = vsel %vm22_vm1, %v1062_v22, 0.0  ;;  %v1130_v51 = vmul.f32 %v1062_v22, %v391_v45  ;;  %v1132_v7 = vmul.f32 %v1064_v23, %v1987_v41 }
 0x11e   :  { %v1094_v18 = vadd.f32 %v1093_v63, %v1092_v54  ;;  %v1097_v21 = vsel %vm22_vm1, %v1064_v23, 0.0  ;;  %v1099_v41 = vsel %vm22_vm1, %v2142_v37, 0.0  ;;  %v919_v9 = vadd.f32 %v898_v30, %v1906_v24 }
 0x11f   :  { %v1161_v57 = vsel %vm22_vm1, %v1130_v51, 0.0  ;;  %v865_v29 = vpop.permute.xlu1 %864  ;;  %v1165_v2 = vsel %vm22_vm1, %v1132_v7, 0.0  ;;  %v1047_v37 = vadd.f32 %v1026_v40, %v921_v50 }
 0x120   :  { %v1096_v6 = vadd.f32 %v1095_v0, %v1094_v18  ;;  %v1162_v38 = vadd.f32 %v1161_v57, %v1160_v61  ;;  %v899_v36 = vmul.f32 %v1943_v15, %v865_v29  ;;  %v881_v0 = vpop.permute.xlu0 %880 }
 0x121   :  { %v1068_v48 = vmul.f32 %v1047_v37, %v2091_v60  ;;  %v903_v62 = vmul.f32 %v1943_v15, %v881_v0 }
 0x122   :  { %v1164_v4 = vadd.f32 %v1163_v16, %v1162_v38  ;;  %v1098_v31 = vadd.f32 %v1097_v21, %v1096_v6  ;;  %v920_v47 = vadd.f32 %v899_v36, %v1908_v27 }
 0x123   :  { %v1136_v27 = vmul.f32 %v1068_v48, %v2091_v60  ;;  %v1105_v22 = vsel %vm22_vm1, %v1068_v48, 0.0 }
 0x124   :  { %v1166_v3 = vadd.f32 %v1165_v2, %v1164_v4  ;;  %v987_v44 = vpop.permute.xlu1 %986  ;;  %v1100_v5 = vadd.f32 %v1099_v41, %v1098_v31  ;;  %v924_v31 = vadd.f32 %v903_v62, %v1928_v43 }
 0x125   :  { %v1024_v13 = vmul.f32 %v1955_v32, %v987_v44  ;;  %v1173_v23 = vsel %vm22_vm1, %v1136_v27, 0.0 }
 0x126   :  { %v1168_v53 = vadd.f32 %v1167_v39, %v1166_v3 }
 0x127   :  { %v1045_v56 = vadd.f32 %v1024_v13, %v919_v9 }
 0x128   :  { %v991_v58 = vpop.permute.xlu1 %990 }
 0x129   :  { %v1066_v34 = vmul.f32 %v1045_v56, %v2033_v25  ;;  %v1025_v26 = vmul.f32 %v1955_v32, %v991_v58 }
 0x12b   :  { %v1101_v46 = vsel %vm22_vm1, %v1066_v34, 0.0  ;;  %v1134_v24 = vmul.f32 %v1066_v34, %v2033_v25  ;;  %v1046_v10 = vadd.f32 %v1025_v26, %v920_v47  ;;  %v1188_v47 = vshrl.u32 %v508_v59, 7 }
 0x12c   :  { %v1102_v28 = vadd.f32 %v1101_v46, %v1100_v5 }
 0x12d   :  { %v1169_v12 = vsel %vm22_vm1, %v1134_v24, 0.0  ;;  %v1067_v11 = vmul.f32 %v1046_v10, %v2066_v52  ;;  %v873_v49 = vpop.permute.xlu1 %872  ;;  %vm1189_vm11 = vcmp.eq.s32.totalorder %v1188_v47, 0 }
 0x12e   :  { %v1170_v45 = vadd.f32 %v1169_v12, %v1168_v53  ;;  %v901_v63 = vmul.f32 %v1943_v15, %v873_v49 }
 0x12f   :  { %v1103_v54 = vsel %vm22_vm1, %v1067_v11, 0.0  ;;  %v1135_v1 = vmul.f32 %v1067_v11, %v2066_v52 }
 0x130   :  { %v1104_v20 = vadd.f32 %v1103_v54, %v1102_v28  ;;  %v922_v60 = vadd.f32 %v901_v63, %v1918_v35 }
 0x131   :  { %v1171_v19 = vsel %vm22_vm1, %v1135_v1, 0.0  ;;  %v877_v25 = vpop.permute.xlu1 %876 }
 0x132   :  { %v1172_v8 = vadd.f32 %v1171_v19, %v1170_v45  ;;  %v1106_v61 = vadd.f32 %v1105_v22, %v1104_v20  ;;  %v902_v7 = vmul.f32 %v1943_v15, %v877_v25 }
 0x134   :  { %v1174_v51 = vadd.f32 %v1173_v23, %v1172_v8  ;;  %v923_v33 = vadd.f32 %v902_v7, %v1926_v42 }
 0x136   :  { %v999_v18 = vpop.permute.xlu1 %998 }
 0x137   :  { %v1027_v52 = vmul.f32 %v1955_v32, %v999_v18 }
 0x139   :  { %v1048_v57 = vadd.f32 %v1027_v52, %v922_v60 }
 0x13a   :  { %v1003_v29 = vpop.permute.xlu1 %1002 }
 0x13b   :  { %v1069_v6 = vmul.f32 %v1048_v57, %v2099_v14  ;;  %v1028_v38 = vmul.f32 %v1955_v32, %v1003_v29 }
 0x13d   :  { %v1107_v16 = vsel %vm22_vm1, %v1069_v6, 0.0  ;;  %v1137_v21 = vmul.f32 %v1069_v6, %v2099_v14  ;;  %v1049_v35 = vadd.f32 %v1028_v38, %v923_v33 }
 0x13e   :  { %v1108_v30 = vadd.f32 %v1107_v16, %v1106_v61  ;;  %v1007_v4 = vpop.permute.xlu1 %1006 }
 0x13f   :  { %v1175_v41 = vsel %vm22_vm1, %v1137_v21, 0.0  ;;  %v1070_v40 = vmul.f32 %v1049_v35, %v2128_v17  ;;  %v1029_v15 = vmul.f32 %v1955_v32, %v1007_v4 }
 0x140   :  { %v1176_v42 = vadd.f32 %v1175_v41, %v1174_v51 }
 0x141   :  { %v1109_v2 = vsel %vm22_vm1, %v1070_v40, 0.0  ;;  %v1138_v50 = vmul.f32 %v1070_v40, %v2128_v17  ;;  %v1050_v3 = vadd.f32 %v1029_v15, %v924_v31 }
 0x142   :  { %v1110_v44 = vadd.f32 %v1109_v2, %v1108_v30 }
 0x143   :  { %v1177_v14 = vsel %vm22_vm1, %v1138_v50, 0.0  ;;  %v1071_v5 = vmul.f32 %v1050_v3, %v2150_v55 }
 0x144   :  { %v1178_v39 = vadd.f32 %v1177_v14, %v1176_v42 }
 0x145   :  { %v1111_v43 = vsel %vm22_vm1, %v1071_v5, 0.0  ;;  %v1139_v9 = vmul.f32 %v1071_v5, %v2150_v55 }
 0x146   :  { %v1112_v36 = vadd.f32 %v1111_v43, %v1110_v44 }
 0x147   :  { %v1179_v13 = vsel %vm22_vm1, %v1139_v9, 0.0 }
 0x148   :  { %v1113_v32 = vrot.slane %v1112_v36, 4  ;;  %v1180_v53 = vadd.f32 %v1179_v13, %v1178_v39 }
 0x14a   :  { %v1114_v37 = vadd.f32 %v1113_v32, %v1112_v36  ;;  %v1181_v56 = vrot.slane %v1180_v53, 4 }
 0x14c   :  { %v1115_v58 = vrot.slane %v1114_v37, 2  ;;  %v1182_v17 = vadd.f32 %v1181_v56, %v1180_v53 }
 0x14e   :  { %v1116_v34 = vadd.f32 %v1115_v58, %v1114_v37  ;;  %v1183_v26 = vrot.slane %v1182_v17, 2 }
 0x150   :  { %v1117_v48 = vrot.slane %v1116_v34, 1  ;;  %v1184_v46 = vadd.f32 %v1183_v26, %v1182_v17 }
 0x152   :  { %v1118_v24 = vadd.f32 %v1117_v48, %v1116_v34  ;;  %v1185_v10 = vrot.slane %v1184_v46, 1 }
 0x154   :  { %v1186_v28 = vadd.f32 %v1185_v10, %v1184_v46  ;;  %v1190_v55 = vsel %vm1189_vm11, %v1118_v24, 0.0 }
 0x155   :  { %1191 = vst.msk [vmem:[%s2268_s4] sm:$0xff] %vm22_vm1, %v1190_v55 }
 0x156   :  { %v1192_v12 = vsel %vm1189_vm11, %v1186_v28, 0.0 }
 0x157   :  { %1193 = vst.msk [vmem:[%s2269_s5] sm:$0xff] %vm22_vm1, %v1192_v12 }

// kernel: tile.78
= control target key start
LH: loop header
LB: loop body
LE: loop exit
PB: predicated region body
PF: predicated region fallthrough
CT: control target
= control target key end

     0   :  { %s22_s0 = inlined_call_operand.vmem [shape: f32[8], index: 0, kind: input, shape index: {}]   ;;  %s23_s1 = inlined_call_operand.vmem [shape: f32[4,8], index: 1, kind: output, shape index: {}]  }
   0x1   :  { %v4_v0 = vld [vmem:[%s22_s0] ss:$0 sm:$0xff] }
   0x2   :  { %5 = vst [vmem:[%s23_s1] sm:$0xf] %v4_v0 }

// kernel: tile.79
= control target key start
LH: loop header
LB: loop body
LE: loop exit
PB: predicated region body
PF: predicated region fallthrough
CT: control target
= control target key end

     0   :  { %vm8_vm0 = vcmask 64512   ;;  %s40_s8 = smov 8   ;;  %s41_s9 = smov 16   ;;  %vm14_vm1 = vcmask 261312   ;;  %vm20_vm2 = vcmask 195712   ;;  %vm26_vm3 = vcmask 130112   ;;  %s58_s0 = inlined_call_operand.vmem [shape: f32[4,8], index: 0, kind: input, shape index: {}]   ;;  %s59_s1 = inlined_call_operand.vmem [shape: f32[1,32], index: 1, kind: output, shape index: {}]  }
   0x1   :  { %v5_v0 = vld [vmem:[%s58_s0] sm:$0xf]  ;;  %s39_s0 = smov 24  }
   0x2   :  { %6 = vst [vmem:[#allocation1] sm:$0xf] %v5_v0 }
   0x9   :  { %v11_v1 = vld [vmem:[#allocation1 + $0x3] sm:$0x1]   ;;  %v23_v2 = vld [vmem:[#allocation1 + $0x1] sm:$0x1]   ;;  %v7_v3 = vld [vmem:[#allocation1] sm:$0x1]  }
   0xa   :  { %12 = vrot.lane.b32.xlu0 %v11_v1, %s39_s0  ;;  %24 = vrot.lane.b32.xlu1 %v23_v2, %s40_s8  ;;  %v17_v4 = vld [vmem:[#allocation1 + $0x2] sm:$0x1]   ;;  %9 = vst.msk [vmem:[#allocation0] sm:$0x1] %vm8_vm0, %v7_v3  }
   0xe   :  { %18 = vrot.lane.b32.xlu0 %v17_v4, %s41_s9 }
  0x7c   :  { %v13_v5 = vpop.permute.xlu0 %12   ;;  %v25_v6 = vpop.permute.xlu1 %24  }
  0x7d   :  { %15 = vst.msk [vmem:[#allocation0] sm:$0x1] %vm14_vm1, %v13_v5  }
  0x80   :  { %v19_v7 = vpop.permute.xlu0 %18  }
  0x81   :  { %21 = vst.msk [vmem:[#allocation0] sm:$0x1] %vm20_vm2, %v19_v7  }
  0x82   :  { %27 = vst.msk [vmem:[#allocation0] sm:$0x1] %vm26_vm3, %v25_v6  }
  0x89   :  { %v32_v8 = vld [vmem:[#allocation0] sm:$0x1] }
  0x8a   :  { %35 = vst [vmem:[%s59_s1] sm:$0x1] %v32_v8 }

// kernel: generator_forward.16
= control target key start
LH: loop header
LB: loop body
LE: loop exit
PB: predicated region body
PF: predicated region fallthrough
CT: control target
= control target key end

     0   :  { %vm1180_vm0 = vcmask 257024   ;;  %s2892_s0 = inlined_call_operand.vmem [shape: bf16[1024,32], index: 0, kind: input, shape index: {}]   ;;  %s2893_s1 = inlined_call_operand.vmem [shape: f32[1,32], index: 1, kind: input, shape index: {}]   ;;  %s2894_s2 = inlined_call_operand.vmem [shape: f32[1,32], index: 2, kind: input, shape index: {}]   ;;  %s2895_s3 = inlined_call_operand.vmem [shape: bf16[1024,32], index: 3, kind: output, shape index: {}]  }
   0x1   :  { %v1572_v0 = vld [vmem:[%s2892_s0] sm:$0xff]   ;;  %v1827_v4 = vld [vmem:[%s2892_s0 + $0x8] sm:$0xff]   ;;  %v1828_v5 = vld [vmem:[%s2892_s0 + $0x10] sm:$0xff]  }
   0x2   :  { %v1918_v1 = vld [vmem:[%s2893_s1] ss:$0 sm:$0xff]  ;;  %v1573_v2 = vunpack.c.l.bf16 %v1572_v0  ;;  %v1574_v3 = vunpack.c.h.bf16 %v1572_v0  ;;  %v1829_v6 = vld [vmem:[%s2892_s0 + $0x18] sm:$0xff]   ;;  %v1577_v8 = vunpack.c.l.bf16 %v1827_v4  ;;  %v1578_v9 = vunpack.c.h.bf16 %v1827_v4  ;;  %v1831_v41 = vld [vmem:[%s2892_s0 + $0x28] sm:$0xff]  }
   0x3   :  { %v1932_v7 = vld [vmem:[%s2894_s2] ss:$0 sm:$0xff]  ;;  %v1581_v10 = vunpack.c.l.bf16 %v1828_v5  ;;  %v1582_v11 = vunpack.c.h.bf16 %v1828_v5  ;;  %v1585_v14 = vunpack.c.l.bf16 %v1829_v6  ;;  %v1586_v15 = vunpack.c.h.bf16 %v1829_v6  ;;  %v1832_v42 = vld [vmem:[%s2892_s0 + $0x30] sm:$0xff]   ;;  %v1833_v47 = vld [vmem:[%s2892_s0 + $0x38] sm:$0xff]  }
   0x4   :  { %v277_v12 = vmul.f32 %v1573_v2, %v1918_v1  ;;  %v278_v13 = vmul.f32 %v1574_v3, %v1918_v1  ;;  %v279_v16 = vmul.f32 %v1577_v8, %v1918_v1  ;;  %v280_v17 = vmul.f32 %v1578_v9, %v1918_v1  ;;  %v1830_v36 = vld [vmem:[%s2892_s0 + $0x20] sm:$0xff]  }
   0x5   :  { %v281_v18 = vmul.f32 %v1581_v10, %v1918_v1  ;;  %v282_v19 = vmul.f32 %v1582_v11, %v1918_v1  ;;  %v283_v22 = vmul.f32 %v1585_v14, %v1918_v1  ;;  %v284_v23 = vmul.f32 %v1586_v15, %v1918_v1 }
   0x6   :  { %v412_v20 = vadd.f32 %v1932_v7, %v277_v12  ;;  %v413_v21 = vadd.f32 %v1932_v7, %v278_v13  ;;  %v414_v24 = vadd.f32 %v1932_v7, %v279_v16  ;;  %v415_v25 = vadd.f32 %v1932_v7, %v280_v17 }
   0x7   :  { %v416_v26 = vadd.f32 %v1932_v7, %v281_v18  ;;  %v417_v27 = vadd.f32 %v1932_v7, %v282_v19  ;;  %v418_v30 = vadd.f32 %v1932_v7, %v283_v22  ;;  %v419_v31 = vadd.f32 %v1932_v7, %v284_v23  ;;  %v1834_v18 = vld [vmem:[%s2892_s0 + $0x40] sm:$0xff]   ;;  %v1835_v23 = vld [vmem:[%s2892_s0 + $0x48] sm:$0xff]  }
   0x8   :  { %v540_v28 = vmax.f32 %v412_v20, 0.0  ;;  %v541_v29 = vmax.f32 %v413_v21, 0.0  ;;  %v542_v32 = vmax.f32 %v414_v24, 0.0  ;;  %v543_v33 = vmax.f32 %v415_v25, 0.0  ;;  %v1836_v24 = vld [vmem:[%s2892_s0 + $0x50] sm:$0xff]  }
   0x9   :  { %v544_v34 = vmax.f32 %v416_v26, 0.0  ;;  %v545_v35 = vmax.f32 %v417_v27, 0.0  ;;  %v546_v39 = vmax.f32 %v418_v30, 0.0  ;;  %v547_v40 = vmax.f32 %v419_v31, 0.0 }
   0xa   :  { %v1443_v37 = vpack.c.bf16 %v540_v28, %v540_v28  ;;  %v1444_v38 = vpack.c.bf16 %v541_v29, %v541_v29  ;;  %v1445_v43 = vpack.c.bf16 %v542_v32, %v542_v32  ;;  %v1446_v44 = vpack.c.bf16 %v543_v33, %v543_v33  ;;  %v1837_v29 = vld [vmem:[%s2892_s0 + $0x58] sm:$0xff]  }
   0xb   :  { %v1447_v45 = vpack.c.bf16 %v544_v34, %v544_v34  ;;  %v1448_v46 = vpack.c.bf16 %v545_v35, %v545_v35  ;;  %v1449_v48 = vpack.c.bf16 %v546_v39, %v546_v39  ;;  %v1450_v49 = vpack.c.bf16 %v547_v40, %v547_v40 }
   0xc   :  { %1181 = vst.msk [vmem:[%s2895_s3] sm:$0xf] %vm1180_vm0, %v1443_v37  ;;  %1182 = vst.msk [vmem:[%s2895_s3 + $0x4] sm:$0xf] %vm1180_vm0, %v1444_v38  ;;  %v1589_v50 = vunpack.c.l.bf16 %v1830_v36  ;;  %v1590_v51 = vunpack.c.h.bf16 %v1830_v36  ;;  %v1593_v52 = vunpack.c.l.bf16 %v1831_v41  ;;  %v1594_v53 = vunpack.c.h.bf16 %v1831_v41 }
   0xd   :  { %1183 = vst.msk [vmem:[%s2895_s3 + $0x8] sm:$0xf] %vm1180_vm0, %v1445_v43  ;;  %1184 = vst.msk [vmem:[%s2895_s3 + $0xc] sm:$0xf] %vm1180_vm0, %v1446_v44  ;;  %v1597_v54 = vunpack.c.l.bf16 %v1832_v42  ;;  %v1598_v55 = vunpack.c.h.bf16 %v1832_v42  ;;  %v1601_v58 = vunpack.c.l.bf16 %v1833_v47  ;;  %v1602_v59 = vunpack.c.h.bf16 %v1833_v47 }
   0xe   :  { %1185 = vst.msk [vmem:[%s2895_s3 + $0x10] sm:$0xf] %vm1180_vm0, %v1447_v45  ;;  %1186 = vst.msk [vmem:[%s2895_s3 + $0x14] sm:$0xf] %vm1180_vm0, %v1448_v46  ;;  %v285_v56 = vmul.f32 %v1589_v50, %v1918_v1  ;;  %v286_v57 = vmul.f32 %v1590_v51, %v1918_v1  ;;  %v287_v60 = vmul.f32 %v1593_v52, %v1918_v1  ;;  %v1605_v32 = vunpack.c.l.bf16 %v1834_v18 }
   0xf   :  { %1187 = vst.msk [vmem:[%s2895_s3 + $0x18] sm:$0xf] %vm1180_vm0, %v1449_v48  ;;  %1188 = vst.msk [vmem:[%s2895_s3 + $0x1c] sm:$0xf] %vm1180_vm0, %v1450_v49  ;;  %v288_v61 = vmul.f32 %v1594_v53, %v1918_v1  ;;  %v289_v62 = vmul.f32 %v1597_v54, %v1918_v1  ;;  %v290_v63 = vmul.f32 %v1598_v55, %v1918_v1  ;;  %v1606_v33 = vunpack.c.h.bf16 %v1834_v18 }
  0x10   :  { %v420_v0 = vadd.f32 %v1932_v7, %v285_v56  ;;  %v421_v2 = vadd.f32 %v1932_v7, %v286_v57  ;;  %v291_v3 = vmul.f32 %v1601_v58, %v1918_v1  ;;  %v292_v4 = vmul.f32 %v1602_v59, %v1918_v1 }
  0x11   :  { %v422_v5 = vadd.f32 %v1932_v7, %v287_v60  ;;  %v423_v6 = vadd.f32 %v1932_v7, %v288_v61  ;;  %v424_v8 = vadd.f32 %v1932_v7, %v289_v62  ;;  %v425_v9 = vadd.f32 %v1932_v7, %v290_v63  ;;  %v1838_v62 = vld [vmem:[%s2892_s0 + $0x60] sm:$0xff]  }
  0x12   :  { %v548_v10 = vmax.f32 %v420_v0, 0.0  ;;  %v549_v11 = vmax.f32 %v421_v2, 0.0  ;;  %v426_v12 = vadd.f32 %v1932_v7, %v291_v3  ;;  %v427_v13 = vadd.f32 %v1932_v7, %v292_v4  ;;  %v1839_v4 = vld [vmem:[%s2892_s0 + $0x68] sm:$0xff]  }
  0x13   :  { %v550_v14 = vmax.f32 %v422_v5, 0.0  ;;  %v551_v15 = vmax.f32 %v423_v6, 0.0  ;;  %v552_v16 = vmax.f32 %v424_v8, 0.0  ;;  %v553_v17 = vmax.f32 %v425_v9, 0.0  ;;  %v1840_v5 = vld [vmem:[%s2892_s0 + $0x70] sm:$0xff]  }
  0x14   :  { %v1451_v19 = vpack.c.bf16 %v548_v10, %v548_v10  ;;  %v1452_v20 = vpack.c.bf16 %v549_v11, %v549_v11  ;;  %v554_v21 = vmax.f32 %v426_v12, 0.0  ;;  %v555_v22 = vmax.f32 %v427_v13, 0.0  ;;  %v1841_v11 = vld [vmem:[%s2892_s0 + $0x78] sm:$0xff]  }
  0x15   :  { %v1453_v25 = vpack.c.bf16 %v550_v14, %v550_v14  ;;  %v1454_v26 = vpack.c.bf16 %v551_v15, %v551_v15  ;;  %v1455_v27 = vpack.c.bf16 %v552_v16, %v552_v16  ;;  %v1456_v28 = vpack.c.bf16 %v553_v17, %v553_v17 }
  0x16   :  { %1189 = vst.msk [vmem:[%s2895_s3 + $0x20] sm:$0xf] %vm1180_vm0, %v1451_v19  ;;  %1190 = vst.msk [vmem:[%s2895_s3 + $0x24] sm:$0xf] %vm1180_vm0, %v1452_v20  ;;  %v1457_v30 = vpack.c.bf16 %v554_v21, %v554_v21  ;;  %v1458_v31 = vpack.c.bf16 %v555_v22, %v555_v22  ;;  %v1609_v34 = vunpack.c.l.bf16 %v1835_v23  ;;  %v1610_v35 = vunpack.c.h.bf16 %v1835_v23 }
  0x17   :  { %1191 = vst.msk [vmem:[%s2895_s3 + $0x28] sm:$0xf] %vm1180_vm0, %v1453_v25  ;;  %1192 = vst.msk [vmem:[%s2895_s3 + $0x2c] sm:$0xf] %vm1180_vm0, %v1454_v26  ;;  %v1613_v36 = vunpack.c.l.bf16 %v1836_v24  ;;  %v1614_v37 = vunpack.c.h.bf16 %v1836_v24  ;;  %v293_v38 = vmul.f32 %v1605_v32, %v1918_v1  ;;  %v294_v39 = vmul.f32 %v1606_v33, %v1918_v1 }
  0x18   :  { %1193 = vst.msk [vmem:[%s2895_s3 + $0x30] sm:$0xf] %vm1180_vm0, %v1455_v27  ;;  %1194 = vst.msk [vmem:[%s2895_s3 + $0x34] sm:$0xf] %vm1180_vm0, %v1456_v28  ;;  %v1617_v40 = vunpack.c.l.bf16 %v1837_v29  ;;  %v1618_v41 = vunpack.c.h.bf16 %v1837_v29  ;;  %v295_v42 = vmul.f32 %v1609_v34, %v1918_v1  ;;  %v296_v43 = vmul.f32 %v1610_v35, %v1918_v1 }
  0x19   :  { %1195 = vst.msk [vmem:[%s2895_s3 + $0x38] sm:$0xf] %vm1180_vm0, %v1457_v30  ;;  %1196 = vst.msk [vmem:[%s2895_s3 + $0x3c] sm:$0xf] %vm1180_vm0, %v1458_v31  ;;  %v297_v44 = vmul.f32 %v1613_v36, %v1918_v1  ;;  %v298_v45 = vmul.f32 %v1614_v37, %v1918_v1  ;;  %v428_v46 = vadd.f32 %v1932_v7, %v293_v38  ;;  %v1621_v14 = vunpack.c.l.bf16 %v1838_v62 }
  0x1a   :  { %v429_v47 = vadd.f32 %v1932_v7, %v294_v39  ;;  %v299_v48 = vmul.f32 %v1617_v40, %v1918_v1  ;;  %v300_v49 = vmul.f32 %v1618_v41, %v1918_v1  ;;  %v430_v50 = vadd.f32 %v1932_v7, %v295_v42 }
  0x1b   :  { %v431_v51 = vadd.f32 %v1932_v7, %v296_v43  ;;  %v432_v52 = vadd.f32 %v1932_v7, %v297_v44  ;;  %v433_v53 = vadd.f32 %v1932_v7, %v298_v45  ;;  %v556_v54 = vmax.f32 %v428_v46, 0.0  ;;  %v1842_v44 = vld [vmem:[%s2892_s0 + $0x80] sm:$0xff]  }
  0x1c   :  { %v557_v55 = vmax.f32 %v429_v47, 0.0  ;;  %v434_v56 = vadd.f32 %v1932_v7, %v299_v48  ;;  %v435_v57 = vadd.f32 %v1932_v7, %v300_v49  ;;  %v558_v58 = vmax.f32 %v430_v50, 0.0  ;;  %v1843_v49 = vld [vmem:[%s2892_s0 + $0x88] sm:$0xff]   ;;  %v1844_v50 = vld [vmem:[%s2892_s0 + $0x90] sm:$0xff]  }
  0x1d   :  { %v559_v59 = vmax.f32 %v431_v51, 0.0  ;;  %v560_v60 = vmax.f32 %v432_v52, 0.0  ;;  %v561_v61 = vmax.f32 %v433_v53, 0.0  ;;  %v1459_v63 = vpack.c.bf16 %v556_v54, %v556_v54 }
  0x1e   :  { %v1460_v0 = vpack.c.bf16 %v557_v55, %v557_v55  ;;  %v562_v2 = vmax.f32 %v434_v56, 0.0  ;;  %v563_v3 = vmax.f32 %v435_v57, 0.0  ;;  %v1461_v6 = vpack.c.bf16 %v558_v58, %v558_v58  ;;  %v1845_v55 = vld [vmem:[%s2892_s0 + $0x98] sm:$0xff]  }
  0x1f   :  { %v1462_v8 = vpack.c.bf16 %v559_v59, %v559_v59  ;;  %v1463_v9 = vpack.c.bf16 %v560_v60, %v560_v60  ;;  %v1464_v10 = vpack.c.bf16 %v561_v61, %v561_v61  ;;  %1197 = vst.msk [vmem:[%s2895_s3 + $0x40] sm:$0xf] %vm1180_vm0, %v1459_v63  ;;  %v1622_v15 = vunpack.c.h.bf16 %v1838_v62 }
  0x20   :  { %1198 = vst.msk [vmem:[%s2895_s3 + $0x44] sm:$0xf] %vm1180_vm0, %v1460_v0  ;;  %v1465_v12 = vpack.c.bf16 %v562_v2, %v562_v2  ;;  %v1466_v13 = vpack.c.bf16 %v563_v3, %v563_v3  ;;  %1199 = vst.msk [vmem:[%s2895_s3 + $0x48] sm:$0xf] %vm1180_vm0, %v1461_v6  ;;  %v1625_v16 = vunpack.c.l.bf16 %v1839_v4  ;;  %v1626_v17 = vunpack.c.h.bf16 %v1839_v4 }
  0x21   :  { %1200 = vst.msk [vmem:[%s2895_s3 + $0x4c] sm:$0xf] %vm1180_vm0, %v1462_v8  ;;  %1201 = vst.msk [vmem:[%s2895_s3 + $0x50] sm:$0xf] %vm1180_vm0, %v1463_v9  ;;  %v1629_v18 = vunpack.c.l.bf16 %v1840_v5  ;;  %v1630_v19 = vunpack.c.h.bf16 %v1840_v5  ;;  %v301_v20 = vmul.f32 %v1621_v14, %v1918_v1  ;;  %v302_v21 = vmul.f32 %v1622_v15, %v1918_v1 }
  0x22   :  { %1202 = vst.msk [vmem:[%s2895_s3 + $0x54] sm:$0xf] %vm1180_vm0, %v1464_v10  ;;  %1203 = vst.msk [vmem:[%s2895_s3 + $0x58] sm:$0xf] %vm1180_vm0, %v1465_v12  ;;  %v1633_v22 = vunpack.c.l.bf16 %v1841_v11  ;;  %v1634_v23 = vunpack.c.h.bf16 %v1841_v11  ;;  %v303_v24 = vmul.f32 %v1625_v16, %v1918_v1  ;;  %v304_v25 = vmul.f32 %v1626_v17, %v1918_v1 }
  0x23   :  { %1204 = vst.msk [vmem:[%s2895_s3 + $0x5c] sm:$0xf] %vm1180_vm0, %v1466_v13  ;;  %v305_v26 = vmul.f32 %v1629_v18, %v1918_v1  ;;  %v306_v27 = vmul.f32 %v1630_v19, %v1918_v1  ;;  %v436_v28 = vadd.f32 %v1932_v7, %v301_v20  ;;  %v437_v29 = vadd.f32 %v1932_v7, %v302_v21 }
  0x24   :  { %v307_v30 = vmul.f32 %v1633_v22, %v1918_v1  ;;  %v308_v31 = vmul.f32 %v1634_v23, %v1918_v1  ;;  %v438_v32 = vadd.f32 %v1932_v7, %v303_v24  ;;  %v439_v33 = vadd.f32 %v1932_v7, %v304_v25 }
  0x25   :  { %v440_v34 = vadd.f32 %v1932_v7, %v305_v26  ;;  %v441_v35 = vadd.f32 %v1932_v7, %v306_v27  ;;  %v564_v36 = vmax.f32 %v436_v28, 0.0  ;;  %v565_v37 = vmax.f32 %v437_v29, 0.0  ;;  %v1846_v26 = vld [vmem:[%s2892_s0 + $0xa0] sm:$0xff]  }
  0x26   :  { %v442_v38 = vadd.f32 %v1932_v7, %v307_v30  ;;  %v443_v39 = vadd.f32 %v1932_v7, %v308_v31  ;;  %v566_v40 = vmax.f32 %v438_v32, 0.0  ;;  %v567_v41 = vmax.f32 %v439_v33, 0.0  ;;  %v1847_v31 = vld [vmem:[%s2892_s0 + $0xa8] sm:$0xff]   ;;  %v1848_v32 = vld [vmem:[%s2892_s0 + $0xb0] sm:$0xff]  }
  0x27   :  { %v568_v42 = vmax.f32 %v440_v34, 0.0  ;;  %v569_v43 = vmax.f32 %v441_v35, 0.0  ;;  %v1467_v45 = vpack.c.bf16 %v564_v36, %v564_v36  ;;  %v1468_v46 = vpack.c.bf16 %v565_v37, %v565_v37  ;;  %v1849_v37 = vld [vmem:[%s2892_s0 + $0xb8] sm:$0xff]  }
  0x28   :  { %v570_v47 = vmax.f32 %v442_v38, 0.0  ;;  %v571_v48 = vmax.f32 %v443_v39, 0.0  ;;  %v1469_v51 = vpack.c.bf16 %v566_v40, %v566_v40  ;;  %v1470_v52 = vpack.c.bf16 %v567_v41, %v567_v41 }
  0x29   :  { %v1471_v53 = vpack.c.bf16 %v568_v42, %v568_v42  ;;  %v1472_v54 = vpack.c.bf16 %v569_v43, %v569_v43  ;;  %1205 = vst.msk [vmem:[%s2895_s3 + $0x60] sm:$0xf] %vm1180_vm0, %v1467_v45  ;;  %1206 = vst.msk [vmem:[%s2895_s3 + $0x64] sm:$0xf] %vm1180_vm0, %v1468_v46  ;;  %v1637_v58 = vunpack.c.l.bf16 %v1842_v44  ;;  %v1638_v59 = vunpack.c.h.bf16 %v1842_v44 }
  0x2a   :  { %v1473_v56 = vpack.c.bf16 %v570_v47, %v570_v47  ;;  %v1474_v57 = vpack.c.bf16 %v571_v48, %v571_v48  ;;  %1207 = vst.msk [vmem:[%s2895_s3 + $0x68] sm:$0xf] %vm1180_vm0, %v1469_v51  ;;  %1208 = vst.msk [vmem:[%s2895_s3 + $0x6c] sm:$0xf] %vm1180_vm0, %v1470_v52  ;;  %v1641_v60 = vunpack.c.l.bf16 %v1843_v49  ;;  %v1642_v61 = vunpack.c.h.bf16 %v1843_v49 }
  0x2b   :  { %1209 = vst.msk [vmem:[%s2895_s3 + $0x70] sm:$0xf] %vm1180_vm0, %v1471_v53  ;;  %1210 = vst.msk [vmem:[%s2895_s3 + $0x74] sm:$0xf] %vm1180_vm0, %v1472_v54  ;;  %v1645_v62 = vunpack.c.l.bf16 %v1844_v50  ;;  %v1646_v63 = vunpack.c.h.bf16 %v1844_v50  ;;  %v309_v0 = vmul.f32 %v1637_v58, %v1918_v1  ;;  %v310_v2 = vmul.f32 %v1638_v59, %v1918_v1 }
  0x2c   :  { %1211 = vst.msk [vmem:[%s2895_s3 + $0x78] sm:$0xf] %vm1180_vm0, %v1473_v56  ;;  %1212 = vst.msk [vmem:[%s2895_s3 + $0x7c] sm:$0xf] %vm1180_vm0, %v1474_v57  ;;  %v1649_v3 = vunpack.c.l.bf16 %v1845_v55  ;;  %v1650_v4 = vunpack.c.h.bf16 %v1845_v55  ;;  %v311_v5 = vmul.f32 %v1641_v60, %v1918_v1  ;;  %v312_v6 = vmul.f32 %v1642_v61, %v1918_v1 }
  0x2d   :  { %v313_v8 = vmul.f32 %v1645_v62, %v1918_v1  ;;  %v314_v9 = vmul.f32 %v1646_v63, %v1918_v1  ;;  %v444_v10 = vadd.f32 %v1932_v7, %v309_v0  ;;  %v445_v11 = vadd.f32 %v1932_v7, %v310_v2 }
  0x2e   :  { %v315_v12 = vmul.f32 %v1649_v3, %v1918_v1  ;;  %v316_v13 = vmul.f32 %v1650_v4, %v1918_v1  ;;  %v446_v14 = vadd.f32 %v1932_v7, %v311_v5  ;;  %v447_v15 = vadd.f32 %v1932_v7, %v312_v6 }
  0x2f   :  { %v448_v16 = vadd.f32 %v1932_v7, %v313_v8  ;;  %v449_v17 = vadd.f32 %v1932_v7, %v314_v9  ;;  %v572_v18 = vmax.f32 %v444_v10, 0.0  ;;  %v573_v19 = vmax.f32 %v445_v11, 0.0  ;;  %v1850_v8 = vld [vmem:[%s2892_s0 + $0xc0] sm:$0xff]  }
  0x30   :  { %v450_v20 = vadd.f32 %v1932_v7, %v315_v12  ;;  %v451_v21 = vadd.f32 %v1932_v7, %v316_v13  ;;  %v574_v22 = vmax.f32 %v446_v14, 0.0  ;;  %v575_v23 = vmax.f32 %v447_v15, 0.0  ;;  %v1851_v13 = vld [vmem:[%s2892_s0 + $0xc8] sm:$0xff]   ;;  %v1852_v14 = vld [vmem:[%s2892_s0 + $0xd0] sm:$0xff]  }
  0x31   :  { %v576_v24 = vmax.f32 %v448_v16, 0.0  ;;  %v577_v25 = vmax.f32 %v449_v17, 0.0  ;;  %v1475_v27 = vpack.c.bf16 %v572_v18, %v572_v18  ;;  %v1476_v28 = vpack.c.bf16 %v573_v19, %v573_v19  ;;  %v1853_v19 = vld [vmem:[%s2892_s0 + $0xd8] sm:$0xff]  }
  0x32   :  { %v578_v29 = vmax.f32 %v450_v20, 0.0  ;;  %v579_v30 = vmax.f32 %v451_v21, 0.0  ;;  %v1477_v33 = vpack.c.bf16 %v574_v22, %v574_v22  ;;  %v1478_v34 = vpack.c.bf16 %v575_v23, %v575_v23 }
  0x33   :  { %v1479_v35 = vpack.c.bf16 %v576_v24, %v576_v24  ;;  %v1480_v36 = vpack.c.bf16 %v577_v25, %v577_v25  ;;  %1213 = vst.msk [vmem:[%s2895_s3 + $0x80] sm:$0xf] %vm1180_vm0, %v1475_v27  ;;  %1214 = vst.msk [vmem:[%s2895_s3 + $0x84] sm:$0xf] %vm1180_vm0, %v1476_v28  ;;  %v1653_v40 = vunpack.c.l.bf16 %v1846_v26  ;;  %v1654_v41 = vunpack.c.h.bf16 %v1846_v26 }
  0x34   :  { %v1481_v38 = vpack.c.bf16 %v578_v29, %v578_v29  ;;  %v1482_v39 = vpack.c.bf16 %v579_v30, %v579_v30  ;;  %1215 = vst.msk [vmem:[%s2895_s3 + $0x88] sm:$0xf] %vm1180_vm0, %v1477_v33  ;;  %1216 = vst.msk [vmem:[%s2895_s3 + $0x8c] sm:$0xf] %vm1180_vm0, %v1478_v34  ;;  %v1657_v42 = vunpack.c.l.bf16 %v1847_v31  ;;  %v1658_v43 = vunpack.c.h.bf16 %v1847_v31 }
  0x35   :  { %1217 = vst.msk [vmem:[%s2895_s3 + $0x90] sm:$0xf] %vm1180_vm0, %v1479_v35  ;;  %1218 = vst.msk [vmem:[%s2895_s3 + $0x94] sm:$0xf] %vm1180_vm0, %v1480_v36  ;;  %v1661_v44 = vunpack.c.l.bf16 %v1848_v32  ;;  %v1662_v45 = vunpack.c.h.bf16 %v1848_v32  ;;  %v317_v46 = vmul.f32 %v1653_v40, %v1918_v1  ;;  %v318_v47 = vmul.f32 %v1654_v41, %v1918_v1 }
  0x36   :  { %1219 = vst.msk [vmem:[%s2895_s3 + $0x98] sm:$0xf] %vm1180_vm0, %v1481_v38  ;;  %1220 = vst.msk [vmem:[%s2895_s3 + $0x9c] sm:$0xf] %vm1180_vm0, %v1482_v39  ;;  %v1665_v48 = vunpack.c.l.bf16 %v1849_v37  ;;  %v1666_v49 = vunpack.c.h.bf16 %v1849_v37  ;;  %v319_v50 = vmul.f32 %v1657_v42, %v1918_v1  ;;  %v320_v51 = vmul.f32 %v1658_v43, %v1918_v1 }
  0x37   :  { %v321_v52 = vmul.f32 %v1661_v44, %v1918_v1  ;;  %v322_v53 = vmul.f32 %v1662_v45, %v1918_v1  ;;  %v452_v54 = vadd.f32 %v1932_v7, %v317_v46  ;;  %v453_v55 = vadd.f32 %v1932_v7, %v318_v47 }
  0x38   :  { %v323_v56 = vmul.f32 %v1665_v48, %v1918_v1  ;;  %v324_v57 = vmul.f32 %v1666_v49, %v1918_v1  ;;  %v454_v58 = vadd.f32 %v1932_v7, %v319_v50  ;;  %v455_v59 = vadd.f32 %v1932_v7, %v320_v51 }
  0x39   :  { %v456_v60 = vadd.f32 %v1932_v7, %v321_v52  ;;  %v457_v61 = vadd.f32 %v1932_v7, %v322_v53  ;;  %v580_v62 = vmax.f32 %v452_v54, 0.0  ;;  %v581_v63 = vmax.f32 %v453_v55, 0.0  ;;  %v1854_v52 = vld [vmem:[%s2892_s0 + $0xe0] sm:$0xff]  }
  0x3a   :  { %v458_v0 = vadd.f32 %v1932_v7, %v323_v56  ;;  %v459_v2 = vadd.f32 %v1932_v7, %v324_v57  ;;  %v582_v3 = vmax.f32 %v454_v58, 0.0  ;;  %v583_v4 = vmax.f32 %v455_v59, 0.0  ;;  %v1855_v57 = vld [vmem:[%s2892_s0 + $0xe8] sm:$0xff]   ;;  %v1856_v58 = vld [vmem:[%s2892_s0 + $0xf0] sm:$0xff]  }
  0x3b   :  { %v584_v5 = vmax.f32 %v456_v60, 0.0  ;;  %v585_v6 = vmax.f32 %v457_v61, 0.0  ;;  %v1483_v9 = vpack.c.bf16 %v580_v62, %v580_v62  ;;  %v1484_v10 = vpack.c.bf16 %v581_v63, %v581_v63  ;;  %v1857_v63 = vld [vmem:[%s2892_s0 + $0xf8] sm:$0xff]  }
  0x3c   :  { %v586_v11 = vmax.f32 %v458_v0, 0.0  ;;  %v587_v12 = vmax.f32 %v459_v2, 0.0  ;;  %v1485_v15 = vpack.c.bf16 %v582_v3, %v582_v3  ;;  %v1486_v16 = vpack.c.bf16 %v583_v4, %v583_v4 }
  0x3d   :  { %v1487_v17 = vpack.c.bf16 %v584_v5, %v584_v5  ;;  %v1488_v18 = vpack.c.bf16 %v585_v6, %v585_v6  ;;  %1221 = vst.msk [vmem:[%s2895_s3 + $0xa0] sm:$0xf] %vm1180_vm0, %v1483_v9  ;;  %1222 = vst.msk [vmem:[%s2895_s3 + $0xa4] sm:$0xf] %vm1180_vm0, %v1484_v10  ;;  %v1669_v22 = vunpack.c.l.bf16 %v1850_v8  ;;  %v1670_v23 = vunpack.c.h.bf16 %v1850_v8 }
  0x3e   :  { %v1489_v20 = vpack.c.bf16 %v586_v11, %v586_v11  ;;  %v1490_v21 = vpack.c.bf16 %v587_v12, %v587_v12  ;;  %1223 = vst.msk [vmem:[%s2895_s3 + $0xa8] sm:$0xf] %vm1180_vm0, %v1485_v15  ;;  %1224 = vst.msk [vmem:[%s2895_s3 + $0xac] sm:$0xf] %vm1180_vm0, %v1486_v16  ;;  %v1673_v24 = vunpack.c.l.bf16 %v1851_v13  ;;  %v1674_v25 = vunpack.c.h.bf16 %v1851_v13 }
  0x3f   :  { %1225 = vst.msk [vmem:[%s2895_s3 + $0xb0] sm:$0xf] %vm1180_vm0, %v1487_v17  ;;  %1226 = vst.msk [vmem:[%s2895_s3 + $0xb4] sm:$0xf] %vm1180_vm0, %v1488_v18  ;;  %v1677_v26 = vunpack.c.l.bf16 %v1852_v14  ;;  %v1678_v27 = vunpack.c.h.bf16 %v1852_v14  ;;  %v325_v28 = vmul.f32 %v1669_v22, %v1918_v1  ;;  %v326_v29 = vmul.f32 %v1670_v23, %v1918_v1 }
  0x40   :  { %1227 = vst.msk [vmem:[%s2895_s3 + $0xb8] sm:$0xf] %vm1180_vm0, %v1489_v20  ;;  %1228 = vst.msk [vmem:[%s2895_s3 + $0xbc] sm:$0xf] %vm1180_vm0, %v1490_v21  ;;  %v1681_v30 = vunpack.c.l.bf16 %v1853_v19  ;;  %v1682_v31 = vunpack.c.h.bf16 %v1853_v19  ;;  %v327_v32 = vmul.f32 %v1673_v24, %v1918_v1  ;;  %v328_v33 = vmul.f32 %v1674_v25, %v1918_v1 }
  0x41   :  { %v329_v34 = vmul.f32 %v1677_v26, %v1918_v1  ;;  %v330_v35 = vmul.f32 %v1678_v27, %v1918_v1  ;;  %v460_v36 = vadd.f32 %v1932_v7, %v325_v28  ;;  %v461_v37 = vadd.f32 %v1932_v7, %v326_v29 }
  0x42   :  { %v331_v38 = vmul.f32 %v1681_v30, %v1918_v1  ;;  %v332_v39 = vmul.f32 %v1682_v31, %v1918_v1  ;;  %v462_v40 = vadd.f32 %v1932_v7, %v327_v32  ;;  %v463_v41 = vadd.f32 %v1932_v7, %v328_v33 }
  0x43   :  { %v464_v42 = vadd.f32 %v1932_v7, %v329_v34  ;;  %v465_v43 = vadd.f32 %v1932_v7, %v330_v35  ;;  %v588_v44 = vmax.f32 %v460_v36, 0.0  ;;  %v589_v45 = vmax.f32 %v461_v37, 0.0  ;;  %v1858_v34 = vld [vmem:[%s2892_s0 + $0x100] sm:$0xff]  }
  0x44   :  { %v466_v46 = vadd.f32 %v1932_v7, %v331_v38  ;;  %v467_v47 = vadd.f32 %v1932_v7, %v332_v39  ;;  %v590_v48 = vmax.f32 %v462_v40, 0.0  ;;  %v591_v49 = vmax.f32 %v463_v41, 0.0  ;;  %v1859_v39 = vld [vmem:[%s2892_s0 + $0x108] sm:$0xff]   ;;  %v1860_v40 = vld [vmem:[%s2892_s0 + $0x110] sm:$0xff]  }
  0x45   :  { %v592_v50 = vmax.f32 %v464_v42, 0.0  ;;  %v593_v51 = vmax.f32 %v465_v43, 0.0  ;;  %v1491_v53 = vpack.c.bf16 %v588_v44, %v588_v44  ;;  %v1492_v54 = vpack.c.bf16 %v589_v45, %v589_v45  ;;  %v1861_v45 = vld [vmem:[%s2892_s0 + $0x118] sm:$0xff]  }
  0x46   :  { %v594_v55 = vmax.f32 %v466_v46, 0.0  ;;  %v595_v56 = vmax.f32 %v467_v47, 0.0  ;;  %v1493_v59 = vpack.c.bf16 %v590_v48, %v590_v48  ;;  %v1494_v60 = vpack.c.bf16 %v591_v49, %v591_v49 }
  0x47   :  { %v1495_v61 = vpack.c.bf16 %v592_v50, %v592_v50  ;;  %v1496_v62 = vpack.c.bf16 %v593_v51, %v593_v51  ;;  %1229 = vst.msk [vmem:[%s2895_s3 + $0xc0] sm:$0xf] %vm1180_vm0, %v1491_v53  ;;  %1230 = vst.msk [vmem:[%s2895_s3 + $0xc4] sm:$0xf] %vm1180_vm0, %v1492_v54  ;;  %v1685_v3 = vunpack.c.l.bf16 %v1854_v52  ;;  %v1686_v4 = vunpack.c.h.bf16 %v1854_v52 }
  0x48   :  { %v1497_v0 = vpack.c.bf16 %v594_v55, %v594_v55  ;;  %v1498_v2 = vpack.c.bf16 %v595_v56, %v595_v56  ;;  %1231 = vst.msk [vmem:[%s2895_s3 + $0xc8] sm:$0xf] %vm1180_vm0, %v1493_v59  ;;  %1232 = vst.msk [vmem:[%s2895_s3 + $0xcc] sm:$0xf] %vm1180_vm0, %v1494_v60  ;;  %v1689_v5 = vunpack.c.l.bf16 %v1855_v57  ;;  %v1690_v6 = vunpack.c.h.bf16 %v1855_v57 }
  0x49   :  { %1233 = vst.msk [vmem:[%s2895_s3 + $0xd0] sm:$0xf] %vm1180_vm0, %v1495_v61  ;;  %1234 = vst.msk [vmem:[%s2895_s3 + $0xd4] sm:$0xf] %vm1180_vm0, %v1496_v62  ;;  %v1693_v8 = vunpack.c.l.bf16 %v1856_v58  ;;  %v1694_v9 = vunpack.c.h.bf16 %v1856_v58  ;;  %v333_v10 = vmul.f32 %v1685_v3, %v1918_v1  ;;  %v334_v11 = vmul.f32 %v1686_v4, %v1918_v1 }
  0x4a   :  { %1235 = vst.msk [vmem:[%s2895_s3 + $0xd8] sm:$0xf] %vm1180_vm0, %v1497_v0  ;;  %1236 = vst.msk [vmem:[%s2895_s3 + $0xdc] sm:$0xf] %vm1180_vm0, %v1498_v2  ;;  %v1697_v12 = vunpack.c.l.bf16 %v1857_v63  ;;  %v1698_v13 = vunpack.c.h.bf16 %v1857_v63  ;;  %v335_v14 = vmul.f32 %v1689_v5, %v1918_v1  ;;  %v336_v15 = vmul.f32 %v1690_v6, %v1918_v1 }
  0x4b   :  { %v337_v16 = vmul.f32 %v1693_v8, %v1918_v1  ;;  %v338_v17 = vmul.f32 %v1694_v9, %v1918_v1  ;;  %v468_v18 = vadd.f32 %v1932_v7, %v333_v10  ;;  %v469_v19 = vadd.f32 %v1932_v7, %v334_v11 }
  0x4c   :  { %v339_v20 = vmul.f32 %v1697_v12, %v1918_v1  ;;  %v340_v21 = vmul.f32 %v1698_v13, %v1918_v1  ;;  %v470_v22 = vadd.f32 %v1932_v7, %v335_v14  ;;  %v471_v23 = vadd.f32 %v1932_v7, %v336_v15 }
  0x4d   :  { %v472_v24 = vadd.f32 %v1932_v7, %v337_v16  ;;  %v473_v25 = vadd.f32 %v1932_v7, %v338_v17  ;;  %v596_v26 = vmax.f32 %v468_v18, 0.0  ;;  %v597_v27 = vmax.f32 %v469_v19, 0.0  ;;  %v1862_v16 = vld [vmem:[%s2892_s0 + $0x120] sm:$0xff]  }
  0x4e   :  { %v474_v28 = vadd.f32 %v1932_v7, %v339_v20  ;;  %v475_v29 = vadd.f32 %v1932_v7, %v340_v21  ;;  %v598_v30 = vmax.f32 %v470_v22, 0.0  ;;  %v599_v31 = vmax.f32 %v471_v23, 0.0  ;;  %v1863_v21 = vld [vmem:[%s2892_s0 + $0x128] sm:$0xff]   ;;  %v1864_v22 = vld [vmem:[%s2892_s0 + $0x130] sm:$0xff]  }
  0x4f   :  { %v600_v32 = vmax.f32 %v472_v24, 0.0  ;;  %v601_v33 = vmax.f32 %v473_v25, 0.0  ;;  %v1499_v35 = vpack.c.bf16 %v596_v26, %v596_v26  ;;  %v1500_v36 = vpack.c.bf16 %v597_v27, %v597_v27  ;;  %v1865_v27 = vld [vmem:[%s2892_s0 + $0x138] sm:$0xff]  }
  0x50   :  { %v602_v37 = vmax.f32 %v474_v28, 0.0  ;;  %v603_v38 = vmax.f32 %v475_v29, 0.0  ;;  %v1501_v41 = vpack.c.bf16 %v598_v30, %v598_v30  ;;  %v1502_v42 = vpack.c.bf16 %v599_v31, %v599_v31 }
  0x51   :  { %v1503_v43 = vpack.c.bf16 %v600_v32, %v600_v32  ;;  %v1504_v44 = vpack.c.bf16 %v601_v33, %v601_v33  ;;  %1237 = vst.msk [vmem:[%s2895_s3 + $0xe0] sm:$0xf] %vm1180_vm0, %v1499_v35  ;;  %1238 = vst.msk [vmem:[%s2895_s3 + $0xe4] sm:$0xf] %vm1180_vm0, %v1500_v36  ;;  %v1701_v48 = vunpack.c.l.bf16 %v1858_v34  ;;  %v1702_v49 = vunpack.c.h.bf16 %v1858_v34 }
  0x52   :  { %v1505_v46 = vpack.c.bf16 %v602_v37, %v602_v37  ;;  %v1506_v47 = vpack.c.bf16 %v603_v38, %v603_v38  ;;  %1239 = vst.msk [vmem:[%s2895_s3 + $0xe8] sm:$0xf] %vm1180_vm0, %v1501_v41  ;;  %1240 = vst.msk [vmem:[%s2895_s3 + $0xec] sm:$0xf] %vm1180_vm0, %v1502_v42  ;;  %v1705_v50 = vunpack.c.l.bf16 %v1859_v39  ;;  %v1706_v51 = vunpack.c.h.bf16 %v1859_v39 }
  0x53   :  { %1241 = vst.msk [vmem:[%s2895_s3 + $0xf0] sm:$0xf] %vm1180_vm0, %v1503_v43  ;;  %1242 = vst.msk [vmem:[%s2895_s3 + $0xf4] sm:$0xf] %vm1180_vm0, %v1504_v44  ;;  %v1709_v52 = vunpack.c.l.bf16 %v1860_v40  ;;  %v1710_v53 = vunpack.c.h.bf16 %v1860_v40  ;;  %v341_v54 = vmul.f32 %v1701_v48, %v1918_v1  ;;  %v342_v55 = vmul.f32 %v1702_v49, %v1918_v1 }
  0x54   :  { %1243 = vst.msk [vmem:[%s2895_s3 + $0xf8] sm:$0xf] %vm1180_vm0, %v1505_v46  ;;  %1244 = vst.msk [vmem:[%s2895_s3 + $0xfc] sm:$0xf] %vm1180_vm0, %v1506_v47  ;;  %v1713_v56 = vunpack.c.l.bf16 %v1861_v45  ;;  %v1714_v57 = vunpack.c.h.bf16 %v1861_v45  ;;  %v343_v58 = vmul.f32 %v1705_v50, %v1918_v1  ;;  %v344_v59 = vmul.f32 %v1706_v51, %v1918_v1 }
  0x55   :  { %v345_v60 = vmul.f32 %v1709_v52, %v1918_v1  ;;  %v346_v61 = vmul.f32 %v1710_v53, %v1918_v1  ;;  %v476_v62 = vadd.f32 %v1932_v7, %v341_v54  ;;  %v477_v63 = vadd.f32 %v1932_v7, %v342_v55 }
  0x56   :  { %v347_v0 = vmul.f32 %v1713_v56, %v1918_v1  ;;  %v348_v2 = vmul.f32 %v1714_v57, %v1918_v1  ;;  %v478_v3 = vadd.f32 %v1932_v7, %v343_v58  ;;  %v479_v4 = vadd.f32 %v1932_v7, %v344_v59 }
  0x57   :  { %v480_v5 = vadd.f32 %v1932_v7, %v345_v60  ;;  %v481_v6 = vadd.f32 %v1932_v7, %v346_v61  ;;  %v604_v8 = vmax.f32 %v476_v62, 0.0  ;;  %v605_v9 = vmax.f32 %v477_v63, 0.0 }
  0x58   :  { %v482_v10 = vadd.f32 %v1932_v7, %v347_v0  ;;  %v483_v11 = vadd.f32 %v1932_v7, %v348_v2  ;;  %v606_v12 = vmax.f32 %v478_v3, 0.0  ;;  %v607_v13 = vmax.f32 %v479_v4, 0.0  ;;  %v1867_v0 = vld [vmem:[%s2892_s0 + $0x148] sm:$0xff]  }
  0x59   :  { %v608_v14 = vmax.f32 %v480_v5, 0.0  ;;  %v609_v15 = vmax.f32 %v481_v6, 0.0  ;;  %v1507_v17 = vpack.c.bf16 %v604_v8, %v604_v8  ;;  %v1508_v18 = vpack.c.bf16 %v605_v9, %v605_v9  ;;  %v1869_v6 = vld [vmem:[%s2892_s0 + $0x158] sm:$0xff]  }
  0x5a   :  { %v610_v19 = vmax.f32 %v482_v10, 0.0  ;;  %v611_v20 = vmax.f32 %v483_v11, 0.0  ;;  %v1509_v23 = vpack.c.bf16 %v606_v12, %v606_v12  ;;  %v1510_v24 = vpack.c.bf16 %v607_v13, %v607_v13 }
  0x5b   :  { %v1511_v25 = vpack.c.bf16 %v608_v14, %v608_v14  ;;  %v1512_v26 = vpack.c.bf16 %v609_v15, %v609_v15  ;;  %1245 = vst.msk [vmem:[%s2895_s3 + $0x100] sm:$0xf] %vm1180_vm0, %v1507_v17  ;;  %1246 = vst.msk [vmem:[%s2895_s3 + $0x104] sm:$0xf] %vm1180_vm0, %v1508_v18  ;;  %v1717_v30 = vunpack.c.l.bf16 %v1862_v16  ;;  %v1718_v31 = vunpack.c.h.bf16 %v1862_v16  ;;  %v2537_v16 = vld [vmem:[%s2893_s1] ss:$0 sm:$0xff] }
  0x5c   :  { %v1513_v28 = vpack.c.bf16 %v610_v19, %v610_v19  ;;  %v1514_v29 = vpack.c.bf16 %v611_v20, %v611_v20  ;;  %1247 = vst.msk [vmem:[%s2895_s3 + $0x108] sm:$0xf] %vm1180_vm0, %v1509_v23  ;;  %1248 = vst.msk [vmem:[%s2895_s3 + $0x10c] sm:$0xf] %vm1180_vm0, %v1510_v24  ;;  %v1721_v32 = vunpack.c.l.bf16 %v1863_v21  ;;  %v1722_v33 = vunpack.c.h.bf16 %v1863_v21 }
  0x5d   :  { %1249 = vst.msk [vmem:[%s2895_s3 + $0x110] sm:$0xf] %vm1180_vm0, %v1511_v25  ;;  %1250 = vst.msk [vmem:[%s2895_s3 + $0x114] sm:$0xf] %vm1180_vm0, %v1512_v26  ;;  %v1725_v34 = vunpack.c.l.bf16 %v1864_v22  ;;  %v1726_v35 = vunpack.c.h.bf16 %v1864_v22  ;;  %v349_v36 = vmul.f32 %v1717_v30, %v1918_v1  ;;  %v350_v37 = vmul.f32 %v1718_v31, %v1918_v1  ;;  %v2548_v25 = vld [vmem:[%s2894_s2] ss:$0 sm:$0xff] }
  0x5e   :  { %1251 = vst.msk [vmem:[%s2895_s3 + $0x118] sm:$0xf] %vm1180_vm0, %v1513_v28  ;;  %1252 = vst.msk [vmem:[%s2895_s3 + $0x11c] sm:$0xf] %vm1180_vm0, %v1514_v29  ;;  %v1729_v38 = vunpack.c.l.bf16 %v1865_v27  ;;  %v1730_v39 = vunpack.c.h.bf16 %v1865_v27  ;;  %v351_v40 = vmul.f32 %v1721_v32, %v1918_v1  ;;  %v352_v41 = vmul.f32 %v1722_v33, %v1918_v1 }
  0x5f   :  { %v353_v42 = vmul.f32 %v1725_v34, %v1918_v1  ;;  %v354_v43 = vmul.f32 %v1726_v35, %v1918_v1  ;;  %v484_v44 = vadd.f32 %v1932_v7, %v349_v36  ;;  %v485_v45 = vadd.f32 %v1932_v7, %v350_v37 }
  0x60   :  { %v355_v46 = vmul.f32 %v1729_v38, %v1918_v1  ;;  %v356_v47 = vmul.f32 %v1730_v39, %v1918_v1  ;;  %v486_v48 = vadd.f32 %v1932_v7, %v351_v40  ;;  %v487_v49 = vadd.f32 %v1932_v7, %v352_v41  ;;  %v1866_v1 = vld [vmem:[%s2892_s0 + $0x140] sm:$0xff]  }
  0x61   :  { %v488_v50 = vadd.f32 %v1932_v7, %v353_v42  ;;  %v489_v51 = vadd.f32 %v1932_v7, %v354_v43  ;;  %v612_v52 = vmax.f32 %v484_v44, 0.0  ;;  %v613_v53 = vmax.f32 %v485_v45, 0.0  ;;  %v1870_v42 = vld [vmem:[%s2892_s0 + $0x160] sm:$0xff]  }
  0x62   :  { %v490_v54 = vadd.f32 %v1932_v7, %v355_v46  ;;  %v491_v55 = vadd.f32 %v1932_v7, %v356_v47  ;;  %v614_v56 = vmax.f32 %v486_v48, 0.0  ;;  %v615_v57 = vmax.f32 %v487_v49, 0.0  ;;  %v1868_v7 = vld [vmem:[%s2892_s0 + $0x150] sm:$0xff]   ;;  %v1871_v47 = vld [vmem:[%s2892_s0 + $0x168] sm:$0xff]  }
  0x63   :  { %v616_v58 = vmax.f32 %v488_v50, 0.0  ;;  %v617_v59 = vmax.f32 %v489_v51, 0.0  ;;  %v1515_v60 = vpack.c.bf16 %v612_v52, %v612_v52  ;;  %v1516_v61 = vpack.c.bf16 %v613_v53, %v613_v53  ;;  %v1872_v48 = vld [vmem:[%s2892_s0 + $0x170] sm:$0xff]   ;;  %v1873_v53 = vld [vmem:[%s2892_s0 + $0x178] sm:$0xff]  }
  0x64   :  { %v618_v62 = vmax.f32 %v490_v54, 0.0  ;;  %v619_v63 = vmax.f32 %v491_v55, 0.0  ;;  %v1517_v2 = vpack.c.bf16 %v614_v56, %v614_v56  ;;  %v1518_v3 = vpack.c.bf16 %v615_v57, %v615_v57 }
  0x65   :  { %v1519_v4 = vpack.c.bf16 %v616_v58, %v616_v58  ;;  %v1520_v5 = vpack.c.bf16 %v617_v59, %v617_v59  ;;  %1253 = vst.msk [vmem:[%s2895_s3 + $0x120] sm:$0xf] %vm1180_vm0, %v1515_v60  ;;  %1254 = vst.msk [vmem:[%s2895_s3 + $0x124] sm:$0xf] %vm1180_vm0, %v1516_v61  ;;  %v1733_v10 = vunpack.c.l.bf16 %v1866_v1  ;;  %v1734_v11 = vunpack.c.h.bf16 %v1866_v1 }
  0x66   :  { %v1521_v8 = vpack.c.bf16 %v618_v62, %v618_v62  ;;  %v1522_v9 = vpack.c.bf16 %v619_v63, %v619_v63  ;;  %1255 = vst.msk [vmem:[%s2895_s3 + $0x128] sm:$0xf] %vm1180_vm0, %v1517_v2  ;;  %1256 = vst.msk [vmem:[%s2895_s3 + $0x12c] sm:$0xf] %vm1180_vm0, %v1518_v3  ;;  %v1737_v12 = vunpack.c.l.bf16 %v1867_v0  ;;  %v1738_v13 = vunpack.c.h.bf16 %v1867_v0 }
  0x67   :  { %1257 = vst.msk [vmem:[%s2895_s3 + $0x130] sm:$0xf] %vm1180_vm0, %v1519_v4  ;;  %1258 = vst.msk [vmem:[%s2895_s3 + $0x134] sm:$0xf] %vm1180_vm0, %v1520_v5  ;;  %v1741_v14 = vunpack.c.l.bf16 %v1868_v7  ;;  %v1742_v15 = vunpack.c.h.bf16 %v1868_v7  ;;  %v357_v17 = vmul.f32 %v2537_v16, %v1733_v10  ;;  %v358_v18 = vmul.f32 %v2537_v16, %v1734_v11 }
  0x68   :  { %1259 = vst.msk [vmem:[%s2895_s3 + $0x138] sm:$0xf] %vm1180_vm0, %v1521_v8  ;;  %1260 = vst.msk [vmem:[%s2895_s3 + $0x13c] sm:$0xf] %vm1180_vm0, %v1522_v9  ;;  %v1745_v19 = vunpack.c.l.bf16 %v1869_v6  ;;  %v1746_v20 = vunpack.c.h.bf16 %v1869_v6  ;;  %v359_v21 = vmul.f32 %v2537_v16, %v1737_v12  ;;  %v360_v22 = vmul.f32 %v2537_v16, %v1738_v13 }
  0x69   :  { %v361_v23 = vmul.f32 %v2537_v16, %v1741_v14  ;;  %v362_v24 = vmul.f32 %v2537_v16, %v1742_v15  ;;  %v492_v26 = vadd.f32 %v2548_v25, %v357_v17  ;;  %v493_v27 = vadd.f32 %v2548_v25, %v358_v18 }
  0x6a   :  { %v363_v28 = vmul.f32 %v2537_v16, %v1745_v19  ;;  %v364_v29 = vmul.f32 %v2537_v16, %v1746_v20  ;;  %v494_v30 = vadd.f32 %v2548_v25, %v359_v21  ;;  %v495_v31 = vadd.f32 %v2548_v25, %v360_v22 }
  0x6b   :  { %v496_v32 = vadd.f32 %v2548_v25, %v361_v23  ;;  %v497_v33 = vadd.f32 %v2548_v25, %v362_v24  ;;  %v620_v34 = vmax.f32 %v492_v26, 0.0  ;;  %v621_v35 = vmax.f32 %v493_v27, 0.0  ;;  %v1874_v23 = vld [vmem:[%s2892_s0 + $0x180] sm:$0xff]  }
  0x6c   :  { %v498_v36 = vadd.f32 %v2548_v25, %v363_v28  ;;  %v499_v37 = vadd.f32 %v2548_v25, %v364_v29  ;;  %v622_v38 = vmax.f32 %v494_v30, 0.0  ;;  %v623_v39 = vmax.f32 %v495_v31, 0.0  ;;  %v1875_v29 = vld [vmem:[%s2892_s0 + $0x188] sm:$0xff]   ;;  %v1876_v30 = vld [vmem:[%s2892_s0 + $0x190] sm:$0xff]  }
  0x6d   :  { %v624_v40 = vmax.f32 %v496_v32, 0.0  ;;  %v625_v41 = vmax.f32 %v497_v33, 0.0  ;;  %v1523_v43 = vpack.c.bf16 %v620_v34, %v620_v34  ;;  %v1524_v44 = vpack.c.bf16 %v621_v35, %v621_v35  ;;  %v1877_v35 = vld [vmem:[%s2892_s0 + $0x198] sm:$0xff]  }
  0x6e   :  { %v626_v45 = vmax.f32 %v498_v36, 0.0  ;;  %v627_v46 = vmax.f32 %v499_v37, 0.0  ;;  %v1525_v49 = vpack.c.bf16 %v622_v38, %v622_v38  ;;  %v1526_v50 = vpack.c.bf16 %v623_v39, %v623_v39 }
  0x6f   :  { %v1527_v51 = vpack.c.bf16 %v624_v40, %v624_v40  ;;  %v1528_v52 = vpack.c.bf16 %v625_v41, %v625_v41  ;;  %1261 = vst.msk [vmem:[%s2895_s3 + $0x140] sm:$0xf] %vm1180_vm0, %v1523_v43  ;;  %1262 = vst.msk [vmem:[%s2895_s3 + $0x144] sm:$0xf] %vm1180_vm0, %v1524_v44  ;;  %v1749_v56 = vunpack.c.l.bf16 %v1870_v42  ;;  %v1750_v57 = vunpack.c.h.bf16 %v1870_v42 }
  0x70   :  { %v1529_v54 = vpack.c.bf16 %v626_v45, %v626_v45  ;;  %v1530_v55 = vpack.c.bf16 %v627_v46, %v627_v46  ;;  %1263 = vst.msk [vmem:[%s2895_s3 + $0x148] sm:$0xf] %vm1180_vm0, %v1525_v49  ;;  %1264 = vst.msk [vmem:[%s2895_s3 + $0x14c] sm:$0xf] %vm1180_vm0, %v1526_v50  ;;  %v1753_v58 = vunpack.c.l.bf16 %v1871_v47  ;;  %v1754_v59 = vunpack.c.h.bf16 %v1871_v47 }
  0x71   :  { %1265 = vst.msk [vmem:[%s2895_s3 + $0x150] sm:$0xf] %vm1180_vm0, %v1527_v51  ;;  %1266 = vst.msk [vmem:[%s2895_s3 + $0x154] sm:$0xf] %vm1180_vm0, %v1528_v52  ;;  %v1757_v1 = vunpack.c.l.bf16 %v1872_v48  ;;  %v1758_v60 = vunpack.c.h.bf16 %v1872_v48  ;;  %v365_v61 = vmul.f32 %v2537_v16, %v1749_v56  ;;  %v366_v62 = vmul.f32 %v2537_v16, %v1750_v57 }
  0x72   :  { %1267 = vst.msk [vmem:[%s2895_s3 + $0x158] sm:$0xf] %vm1180_vm0, %v1529_v54  ;;  %1268 = vst.msk [vmem:[%s2895_s3 + $0x15c] sm:$0xf] %vm1180_vm0, %v1530_v55  ;;  %v1761_v63 = vunpack.c.l.bf16 %v1873_v53  ;;  %v1762_v0 = vunpack.c.h.bf16 %v1873_v53  ;;  %v367_v7 = vmul.f32 %v2537_v16, %v1753_v58  ;;  %v368_v2 = vmul.f32 %v2537_v16, %v1754_v59 }
  0x73   :  { %v369_v3 = vmul.f32 %v2537_v16, %v1757_v1  ;;  %v370_v4 = vmul.f32 %v2537_v16, %v1758_v60  ;;  %v500_v5 = vadd.f32 %v2548_v25, %v365_v61  ;;  %v501_v6 = vadd.f32 %v2548_v25, %v366_v62 }
  0x74   :  { %v371_v8 = vmul.f32 %v2537_v16, %v1761_v63  ;;  %v372_v9 = vmul.f32 %v2537_v16, %v1762_v0  ;;  %v502_v10 = vadd.f32 %v2548_v25, %v367_v7  ;;  %v503_v11 = vadd.f32 %v2548_v25, %v368_v2 }
  0x75   :  { %v504_v12 = vadd.f32 %v2548_v25, %v369_v3  ;;  %v505_v13 = vadd.f32 %v2548_v25, %v370_v4  ;;  %v628_v14 = vmax.f32 %v500_v5, 0.0  ;;  %v629_v15 = vmax.f32 %v501_v6, 0.0  ;;  %v1878_v3 = vld [vmem:[%s2892_s0 + $0x1a0] sm:$0xff]  }
  0x76   :  { %v506_v17 = vadd.f32 %v2548_v25, %v371_v8  ;;  %v507_v18 = vadd.f32 %v2548_v25, %v372_v9  ;;  %v630_v19 = vmax.f32 %v502_v10, 0.0  ;;  %v631_v20 = vmax.f32 %v503_v11, 0.0  ;;  %v1879_v9 = vld [vmem:[%s2892_s0 + $0x1a8] sm:$0xff]   ;;  %v1880_v10 = vld [vmem:[%s2892_s0 + $0x1b0] sm:$0xff]  }
  0x77   :  { %v632_v21 = vmax.f32 %v504_v12, 0.0  ;;  %v633_v22 = vmax.f32 %v505_v13, 0.0  ;;  %v1531_v24 = vpack.c.bf16 %v628_v14, %v628_v14  ;;  %v1532_v26 = vpack.c.bf16 %v629_v15, %v629_v15  ;;  %v1881_v15 = vld [vmem:[%s2892_s0 + $0x1b8] sm:$0xff]  }
  0x78   :  { %v634_v27 = vmax.f32 %v506_v17, 0.0  ;;  %v635_v28 = vmax.f32 %v507_v18, 0.0  ;;  %v1533_v31 = vpack.c.bf16 %v630_v19, %v630_v19  ;;  %v1534_v32 = vpack.c.bf16 %v631_v20, %v631_v20 }
  0x79   :  { %v1535_v33 = vpack.c.bf16 %v632_v21, %v632_v21  ;;  %v1536_v34 = vpack.c.bf16 %v633_v22, %v633_v22  ;;  %1269 = vst.msk [vmem:[%s2895_s3 + $0x160] sm:$0xf] %vm1180_vm0, %v1531_v24  ;;  %1270 = vst.msk [vmem:[%s2895_s3 + $0x164] sm:$0xf] %vm1180_vm0, %v1532_v26  ;;  %v1765_v38 = vunpack.c.l.bf16 %v1874_v23  ;;  %v1766_v39 = vunpack.c.h.bf16 %v1874_v23 }
  0x7a   :  { %v1537_v36 = vpack.c.bf16 %v634_v27, %v634_v27  ;;  %v1538_v37 = vpack.c.bf16 %v635_v28, %v635_v28  ;;  %1271 = vst.msk [vmem:[%s2895_s3 + $0x168] sm:$0xf] %vm1180_vm0, %v1533_v31  ;;  %1272 = vst.msk [vmem:[%s2895_s3 + $0x16c] sm:$0xf] %vm1180_vm0, %v1534_v32  ;;  %v1769_v40 = vunpack.c.l.bf16 %v1875_v29  ;;  %v1770_v41 = vunpack.c.h.bf16 %v1875_v29 }
  0x7b   :  { %1273 = vst.msk [vmem:[%s2895_s3 + $0x170] sm:$0xf] %vm1180_vm0, %v1535_v33  ;;  %1274 = vst.msk [vmem:[%s2895_s3 + $0x174] sm:$0xf] %vm1180_vm0, %v1536_v34  ;;  %v1773_v42 = vunpack.c.l.bf16 %v1876_v30  ;;  %v1774_v43 = vunpack.c.h.bf16 %v1876_v30  ;;  %v373_v44 = vmul.f32 %v2537_v16, %v1765_v38  ;;  %v374_v45 = vmul.f32 %v2537_v16, %v1766_v39 }
  0x7c   :  { %1275 = vst.msk [vmem:[%s2895_s3 + $0x178] sm:$0xf] %vm1180_vm0, %v1537_v36  ;;  %1276 = vst.msk [vmem:[%s2895_s3 + $0x17c] sm:$0xf] %vm1180_vm0, %v1538_v37  ;;  %v1777_v46 = vunpack.c.l.bf16 %v1877_v35  ;;  %v1778_v47 = vunpack.c.h.bf16 %v1877_v35  ;;  %v375_v48 = vmul.f32 %v2537_v16, %v1769_v40  ;;  %v376_v49 = vmul.f32 %v2537_v16, %v1770_v41 }
  0x7d   :  { %v377_v50 = vmul.f32 %v2537_v16, %v1773_v42  ;;  %v378_v51 = vmul.f32 %v2537_v16, %v1774_v43  ;;  %v508_v52 = vadd.f32 %v2548_v25, %v373_v44  ;;  %v509_v53 = vadd.f32 %v2548_v25, %v374_v45 }
  0x7e   :  { %v379_v54 = vmul.f32 %v2537_v16, %v1777_v46  ;;  %v380_v55 = vmul.f32 %v2537_v16, %v1778_v47  ;;  %v510_v56 = vadd.f32 %v2548_v25, %v375_v48  ;;  %v511_v57 = vadd.f32 %v2548_v25, %v376_v49 }
  0x7f   :  { %v512_v58 = vadd.f32 %v2548_v25, %v377_v50  ;;  %v513_v59 = vadd.f32 %v2548_v25, %v378_v51  ;;  %v636_v1 = vmax.f32 %v508_v52, 0.0  ;;  %v637_v60 = vmax.f32 %v509_v53, 0.0  ;;  %v1882_v50 = vld [vmem:[%s2892_s0 + $0x1c0] sm:$0xff]  }
  0x80   :  { %v514_v61 = vadd.f32 %v2548_v25, %v379_v54  ;;  %v515_v62 = vadd.f32 %v2548_v25, %v380_v55  ;;  %v638_v63 = vmax.f32 %v510_v56, 0.0  ;;  %v639_v0 = vmax.f32 %v511_v57, 0.0  ;;  %v1883_v55 = vld [vmem:[%s2892_s0 + $0x1c8] sm:$0xff]   ;;  %v1884_v56 = vld [vmem:[%s2892_s0 + $0x1d0] sm:$0xff]  }
  0x81   :  { %v640_v7 = vmax.f32 %v512_v58, 0.0  ;;  %v641_v2 = vmax.f32 %v513_v59, 0.0  ;;  %v1539_v4 = vpack.c.bf16 %v636_v1, %v636_v1  ;;  %v1540_v5 = vpack.c.bf16 %v637_v60, %v637_v60  ;;  %v1885_v60 = vld [vmem:[%s2892_s0 + $0x1d8] sm:$0xff]  }
  0x82   :  { %v642_v6 = vmax.f32 %v514_v61, 0.0  ;;  %v643_v8 = vmax.f32 %v515_v62, 0.0  ;;  %v1541_v11 = vpack.c.bf16 %v638_v63, %v638_v63  ;;  %v1542_v12 = vpack.c.bf16 %v639_v0, %v639_v0 }
  0x83   :  { %v1543_v13 = vpack.c.bf16 %v640_v7, %v640_v7  ;;  %v1544_v14 = vpack.c.bf16 %v641_v2, %v641_v2  ;;  %1277 = vst.msk [vmem:[%s2895_s3 + $0x180] sm:$0xf] %vm1180_vm0, %v1539_v4  ;;  %1278 = vst.msk [vmem:[%s2895_s3 + $0x184] sm:$0xf] %vm1180_vm0, %v1540_v5  ;;  %v1781_v19 = vunpack.c.l.bf16 %v1878_v3  ;;  %v1782_v20 = vunpack.c.h.bf16 %v1878_v3 }
  0x84   :  { %v1545_v17 = vpack.c.bf16 %v642_v6, %v642_v6  ;;  %v1546_v18 = vpack.c.bf16 %v643_v8, %v643_v8  ;;  %1279 = vst.msk [vmem:[%s2895_s3 + $0x188] sm:$0xf] %vm1180_vm0, %v1541_v11  ;;  %1280 = vst.msk [vmem:[%s2895_s3 + $0x18c] sm:$0xf] %vm1180_vm0, %v1542_v12  ;;  %v1785_v21 = vunpack.c.l.bf16 %v1879_v9  ;;  %v1786_v22 = vunpack.c.h.bf16 %v1879_v9 }
  0x85   :  { %1281 = vst.msk [vmem:[%s2895_s3 + $0x190] sm:$0xf] %vm1180_vm0, %v1543_v13  ;;  %1282 = vst.msk [vmem:[%s2895_s3 + $0x194] sm:$0xf] %vm1180_vm0, %v1544_v14  ;;  %v1789_v23 = vunpack.c.l.bf16 %v1880_v10  ;;  %v1790_v24 = vunpack.c.h.bf16 %v1880_v10  ;;  %v381_v26 = vmul.f32 %v2537_v16, %v1781_v19  ;;  %v382_v27 = vmul.f32 %v2537_v16, %v1782_v20 }
  0x86   :  { %1283 = vst.msk [vmem:[%s2895_s3 + $0x198] sm:$0xf] %vm1180_vm0, %v1545_v17  ;;  %1284 = vst.msk [vmem:[%s2895_s3 + $0x19c] sm:$0xf] %vm1180_vm0, %v1546_v18  ;;  %v1793_v28 = vunpack.c.l.bf16 %v1881_v15  ;;  %v1794_v29 = vunpack.c.h.bf16 %v1881_v15  ;;  %v383_v30 = vmul.f32 %v2537_v16, %v1785_v21  ;;  %v384_v31 = vmul.f32 %v2537_v16, %v1786_v22 }
  0x87   :  { %v385_v32 = vmul.f32 %v2537_v16, %v1789_v23  ;;  %v386_v33 = vmul.f32 %v2537_v16, %v1790_v24  ;;  %v516_v34 = vadd.f32 %v2548_v25, %v381_v26  ;;  %v517_v35 = vadd.f32 %v2548_v25, %v382_v27 }
  0x88   :  { %v387_v36 = vmul.f32 %v2537_v16, %v1793_v28  ;;  %v388_v37 = vmul.f32 %v2537_v16, %v1794_v29  ;;  %v518_v38 = vadd.f32 %v2548_v25, %v383_v30  ;;  %v519_v39 = vadd.f32 %v2548_v25, %v384_v31 }
  0x89   :  { %v520_v40 = vadd.f32 %v2548_v25, %v385_v32  ;;  %v521_v41 = vadd.f32 %v2548_v25, %v386_v33  ;;  %v644_v42 = vmax.f32 %v516_v34, 0.0  ;;  %v645_v43 = vmax.f32 %v517_v35, 0.0  ;;  %v1886_v32 = vld [vmem:[%s2892_s0 + $0x1e0] sm:$0xff]  }
  0x8a   :  { %v522_v44 = vadd.f32 %v2548_v25, %v387_v36  ;;  %v523_v45 = vadd.f32 %v2548_v25, %v388_v37  ;;  %v646_v46 = vmax.f32 %v518_v38, 0.0  ;;  %v647_v47 = vmax.f32 %v519_v39, 0.0  ;;  %v1887_v37 = vld [vmem:[%s2892_s0 + $0x1e8] sm:$0xff]   ;;  %v1888_v38 = vld [vmem:[%s2892_s0 + $0x1f0] sm:$0xff]  }
  0x8b   :  { %v648_v48 = vmax.f32 %v520_v40, 0.0  ;;  %v649_v49 = vmax.f32 %v521_v41, 0.0  ;;  %v1547_v51 = vpack.c.bf16 %v644_v42, %v644_v42  ;;  %v1548_v52 = vpack.c.bf16 %v645_v43, %v645_v43  ;;  %v1889_v43 = vld [vmem:[%s2892_s0 + $0x1f8] sm:$0xff]  }
  0x8c   :  { %v650_v53 = vmax.f32 %v522_v44, 0.0  ;;  %v651_v54 = vmax.f32 %v523_v45, 0.0  ;;  %v1549_v57 = vpack.c.bf16 %v646_v46, %v646_v46  ;;  %v1550_v58 = vpack.c.bf16 %v647_v47, %v647_v47 }
  0x8d   :  { %v1551_v59 = vpack.c.bf16 %v648_v48, %v648_v48  ;;  %v1552_v1 = vpack.c.bf16 %v649_v49, %v649_v49  ;;  %1285 = vst.msk [vmem:[%s2895_s3 + $0x1a0] sm:$0xf] %vm1180_vm0, %v1547_v51  ;;  %1286 = vst.msk [vmem:[%s2895_s3 + $0x1a4] sm:$0xf] %vm1180_vm0, %v1548_v52  ;;  %v1797_v63 = vunpack.c.l.bf16 %v1882_v50  ;;  %v1798_v0 = vunpack.c.h.bf16 %v1882_v50 }
  0x8e   :  { %v1553_v61 = vpack.c.bf16 %v650_v53, %v650_v53  ;;  %v1554_v62 = vpack.c.bf16 %v651_v54, %v651_v54  ;;  %1287 = vst.msk [vmem:[%s2895_s3 + $0x1a8] sm:$0xf] %vm1180_vm0, %v1549_v57  ;;  %1288 = vst.msk [vmem:[%s2895_s3 + $0x1ac] sm:$0xf] %vm1180_vm0, %v1550_v58  ;;  %v1801_v7 = vunpack.c.l.bf16 %v1883_v55  ;;  %v1802_v2 = vunpack.c.h.bf16 %v1883_v55 }
  0x8f   :  { %1289 = vst.msk [vmem:[%s2895_s3 + $0x1b0] sm:$0xf] %vm1180_vm0, %v1551_v59  ;;  %1290 = vst.msk [vmem:[%s2895_s3 + $0x1b4] sm:$0xf] %vm1180_vm0, %v1552_v1  ;;  %v1805_v3 = vunpack.c.l.bf16 %v1884_v56  ;;  %v1806_v4 = vunpack.c.h.bf16 %v1884_v56  ;;  %v389_v5 = vmul.f32 %v2537_v16, %v1797_v63  ;;  %v390_v6 = vmul.f32 %v2537_v16, %v1798_v0 }
  0x90   :  { %1291 = vst.msk [vmem:[%s2895_s3 + $0x1b8] sm:$0xf] %vm1180_vm0, %v1553_v61  ;;  %1292 = vst.msk [vmem:[%s2895_s3 + $0x1bc] sm:$0xf] %vm1180_vm0, %v1554_v62  ;;  %v1809_v8 = vunpack.c.l.bf16 %v1885_v60  ;;  %v1810_v9 = vunpack.c.h.bf16 %v1885_v60  ;;  %v391_v10 = vmul.f32 %v2537_v16, %v1801_v7  ;;  %v392_v11 = vmul.f32 %v2537_v16, %v1802_v2 }
  0x91   :  { %v393_v12 = vmul.f32 %v2537_v16, %v1805_v3  ;;  %v394_v13 = vmul.f32 %v2537_v16, %v1806_v4  ;;  %v524_v14 = vadd.f32 %v2548_v25, %v389_v5  ;;  %v525_v15 = vadd.f32 %v2548_v25, %v390_v6 }
  0x92   :  { %v395_v17 = vmul.f32 %v2537_v16, %v1809_v8  ;;  %v396_v18 = vmul.f32 %v2537_v16, %v1810_v9  ;;  %v526_v19 = vadd.f32 %v2548_v25, %v391_v10  ;;  %v527_v20 = vadd.f32 %v2548_v25, %v392_v11 }
  0x93   :  { %v528_v21 = vadd.f32 %v2548_v25, %v393_v12  ;;  %v529_v22 = vadd.f32 %v2548_v25, %v394_v13  ;;  %v652_v23 = vmax.f32 %v524_v14, 0.0  ;;  %v653_v24 = vmax.f32 %v525_v15, 0.0 }
  0x94   :  { %v530_v26 = vadd.f32 %v2548_v25, %v395_v17  ;;  %v531_v27 = vadd.f32 %v2548_v25, %v396_v18  ;;  %v654_v28 = vmax.f32 %v526_v19, 0.0  ;;  %v655_v29 = vmax.f32 %v527_v20, 0.0 }
  0x95   :  { %v656_v30 = vmax.f32 %v528_v21, 0.0  ;;  %v657_v31 = vmax.f32 %v529_v22, 0.0  ;;  %v1555_v33 = vpack.c.bf16 %v652_v23, %v652_v23  ;;  %v1556_v34 = vpack.c.bf16 %v653_v24, %v653_v24 }
  0x96   :  { %v658_v35 = vmax.f32 %v530_v26, 0.0  ;;  %v659_v36 = vmax.f32 %v531_v27, 0.0  ;;  %v1557_v39 = vpack.c.bf16 %v654_v28, %v654_v28  ;;  %v1558_v40 = vpack.c.bf16 %v655_v29, %v655_v29 }
  0x97   :  { %v1559_v41 = vpack.c.bf16 %v656_v30, %v656_v30  ;;  %v1560_v42 = vpack.c.bf16 %v657_v31, %v657_v31  ;;  %1293 = vst.msk [vmem:[%s2895_s3 + $0x1c0] sm:$0xf] %vm1180_vm0, %v1555_v33  ;;  %1294 = vst.msk [vmem:[%s2895_s3 + $0x1c4] sm:$0xf] %vm1180_vm0, %v1556_v34  ;;  %v1813_v46 = vunpack.c.l.bf16 %v1886_v32  ;;  %v1814_v47 = vunpack.c.h.bf16 %v1886_v32 }
  0x98   :  { %v1561_v44 = vpack.c.bf16 %v658_v35, %v658_v35  ;;  %v1562_v45 = vpack.c.bf16 %v659_v36, %v659_v36  ;;  %1295 = vst.msk [vmem:[%s2895_s3 + $0x1c8] sm:$0xf] %vm1180_vm0, %v1557_v39  ;;  %1296 = vst.msk [vmem:[%s2895_s3 + $0x1cc] sm:$0xf] %vm1180_vm0, %v1558_v40  ;;  %v1817_v48 = vunpack.c.l.bf16 %v1887_v37  ;;  %v1818_v49 = vunpack.c.h.bf16 %v1887_v37 }
  0x99   :  { %1297 = vst.msk [vmem:[%s2895_s3 + $0x1d0] sm:$0xf] %vm1180_vm0, %v1559_v41  ;;  %1298 = vst.msk [vmem:[%s2895_s3 + $0x1d4] sm:$0xf] %vm1180_vm0, %v1560_v42  ;;  %v1821_v50 = vunpack.c.l.bf16 %v1888_v38  ;;  %v1822_v51 = vunpack.c.h.bf16 %v1888_v38  ;;  %v397_v52 = vmul.f32 %v2537_v16, %v1813_v46  ;;  %v398_v53 = vmul.f32 %v2537_v16, %v1814_v47 }
  0x9a   :  { %1299 = vst.msk [vmem:[%s2895_s3 + $0x1d8] sm:$0xf] %vm1180_vm0, %v1561_v44  ;;  %1300 = vst.msk [vmem:[%s2895_s3 + $0x1dc] sm:$0xf] %vm1180_vm0, %v1562_v45  ;;  %v1825_v54 = vunpack.c.l.bf16 %v1889_v43  ;;  %v1826_v55 = vunpack.c.h.bf16 %v1889_v43  ;;  %v399_v56 = vmul.f32 %v2537_v16, %v1817_v48  ;;  %v400_v57 = vmul.f32 %v2537_v16, %v1818_v49 }
  0x9b   :  { %v401_v58 = vmul.f32 %v2537_v16, %v1821_v50  ;;  %v402_v59 = vmul.f32 %v2537_v16, %v1822_v51  ;;  %v532_v1 = vadd.f32 %v2548_v25, %v397_v52  ;;  %v533_v60 = vadd.f32 %v2548_v25, %v398_v53 }
  0x9c   :  { %v403_v61 = vmul.f32 %v2537_v16, %v1825_v54  ;;  %v404_v62 = vmul.f32 %v2537_v16, %v1826_v55  ;;  %v534_v63 = vadd.f32 %v2548_v25, %v399_v56  ;;  %v535_v0 = vadd.f32 %v2548_v25, %v400_v57 }
  0x9d   :  { %v536_v7 = vadd.f32 %v2548_v25, %v401_v58  ;;  %v537_v2 = vadd.f32 %v2548_v25, %v402_v59  ;;  %v660_v3 = vmax.f32 %v532_v1, 0.0  ;;  %v661_v4 = vmax.f32 %v533_v60, 0.0 }
  0x9e   :  { %v538_v5 = vadd.f32 %v2548_v25, %v403_v61  ;;  %v539_v6 = vadd.f32 %v2548_v25, %v404_v62  ;;  %v662_v8 = vmax.f32 %v534_v63, 0.0  ;;  %v663_v9 = vmax.f32 %v535_v0, 0.0 }
  0x9f   :  { %v664_v10 = vmax.f32 %v536_v7, 0.0  ;;  %v665_v11 = vmax.f32 %v537_v2, 0.0  ;;  %v1563_v12 = vpack.c.bf16 %v660_v3, %v660_v3  ;;  %v1564_v16 = vpack.c.bf16 %v661_v4, %v661_v4 }
  0xa0   :  { %v666_v13 = vmax.f32 %v538_v5, 0.0  ;;  %v667_v14 = vmax.f32 %v539_v6, 0.0  ;;  %v1565_v15 = vpack.c.bf16 %v662_v8, %v662_v8  ;;  %v1566_v17 = vpack.c.bf16 %v663_v9, %v663_v9 }
  0xa1   :  { %v1567_v18 = vpack.c.bf16 %v664_v10, %v664_v10  ;;  %v1568_v19 = vpack.c.bf16 %v665_v11, %v665_v11  ;;  %1301 = vst.msk [vmem:[%s2895_s3 + $0x1e0] sm:$0xf] %vm1180_vm0, %v1563_v12  ;;  %1302 = vst.msk [vmem:[%s2895_s3 + $0x1e4] sm:$0xf] %vm1180_vm0, %v1564_v16 }
  0xa2   :  { %v1569_v25 = vpack.c.bf16 %v666_v13, %v666_v13  ;;  %v1570_v20 = vpack.c.bf16 %v667_v14, %v667_v14  ;;  %1303 = vst.msk [vmem:[%s2895_s3 + $0x1e8] sm:$0xf] %vm1180_vm0, %v1565_v15  ;;  %1304 = vst.msk [vmem:[%s2895_s3 + $0x1ec] sm:$0xf] %vm1180_vm0, %v1566_v17 }
  0xa3   :  { %1305 = vst.msk [vmem:[%s2895_s3 + $0x1f0] sm:$0xf] %vm1180_vm0, %v1567_v18  ;;  %1306 = vst.msk [vmem:[%s2895_s3 + $0x1f4] sm:$0xf] %vm1180_vm0, %v1568_v19 }
  0xa4   :  { %1307 = vst.msk [vmem:[%s2895_s3 + $0x1f8] sm:$0xf] %vm1180_vm0, %v1569_v25  ;;  %1308 = vst.msk [vmem:[%s2895_s3 + $0x1fc] sm:$0xf] %vm1180_vm0, %v1570_v20 }

// kernel: generator_forward.15
= control target key start
LH: loop header
LB: loop body
LE: loop exit
PB: predicated region body
PF: predicated region fallthrough
CT: control target
= control target key end

     0   :  { %s4379_s18 = smov 0   ;;  %s4381_s19 = smov 0   ;;  %s6890_s0 = inlined_call_operand.vmem [shape: bf16[1024,64], index: 0, kind: input, shape index: {}]   ;;  %s6891_s1 = inlined_call_operand.vmem [shape: bf16[64,32], index: 1, kind: input, shape index: {}]   ;;  %s6892_s2 = inlined_call_operand.vmem [shape: f32[1024,4], index: 2, kind: input, shape index: {}]   ;;  %s6893_s3 = inlined_call_operand.vmem [shape: bf16[1024,32], index: 3, kind: output, shape index: {0}]   ;;  %s6894_s4 = inlined_call_operand.vmem [shape: f32[16,32], index: 4, kind: output, shape index: {1}]   ;;  %s6895_s5 = inlined_call_operand.vmem [shape: f32[16,32], index: 5, kind: output, shape index: {2}]  }
   0x1   :  { %s4383_s20 = smov 0  }
   0x2 LB: > { %s28_s21 = sadd.s32 1, %s4338_s19  ;;  %p3790_p0 = scmp.ge.s32.totalorder %s4342_s20, 1  ;;  %s4342_s20 = sphi %s4383_s20, %s16_s20   ;;  %s4338_s19 = sphi %s4381_s19, %s7459_s19   ;;  %s4334_s18 = sphi %s4379_s18, %s7458_s18  }
   0x3   : > { %p30_p1 = scmp.ge.s32.totalorder %s28_s21, 2  ;;  %p232_p2 = scmp.lt.s32.totalorder %s4342_s20, 3 }
   0x5   : > { %s7461_s21 = smov (%p30_p1, %s28_s21), 0  ;;  %p233_p3 = pnand %p3790_p0, %p232_p2 }
   0x7   : > { %236 = sbr.rel (%p233_p3) target bundleno = 747 (0x2eb), region = 32 }
   0xc   : > { %s3791_s22 = sshll.u32 %s4334_s18, 6  ;;  %v4344_v0 = vmov 0   ;;  %vm706_vm0 = vcmask 523264   ;;  %vm321_vm1 = vcmask 261120   ;;  %vm1544_vm2 = vcmask 257024   ;;  %p308_p5 = scmp.lt.s32.totalorder %s4334_s18, 1 }
   0xd   : > { %4147 = vset.pattern.permute.xlu1 %v4344_v0  ;;  %4146 = vset.pattern.permute.xlu0 %v4344_v0  ;;  %p282_p4 = scmp.lt.s32.totalorder %s3791_s22, 127 }
   0xe   : > { %s7465_s18 = smov (!%p308_p5, %s4334_s18), 1 }
   0xf   : > { %s7463_s22 = smov (!%p282_p4, %s3791_s22), 127  ;;  %s3797_s17 = sshll.u32 %s7465_s18, 3 }
  0x10   : > { %s3794_s23 = sshll.u32 %s7463_s22, 3  ;;  %s3792_s10 = sshll.u32 %s7463_s22, 2 }
  0x11   : > { %s4406_s26 = scalar_lea.vmem %s6892_s2, %s3794_s23  ;;  %s4752_s13 = scalar_lea.vmem %s6890_s0, %s3792_s10 }
  0x12   : > { %v4409_v1 = vld [vmem:[%s4406_s26 + $0x10] sm:$0xff]  ;;  %v4412_v2 = vld [vmem:[%s4406_s26] sm:$0xff]  ;;  %v4417_v3 = vld [vmem:[%s4406_s26 + $0x18] sm:$0xff]  ;;  %s5273_s16 = scalar_lea.vmem %s6893_s3, %s3792_s10  ;;  %s311_s24 = scalar_lea.vmem %s6894_s4, %s3797_s17 }
  0x13   : > { %1703 = vperm.xlu1 %4147, %v4409_v1   ;;  %1693 = vperm.xlu0 %4146, %v4412_v2   ;;  %v4420_v4 = vld [vmem:[%s4406_s26 + $0x8] sm:$0xff]  ;;  %v4428_v6 = vld [vmem:[%s4406_s26 + $0x20] sm:$0xff]  ;;  %v4433_v7 = vld [vmem:[%s4406_s26 + $0x38] sm:$0xff]  ;;  %s315_s27 = scalar_lea.vmem %s6895_s5, %s3797_s17 }
  0x14   : > { %v4425_v5 = vld [vmem:[%s4406_s26 + $0x28] sm:$0xff]  ;;  %v4436_v8 = vld [vmem:[%s4406_s26 + $0x30] sm:$0xff]  ;;  %v4444_v10 = vld [vmem:[%s4406_s26 + $0x40] sm:$0xff] }
  0x15   : > { %v4441_v9 = vld [vmem:[%s4406_s26 + $0x48] sm:$0xff]  ;;  %v4449_v11 = vld [vmem:[%s4406_s26 + $0x58] sm:$0xff]  ;;  %v4452_v12 = vld [vmem:[%s4406_s26 + $0x50] sm:$0xff] }
  0x16   : > { %v4457_v13 = vld [vmem:[%s4406_s26 + $0x68] sm:$0xff]  ;;  %v4460_v14 = vld [vmem:[%s4406_s26 + $0x60] sm:$0xff]  ;;  %v4465_v15 = vld [vmem:[%s4406_s26 + $0x78] sm:$0xff] }
  0x17   : > { %1708 = vperm.xlu1 %4147, %v4417_v3   ;;  %1698 = vperm.xlu0 %4146, %v4420_v4   ;;  %v4468_v16 = vld [vmem:[%s4406_s26 + $0x70] sm:$0xff]  ;;  %v4473_v17 = vld [vmem:[%s4406_s26 + $0x88] sm:$0xff]  ;;  %v4476_v18 = vld [vmem:[%s4406_s26 + $0x80] sm:$0xff] }
  0x18   : > { %v4481_v19 = vld [vmem:[%s4406_s26 + $0x98] sm:$0xff]  ;;  %v4484_v20 = vld [vmem:[%s4406_s26 + $0x90] sm:$0xff]  ;;  %v4489_v21 = vld [vmem:[%s4406_s26 + $0xa8] sm:$0xff] }
  0x19   : > { %6918 = vst [vmem:[#allocation3_spill] sm:$0xff] %v4489_v21  ;;  %v4492_v22 = vld [vmem:[%s4406_s26 + $0xa0] sm:$0xff]  ;;  %v4497_v23 = vld [vmem:[%s4406_s26 + $0xb8] sm:$0xff]  ;;  %v4500_v24 = vld [vmem:[%s4406_s26 + $0xb0] sm:$0xff] }
  0x1a   : > { %6919 = vst [vmem:[#allocation4_spill] sm:$0xff] %v4497_v23  ;;  %v4505_v25 = vld [vmem:[%s4406_s26 + $0xc8] sm:$0xff]  ;;  %v4508_v26 = vld [vmem:[%s4406_s26 + $0xc0] sm:$0xff]  ;;  %v4513_v27 = vld [vmem:[%s4406_s26 + $0xd8] sm:$0xff] }
  0x1b   : > { %1718 = vperm.xlu1 %4147, %v4425_v5   ;;  %1713 = vperm.xlu0 %4146, %v4428_v6   ;;  %v4516_v28 = vld [vmem:[%s4406_s26 + $0xd0] sm:$0xff]  ;;  %v4521_v29 = vld [vmem:[%s4406_s26 + $0xe8] sm:$0xff]  ;;  %v4524_v30 = vld [vmem:[%s4406_s26 + $0xe0] sm:$0xff] }
  0x1c   : > { %v4529_v31 = vld [vmem:[%s4406_s26 + $0xf8] sm:$0xff]  ;;  %v4532_v32 = vld [vmem:[%s4406_s26 + $0xf0] sm:$0xff]  ;;  %v4537_v33 = vld [vmem:[%s4406_s26 + $0x108] sm:$0xff] }
  0x1d   : > { %v4540_v34 = vld [vmem:[%s4406_s26 + $0x100] sm:$0xff]  ;;  %v4545_v35 = vld [vmem:[%s4406_s26 + $0x118] sm:$0xff]  ;;  %v4548_v36 = vld [vmem:[%s4406_s26 + $0x110] sm:$0xff] }
  0x1e   : > { %v4553_v37 = vld [vmem:[%s4406_s26 + $0x128] sm:$0xff]  ;;  %v4556_v38 = vld [vmem:[%s4406_s26 + $0x120] sm:$0xff]  ;;  %v4561_v39 = vld [vmem:[%s4406_s26 + $0x138] sm:$0xff] }
  0x1f   : > { %1728 = vperm.xlu1 %4147, %v4433_v7   ;;  %1723 = vperm.xlu0 %4146, %v4436_v8   ;;  %v4564_v40 = vld [vmem:[%s4406_s26 + $0x130] sm:$0xff]  ;;  %v4569_v41 = vld [vmem:[%s4406_s26 + $0x148] sm:$0xff]  ;;  %v4572_v42 = vld [vmem:[%s4406_s26 + $0x140] sm:$0xff] }
  0x20   : > { %v4577_v43 = vld [vmem:[%s4406_s26 + $0x158] sm:$0xff]  ;;  %v4580_v44 = vld [vmem:[%s4406_s26 + $0x150] sm:$0xff]  ;;  %v4585_v45 = vld [vmem:[%s4406_s26 + $0x168] sm:$0xff] }
  0x21   : > { %v4588_v46 = vld [vmem:[%s4406_s26 + $0x160] sm:$0xff]  ;;  %v4593_v47 = vld [vmem:[%s4406_s26 + $0x178] sm:$0xff]  ;;  %v4596_v48 = vld [vmem:[%s4406_s26 + $0x170] sm:$0xff] }
  0x22   : > { %v4601_v49 = vld [vmem:[%s4406_s26 + $0x188] sm:$0xff]  ;;  %v4604_v50 = vld [vmem:[%s4406_s26 + $0x180] sm:$0xff]  ;;  %v4609_v51 = vld [vmem:[%s4406_s26 + $0x198] sm:$0xff] }
  0x23   : > { %1738 = vperm.xlu1 %4147, %v4441_v9   ;;  %1733 = vperm.xlu0 %4146, %v4444_v10   ;;  %6920 = vst [vmem:[#allocation5_spill] sm:$0xff] %v4609_v51  ;;  %v4612_v52 = vld [vmem:[%s4406_s26 + $0x190] sm:$0xff]  ;;  %v4617_v53 = vld [vmem:[%s4406_s26 + $0x1a8] sm:$0xff]  ;;  %v4620_v54 = vld [vmem:[%s4406_s26 + $0x1a0] sm:$0xff] }
  0x24   : > { %6921 = vst [vmem:[#allocation6_spill] sm:$0xff] %v4617_v53  ;;  %v4625_v55 = vld [vmem:[%s4406_s26 + $0x1b8] sm:$0xff]  ;;  %v4628_v56 = vld [vmem:[%s4406_s26 + $0x1b0] sm:$0xff]  ;;  %v4633_v57 = vld [vmem:[%s4406_s26 + $0x1c8] sm:$0xff] }
  0x25   : > { %6922 = vst [vmem:[#allocation7_spill] sm:$0xff] %v4625_v55  ;;  %6923 = vst [vmem:[#allocation8_spill] sm:$0xff] %v4628_v56  ;;  %v4636_v58 = vld [vmem:[%s4406_s26 + $0x1c0] sm:$0xff]  ;;  %v4641_v59 = vld [vmem:[%s4406_s26 + $0x1d8] sm:$0xff] }
  0x26   : > { %6924 = vst [vmem:[#allocation9_spill] sm:$0xff] %v4633_v57  ;;  %6925 = vst [vmem:[#allocation10_spill] sm:$0xff] %v4636_v58  ;;  %v4644_v60 = vld [vmem:[%s4406_s26 + $0x1d0] sm:$0xff]  ;;  %v4649_v61 = vld [vmem:[%s4406_s26 + $0x1e8] sm:$0xff] }
  0x27   : > { %1748 = vperm.xlu1 %4147, %v4449_v11   ;;  %1743 = vperm.xlu0 %4146, %v4452_v12   ;;  %6926 = vst [vmem:[#allocation11_spill] sm:$0xff] %v4641_v59  ;;  %6927 = vst [vmem:[#allocation12_spill] sm:$0xff] %v4644_v60  ;;  %v4652_v62 = vld [vmem:[%s4406_s26 + $0x1e0] sm:$0xff]  ;;  %v4657_v63 = vld [vmem:[%s4406_s26 + $0x1f8] sm:$0xff] }
  0x28   : > { %6928 = vst [vmem:[#allocation13_spill] sm:$0xff] %v4649_v61  ;;  %v4660_v0 = vld [vmem:[%s4406_s26 + $0x1f0] sm:$0xff] }
  0x2b   : > { %1758 = vperm.xlu1 %4147, %v4457_v13   ;;  %1753 = vperm.xlu0 %4146, %v4460_v14  }
  0x2f   : > { %1768 = vperm.xlu1 %4147, %v4465_v15   ;;  %1763 = vperm.xlu0 %4146, %v4468_v16  }
  0x33   : > { %1778 = vperm.xlu1 %4147, %v4473_v17   ;;  %1773 = vperm.xlu0 %4146, %v4476_v18  }
  0x37   : > { %1788 = vperm.xlu1 %4147, %v4481_v19   ;;  %1783 = vperm.xlu0 %4146, %v4484_v20  }
  0x3b   : > { %1798 = vperm.xlu1 %4147, %v4489_v21   ;;  %1793 = vperm.xlu0 %4146, %v4492_v22  }
  0x3f   : > { %1808 = vperm.xlu1 %4147, %v4497_v23   ;;  %1803 = vperm.xlu0 %4146, %v4500_v24  }
  0x43   : > { %1818 = vperm.xlu1 %4147, %v4505_v25   ;;  %1813 = vperm.xlu0 %4146, %v4508_v26  }
  0x47   : > { %1828 = vperm.xlu1 %4147, %v4513_v27   ;;  %1823 = vperm.xlu0 %4146, %v4516_v28  }
  0x4b   : > { %1838 = vperm.xlu1 %4147, %v4521_v29   ;;  %1833 = vperm.xlu0 %4146, %v4524_v30  }
  0x4f   : > { %1848 = vperm.xlu1 %4147, %v4529_v31   ;;  %1843 = vperm.xlu0 %4146, %v4532_v32  }
  0x53   : > { %1858 = vperm.xlu1 %4147, %v4537_v33   ;;  %1853 = vperm.xlu0 %4146, %v4540_v34  }
  0x57   : > { %1868 = vperm.xlu1 %4147, %v4545_v35   ;;  %1863 = vperm.xlu0 %4146, %v4548_v36  }
  0x5b   : > { %1878 = vperm.xlu1 %4147, %v4553_v37   ;;  %1873 = vperm.xlu0 %4146, %v4556_v38  }
  0x5f   : > { %1888 = vperm.xlu1 %4147, %v4561_v39   ;;  %1883 = vperm.xlu0 %4146, %v4564_v40  }
  0x63   : > { %1898 = vperm.xlu1 %4147, %v4569_v41   ;;  %1893 = vperm.xlu0 %4146, %v4572_v42  }
  0x67   : > { %1908 = vperm.xlu1 %4147, %v4577_v43   ;;  %1903 = vperm.xlu0 %4146, %v4580_v44  }
  0x6b   : > { %1918 = vperm.xlu1 %4147, %v4585_v45   ;;  %1913 = vperm.xlu0 %4146, %v4588_v46  }
  0x6f   : > { %1928 = vperm.xlu1 %4147, %v4593_v47   ;;  %1923 = vperm.xlu0 %4146, %v4596_v48  }
  0x73   : > { %1938 = vperm.xlu1 %4147, %v4601_v49   ;;  %1933 = vperm.xlu0 %4146, %v4604_v50  }
  0x77   : > { %1948 = vperm.xlu1 %4147, %v4609_v51   ;;  %1943 = vperm.xlu0 %4146, %v4612_v52  }
  0x7b   : > { %1958 = vperm.xlu1 %4147, %v4617_v53   ;;  %1953 = vperm.xlu0 %4146, %v4620_v54  }
  0x7f   : > { %1968 = vperm.xlu1 %4147, %v4625_v55   ;;  %1963 = vperm.xlu0 %4146, %v4628_v56   ;;  %v4345_v55 = vmov 1  }
  0x83   : > { %1978 = vperm.xlu1 %4147, %v4633_v57   ;;  %1973 = vperm.xlu0 %4146, %v4636_v58  }
  0x87   : > { %1988 = vperm.xlu1 %4147, %v4641_v59   ;;  %1983 = vperm.xlu0 %4146, %v4644_v60  }
  0x8b   : > { %1998 = vperm.xlu1 %4147, %v4649_v61   ;;  %1993 = vperm.xlu0 %4146, %v4652_v62  }
  0x8e   : > { %v4662_v57 = vpop.permute.xlu1 %1703  ;;  %v4664_v58 = vpop.permute.xlu0 %1693 }
  0x8f   : > { %6929 = vst [vmem:[#allocation14_spill] sm:$0xff] %v4662_v57  ;;  %6930 = vst [vmem:[#allocation15_spill] sm:$0xff] %v4664_v58  ;;  %2008 = vperm.xlu1 %4147, %v4657_v63   ;;  %2003 = vperm.xlu0 %4146, %v4660_v0  }
  0x92   : > { %v4668_v59 = vpop.permute.xlu1 %1708  ;;  %v4670_v60 = vpop.permute.xlu0 %1698 }
  0x93   : > { %6931 = vst [vmem:[#allocation16_spill] sm:$0xff] %v4668_v59  ;;  %6932 = vst [vmem:[#allocation17_spill] sm:$0xff] %v4670_v60  ;;  %4149 = vset.pattern.permute.xlu1 %v4345_v55  ;;  %4148 = vset.pattern.permute.xlu0 %v4345_v55 }
  0x94   : > { %2080 = vperm.xlu1 %4149, %v4420_v4   ;;  %2076 = vperm.xlu0 %4148, %v4412_v2  }
  0x96   : > { %v4674_v61 = vpop.permute.xlu1 %1718  ;;  %v4676_v57 = vpop.permute.xlu0 %1713 }
  0x97   : > { %6933 = vst [vmem:[#allocation18_spill] sm:$0xff] %v4674_v61  ;;  %6934 = vst [vmem:[#allocation19_spill] sm:$0xff] %v4676_v57 }
  0x98   : > { %2084 = vperm.xlu1 %4149, %v4409_v1   ;;  %2088 = vperm.xlu0 %4148, %v4417_v3  }
  0x9a   : > { %v4680_v58 = vpop.permute.xlu1 %1728  ;;  %v4682_v59 = vpop.permute.xlu0 %1723 }
  0x9b   : > { %6935 = vst [vmem:[#allocation20_spill] sm:$0xff] %v4680_v58  ;;  %6936 = vst [vmem:[#allocation21_spill] sm:$0xff] %v4682_v59 }
  0x9c   : > { %2092 = vperm.xlu1 %4149, %v4428_v6   ;;  %2096 = vperm.xlu0 %4148, %v4425_v5  }
  0x9e   : > { %v4686_v55 = vpop.permute.xlu1 %1738  ;;  %v4688_v60 = vpop.permute.xlu0 %1733 }
  0x9f   : > { %6937 = vst [vmem:[#allocation22_spill] sm:$0xff] %v4686_v55  ;;  %6938 = vst [vmem:[#allocation23_spill] sm:$0xff] %v4688_v60 }
  0xa0   : > { %2100 = vperm.xlu1 %4149, %v4436_v8   ;;  %2104 = vperm.xlu0 %4148, %v4433_v7  }
  0xa2   : > { %v4692_v57 = vpop.permute.xlu1 %1748  ;;  %v4694_v61 = vpop.permute.xlu0 %1743 }
  0xa3   : > { %6939 = vst [vmem:[#allocation24_spill] sm:$0xff] %v4692_v57  ;;  %6940 = vst [vmem:[#allocation25_spill] sm:$0xff] %v4694_v61 }
  0xa4   : > { %2108 = vperm.xlu1 %4149, %v4444_v10   ;;  %2112 = vperm.xlu0 %4148, %v4441_v9  }
  0xa6   : > { %v4698_v59 = vpop.permute.xlu1 %1758  ;;  %v4700_v58 = vpop.permute.xlu0 %1753 }
  0xa7   : > { %6941 = vst [vmem:[#allocation26_spill] sm:$0xff] %v4698_v59  ;;  %6942 = vst [vmem:[#allocation27_spill] sm:$0xff] %v4700_v58  ;;  %v4154_v58 = vld [vmem:[%s6891_s1 + $0x18] sm:$0xff]  }
  0xa8   : > { %2116 = vperm.xlu1 %4149, %v4452_v12   ;;  %2120 = vperm.xlu0 %4148, %v4449_v11  }
  0xa9   : > { %4037 = vmatprep.subr.bf16.mxu0 %v4154_v58  ;;  %4109 = vmatprep.subr.bf16.mxu1 %v4154_v58 }
  0xaa   : > { %v4704_v60 = vpop.permute.xlu1 %1768  ;;  %v4706_v55 = vpop.permute.xlu0 %1763  ;;  %4038 = vmatpush3.bf16.msra.mxu0 %v4154_v58  ;;  %4113 = vmatpush3.bf16.msra.mxu1 %v4154_v58  ;;  %v4156_v58 = vld [vmem:[%s6891_s1 + $0x8] sm:$0xff]  }
  0xab   : > { %6943 = vst [vmem:[#allocation28_spill] sm:$0xff] %v4704_v60  ;;  %6944 = vst [vmem:[#allocation29_spill] sm:$0xff] %v4706_v55 }
  0xac   : > { %2124 = vperm.xlu1 %4149, %v4460_v14   ;;  %2128 = vperm.xlu0 %4148, %v4457_v13  }
  0xae   : > { %v4710_v61 = vpop.permute.xlu1 %1778  ;;  %v4712_v57 = vpop.permute.xlu0 %1773 }
  0xaf   : > { %6945 = vst [vmem:[#allocation30_spill] sm:$0xff] %v4710_v61  ;;  %6946 = vst [vmem:[#allocation31_spill] sm:$0xff] %v4712_v57  ;;  %v4155_v57 = vld [vmem:[%s6891_s1 + $0x10] sm:$0xff]  }
  0xb0   : > { %2132 = vperm.xlu1 %4149, %v4468_v16   ;;  %2136 = vperm.xlu0 %4148, %v4465_v15  }
  0xb1   : > { %4039 = vmatprep.subr.bf16.mxu0 %v4155_v57  ;;  %4110 = vmatprep.subr.bf16.mxu1 %v4155_v57 }
  0xb2   : > { %v4719_v60 = vpop.permute.xlu1 %1788  ;;  %v4721_v55 = vpop.permute.xlu0 %1783  ;;  %4040 = vmatpush3.bf16.msra.mxu0 %v4155_v57  ;;  %4114 = vmatpush3.bf16.msra.mxu1 %v4155_v57  ;;  %v4157_v57 = vld [vmem:[%s6891_s1] sm:$0xff]  }
  0xb3   : > { %6947 = vst [vmem:[#allocation32_spill] sm:$0xff] %v4719_v60  ;;  %6948 = vst [vmem:[#allocation33_spill] sm:$0xff] %v4721_v55  ;;  %4041 = vmatprep.subr.bf16.mxu0 %v4156_v58  ;;  %4111 = vmatprep.subr.bf16.mxu1 %v4156_v58 }
  0xb4   : > { %2140 = vperm.xlu1 %4149, %v4476_v18   ;;  %2144 = vperm.xlu0 %4148, %v4473_v17  }
  0xb6   : > { %v4728_v61 = vpop.permute.xlu1 %1798  ;;  %v4730_v59 = vpop.permute.xlu0 %1793  ;;  %4042 = vmatpush3.bf16.msra.mxu0 %v4156_v58  ;;  %4115 = vmatpush3.bf16.msra.mxu1 %v4156_v58 }
  0xb7   : > { %6949 = vst [vmem:[#allocation34_spill] sm:$0xff] %v4728_v61  ;;  %6950 = vst [vmem:[#allocation35_spill] sm:$0xff] %v4730_v59  ;;  %4043 = vmatprep.subr.bf16.mxu0 %v4157_v57  ;;  %4112 = vmatprep.subr.bf16.mxu1 %v4157_v57  ;;  %v4159_v59 = vld [vmem:[%s4752_s13 + $0x8] sm:$0xff]  }
  0xb8   : > { %2148 = vperm.xlu1 %4149, %v4484_v20   ;;  %2152 = vperm.xlu0 %4148, %v4481_v19  }
  0xba   : > { %v4737_v55 = vpop.permute.xlu1 %1808  ;;  %v4739_v60 = vpop.permute.xlu0 %1803  ;;  %4044 = vmatpush3.bf16.msra.mxu0 %v4157_v57  ;;  %4116 = vmatpush3.bf16.msra.mxu1 %v4157_v57 }
  0xbb   : > { %6951 = vst [vmem:[#allocation36_spill] sm:$0xff] %v4737_v55  ;;  %6952 = vst [vmem:[#allocation37_spill] sm:$0xff] %v4739_v60  ;;  %v4158_v55 = vld [vmem:[%s4752_s13] sm:$0xff]  }
  0xbc   : > { %2156 = vperm.xlu1 %4149, %v4492_v22   ;;  %2160 = vperm.xlu0 %4148, %v4489_v21  }
  0xbd   : > { %4045 = vmatprep.mubr.msk.bf16.mxu0 %vm706_vm0, %v4158_v55 }
  0xbe   : > { %v4754_v58 = vpop.permute.xlu1 %1818  ;;  %v4756_v60 = vpop.permute.xlu0 %1813  ;;  %4046 = vmatmul.mubr.msk.bf16.vlgmr.msra.gmra.mxu0 %vm706_vm0, %v4159_v59 }
  0xbf   : > { %6953 = vst [vmem:[#allocation38_spill] sm:$0xff] %v4754_v58  ;;  %6954 = vst [vmem:[#allocation39_spill] sm:$0xff] %v4756_v60  ;;  %v4160_v58 = vld [vmem:[%s4752_s13 + $0x10] sm:$0xff]  }
  0xc0   : > { %2164 = vperm.xlu1 %4149, %v4500_v24   ;;  %2168 = vperm.xlu0 %4148, %v4497_v23   ;;  %v4161_v23 = vld [vmem:[%s4752_s13 + $0x18] sm:$0xff]  }
  0xc1   : > { %4049 = vmatprep.mubr.msk.bf16.mxu0 %vm706_vm0, %v4160_v58 }
  0xc2   : > { %v4763_v61 = vpop.permute.xlu1 %1828  ;;  %v4765_v21 = vpop.permute.xlu0 %1823 }
  0xc3   : > { %6955 = vst [vmem:[#allocation40_spill] sm:$0xff] %v4763_v61  ;;  %6956 = vst [vmem:[#allocation41_spill] sm:$0xff] %v4765_v21  ;;  %v4162_v21 = vld [vmem:[%s4752_s13 + $0x20] sm:$0xff]   ;;  %v4163_v61 = vld [vmem:[%s4752_s13 + $0x28] sm:$0xff]  }
  0xc4   : > { %2172 = vperm.xlu1 %4149, %v4508_v26   ;;  %2176 = vperm.xlu0 %4148, %v4505_v25  }
  0xc6   : > { %v4770_v57 = vpop.permute.xlu1 %1838  ;;  %v4772_v60 = vpop.permute.xlu0 %1833  ;;  %4050 = vmatmul.mubr.msk.bf16.gmra.mxu0 %vm706_vm0, %v4161_v23 }
  0xc7   : > { %6957 = vst [vmem:[#allocation42_spill] sm:$0xff] %v4770_v57  ;;  %6958 = vst [vmem:[#allocation43_spill] sm:$0xff] %v4772_v60  ;;  %4053 = vmatprep.mubr.msk.bf16.mxu0 %vm706_vm0, %v4162_v21 }
  0xc8   : > { %2180 = vperm.xlu1 %4149, %v4516_v28   ;;  %2184 = vperm.xlu0 %4148, %v4513_v27  }
  0xca   : > { %v4779_v55 = vpop.permute.xlu1 %1848  ;;  %v4781_v59 = vpop.permute.xlu0 %1843 }
  0xcb   : > { %6959 = vst [vmem:[#allocation44_spill] sm:$0xff] %v4779_v55  ;;  %6960 = vst [vmem:[#allocation45_spill] sm:$0xff] %v4781_v59  ;;  %v4164_v59 = vld [vmem:[%s4752_s13 + $0x30] sm:$0xff]   ;;  %v4165_v55 = vld [vmem:[%s4752_s13 + $0x38] sm:$0xff]  }
  0xcc   : > { %2188 = vperm.xlu1 %4149, %v4524_v30   ;;  %2192 = vperm.xlu0 %4148, %v4521_v29  }
  0xce   : > { %v4786_v60 = vpop.permute.xlu1 %1858  ;;  %v4788_v57 = vpop.permute.xlu0 %1853  ;;  %4054 = vmatmul.mubr.msk.bf16.gmra.mxu0 %vm706_vm0, %v4163_v61 }
  0xcf   : > { %6961 = vst [vmem:[#allocation46_spill] sm:$0xff] %v4786_v60  ;;  %6962 = vst [vmem:[#allocation47_spill] sm:$0xff] %v4788_v57  ;;  %4057 = vmatprep.mubr.msk.bf16.mxu0 %vm706_vm0, %v4164_v59 }
  0xd0   : > { %2196 = vperm.xlu1 %4149, %v4532_v32   ;;  %2200 = vperm.xlu0 %4148, %v4529_v31  }
  0xd2   : > { %v4795_v58 = vpop.permute.xlu1 %1868  ;;  %v4797_v23 = vpop.permute.xlu0 %1863 }
  0xd3   : > { %6963 = vst [vmem:[#allocation48_spill] sm:$0xff] %v4795_v58  ;;  %6964 = vst [vmem:[#allocation49_spill] sm:$0xff] %v4797_v23  ;;  %v4166_v23 = vld [vmem:[%s4752_s13 + $0x40] sm:$0xff]   ;;  %v4167_v58 = vld [vmem:[%s4752_s13 + $0x48] sm:$0xff]  }
  0xd4   : > { %2204 = vperm.xlu1 %4149, %v4540_v34   ;;  %2208 = vperm.xlu0 %4148, %v4537_v33  }
  0xd6   : > { %v4802_v57 = vpop.permute.xlu1 %1878  ;;  %v4804_v60 = vpop.permute.xlu0 %1873  ;;  %4058 = vmatmul.mubr.msk.bf16.gmra.mxu0 %vm706_vm0, %v4165_v55 }
  0xd7   : > { %6965 = vst [vmem:[#allocation50_spill] sm:$0xff] %v4802_v57  ;;  %6966 = vst [vmem:[#allocation51_spill] sm:$0xff] %v4804_v60  ;;  %4061 = vmatprep.mubr.msk.bf16.mxu0 %vm706_vm0, %v4166_v23 }
  0xd8   : > { %2212 = vperm.xlu1 %4149, %v4548_v36   ;;  %2216 = vperm.xlu0 %4148, %v4545_v35  }
  0xda   : > { %v4811_v21 = vpop.permute.xlu1 %1888  ;;  %v4813_v61 = vpop.permute.xlu0 %1883 }
  0xdb   : > { %6967 = vst [vmem:[#allocation52_spill] sm:$0xff] %v4811_v21  ;;  %6968 = vst [vmem:[#allocation53_spill] sm:$0xff] %v4813_v61  ;;  %v4168_v61 = vld [vmem:[%s4752_s13 + $0x50] sm:$0xff]   ;;  %v4169_v21 = vld [vmem:[%s4752_s13 + $0x58] sm:$0xff]  }
  0xdc   : > { %2220 = vperm.xlu1 %4149, %v4556_v38   ;;  %2224 = vperm.xlu0 %4148, %v4553_v37  }
  0xde   : > { %v4818_v60 = vpop.permute.xlu1 %1898  ;;  %v4820_v57 = vpop.permute.xlu0 %1893  ;;  %4062 = vmatmul.mubr.msk.bf16.gmra.mxu0 %vm706_vm0, %v4167_v58 }
  0xdf   : > { %6969 = vst [vmem:[#allocation54_spill] sm:$0xff] %v4818_v60  ;;  %6970 = vst [vmem:[#allocation55_spill] sm:$0xff] %v4820_v57  ;;  %4065 = vmatprep.mubr.msk.bf16.mxu0 %vm706_vm0, %v4168_v61 }
  0xe0   : > { %2228 = vperm.xlu1 %4149, %v4564_v40   ;;  %2232 = vperm.xlu0 %4148, %v4561_v39  }
  0xe2   : > { %v4827_v59 = vpop.permute.xlu1 %1908  ;;  %v4829_v55 = vpop.permute.xlu0 %1903 }
  0xe3   : > { %6971 = vst [vmem:[#allocation56_spill] sm:$0xff] %v4827_v59  ;;  %6972 = vst [vmem:[#allocation57_spill] sm:$0xff] %v4829_v55  ;;  %v4170_v55 = vld [vmem:[%s4752_s13 + $0x60] sm:$0xff]   ;;  %v4171_v59 = vld [vmem:[%s4752_s13 + $0x68] sm:$0xff]  }
  0xe4   : > { %2236 = vperm.xlu1 %4149, %v4572_v42   ;;  %2240 = vperm.xlu0 %4148, %v4569_v41  }
  0xe6   : > { %v4834_v57 = vpop.permute.xlu1 %1918  ;;  %v4836_v60 = vpop.permute.xlu0 %1913  ;;  %4066 = vmatmul.mubr.msk.bf16.gmra.mxu0 %vm706_vm0, %v4169_v21 }
  0xe7   : > { %6973 = vst [vmem:[#allocation58_spill] sm:$0xff] %v4834_v57  ;;  %6974 = vst [vmem:[#allocation59_spill] sm:$0xff] %v4836_v60  ;;  %4069 = vmatprep.mubr.msk.bf16.mxu0 %vm706_vm0, %v4170_v55 }
  0xe8   : > { %2244 = vperm.xlu1 %4149, %v4580_v44   ;;  %2248 = vperm.xlu0 %4148, %v4577_v43  }
  0xea   : > { %v4843_v23 = vpop.permute.xlu1 %1928  ;;  %v4845_v58 = vpop.permute.xlu0 %1923 }
  0xeb   : > { %6975 = vst [vmem:[#allocation60_spill] sm:$0xff] %v4843_v23  ;;  %6976 = vst [vmem:[#allocation61_spill] sm:$0xff] %v4845_v58  ;;  %v4172_v58 = vld [vmem:[%s4752_s13 + $0x70] sm:$0xff]   ;;  %v4173_v23 = vld [vmem:[%s4752_s13 + $0x78] sm:$0xff]  }
  0xec   : > { %2252 = vperm.xlu1 %4149, %v4588_v46   ;;  %2256 = vperm.xlu0 %4148, %v4585_v45  }
  0xee   : > { %v4850_v60 = vpop.permute.xlu1 %1938  ;;  %v4852_v57 = vpop.permute.xlu0 %1933  ;;  %4070 = vmatmul.mubr.msk.bf16.gmra.mxu0 %vm706_vm0, %v4171_v59 }
  0xef   : > { %6977 = vst [vmem:[#allocation62_spill] sm:$0xff] %v4850_v60  ;;  %6978 = vst [vmem:[#allocation63_spill] sm:$0xff] %v4852_v57  ;;  %4073 = vmatprep.mubr.msk.bf16.mxu0 %vm706_vm0, %v4172_v58  ;;  %v6987_v58 = vld [vmem:[#allocation7_spill] sm:$0xff] }
  0xf0   : > { %2260 = vperm.xlu1 %4149, %v4596_v48   ;;  %2264 = vperm.xlu0 %4148, %v4593_v47  }
  0xf2   : > { %v4859_v61 = vpop.permute.xlu1 %1948  ;;  %v4861_v21 = vpop.permute.xlu0 %1943 }
  0xf3   : > { %6979 = vst [vmem:[#allocation64_spill] sm:$0xff] %v4859_v61  ;;  %6980 = vst [vmem:[#allocation65_spill] sm:$0xff] %v4861_v21  ;;  %v4174_v21 = vld [vmem:[%s4752_s13 + $0x80] sm:$0xff]   ;;  %v4175_v61 = vld [vmem:[%s4752_s13 + $0x88] sm:$0xff]  }
  0xf4   : > { %2268 = vperm.xlu1 %4149, %v4604_v50   ;;  %2272 = vperm.xlu0 %4148, %v4601_v49  }
  0xf5   : > { %4077 = vmatprep.mubr.msk.bf16.mxu1 %vm706_vm0, %v4174_v21  ;;  %v6995_v21 = vld [vmem:[#allocation11_spill] sm:$0xff] }
  0xf6   : > { %v4866_v57 = vpop.permute.xlu1 %1958  ;;  %v4868_v60 = vpop.permute.xlu0 %1953  ;;  %4074 = vmatmul.mubr.msk.bf16.gmra.mxu0 %vm706_vm0, %v4173_v23  ;;  %4078 = vmatmul.mubr.msk.bf16.vlgmr.msra.gmra.mxu1 %vm706_vm0, %v4175_v61 }
  0xf7   : > { %6981 = vst [vmem:[#allocation66_spill] sm:$0xff] %v4866_v57  ;;  %6982 = vst [vmem:[#allocation67_spill] sm:$0xff] %v4868_v60 }
  0xf8   : > { %2276 = vperm.xlu1 %4149, %v4612_v52   ;;  %2280 = vperm.xlu0 %4148, %v4609_v51   ;;  %v6994_v51 = vld [vmem:[#allocation12_spill] sm:$0xff] }
  0xfa   : > { %v4875_v55 = vpop.permute.xlu1 %1968  ;;  %v4877_v59 = vpop.permute.xlu0 %1963 }
  0xfb   : > { %6983 = vst [vmem:[#allocation68_spill] sm:$0xff] %v4875_v55  ;;  %6984 = vst [vmem:[#allocation69_spill] sm:$0xff] %v4877_v59  ;;  %v6990_v55 = vld [vmem:[#allocation10_spill] sm:$0xff] }
  0xfc   : > { %2284 = vperm.xlu1 %4149, %v4620_v54   ;;  %2288 = vperm.xlu0 %4148, %v4617_v53  }
  0xfe   : > { %v4882_v60 = vpop.permute.xlu1 %1978  ;;  %v4884_v57 = vpop.permute.xlu0 %1973 }
  0xff   : > { %6985 = vst [vmem:[#allocation70_spill] sm:$0xff] %v4882_v60  ;;  %6986 = vst [vmem:[#allocation71_spill] sm:$0xff] %v4884_v57  ;;  %v6991_v60 = vld [vmem:[#allocation9_spill] sm:$0xff] }
 0x100   : > { %2292 = vperm.xlu1 %4149, %v4628_v56   ;;  %2296 = vperm.xlu0 %4148, %v6987_v58   ;;  %v4176_v56 = vld [vmem:[%s4752_s13 + $0x90] sm:$0xff]   ;;  %v4177_v58 = vld [vmem:[%s4752_s13 + $0x98] sm:$0xff]  }
 0x101   : > { %4081 = vmatprep.mubr.msk.bf16.mxu1 %vm706_vm0, %v4176_v56 }
 0x102   : > { %v4891_v59 = vpop.permute.xlu1 %1988  ;;  %v4893_v23 = vpop.permute.xlu0 %1983  ;;  %4082 = vmatmul.mubr.msk.bf16.gmra.mxu1 %vm706_vm0, %v4177_v58 }
 0x103   : > { %6988 = vst [vmem:[#allocation72_spill] sm:$0xff] %v4891_v59  ;;  %6989 = vst [vmem:[#allocation73_spill] sm:$0xff] %v4893_v23  ;;  %v6998_v59 = vld [vmem:[#allocation13_spill] sm:$0xff] }
 0x104   : > { %2300 = vperm.xlu1 %4149, %v6990_v55   ;;  %2304 = vperm.xlu0 %4148, %v6991_v60  }
 0x106   : > { %v4898_v57 = vpop.permute.xlu1 %1998  ;;  %v4900_v53 = vpop.permute.xlu0 %1993 }
 0x107   : > { %6992 = vst [vmem:[#allocation10_spill] sm:$0xff] %v4898_v57  ;;  %6993 = vst [vmem:[#allocation74_spill] sm:$0xff] %v4900_v53  ;;  %v4178_v53 = vld [vmem:[%s4752_s13 + $0xa0] sm:$0xff]  }
 0x108   : > { %2308 = vperm.xlu1 %4149, %v6994_v51   ;;  %2312 = vperm.xlu0 %4148, %v6995_v21   ;;  %v4179_v21 = vld [vmem:[%s4752_s13 + $0xa8] sm:$0xff]  }
 0x109   : > { %4085 = vmatprep.mubr.msk.bf16.mxu1 %vm706_vm0, %v4178_v53  ;;  %v4181_v53 = vld [vmem:[%s4752_s13 + $0xb8] sm:$0xff]  }
 0x10a   : > { %v4907_v23 = vpop.permute.xlu1 %2008  ;;  %v4909_v61 = vpop.permute.xlu0 %2003  ;;  %4086 = vmatmul.mubr.msk.bf16.gmra.mxu1 %vm706_vm0, %v4179_v21 }
 0x10b   : > { %6996 = vst [vmem:[#allocation12_spill] sm:$0xff] %v4907_v23  ;;  %6997 = vst [vmem:[#allocation75_spill] sm:$0xff] %v4909_v61  ;;  %v4180_v61 = vld [vmem:[%s4752_s13 + $0xb0] sm:$0xff]  }
 0x10c   : > { %2316 = vperm.xlu1 %4149, %v4652_v62   ;;  %2320 = vperm.xlu0 %4148, %v6998_v59   ;;  %v4346_v59 = vmov 2  }
 0x10d   : > { %4089 = vmatprep.mubr.msk.bf16.mxu1 %vm706_vm0, %v4180_v61 }
 0x10f   : > { %v4915_v57 = vpop.permute.xlu1 %2080  ;;  %v4917_v60 = vpop.permute.xlu0 %2076 }
 0x110   : > { %2324 = vperm.xlu1 %4149, %v4660_v0   ;;  %2328 = vperm.xlu0 %4148, %v4657_v63  }
 0x112   : > { %4090 = vmatmul.mubr.msk.bf16.gmra.mxu1 %vm706_vm0, %v4181_v53 }
 0x113   : > { %v4924_v56 = vpop.permute.xlu1 %2084  ;;  %v4926_v58 = vpop.permute.xlu0 %2088 }
 0x114   : > { %4150 = vset.pattern.permute.xlu1 %v4346_v59  ;;  %4151 = vset.pattern.permute.xlu0 %v4346_v59 }
 0x115   : > { %2460 = vperm.xlu1 %4150, %v4412_v2   ;;  %2464 = vperm.xlu0 %4151, %v4420_v4   ;;  %v4182_v4 = vld [vmem:[%s4752_s13 + $0xc0] sm:$0xff]  }
 0x116   : > { %4093 = vmatprep.mubr.msk.bf16.mxu1 %vm706_vm0, %v4182_v4 }
 0x117   : > { %v4931_v23 = vpop.permute.xlu1 %2092  ;;  %v4933_v63 = vpop.permute.xlu0 %2096 }
 0x119   : > { %2468 = vperm.xlu1 %4150, %v4409_v1   ;;  %2476 = vperm.xlu0 %4151, %v4428_v6   ;;  %v4183_v1 = vld [vmem:[%s4752_s13 + $0xc8] sm:$0xff]  }
 0x11a   : > { %4094 = vmatmul.mubr.msk.bf16.gmra.mxu1 %vm706_vm0, %v4183_v1 }
 0x11b   : > { %v4940_v21 = vpop.permute.xlu1 %2100  ;;  %v4942_v2 = vpop.permute.xlu0 %2104 }
 0x11d   : > { %2472 = vperm.xlu1 %4150, %v4417_v3   ;;  %2484 = vperm.xlu0 %4151, %v4436_v8   ;;  %v4184_v8 = vld [vmem:[%s4752_s13 + $0xd0] sm:$0xff]  }
 0x11e   : > { %4097 = vmatprep.mubr.msk.bf16.mxu1 %vm706_vm0, %v4184_v8 }
 0x11f   : > { %v4947_v59 = vpop.permute.xlu1 %2108  ;;  %v4949_v61 = vpop.permute.xlu0 %2112 }
 0x121   : > { %2480 = vperm.xlu1 %4150, %v4425_v5   ;;  %2492 = vperm.xlu0 %4151, %v4444_v10   ;;  %v4185_v5 = vld [vmem:[%s4752_s13 + $0xd8] sm:$0xff]  }
 0x122   : > { %4098 = vmatmul.mubr.msk.bf16.gmra.mxu1 %vm706_vm0, %v4185_v5 }
 0x123   : > { %v4956_v6 = vpop.permute.xlu1 %2116  ;;  %v4958_v3 = vpop.permute.xlu0 %2120 }
 0x125   : > { %2488 = vperm.xlu1 %4150, %v4433_v7   ;;  %2500 = vperm.xlu0 %4151, %v4452_v12   ;;  %v4186_v12 = vld [vmem:[%s4752_s13 + $0xe0] sm:$0xff]  }
 0x126   : > { %4101 = vmatprep.mubr.msk.bf16.mxu1 %vm706_vm0, %v4186_v12  ;;  %v4189_v12 = vld [vmem:[%s4752_s13 + $0xf8] sm:$0xff]  }
 0x127   : > { %v4963_v53 = vpop.permute.xlu1 %2124  ;;  %v4965_v4 = vpop.permute.xlu0 %2128 }
 0x129   : > { %2496 = vperm.xlu1 %4150, %v4441_v9   ;;  %2508 = vperm.xlu0 %4151, %v4460_v14   ;;  %v4187_v9 = vld [vmem:[%s4752_s13 + $0xe8] sm:$0xff]  }
 0x12a   : > { %4102 = vmatmul.mubr.msk.bf16.gmra.mxu1 %vm706_vm0, %v4187_v9  ;;  %v7001_v9 = vld [vmem:[#allocation3_spill] sm:$0xff] }
 0x12b   : > { %v4972_v10 = vpop.permute.xlu1 %2132  ;;  %v4974_v7 = vpop.permute.xlu0 %2136 }
 0x12d   : > { %2504 = vperm.xlu1 %4150, %v4449_v11   ;;  %2516 = vperm.xlu0 %4151, %v4468_v16   ;;  %v4188_v16 = vld [vmem:[%s4752_s13 + $0xf0] sm:$0xff]  }
 0x12e   : > { %4105 = vmatprep.mubr.msk.bf16.mxu1 %vm706_vm0, %v4188_v16  ;;  %v7004_v16 = vld [vmem:[#allocation4_spill] sm:$0xff] }
 0x12f   : > { %v4979_v1 = vpop.permute.xlu1 %2140  ;;  %v4981_v8 = vpop.permute.xlu0 %2144 }
 0x130   : > { %6999 = vst [vmem:[#allocation13_spill] sm:$0xff] %v4981_v8 }
 0x131   : > { %2512 = vperm.xlu1 %4150, %v4457_v13   ;;  %2524 = vperm.xlu0 %4151, %v4476_v18  }
 0x132   : > { %4106 = vmatmul.mubr.msk.bf16.gmra.mxu1 %vm706_vm0, %v4189_v12 }
 0x133   : > { %v4988_v14 = vpop.permute.xlu1 %2148  ;;  %v4990_v11 = vpop.permute.xlu0 %2152 }
 0x135   : > { %2520 = vperm.xlu1 %4150, %v4465_v15   ;;  %2532 = vperm.xlu0 %4151, %v4484_v20  }
 0x137   : > { %v4995_v5 = vpop.permute.xlu1 %2156  ;;  %v4997_v8 = vpop.permute.xlu0 %2160 }
 0x139   : > { %2528 = vperm.xlu1 %4150, %v4473_v17   ;;  %2540 = vperm.xlu0 %4151, %v4492_v22  }
 0x13b   : > { %v5004_v13 = vpop.permute.xlu1 %2164  ;;  %v5006_v18 = vpop.permute.xlu0 %2168 }
 0x13d   : > { %2536 = vperm.xlu1 %4150, %v4481_v19   ;;  %2548 = vperm.xlu0 %4151, %v4500_v24  }
 0x13f   : > { %v5010_v15 = vpop.permute.xlu1 %2172  ;;  %v5012_v20 = vpop.permute.xlu0 %2176 }
 0x140   : > { %7000 = vst [vmem:[#allocation76_spill] sm:$0xff] %v5012_v20 }
 0x141   : > { %2544 = vperm.xlu1 %4150, %v7001_v9   ;;  %2556 = vperm.xlu0 %4151, %v4508_v26  }
 0x143   : > { %v5016_v17 = vpop.permute.xlu1 %2180  ;;  %v5018_v22 = vpop.permute.xlu0 %2184 }
 0x144   : > { %7002 = vst [vmem:[#allocation3_spill] sm:$0xff] %v5016_v17  ;;  %7003 = vst [vmem:[#allocation77_spill] sm:$0xff] %v5018_v22 }
 0x145   : > { %2552 = vperm.xlu1 %4150, %v7004_v16   ;;  %2564 = vperm.xlu0 %4151, %v4516_v28  }
 0x147   : > { %v5022_v12 = vpop.permute.xlu1 %2188  ;;  %v5024_v19 = vpop.permute.xlu0 %2192 }
 0x148   : > { %7005 = vst [vmem:[#allocation4_spill] sm:$0xff] %v5022_v12  ;;  %7006 = vst [vmem:[#allocation78_spill] sm:$0xff] %v5024_v19  ;;  %v7089_v19 = vld [vmem:[#allocation34_spill] sm:$0xff]  ;;  %v7091_v12 = vld [vmem:[#allocation35_spill] sm:$0xff] }
 0x149   : > { %2560 = vperm.xlu1 %4150, %v4505_v25   ;;  %2572 = vperm.xlu0 %4151, %v4524_v30  }
 0x14b   : > { %v5028_v24 = vpop.permute.xlu1 %2196  ;;  %v5030_v9 = vpop.permute.xlu0 %2200 }
 0x14c   : > { %7007 = vst [vmem:[#allocation79_spill] sm:$0xff] %v5028_v24  ;;  %7008 = vst [vmem:[#allocation80_spill] sm:$0xff] %v5030_v9  ;;  %v7084_v9 = vld [vmem:[#allocation31_spill] sm:$0xff]  ;;  %v7085_v24 = vld [vmem:[#allocation32_spill] sm:$0xff] }
 0x14d   : > { %2568 = vperm.xlu1 %4150, %v4513_v27   ;;  %2580 = vperm.xlu0 %4151, %v4532_v32  }
 0x14f   : > { %v5034_v26 = vpop.permute.xlu1 %2204  ;;  %v5036_v16 = vpop.permute.xlu0 %2208 }
 0x150   : > { %7009 = vst [vmem:[#allocation81_spill] sm:$0xff] %v5034_v26  ;;  %7010 = vst [vmem:[#allocation82_spill] sm:$0xff] %v5036_v16  ;;  %v7082_v16 = vld [vmem:[#allocation29_spill] sm:$0xff]  ;;  %v7083_v26 = vld [vmem:[#allocation30_spill] sm:$0xff] }
 0x151   : > { %2576 = vperm.xlu1 %4150, %v4521_v29   ;;  %2588 = vperm.xlu0 %4151, %v4540_v34  }
 0x153   : > { %v5040_v28 = vpop.permute.xlu1 %2212  ;;  %v5042_v25 = vpop.permute.xlu0 %2216 }
 0x154   : > { %7011 = vst [vmem:[#allocation83_spill] sm:$0xff] %v5040_v28  ;;  %7012 = vst [vmem:[#allocation84_spill] sm:$0xff] %v5042_v25  ;;  %v7081_v28 = vld [vmem:[#allocation28_spill] sm:$0xff] }
 0x155   : > { %2584 = vperm.xlu1 %4150, %v4529_v31   ;;  %2596 = vperm.xlu0 %4151, %v4548_v36  }
 0x157   : > { %v5046_v30 = vpop.permute.xlu1 %2220  ;;  %v5048_v27 = vpop.permute.xlu0 %2224 }
 0x158   : > { %7013 = vst [vmem:[#allocation85_spill] sm:$0xff] %v5046_v30  ;;  %7014 = vst [vmem:[#allocation86_spill] sm:$0xff] %v5048_v27  ;;  %v7079_v27 = vld [vmem:[#allocation26_spill] sm:$0xff]  ;;  %v7080_v30 = vld [vmem:[#allocation27_spill] sm:$0xff] }
 0x159   : > { %2592 = vperm.xlu1 %4150, %v4537_v33   ;;  %2604 = vperm.xlu0 %4151, %v4556_v38  }
 0x15b   : > { %v5052_v32 = vpop.permute.xlu1 %2228  ;;  %v5054_v29 = vpop.permute.xlu0 %2232 }
 0x15c   : > { %7015 = vst [vmem:[#allocation87_spill] sm:$0xff] %v5052_v32  ;;  %7016 = vst [vmem:[#allocation88_spill] sm:$0xff] %v5054_v29  ;;  %v7075_v29 = vld [vmem:[#allocation24_spill] sm:$0xff]  ;;  %v7078_v32 = vld [vmem:[#allocation25_spill] sm:$0xff] }
 0x15d   : > { %2600 = vperm.xlu1 %4150, %v4545_v35   ;;  %2612 = vperm.xlu0 %4151, %v4564_v40  }
 0x15f   : > { %v5058_v34 = vpop.permute.xlu1 %2236  ;;  %v5060_v31 = vpop.permute.xlu0 %2240 }
 0x160   : > { %7017 = vst [vmem:[#allocation89_spill] sm:$0xff] %v5058_v34  ;;  %7018 = vst [vmem:[#allocation90_spill] sm:$0xff] %v5060_v31  ;;  %v7074_v34 = vld [vmem:[#allocation23_spill] sm:$0xff] }
 0x161   : > { %2608 = vperm.xlu1 %4150, %v4553_v37   ;;  %2620 = vperm.xlu0 %4151, %v4572_v42  }
 0x163   : > { %v5064_v36 = vpop.permute.xlu1 %2244  ;;  %v5066_v33 = vpop.permute.xlu0 %2248 }
 0x164   : > { %7019 = vst [vmem:[#allocation91_spill] sm:$0xff] %v5064_v36  ;;  %7020 = vst [vmem:[#allocation92_spill] sm:$0xff] %v5066_v33  ;;  %v4205_v36 = vld [vmem:[%s4406_s26 + $0x78] sm:$0xff] }
 0x165   : > { %2616 = vperm.xlu1 %4150, %v4561_v39   ;;  %2628 = vperm.xlu0 %4151, %v4580_v44  }
 0x167   : > { %v5070_v38 = vpop.permute.xlu1 %2252  ;;  %v5072_v35 = vpop.permute.xlu0 %2256 }
 0x168   : > { %7021 = vst [vmem:[#allocation93_spill] sm:$0xff] %v5070_v38  ;;  %7022 = vst [vmem:[#allocation94_spill] sm:$0xff] %v5072_v35 }
 0x169   : > { %2624 = vperm.xlu1 %4150, %v4569_v41   ;;  %2636 = vperm.xlu0 %4151, %v4588_v46  }
 0x16b   : > { %v5076_v40 = vpop.permute.xlu1 %2260  ;;  %v5078_v37 = vpop.permute.xlu0 %2264 }
 0x16c   : > { %7023 = vst [vmem:[#allocation95_spill] sm:$0xff] %v5076_v40  ;;  %7024 = vst [vmem:[#allocation96_spill] sm:$0xff] %v5078_v37  ;;  %v4200_v40 = vld [vmem:[%s4406_s26 + $0x30] sm:$0xff] }
 0x16d   : > { %2632 = vperm.xlu1 %4150, %v4577_v43   ;;  %2644 = vperm.xlu0 %4151, %v4596_v48  }
 0x16f   : > { %v5082_v42 = vpop.permute.xlu1 %2268  ;;  %v5084_v39 = vpop.permute.xlu0 %2272 }
 0x170   : > { %7025 = vst [vmem:[#allocation97_spill] sm:$0xff] %v5082_v42  ;;  %7026 = vst [vmem:[#allocation98_spill] sm:$0xff] %v5084_v39 }
 0x171   : > { %2640 = vperm.xlu1 %4150, %v4585_v45   ;;  %2652 = vperm.xlu0 %4151, %v4604_v50   ;;  %v7033_v50 = vld [vmem:[#allocation5_spill] sm:$0xff] }
 0x173   : > { %v5088_v44 = vpop.permute.xlu1 %2276  ;;  %v5090_v41 = vpop.permute.xlu0 %2280 }
 0x174   : > { %7027 = vst [vmem:[#allocation99_spill] sm:$0xff] %v5088_v44  ;;  %7028 = vst [vmem:[#allocation100_spill] sm:$0xff] %v5090_v41  ;;  %v7034_v44 = vld [vmem:[#allocation8_spill] sm:$0xff] }
 0x175   : > { %2648 = vperm.xlu1 %4150, %v4593_v47   ;;  %2660 = vperm.xlu0 %4151, %v4612_v52   ;;  %v6912_v52 = vmov 0.0  }
 0x176   : > { %324 = vst.msk [vmem:[#allocation2 + $0x10] sm:$0xff] %vm321_vm1, %v6912_v52  ;;  %322 = vst.msk [vmem:[#allocation2] sm:$0xff] %vm321_vm1, %v6912_v52 }
 0x177   : > { %v5094_v46 = vpop.permute.xlu1 %2284  ;;  %v5096_v43 = vpop.permute.xlu0 %2288  ;;  %323 = vst.msk [vmem:[#allocation2 + $0x8] sm:$0xff] %vm321_vm1, %v6912_v52  ;;  %325 = vst.msk [vmem:[#allocation2 + $0x18] sm:$0xff] %vm321_vm1, %v6912_v52 }
 0x178   : > { %7029 = vst [vmem:[#allocation101_spill] sm:$0xff] %v5094_v46  ;;  %7030 = vst [vmem:[#allocation102_spill] sm:$0xff] %v5096_v43 }
 0x179   : > { %2656 = vperm.xlu1 %4150, %v4601_v49   ;;  %2668 = vperm.xlu0 %4151, %v4620_v54   ;;  %326 = vst.msk [vmem:[#allocation2 + $0x20] sm:$0xff] %vm321_vm1, %v6912_v52  ;;  %327 = vst.msk [vmem:[#allocation2 + $0x28] sm:$0xff] %vm321_vm1, %v6912_v52  ;;  %v7037_v49 = vld [vmem:[#allocation6_spill] sm:$0xff] }
 0x17a   : > { %328 = vst.msk [vmem:[#allocation2 + $0x30] sm:$0xff] %vm321_vm1, %v6912_v52  ;;  %329 = vst.msk [vmem:[#allocation2 + $0x38] sm:$0xff] %vm321_vm1, %v6912_v52 }
 0x17b   : > { %v5100_v48 = vpop.permute.xlu1 %2292  ;;  %v5102_v45 = vpop.permute.xlu0 %2296  ;;  %330 = vst.msk [vmem:[#allocation2 + $0x40] sm:$0xff] %vm321_vm1, %v6912_v52  ;;  %331 = vst.msk [vmem:[#allocation2 + $0x48] sm:$0xff] %vm321_vm1, %v6912_v52 }
 0x17c   : > { %7031 = vst [vmem:[#allocation103_spill] sm:$0xff] %v5100_v48  ;;  %7032 = vst [vmem:[#allocation104_spill] sm:$0xff] %v5102_v45 }
 0x17d   : > { %2664 = vperm.xlu1 %4150, %v7033_v50   ;;  %2676 = vperm.xlu0 %4151, %v7034_v44   ;;  %332 = vst.msk [vmem:[#allocation2 + $0x50] sm:$0xff] %vm321_vm1, %v6912_v52  ;;  %333 = vst.msk [vmem:[#allocation2 + $0x58] sm:$0xff] %vm321_vm1, %v6912_v52  ;;  %v386_v46 = vld [vmem:[#allocation2] sm:$0xff] }
 0x17e   : > { %334 = vst.msk [vmem:[#allocation2 + $0x60] sm:$0xff] %vm321_vm1, %v6912_v52  ;;  %335 = vst.msk [vmem:[#allocation2 + $0x68] sm:$0xff] %vm321_vm1, %v6912_v52  ;;  %v4047_v54 = vpop.f32.mrf.mxu0  ;;  %v387_v42 = vld [vmem:[#allocation2 + $0x8] sm:$0xff] }
 0x17f   : > { %v5106_v41 = vpop.permute.xlu1 %2300  ;;  %v5108_v47 = vpop.permute.xlu0 %2304  ;;  %336 = vst.msk [vmem:[#allocation2 + $0x70] sm:$0xff] %vm321_vm1, %v6912_v52  ;;  %337 = vst.msk [vmem:[#allocation2 + $0x78] sm:$0xff] %vm321_vm1, %v6912_v52 }
 0x180   : > { %7035 = vst [vmem:[#allocation5_spill] sm:$0xff] %v5106_v41  ;;  %7036 = vst [vmem:[#allocation8_spill] sm:$0xff] %v5108_v47  ;;  %v837_v47 = vpop.f32.mrf.mxu0  ;;  %v7040_v41 = vld [vmem:[#allocation7_spill] sm:$0xff] }
 0x181   : > { %338 = vst.msk [vmem:[#allocation2 + $0x80] sm:$0xff] %vm321_vm1, %v6912_v52  ;;  %339 = vst.msk [vmem:[#allocation2 + $0x88] sm:$0xff] %vm321_vm1, %v6912_v52  ;;  %2672 = vperm.xlu1 %4150, %v7037_v49   ;;  %2684 = vperm.xlu0 %4151, %v6990_v55   ;;  %v389_v49 = vld [vmem:[#allocation2 + $0x18] sm:$0xff]  ;;  %v1092_v55 = vadd.f32 %v837_v47, %v386_v46  ;;  %v392_v46 = vld [vmem:[#allocation2 + $0x30] sm:$0xff] }
 0x182   : > { %340 = vst.msk [vmem:[#allocation2 + $0x90] sm:$0xff] %vm321_vm1, %v6912_v52  ;;  %341 = vst.msk [vmem:[#allocation2 + $0x98] sm:$0xff] %vm321_vm1, %v6912_v52  ;;  %v4048_v45 = vpop.f32.mrf.mxu0  ;;  %v390_v47 = vld [vmem:[#allocation2 + $0x20] sm:$0xff] }
 0x183   : > { %342 = vst.msk [vmem:[#allocation2 + $0xa0] sm:$0xff] %vm321_vm1, %v6912_v52  ;;  %343 = vst.msk [vmem:[#allocation2 + $0xa8] sm:$0xff] %vm321_vm1, %v6912_v52  ;;  %v5240_v44 = vpop.permute.xlu1 %2308  ;;  %v5242_v50 = vpop.permute.xlu0 %2312 }
 0x184   : > { %344 = vst.msk [vmem:[#allocation2 + $0xb0] sm:$0xff] %vm321_vm1, %v6912_v52  ;;  %345 = vst.msk [vmem:[#allocation2 + $0xb8] sm:$0xff] %vm321_vm1, %v6912_v52  ;;  %v840_v37 = vpop.f32.mrf.mxu0 }
 0x185   : > { %346 = vst.msk [vmem:[#allocation2 + $0xc0] sm:$0xff] %vm321_vm1, %v6912_v52  ;;  %347 = vst.msk [vmem:[#allocation2 + $0xc8] sm:$0xff] %vm321_vm1, %v6912_v52  ;;  %2680 = vperm.xlu1 %4150, %v7040_v41   ;;  %2692 = vperm.xlu0 %4151, %v6994_v51   ;;  %v1093_v41 = vadd.f32 %v840_v37, %v387_v42  ;;  %v7046_v37 = vld [vmem:[#allocation11_spill] sm:$0xff] }
 0x186   : > { %348 = vst.msk [vmem:[#allocation2 + $0xd0] sm:$0xff] %vm321_vm1, %v6912_v52  ;;  %349 = vst.msk [vmem:[#allocation2 + $0xd8] sm:$0xff] %vm321_vm1, %v6912_v52  ;;  %v4051_v51 = vpop.f32.mrf.mxu0 }
 0x187   : > { %350 = vst.msk [vmem:[#allocation2 + $0xe0] sm:$0xff] %vm321_vm1, %v6912_v52  ;;  %351 = vst.msk [vmem:[#allocation2 + $0xe8] sm:$0xff] %vm321_vm1, %v6912_v52  ;;  %v5246_v48 = vpop.permute.xlu1 %2316  ;;  %v5248_v43 = vpop.permute.xlu0 %2320 }
 0x188   : > { %352 = vst.msk [vmem:[#allocation2 + $0xf0] sm:$0xff] %vm321_vm1, %v6912_v52  ;;  %353 = vst.msk [vmem:[#allocation2 + $0xf8] sm:$0xff] %vm321_vm1, %v6912_v52 }
 0x189   : > { %354 = vst.msk [vmem:[#allocation2 + $0x100] sm:$0xff] %vm321_vm1, %v6912_v52  ;;  %355 = vst.msk [vmem:[#allocation2 + $0x108] sm:$0xff] %vm321_vm1, %v6912_v52  ;;  %2700 = vperm.xlu0 %4151, %v4652_v62   ;;  %v1098_v62 = vadd.f32 %v4051_v51, %v392_v46 }
 0x18a   : > { %356 = vst.msk [vmem:[#allocation2 + $0x110] sm:$0xff] %vm321_vm1, %v6912_v52  ;;  %357 = vst.msk [vmem:[#allocation2 + $0x118] sm:$0xff] %vm321_vm1, %v6912_v52 }
 0x18b   : > { %358 = vst.msk [vmem:[#allocation2 + $0x120] sm:$0xff] %vm321_vm1, %v6912_v52  ;;  %359 = vst.msk [vmem:[#allocation2 + $0x128] sm:$0xff] %vm321_vm1, %v6912_v52 }
 0x18c   : > { %360 = vst.msk [vmem:[#allocation2 + $0x130] sm:$0xff] %vm321_vm1, %v6912_v52  ;;  %361 = vst.msk [vmem:[#allocation2 + $0x138] sm:$0xff] %vm321_vm1, %v6912_v52 }
 0x18d   : > { %362 = vst.msk [vmem:[#allocation2 + $0x140] sm:$0xff] %vm321_vm1, %v6912_v52  ;;  %363 = vst.msk [vmem:[#allocation2 + $0x148] sm:$0xff] %vm321_vm1, %v6912_v52  ;;  %2708 = vperm.xlu0 %4151, %v4660_v0   ;;  %v4190_v0 = vld [vmem:[%s4406_s26 + $0x1e8] sm:$0xff] }
 0x18e   : > { %364 = vst.msk [vmem:[#allocation2 + $0x150] sm:$0xff] %vm321_vm1, %v6912_v52  ;;  %365 = vst.msk [vmem:[#allocation2 + $0x158] sm:$0xff] %vm321_vm1, %v6912_v52 }
 0x18f   : > { %366 = vst.msk [vmem:[#allocation2 + $0x160] sm:$0xff] %vm321_vm1, %v6912_v52  ;;  %367 = vst.msk [vmem:[#allocation2 + $0x168] sm:$0xff] %vm321_vm1, %v6912_v52 }
 0x190   : > { %368 = vst.msk [vmem:[#allocation2 + $0x170] sm:$0xff] %vm321_vm1, %v6912_v52  ;;  %369 = vst.msk [vmem:[#allocation2 + $0x178] sm:$0xff] %vm321_vm1, %v6912_v52 }
 0x191   : > { %370 = vst.msk [vmem:[#allocation2 + $0x180] sm:$0xff] %vm321_vm1, %v6912_v52  ;;  %371 = vst.msk [vmem:[#allocation2 + $0x188] sm:$0xff] %vm321_vm1, %v6912_v52 }
 0x192   : > { %372 = vst.msk [vmem:[#allocation2 + $0x190] sm:$0xff] %vm321_vm1, %v6912_v52  ;;  %373 = vst.msk [vmem:[#allocation2 + $0x198] sm:$0xff] %vm321_vm1, %v6912_v52 }
 0x193   : > { %374 = vst.msk [vmem:[#allocation2 + $0x1a0] sm:$0xff] %vm321_vm1, %v6912_v52  ;;  %375 = vst.msk [vmem:[#allocation2 + $0x1a8] sm:$0xff] %vm321_vm1, %v6912_v52 }
 0x194   : > { %376 = vst.msk [vmem:[#allocation2 + $0x1b0] sm:$0xff] %vm321_vm1, %v6912_v52  ;;  %377 = vst.msk [vmem:[#allocation2 + $0x1b8] sm:$0xff] %vm321_vm1, %v6912_v52 }
 0x195   : > { %378 = vst.msk [vmem:[#allocation2 + $0x1c0] sm:$0xff] %vm321_vm1, %v6912_v52  ;;  %379 = vst.msk [vmem:[#allocation2 + $0x1c8] sm:$0xff] %vm321_vm1, %v6912_v52 }
 0x196   : > { %380 = vst.msk [vmem:[#allocation2 + $0x1d0] sm:$0xff] %vm321_vm1, %v6912_v52  ;;  %381 = vst.msk [vmem:[#allocation2 + $0x1d8] sm:$0xff] %vm321_vm1, %v6912_v52 }
 0x197   : > { %382 = vst.msk [vmem:[#allocation2 + $0x1e0] sm:$0xff] %vm321_vm1, %v6912_v52  ;;  %383 = vst.msk [vmem:[#allocation2 + $0x1e8] sm:$0xff] %vm321_vm1, %v6912_v52 }
 0x198   : > { %384 = vst.msk [vmem:[#allocation2 + $0x1f0] sm:$0xff] %vm321_vm1, %v6912_v52  ;;  %385 = vst.msk [vmem:[#allocation2 + $0x1f8] sm:$0xff] %vm321_vm1, %v6912_v52  ;;  %v388_v52 = vld [vmem:[#allocation2 + $0x10] sm:$0xff] }
 0x199   : > { %7038 = vst [vmem:[#allocation6_spill] sm:$0xff] %v5240_v44  ;;  %7039 = vst [vmem:[#allocation105_spill] sm:$0xff] %v5242_v50  ;;  %v1094_v39 = vadd.f32 %v4047_v54, %v388_v52  ;;  %v7043_v44 = vld [vmem:[#allocation9_spill] sm:$0xff]  ;;  %v1095_v50 = vadd.f32 %v4048_v45, %v389_v49  ;;  %v853_v45 = vpop.f32.mrf.mxu0  ;;  %v391_v52 = vld [vmem:[#allocation2 + $0x28] sm:$0xff] }
 0x19a   : > { %7041 = vst [vmem:[#allocation7_spill] sm:$0xff] %v5246_v48  ;;  %7042 = vst [vmem:[#allocation106_spill] sm:$0xff] %v5248_v43  ;;  %2688 = vperm.xlu1 %4150, %v7043_v44   ;;  %v5254_v48 = vpop.permute.xlu1 %2324  ;;  %v5256_v43 = vpop.permute.xlu0 %2328  ;;  %v1096_v42 = vadd.f32 %v853_v45, %v390_v47  ;;  %v393_v47 = vld [vmem:[#allocation2 + $0x38] sm:$0xff] }
 0x19b   : > { %1159 = vst.msk [vmem:[#allocation2 + $0x10] sm:$0xff] %vm321_vm1, %v1094_v39  ;;  %1157 = vst.msk [vmem:[#allocation2] sm:$0xff] %vm321_vm1, %v1092_v55  ;;  %v4052_v39 = vpop.f32.mrf.mxu0 }
 0x19c   : > { %7044 = vst [vmem:[#allocation9_spill] sm:$0xff] %v5254_v48  ;;  %7045 = vst [vmem:[#allocation107_spill] sm:$0xff] %v5256_v43 }
 0x19d   : > { %1160 = vst.msk [vmem:[#allocation2 + $0x18] sm:$0xff] %vm321_vm1, %v1095_v50  ;;  %1158 = vst.msk [vmem:[#allocation2 + $0x8] sm:$0xff] %vm321_vm1, %v1093_v41  ;;  %v4348_v50 = vmov 3   ;;  %v856_v55 = vpop.f32.mrf.mxu0  ;;  %v4191_v41 = vld [vmem:[%s4406_s26] sm:$0xff] }
 0x19e   : > { %2696 = vperm.xlu1 %4150, %v7046_v37   ;;  %1163 = vst.msk [vmem:[#allocation2 + $0x30] sm:$0xff] %vm321_vm1, %v1098_v62  ;;  %1161 = vst.msk [vmem:[#allocation2 + $0x20] sm:$0xff] %vm321_vm1, %v1096_v42  ;;  %v5264_v54 = vpop.permute.xlu1 %2460  ;;  %v5266_v44 = vpop.permute.xlu0 %2464  ;;  %4152 = vset.pattern.permute.xlu0 %v4348_v50  ;;  %v1097_v46 = vadd.f32 %v856_v55, %v391_v52  ;;  %v1099_v42 = vadd.f32 %v4052_v39, %v393_v47  ;;  %v4193_v55 = vld [vmem:[%s4406_s26 + $0x18] sm:$0xff] }
 0x19f   : > { %7047 = vst [vmem:[#allocation11_spill] sm:$0xff] %v5264_v54  ;;  %7048 = vst [vmem:[#allocation108_spill] sm:$0xff] %v5266_v44  ;;  %2844 = vperm.xlu0 %4152, %v4191_v41   ;;  %v4055_v62 = vpop.f32.mrf.mxu0  ;;  %v4194_v54 = vld [vmem:[%s4406_s26 + $0x8] sm:$0xff] }
 0x1a0   : > { %1162 = vst.msk [vmem:[#allocation2 + $0x28] sm:$0xff] %vm321_vm1, %v1097_v46  ;;  %1164 = vst.msk [vmem:[#allocation2 + $0x38] sm:$0xff] %vm321_vm1, %v1099_v42  ;;  %v395_v46 = vld [vmem:[#allocation2 + $0x48] sm:$0xff]  ;;  %v4195_v42 = vld [vmem:[%s4406_s26 + $0x28] sm:$0xff] }
 0x1a1   : > { %v869_v41 = vpop.f32.mrf.mxu0 }
 0x1a2   : > { %2704 = vperm.xlu1 %4150, %v4190_v0   ;;  %v1224_v49 = vld [vmem:[#allocation2] sm:$0xff]  ;;  %v5277_v45 = vpop.permute.xlu1 %2468  ;;  %v5279_v37 = vpop.permute.xlu0 %2476  ;;  %v4192_v0 = vld [vmem:[%s4406_s26 + $0x1f8] sm:$0xff]  ;;  %v1226_v52 = vld [vmem:[#allocation2 + $0x10] sm:$0xff] }
 0x1a3   : > { %v3937_v51 = vpack.c.bf16 %v1224_v49, %v1224_v49  ;;  %7049 = vst [vmem:[#allocation109_spill] sm:$0xff] %v5277_v45  ;;  %7050 = vst [vmem:[#allocation110_spill] sm:$0xff] %v5279_v37  ;;  %2856 = vperm.xlu0 %4152, %v4193_v55   ;;  %v3939_v39 = vpack.c.bf16 %v1226_v52, %v1226_v52  ;;  %v4056_v47 = vpop.f32.mrf.mxu0 }
 0x1a4   : > { %v1227_v44 = vld [vmem:[#allocation2 + $0x18] sm:$0xff]  ;;  %v1225_v49 = vld [vmem:[#allocation2 + $0x8] sm:$0xff] }
 0x1a5   : > { %1545 = vst.msk [vmem:[%s5273_s16] sm:$0xf] %vm1544_vm2, %v3937_v51  ;;  %v3940_v37 = vpack.c.bf16 %v1227_v44, %v1227_v44  ;;  %v3938_v51 = vpack.c.bf16 %v1225_v49, %v1225_v49  ;;  %1547 = vst.msk [vmem:[%s5273_s16 + $0x8] sm:$0xf] %vm1544_vm2, %v3939_v39  ;;  %v872_v55 = vpop.f32.mrf.mxu0  ;;  %v396_v44 = vld [vmem:[#allocation2 + $0x50] sm:$0xff]  ;;  %v394_v49 = vld [vmem:[#allocation2 + $0x40] sm:$0xff] }
 0x1a6   : > { %2712 = vperm.xlu1 %4150, %v4192_v0   ;;  %v5287_v45 = vpop.permute.xlu1 %2472  ;;  %v5289_v0 = vpop.permute.xlu0 %2484  ;;  %v1101_v52 = vadd.f32 %v872_v55, %v395_v46  ;;  %v1100_v43 = vadd.f32 %v869_v41, %v394_v49  ;;  %v1228_v46 = vld [vmem:[#allocation2 + $0x20] sm:$0xff] }
 0x1a7   : > { %7051 = vst [vmem:[#allocation111_spill] sm:$0xff] %v5287_v45  ;;  %7052 = vst [vmem:[#allocation112_spill] sm:$0xff] %v5289_v0  ;;  %2864 = vperm.xlu0 %4152, %v4195_v42   ;;  %v1102_v45 = vadd.f32 %v4055_v62, %v396_v44  ;;  %v397_v0 = vld [vmem:[#allocation2 + $0x58] sm:$0xff]  ;;  %v4059_v48 = vpop.f32.mrf.mxu0  ;;  %v4196_v42 = vld [vmem:[%s4406_s26 + $0x10] sm:$0xff] }
 0x1a8   : > { %1548 = vst.msk [vmem:[%s5273_s16 + $0xc] sm:$0xf] %vm1544_vm2, %v3940_v37  ;;  %1546 = vst.msk [vmem:[%s5273_s16 + $0x4] sm:$0xf] %vm1544_vm2, %v3938_v51  ;;  %v1103_v39 = vadd.f32 %v4056_v47, %v397_v0  ;;  %v4197_v62 = vld [vmem:[%s4406_s26 + $0x38] sm:$0xff]  ;;  %v1231_v47 = vld [vmem:[#allocation2 + $0x38] sm:$0xff] }
 0x1a9   : > { %1166 = vst.msk [vmem:[#allocation2 + $0x48] sm:$0xff] %vm321_vm1, %v1101_v52  ;;  %1167 = vst.msk [vmem:[#allocation2 + $0x50] sm:$0xff] %vm321_vm1, %v1102_v45  ;;  %v1230_v0 = vld [vmem:[#allocation2 + $0x30] sm:$0xff]  ;;  %v6914_v45 = vlaneseq  ;;  %v3944_v55 = vpack.c.bf16 %v1231_v47, %v1231_v47  ;;  %v4199_v47 = vld [vmem:[%s4406_s26 + $0x48] sm:$0xff] }
 0x1aa   : > { %4153 = vset.pattern.permute.xlu1 %v4348_v50  ;;  %v5299_v37 = vpop.permute.xlu1 %2480  ;;  %v5301_v51 = vpop.permute.xlu0 %2492  ;;  %1165 = vst.msk [vmem:[#allocation2 + $0x40] sm:$0xff] %vm321_vm1, %v1100_v43  ;;  %1168 = vst.msk [vmem:[#allocation2 + $0x58] sm:$0xff] %vm321_vm1, %v1103_v39  ;;  %v3941_v43 = vpack.c.bf16 %v1228_v46, %v1228_v46 }
 0x1ab   : > { %2848 = vperm.xlu1 %4153, %v4194_v54   ;;  %7053 = vst [vmem:[#allocation113_spill] sm:$0xff] %v5299_v37  ;;  %7054 = vst [vmem:[#allocation114_spill] sm:$0xff] %v5301_v51  ;;  %v1229_v54 = vld [vmem:[#allocation2 + $0x28] sm:$0xff]  ;;  %v885_v50 = vpop.f32.mrf.mxu0  ;;  %2872 = vperm.xlu0 %4152, %v4197_v62   ;;  %v4198_v62 = vld [vmem:[%s4406_s26 + $0x20] sm:$0xff] }
 0x1ac   : > { %v3942_v41 = vpack.c.bf16 %v1229_v54, %v1229_v54  ;;  %v3943_v54 = vpack.c.bf16 %v1230_v0, %v1230_v0  ;;  %1552 = vst.msk [vmem:[%s5273_s16 + $0x1c] sm:$0xf] %vm1544_vm2, %v3944_v55  ;;  %1549 = vst.msk [vmem:[%s5273_s16 + $0x10] sm:$0xf] %vm1544_vm2, %v3941_v43  ;;  %v400_v55 = vld [vmem:[#allocation2 + $0x70] sm:$0xff]  ;;  %v398_v43 = vld [vmem:[#allocation2 + $0x60] sm:$0xff] }
 0x1ad   : > { %v4060_v44 = vpop.f32.mrf.mxu0  ;;  %v401_v51 = vld [vmem:[#allocation2 + $0x78] sm:$0xff]  ;;  %v1104_v37 = vadd.f32 %v885_v50, %v398_v43 }
 0x1ae   : > { %v5309_v49 = vpop.permute.xlu1 %2488  ;;  %v5311_v52 = vpop.permute.xlu0 %2500  ;;  %1550 = vst.msk [vmem:[%s5273_s16 + $0x14] sm:$0xf] %vm1544_vm2, %v3942_v41  ;;  %1551 = vst.msk [vmem:[%s5273_s16 + $0x18] sm:$0xf] %vm1544_vm2, %v3943_v54 }
 0x1af   : > { %2852 = vperm.xlu1 %4153, %v4196_v42   ;;  %7055 = vst [vmem:[#allocation115_spill] sm:$0xff] %v5309_v49  ;;  %7056 = vst [vmem:[#allocation116_spill] sm:$0xff] %v5311_v52  ;;  %v399_v42 = vld [vmem:[#allocation2 + $0x68] sm:$0xff]  ;;  %v888_v39 = vpop.f32.mrf.mxu0  ;;  %2880 = vperm.xlu0 %4152, %v4199_v47   ;;  %v5324_v52 = vand.u32 127, %v6914_v45 }
 0x1b0   : > { %v1105_v46 = vadd.f32 %v888_v39, %v399_v42  ;;  %v4201_v42 = vld [vmem:[%s4406_s26 + $0x58] sm:$0xff]  ;;  %v1107_v39 = vadd.f32 %v4060_v44, %v401_v51  ;;  %1169 = vst.msk [vmem:[#allocation2 + $0x60] sm:$0xff] %vm321_vm1, %v1104_v37  ;;  %v1234_v44 = vld [vmem:[#allocation2 + $0x50] sm:$0xff] }
 0x1b1   : > { %7057 = vst [vmem:[#allocation117_spill] sm:$0xff] %v5324_v52  ;;  %v4063_v41 = vpop.f32.mrf.mxu0  ;;  %v1233_v54 = vld [vmem:[#allocation2 + $0x48] sm:$0xff]  ;;  %v1235_v45 = vld [vmem:[#allocation2 + $0x58] sm:$0xff]  ;;  %vm1611_vm3 = vcmp.lt.s32.totalorder %v5324_v52, 8  ;;  %v3947_v43 = vpack.c.bf16 %v1234_v44, %v1234_v44  ;;  %v402_v44 = vld [vmem:[#allocation2 + $0x80] sm:$0xff]  ;;  %vm1614_vm4 = vcmp.ge.s32.totalorder %v5324_v52, 8 }
 0x1b2   : > { %v5326_v49 = vpop.permute.xlu1 %2496  ;;  %v5328_v0 = vpop.permute.xlu0 %2508  ;;  %1170 = vst.msk [vmem:[#allocation2 + $0x68] sm:$0xff] %vm321_vm1, %v1105_v46  ;;  %v3948_v50 = vpack.c.bf16 %v1235_v45, %v1235_v45  ;;  %1172 = vst.msk [vmem:[#allocation2 + $0x78] sm:$0xff] %vm321_vm1, %v1107_v39  ;;  %v4203_v45 = vld [vmem:[%s4406_s26 + $0x68] sm:$0xff]  ;;  %vm1615_vm5 = vcmp.lt.s32.totalorder %v5324_v52, 16 }
 0x1b3   : > { %2860 = vperm.xlu1 %4153, %v4198_v62   ;;  %7058 = vst [vmem:[#allocation118_spill] sm:$0xff] %v5326_v49  ;;  %7059 = vst [vmem:[#allocation119_spill] sm:$0xff] %v5328_v0  ;;  %v1106_v62 = vadd.f32 %v4059_v48, %v400_v55  ;;  %v901_v47 = vpop.f32.mrf.mxu0  ;;  %2888 = vperm.xlu0 %4152, %v4201_v42   ;;  %v1232_v49 = vld [vmem:[#allocation2 + $0x40] sm:$0xff]  ;;  %v3946_v48 = vpack.c.bf16 %v1233_v54, %v1233_v54  ;;  %v4202_v42 = vld [vmem:[%s4406_s26 + $0x40] sm:$0xff] }
 0x1b4   : > { %v3945_v51 = vpack.c.bf16 %v1232_v49, %v1232_v49  ;;  %1556 = vst.msk [vmem:[%s5273_s16 + $0x2c] sm:$0xf] %vm1544_vm2, %v3948_v50  ;;  %v403_v54 = vld [vmem:[#allocation2 + $0x88] sm:$0xff]  ;;  %1555 = vst.msk [vmem:[%s5273_s16 + $0x28] sm:$0xf] %vm1544_vm2, %v3947_v43  ;;  %v404_v50 = vld [vmem:[#allocation2 + $0x90] sm:$0xff]  ;;  %v1108_v35 = vadd.f32 %v901_v47, %v402_v44 }
 0x1b5   : > { %1171 = vst.msk [vmem:[#allocation2 + $0x70] sm:$0xff] %vm321_vm1, %v1106_v62  ;;  %v4064_v55 = vpop.f32.mrf.mxu0  ;;  %v7062_v62 = vmov 0.0   ;;  %v1110_v0 = vadd.f32 %v4063_v41, %v404_v50  ;;  %v7067_v43 = vld [vmem:[#allocation16_spill] sm:$0xff]  ;;  %v405_v41 = vld [vmem:[#allocation2 + $0x98] sm:$0xff]  ;;  %v7070_v47 = vld [vmem:[#allocation19_spill] sm:$0xff] }
 0x1b6   : > { %v5338_v46 = vpop.permute.xlu0 %2516  ;;  %1554 = vst.msk [vmem:[%s5273_s16 + $0x24] sm:$0xf] %vm1544_vm2, %v3946_v48  ;;  %v5346_v37 = vsel %vm1611_vm3, 1.0, %v7062_v62  ;;  %1553 = vst.msk [vmem:[%s5273_s16 + $0x20] sm:$0xf] %vm1544_vm2, %v3945_v51  ;;  %v7071_v44 = vld [vmem:[#allocation20_spill] sm:$0xff] }
 0x1b7   : > { %2868 = vperm.xlu1 %4153, %v4200_v40   ;;  %v5336_v40 = vpop.permute.xlu1 %2504  ;;  %7061 = vst [vmem:[#allocation121_spill] sm:$0xff] %v5338_v46  ;;  %2896 = vperm.xlu0 %4152, %v4203_v45   ;;  %v904_v39 = vpop.f32.mrf.mxu0  ;;  %v7066_v45 = vld [vmem:[#allocation15_spill] sm:$0xff]  ;;  %v5368_v33 = vmul.f32 %v5346_v37, %v7067_v43  ;;  %v5383_v50 = vmul.f32 %v5346_v37, %v7070_v47  ;;  %1175 = vst.msk [vmem:[#allocation2 + $0x90] sm:$0xff] %vm321_vm1, %v1110_v0 }
 0x1b8   : > { %7060 = vst [vmem:[#allocation120_spill] sm:$0xff] %v5336_v40  ;;  %v1109_v46 = vadd.f32 %v904_v39, %v403_v54  ;;  %v7065_v40 = vld [vmem:[#allocation14_spill] sm:$0xff]  ;;  %v5364_v51 = vmul.f32 %v5346_v37, %v7066_v45  ;;  %1173 = vst.msk [vmem:[#allocation2 + $0x80] sm:$0xff] %vm321_vm1, %v1108_v35  ;;  %v5405_v0 = vmul.f32 %v5346_v37, %v7075_v29 }
 0x1b9   : > { %v4067_v38 = vpop.f32.mrf.mxu0  ;;  %v7069_v54 = vld [vmem:[#allocation18_spill] sm:$0xff]  ;;  %v1237_v45 = vld [vmem:[#allocation2 + $0x68] sm:$0xff]  ;;  %v5424_v25 = vmul.f32 %v5346_v37, %v7080_v30  ;;  %v5439_v30 = vmul.f32 %v5346_v37, %v7083_v26  ;;  %v5459_v26 = vmul.f32 %v5346_v37, %v7089_v19  ;;  %v7097_v19 = vld [vmem:[#allocation37_spill] sm:$0xff] }
 0x1ba   : > { %v5356_v48 = vpop.permute.xlu0 %2524  ;;  %v5376_v39 = vmul.f32 %v5346_v37, %v7069_v54  ;;  %1174 = vst.msk [vmem:[#allocation2 + $0x88] sm:$0xff] %vm321_vm1, %v1109_v46  ;;  %v3950_v43 = vpack.c.bf16 %v1237_v45, %v1237_v45  ;;  %v1111_v54 = vadd.f32 %v4064_v55, %v405_v41  ;;  %v7073_v46 = vld [vmem:[#allocation22_spill] sm:$0xff]  ;;  %v1236_v41 = vld [vmem:[#allocation2 + $0x60] sm:$0xff]  ;;  %vm5566_vm6 = vmand %vm1614_vm4, %vm1615_vm5 }
 0x1bb   : > { %2876 = vperm.xlu1 %4153, %v4202_v42   ;;  %v5354_v49 = vpop.permute.xlu1 %2512  ;;  %7064 = vst [vmem:[#allocation123_spill] sm:$0xff] %v5356_v48  ;;  %v5360_v42 = vmul.f32 %v5346_v37, %v7065_v40  ;;  %v4204_v40 = vld [vmem:[%s4406_s26 + $0x50] sm:$0xff]  ;;  %2904 = vperm.xlu0 %4152, %v4205_v36   ;;  %v917_v36 = vpop.f32.mrf.mxu0  ;;  %v5397_v47 = vmul.f32 %v5346_v37, %v7073_v46  ;;  %v1239_v45 = vld [vmem:[#allocation2 + $0x78] sm:$0xff]  ;;  %7090 = vst [vmem:[#allocation18_spill] sm:$0xff] %v5459_v26 }
 0x1bc   : > { %7063 = vst [vmem:[#allocation122_spill] sm:$0xff] %v5354_v49  ;;  %v7068_v49 = vld [vmem:[#allocation17_spill] sm:$0xff]  ;;  %v5413_v46 = vmul.f32 %v5346_v37, %v7078_v32  ;;  %1558 = vst.msk [vmem:[%s5273_s16 + $0x34] sm:$0xf] %vm1544_vm2, %v3950_v43  ;;  %v3952_v29 = vpack.c.bf16 %v1239_v45, %v1239_v45  ;;  %v5428_v32 = vmul.f32 %v5346_v37, %v7081_v28  ;;  %v4207_v43 = vld [vmem:[%s4406_s26 + $0x88] sm:$0xff] }
 0x1bd   : > { %v5372_v48 = vmul.f32 %v5346_v37, %v7068_v49  ;;  %v5387_v49 = vmul.f32 %v5346_v37, %v7071_v44  ;;  %v5401_v44 = vmul.f32 %v5346_v37, %v7074_v34  ;;  %v5417_v34 = vmul.f32 %v5346_v37, %v7079_v27  ;;  %1176 = vst.msk [vmem:[#allocation2 + $0x98] sm:$0xff] %vm321_vm1, %v1111_v54  ;;  %v4206_v27 = vld [vmem:[%s4406_s26 + $0x60] sm:$0xff]  ;;  %v407_v54 = vld [vmem:[#allocation2 + $0xa8] sm:$0xff] }
 0x1be   : > { %v5409_v55 = vpop.permute.xlu0 %2532  ;;  %v5443_v28 = vmul.f32 %v5346_v37, %v7084_v9  ;;  %1560 = vst.msk [vmem:[%s5273_s16 + $0x3c] sm:$0xf] %vm1544_vm2, %v3952_v29  ;;  %v5463_v9 = vmul.f32 %v5346_v37, %v7091_v12  ;;  %v406_v29 = vld [vmem:[#allocation2 + $0xa0] sm:$0xff]  ;;  %v5477_v26 = vmul.f32 %v5346_v37, %v7097_v19  ;;  %v4209_v19 = vld [vmem:[%s4406_s26 + $0x98] sm:$0xff] }
 0x1bf   : > { %2884 = vperm.xlu1 %4153, %v4204_v40   ;;  %v7072_v40 = vld [vmem:[#allocation21_spill] sm:$0xff]  ;;  %v5407_v35 = vpop.permute.xlu1 %2520  ;;  %7077 = vst [vmem:[#allocation15_spill] sm:$0xff] %v5409_v55  ;;  %v4068_v55 = vpop.f32.mrf.mxu0  ;;  %2912 = vperm.xlu0 %4152, %v4207_v43  }
 0x1c0   : > { %v5393_v31 = vmul.f32 %v5346_v37, %v7072_v40  ;;  %7076 = vst [vmem:[#allocation14_spill] sm:$0xff] %v5407_v35  ;;  %v1238_v40 = vld [vmem:[#allocation2 + $0x70] sm:$0xff]  ;;  %v3949_v35 = vpack.c.bf16 %v1236_v41, %v1236_v41  ;;  %v5435_v41 = vmul.f32 %v5346_v37, %v7082_v16  ;;  %7092 = vst [vmem:[#allocation19_spill] sm:$0xff] %v5463_v9 }
 0x1c1   : > { %v3951_v45 = vpack.c.bf16 %v1238_v40, %v1238_v40  ;;  %v920_v40 = vpop.f32.mrf.mxu0  ;;  %v7087_v43 = vld [vmem:[#allocation33_spill] sm:$0xff]  ;;  %7098 = vst [vmem:[#allocation23_spill] sm:$0xff] %v5477_v26  ;;  %v1112_v9 = vadd.f32 %v917_v36, %v406_v29  ;;  %v7109_v29 = vld [vmem:[#allocation43_spill] sm:$0xff] }
 0x1c2   : > { %1557 = vst.msk [vmem:[%s5273_s16 + $0x30] sm:$0xf] %vm1544_vm2, %v3949_v35  ;;  %v5455_v16 = vmul.f32 %v5346_v37, %v7087_v43  ;;  %v5467_v22 = vpop.permute.xlu0 %2540  ;;  %v408_v35 = vld [vmem:[#allocation2 + $0xb0] sm:$0xff]  ;;  %v1113_v17 = vadd.f32 %v920_v40, %v407_v54  ;;  %v7095_v43 = vld [vmem:[#allocation36_spill] sm:$0xff] }
 0x1c3   : > { %2892 = vperm.xlu1 %4153, %v4206_v27   ;;  %v5447_v27 = vmul.f32 %v5346_v37, %v7085_v24  ;;  %v5465_v24 = vpop.permute.xlu1 %2528  ;;  %7094 = vst [vmem:[#allocation21_spill] sm:$0xff] %v5467_v22  ;;  %1559 = vst.msk [vmem:[%s5273_s16 + $0x38] sm:$0xf] %vm1544_vm2, %v3951_v45  ;;  %v5473_v20 = vmul.f32 %v5346_v37, %v7095_v43  ;;  %v1114_v12 = vadd.f32 %v4067_v38, %v408_v35  ;;  %v7103_v45 = vld [vmem:[#allocation40_spill] sm:$0xff]  ;;  %v4208_v43 = vld [vmem:[%s4406_s26 + $0x70] sm:$0xff] }
 0x1c4   : > { %7088 = vst [vmem:[#allocation17_spill] sm:$0xff] %v5455_v16  ;;  %7093 = vst [vmem:[#allocation20_spill] sm:$0xff] %v5465_v24  ;;  %v7099_v24 = vld [vmem:[#allocation38_spill] sm:$0xff]  ;;  %v7101_v16 = vld [vmem:[#allocation39_spill] sm:$0xff]  ;;  %v5489_v40 = vmul.f32 %v5346_v37, %v7103_v45  ;;  %2920 = vperm.xlu0 %4152, %v4209_v19   ;;  %v5505_v45 = vmul.f32 %v5346_v37, %v7109_v29 }
 0x1c5   : > { %7086 = vst [vmem:[#allocation16_spill] sm:$0xff] %v5447_v27  ;;  %7096 = vst [vmem:[#allocation22_spill] sm:$0xff] %v5473_v20  ;;  %v4071_v27 = vpop.f32.mrf.mxu0  ;;  %v5481_v22 = vmul.f32 %v5346_v37, %v7099_v24  ;;  %v5485_v54 = vmul.f32 %v5346_v37, %v7101_v16  ;;  %v409_v38 = vld [vmem:[#allocation2 + $0xb8] sm:$0xff]  ;;  %v7105_v36 = vld [vmem:[#allocation41_spill] sm:$0xff] }
 0x1c6   : > { %7104 = vst [vmem:[#allocation26_spill] sm:$0xff] %v5489_v40  ;;  %1178 = vst.msk [vmem:[#allocation2 + $0xa8] sm:$0xff] %vm321_vm1, %v1113_v17  ;;  %v5497_v24 = vmul.f32 %v5346_v37, %v7105_v36  ;;  %v7107_v35 = vld [vmem:[#allocation42_spill] sm:$0xff]  ;;  %v1115_v19 = vadd.f32 %v4068_v55, %v409_v38  ;;  %v7111_v17 = vld [vmem:[#allocation44_spill] sm:$0xff] }
 0x1c7   : > { %7100 = vst [vmem:[#allocation24_spill] sm:$0xff] %v5481_v22  ;;  %7102 = vst [vmem:[#allocation25_spill] sm:$0xff] %v5485_v54  ;;  %2900 = vperm.xlu1 %4153, %v4208_v43   ;;  %v5501_v16 = vmul.f32 %v5346_v37, %v7107_v35  ;;  %v1241_v43 = vld [vmem:[#allocation2 + $0x88] sm:$0xff]  ;;  %v933_v40 = vpop.f32.mrf.mxu0  ;;  %v5511_v22 = vmul.f32 %v5346_v37, %v7111_v17  ;;  %v7113_v36 = vld [vmem:[#allocation45_spill] sm:$0xff] }
 0x1c8   : > { %7106 = vst [vmem:[#allocation27_spill] sm:$0xff] %v5497_v24  ;;  %7110 = vst [vmem:[#allocation29_spill] sm:$0xff] %v5505_v45  ;;  %v5515_v24 = vmul.f32 %v5346_v37, %v7113_v36  ;;  %v7115_v35 = vld [vmem:[#allocation46_spill] sm:$0xff]  ;;  %v3954_v55 = vpack.c.bf16 %v1241_v43, %v1241_v43  ;;  %v1240_v38 = vld [vmem:[#allocation2 + $0x80] sm:$0xff] }
 0x1c9   : > { %7108 = vst [vmem:[#allocation28_spill] sm:$0xff] %v5501_v16  ;;  %1179 = vst.msk [vmem:[#allocation2 + $0xb0] sm:$0xff] %vm321_vm1, %v1114_v12  ;;  %v5519_v29 = vmul.f32 %v5346_v37, %v7115_v35  ;;  %v5521_v16 = vpop.permute.xlu1 %2536  ;;  %v1243_v12 = vld [vmem:[#allocation2 + $0x98] sm:$0xff]  ;;  %v1242_v17 = vld [vmem:[#allocation2 + $0x90] sm:$0xff] }
 0x1ca   : > { %1177 = vst.msk [vmem:[#allocation2 + $0xa0] sm:$0xff] %vm321_vm1, %v1112_v9  ;;  %7112 = vst [vmem:[#allocation30_spill] sm:$0xff] %v5511_v22  ;;  %v5523_v9 = vpop.permute.xlu0 %2548  ;;  %v7119_v22 = vld [vmem:[#allocation47_spill] sm:$0xff]  ;;  %v7121_v36 = vld [vmem:[#allocation48_spill] sm:$0xff]  ;;  %v3956_v35 = vpack.c.bf16 %v1243_v12, %v1243_v12  ;;  %v3955_v12 = vpack.c.bf16 %v1242_v17, %v1242_v17 }
 0x1cb   : > { %7114 = vst [vmem:[#allocation31_spill] sm:$0xff] %v5515_v24  ;;  %7116 = vst [vmem:[#allocation32_spill] sm:$0xff] %v5519_v29  ;;  %v5527_v45 = vmul.f32 %v5346_v37, %v7119_v22  ;;  %v5531_v24 = vmul.f32 %v5346_v37, %v7121_v36  ;;  %v4072_v29 = vpop.f32.mrf.mxu0  ;;  %v7125_v54 = vld [vmem:[#allocation50_spill] sm:$0xff]  ;;  %v4210_v22 = vld [vmem:[%s4406_s26 + $0x80] sm:$0xff] }
 0x1cc   : > { %7117 = vst [vmem:[#allocation33_spill] sm:$0xff] %v5521_v16  ;;  %7118 = vst [vmem:[#allocation34_spill] sm:$0xff] %v5523_v9  ;;  %v3953_v16 = vpack.c.bf16 %v1240_v38, %v1240_v38  ;;  %v7123_v9 = vld [vmem:[#allocation49_spill] sm:$0xff]  ;;  %v5540_v20 = vmul.f32 %v5346_v37, %v7125_v54  ;;  %2908 = vperm.xlu1 %4153, %v4210_v22   ;;  %v7127_v38 = vld [vmem:[#allocation51_spill] sm:$0xff] }
 0x1cd   : > { %7120 = vst [vmem:[#allocation35_spill] sm:$0xff] %v5527_v45  ;;  %7122 = vst [vmem:[#allocation36_spill] sm:$0xff] %v5531_v24  ;;  %v5536_v43 = vmul.f32 %v5346_v37, %v7123_v9  ;;  %v4211_v45 = vld [vmem:[%s4406_s26 + $0xa8] sm:$0xff]  ;;  %v5548_v36 = vmul.f32 %v5346_v37, %v7127_v38  ;;  %v7129_v24 = vld [vmem:[#allocation52_spill] sm:$0xff] }
 0x1ce   : > { %1180 = vst.msk [vmem:[#allocation2 + $0xb8] sm:$0xff] %vm321_vm1, %v1115_v19  ;;  %7126 = vst [vmem:[#allocation38_spill] sm:$0xff] %v5540_v20  ;;  %2928 = vperm.xlu0 %4152, %v4211_v45   ;;  %v411_v19 = vld [vmem:[#allocation2 + $0xc8] sm:$0xff]  ;;  %v5552_v9 = vmul.f32 %v5346_v37, %v7129_v24  ;;  %v7133_v22 = vld [vmem:[#allocation54_spill] sm:$0xff]  ;;  %v936_v24 = vpop.f32.mrf.mxu0  ;;  %v5588_v20 = vpop.permute.xlu0 %2556 }
 0x1cf   : > { %7124 = vst [vmem:[#allocation37_spill] sm:$0xff] %v5536_v43  ;;  %1562 = vst.msk [vmem:[%s5273_s16 + $0x44] sm:$0xf] %vm1544_vm2, %v3954_v55  ;;  %v7131_v43 = vld [vmem:[#allocation53_spill] sm:$0xff]  ;;  %v5560_v45 = vmul.f32 %v5346_v37, %v7133_v22  ;;  %v7137_v17 = vld [vmem:[#allocation55_spill] sm:$0xff] }
 0x1d0   : > { %7128 = vst [vmem:[#allocation39_spill] sm:$0xff] %v5548_v36  ;;  %7130 = vst [vmem:[#allocation40_spill] sm:$0xff] %v5552_v9  ;;  %v5556_v54 = vmul.f32 %v5346_v37, %v7131_v43  ;;  %v5576_v43 = vmul.f32 %v5346_v37, %v7137_v17  ;;  %v7139_v38 = vld [vmem:[#allocation56_spill] sm:$0xff]  ;;  %v1117_v36 = vadd.f32 %v936_v24, %v411_v19  ;;  %v7145_v17 = vld [vmem:[#allocation58_spill] sm:$0xff]  ;;  %v5600_v52 = vpop.f32.mrf.mxu0 }
 0x1d1   : > { %7134 = vst [vmem:[#allocation42_spill] sm:$0xff] %v5560_v45  ;;  %1564 = vst.msk [vmem:[%s5273_s16 + $0x4c] sm:$0xf] %vm1544_vm2, %v3956_v35  ;;  %v5580_v22 = vmul.f32 %v5346_v37, %v7139_v38  ;;  %v7141_v45 = vld [vmem:[#allocation57_spill] sm:$0xff]  ;;  %v410_v35 = vld [vmem:[#allocation2 + $0xc0] sm:$0xff] }
 0x1d2   : > { %7132 = vst [vmem:[#allocation41_spill] sm:$0xff] %v5556_v54  ;;  %1561 = vst.msk [vmem:[%s5273_s16 + $0x40] sm:$0xf] %vm1544_vm2, %v3953_v16  ;;  %v5584_v9 = vmul.f32 %v5346_v37, %v7141_v45  ;;  %v5586_v54 = vpop.permute.xlu1 %2544  ;;  %v412_v16 = vld [vmem:[#allocation2 + $0xd0] sm:$0xff]  ;;  %v7146_v38 = vld [vmem:[#allocation59_spill] sm:$0xff] }
 0x1d3   : > { %7138 = vst [vmem:[#allocation43_spill] sm:$0xff] %v5576_v43  ;;  %7140 = vst [vmem:[#allocation44_spill] sm:$0xff] %v5580_v22  ;;  %v5594_v43 = vmul.f32 %v5346_v37, %v7145_v17  ;;  %v5598_v22 = vmul.f32 %v5346_v37, %v7146_v38  ;;  %v1118_v45 = vadd.f32 %v4071_v27, %v412_v16  ;;  %v7149_v26 = vld [vmem:[#allocation61_spill] sm:$0xff]  ;;  %v5617_v17 = vsel %vm5566_vm6, 1.0, %v7062_v62  ;;  %v4212_v27 = vld [vmem:[%s4406_s26 + $0x90] sm:$0xff] }
 0x1d4   : > { %7142 = vst [vmem:[#allocation45_spill] sm:$0xff] %v5584_v9  ;;  %7143 = vst [vmem:[#allocation46_spill] sm:$0xff] %v5586_v54  ;;  %v1116_v9 = vadd.f32 %v933_v40, %v410_v35  ;;  %v7147_v54 = vld [vmem:[#allocation60_spill] sm:$0xff]  ;;  %v5608_v19 = vmul.f32 %v5346_v37, %v7149_v26  ;;  %2916 = vperm.xlu1 %4153, %v4212_v27   ;;  %v413_v16 = vld [vmem:[#allocation2 + $0xd8] sm:$0xff] }
 0x1d5   : > { %7144 = vst [vmem:[#allocation47_spill] sm:$0xff] %v5588_v20  ;;  %1563 = vst.msk [vmem:[%s5273_s16 + $0x48] sm:$0xf] %vm1544_vm2, %v3955_v12  ;;  %v5604_v20 = vmul.f32 %v5346_v37, %v7147_v54  ;;  %v7151_v12 = vld [vmem:[#allocation62_spill] sm:$0xff]  ;;  %v4213_v40 = vld [vmem:[%s4406_s26 + $0xb8] sm:$0xff] }
 0x1d6   : > { %7150 = vst [vmem:[#allocation49_spill] sm:$0xff] %v5608_v19  ;;  %v5612_v24 = vmul.f32 %v5346_v37, %v7151_v12  ;;  %2936 = vperm.xlu0 %4152, %v4213_v40   ;;  %1182 = vst.msk [vmem:[#allocation2 + $0xc8] sm:$0xff] %vm321_vm1, %v1117_v36  ;;  %v7153_v54 = vld [vmem:[#allocation63_spill] sm:$0xff]  ;;  %v7155_v35 = vld [vmem:[#allocation64_spill] sm:$0xff]  ;;  %v1119_v40 = vadd.f32 %v4072_v29, %v413_v16 }
 0x1d7   : > { %7148 = vst [vmem:[#allocation48_spill] sm:$0xff] %v5604_v20  ;;  %v5624_v26 = vmul.f32 %v5346_v37, %v7153_v54  ;;  %v5628_v38 = vmul.f32 %v5346_v37, %v7155_v35  ;;  %v7157_v12 = vld [vmem:[#allocation65_spill] sm:$0xff]  ;;  %1183 = vst.msk [vmem:[#allocation2 + $0xd0] sm:$0xff] %vm321_vm1, %v1118_v45  ;;  %v1245_v27 = vld [vmem:[#allocation2 + $0xa8] sm:$0xff] }
 0x1d8   : > { %7152 = vst [vmem:[#allocation50_spill] sm:$0xff] %v5612_v24  ;;  %v5632_v55 = vmul.f32 %v5346_v37, %v7157_v12  ;;  %1181 = vst.msk [vmem:[#allocation2 + $0xc0] sm:$0xff] %vm321_vm1, %v1116_v9  ;;  %v949_v24 = vpop.f32.mrf.mxu0  ;;  %v7159_v36 = vld [vmem:[#allocation66_spill] sm:$0xff]  ;;  %v7161_v54 = vld [vmem:[#allocation67_spill] sm:$0xff]  ;;  %v5650_v9 = vpop.permute.xlu0 %2564  ;;  %v3958_v29 = vpack.c.bf16 %v1245_v27, %v1245_v27 }
 0x1d9   : > { %7154 = vst [vmem:[#allocation51_spill] sm:$0xff] %v5624_v26  ;;  %7156 = vst [vmem:[#allocation52_spill] sm:$0xff] %v5628_v38  ;;  %v5638_v20 = vmul.f32 %v5346_v37, %v7159_v36  ;;  %v5642_v26 = vmul.f32 %v5346_v37, %v7161_v54  ;;  %v7163_v35 = vld [vmem:[#allocation68_spill] sm:$0xff]  ;;  %v5648_v38 = vpop.permute.xlu1 %2552  ;;  %v1247_v45 = vld [vmem:[#allocation2 + $0xb8] sm:$0xff]  ;;  %v2331_v54 = vmul.f32 %v5617_v17, %v4917_v60 }
 0x1da   : > { %7158 = vst [vmem:[#allocation53_spill] sm:$0xff] %v5632_v55  ;;  %v5646_v12 = vmul.f32 %v5346_v37, %v7163_v35  ;;  %7165 = vst [vmem:[#allocation57_spill] sm:$0xff] %v5648_v38  ;;  %v1244_v16 = vld [vmem:[#allocation2 + $0xa0] sm:$0xff]  ;;  %v1246_v36 = vld [vmem:[#allocation2 + $0xb0] sm:$0xff]  ;;  %v3960_v35 = vpack.c.bf16 %v1247_v45, %v1247_v45  ;;  %v4076_v38 = vpop.f32.mrf.mxu0 }
 0x1db   : > { %7160 = vst [vmem:[#allocation54_spill] sm:$0xff] %v5638_v20  ;;  %7162 = vst [vmem:[#allocation55_spill] sm:$0xff] %v5642_v26  ;;  %v2332_v20 = vmul.f32 %v5617_v17, %v4915_v57  ;;  %v7167_v26 = vld [vmem:[#allocation69_spill] sm:$0xff]  ;;  %v4215_v57 = vld [vmem:[%s4406_s26 + $0xc8] sm:$0xff] }
 0x1dc   : > { %7164 = vst [vmem:[#allocation56_spill] sm:$0xff] %v5646_v12  ;;  %7166 = vst [vmem:[#allocation58_spill] sm:$0xff] %v5650_v9  ;;  %v3957_v12 = vpack.c.bf16 %v1244_v16, %v1244_v16  ;;  %v5659_v27 = vmul.f32 %v5346_v37, %v7167_v26  ;;  %v7169_v9 = vld [vmem:[#allocation70_spill] sm:$0xff]  ;;  %v4214_v62 = vld [vmem:[%s4406_s26 + $0xa0] sm:$0xff]  ;;  %2944 = vperm.xlu0 %4152, %v4215_v57  }
 0x1dd   : > { %1184 = vst.msk [vmem:[#allocation2 + $0xd8] sm:$0xff] %vm321_vm1, %v1119_v40  ;;  %v5663_v55 = vmul.f32 %v5346_v37, %v7169_v9  ;;  %2924 = vperm.xlu1 %4153, %v4214_v62   ;;  %v415_v60 = vld [vmem:[#allocation2 + $0xe8] sm:$0xff]  ;;  %v3959_v40 = vpack.c.bf16 %v1246_v36, %v1246_v36  ;;  %v7170_v45 = vld [vmem:[#allocation71_spill] sm:$0xff]  ;;  %v7175_v62 = vld [vmem:[#allocation10_spill] sm:$0xff] }
 0x1de   : > { %7168 = vst [vmem:[#allocation59_spill] sm:$0xff] %v5659_v27  ;;  %1566 = vst.msk [vmem:[%s5273_s16 + $0x54] sm:$0xf] %vm1544_vm2, %v3958_v29  ;;  %v5671_v16 = vmul.f32 %v5346_v37, %v7170_v45  ;;  %v7171_v19 = vld [vmem:[#allocation72_spill] sm:$0xff]  ;;  %v7173_v27 = vld [vmem:[#allocation73_spill] sm:$0xff]  ;;  %v5683_v57 = vmul.f32 %v5346_v37, %v7175_v62  ;;  %v952_v29 = vpop.f32.mrf.mxu0  ;;  %v5701_v62 = vpop.permute.xlu1 %2560 }
 0x1df   : > { %v5675_v26 = vmul.f32 %v5346_v37, %v7171_v19  ;;  %v5679_v9 = vmul.f32 %v5346_v37, %v7173_v27  ;;  %1568 = vst.msk [vmem:[%s5273_s16 + $0x5c] sm:$0xf] %vm1544_vm2, %v3960_v35  ;;  %1565 = vst.msk [vmem:[%s5273_s16 + $0x50] sm:$0xf] %vm1544_vm2, %v3957_v12  ;;  %v7177_v36 = vld [vmem:[#allocation74_spill] sm:$0xff]  ;;  %v7178_v19 = vld [vmem:[#allocation12_spill] sm:$0xff]  ;;  %v5703_v35 = vpop.permute.xlu0 %2572  ;;  %v1121_v12 = vadd.f32 %v952_v29, %v415_v60 }
 0x1e0   : > { %7176 = vst [vmem:[#allocation62_spill] sm:$0xff] %v5683_v57  ;;  %v5691_v45 = vmul.f32 %v5346_v37, %v7177_v36  ;;  %v7180_v27 = vld [vmem:[#allocation75_spill] sm:$0xff]  ;;  %7181 = vst [vmem:[#allocation64_spill] sm:$0xff] %v5701_v62  ;;  %v5708_v57 = vadd.f32 %v2332_v20, %v5372_v48  ;;  %v5711_v36 = vadd.f32 %v2331_v54, %v5364_v51  ;;  %v5717_v62 = vpop.f32.mrf.mxu1  ;;  %v4217_v20 = vld [vmem:[%s4406_s26 + $0xd8] sm:$0xff] }
 0x1e1   : > { %7172 = vst [vmem:[#allocation60_spill] sm:$0xff] %v5675_v26  ;;  %7174 = vst [vmem:[#allocation61_spill] sm:$0xff] %v5679_v9  ;;  %v5695_v26 = vmul.f32 %v5346_v37, %v7178_v19  ;;  %v5699_v9 = vmul.f32 %v5346_v37, %v7180_v27  ;;  %v2333_v19 = vmul.f32 %v5617_v17, %v4924_v56  ;;  %v416_v27 = vld [vmem:[#allocation2 + $0xf0] sm:$0xff]  ;;  %2952 = vperm.xlu0 %4152, %v4217_v20   ;;  %v417_v54 = vld [vmem:[#allocation2 + $0xf8] sm:$0xff] }
 0x1e2   : > { %7182 = vst [vmem:[#allocation65_spill] sm:$0xff] %v5703_v35  ;;  %1567 = vst.msk [vmem:[%s5273_s16 + $0x58] sm:$0xf] %vm1544_vm2, %v3959_v40  ;;  %v2334_v37 = vmul.f32 %v5617_v17, %v4926_v58  ;;  %v2335_v60 = vmul.f32 %v5617_v17, %v4931_v23  ;;  %v4216_v40 = vld [vmem:[%s4406_s26 + $0xb0] sm:$0xff]  ;;  %v1122_v48 = vadd.f32 %v5600_v52, %v416_v27  ;;  %v1249_v23 = vld [vmem:[#allocation2 + $0xc8] sm:$0xff] }
 0x1e3   : > { %7179 = vst [vmem:[#allocation63_spill] sm:$0xff] %v5695_v26  ;;  %v414_v26 = vld [vmem:[#allocation2 + $0xe0] sm:$0xff]  ;;  %2932 = vperm.xlu1 %4153, %v4216_v40   ;;  %1186 = vst.msk [vmem:[#allocation2 + $0xe8] sm:$0xff] %vm321_vm1, %v1121_v12  ;;  %v2336_v56 = vmul.f32 %v5617_v17, %v4933_v63  ;;  %v2337_v58 = vmul.f32 %v5617_v17, %v4940_v21  ;;  %v2338_v29 = vmul.f32 %v5617_v17, %v4942_v2  ;;  %v965_v40 = vpop.f32.mrf.mxu1  ;;  %v5739_v21 = vpop.permute.xlu1 %2568 }
 0x1e4   : > { %v1120_v51 = vadd.f32 %v949_v24, %v414_v26  ;;  %v1123_v35 = vadd.f32 %v4076_v38, %v417_v54  ;;  %v2339_v20 = vmul.f32 %v5617_v17, %v4947_v59  ;;  %v2340_v52 = vmul.f32 %v5617_v17, %v4949_v61  ;;  %7183 = vst [vmem:[#allocation66_spill] sm:$0xff] %v5739_v21  ;;  %v5741_v2 = vpop.permute.xlu0 %2580  ;;  %v1251_v59 = vld [vmem:[#allocation2 + $0xd8] sm:$0xff]  ;;  %v1248_v38 = vld [vmem:[#allocation2 + $0xc0] sm:$0xff]  ;;  %v1250_v26 = vld [vmem:[#allocation2 + $0xd0] sm:$0xff] }
 0x1e5   : > { %v2341_v24 = vmul.f32 %v5617_v17, %v4956_v6  ;;  %v2342_v63 = vmul.f32 %v5617_v17, %v4958_v3  ;;  %7184 = vst [vmem:[#allocation67_spill] sm:$0xff] %v5741_v2  ;;  %1187 = vst.msk [vmem:[#allocation2 + $0xf0] sm:$0xff] %vm321_vm1, %v1122_v48  ;;  %v2343_v61 = vmul.f32 %v5617_v17, %v4963_v53  ;;  %v4080_v27 = vpop.f32.mrf.mxu1  ;;  %v4219_v54 = vld [vmem:[%s4406_s26 + $0xe8] sm:$0xff]  ;;  %v419_v53 = vld [vmem:[#allocation2 + $0x108] sm:$0xff] }
 0x1e6   : > { %1185 = vst.msk [vmem:[#allocation2 + $0xe0] sm:$0xff] %vm321_vm1, %v1120_v51  ;;  %v2344_v6 = vmul.f32 %v5617_v17, %v4965_v4  ;;  %v3962_v12 = vpack.c.bf16 %v1249_v23, %v1249_v23  ;;  %1188 = vst.msk [vmem:[#allocation2 + $0xf8] sm:$0xff] %vm321_vm1, %v1123_v35  ;;  %v3964_v3 = vpack.c.bf16 %v1251_v59, %v1251_v59  ;;  %v4218_v51 = vld [vmem:[%s4406_s26 + $0xc0] sm:$0xff]  ;;  %2960 = vperm.xlu0 %4152, %v4219_v54  }
 0x1e7   : > { %v5751_v48 = vadd.f32 %v2333_v19, %v5360_v42  ;;  %2940 = vperm.xlu1 %4153, %v4218_v51   ;;  %v3961_v2 = vpack.c.bf16 %v1248_v38, %v1248_v38  ;;  %v3963_v21 = vpack.c.bf16 %v1250_v26, %v1250_v26  ;;  %v5756_v4 = vadd.f32 %v2334_v37, %v5368_v33  ;;  %v968_v19 = vpop.f32.mrf.mxu1 }
 0x1e8   : > { %v5759_v35 = vadd.f32 %v2335_v60, %v5383_v50  ;;  %v5762_v23 = vadd.f32 %v2336_v56, %v5376_v39  ;;  %v5765_v42 = vadd.f32 %v2337_v58, %v5393_v31  ;;  %1570 = vst.msk [vmem:[%s5273_s16 + $0x64] sm:$0xf] %vm1544_vm2, %v3962_v12  ;;  %1572 = vst.msk [vmem:[%s5273_s16 + $0x6c] sm:$0xf] %vm1544_vm2, %v3964_v3  ;;  %v5780_v39 = vpop.permute.xlu1 %2576  ;;  %v5782_v31 = vpop.permute.xlu0 %2588  ;;  %v420_v56 = vld [vmem:[#allocation2 + $0x110] sm:$0xff]  ;;  %v418_v58 = vld [vmem:[#allocation2 + $0x100] sm:$0xff] }
 0x1e9   : > { %v5772_v59 = vadd.f32 %v2338_v29, %v5387_v49  ;;  %v5775_v33 = vadd.f32 %v2339_v20, %v5401_v44  ;;  %v5778_v50 = vadd.f32 %v2340_v52, %v5397_v47  ;;  %7185 = vst [vmem:[#allocation68_spill] sm:$0xff] %v5780_v39  ;;  %7186 = vst [vmem:[#allocation69_spill] sm:$0xff] %v5782_v31  ;;  %v5800_v29 = vpop.f32.mrf.mxu1  ;;  %v4220_v52 = vld [vmem:[%s4406_s26 + $0xd0] sm:$0xff] }
 0x1ea   : > { %1569 = vst.msk [vmem:[%s5273_s16 + $0x60] sm:$0xf] %vm1544_vm2, %v3961_v2  ;;  %v1125_v37 = vadd.f32 %v968_v19, %v419_v53  ;;  %1571 = vst.msk [vmem:[%s5273_s16 + $0x68] sm:$0xf] %vm1544_vm2, %v3963_v21  ;;  %v5789_v49 = vadd.f32 %v2341_v24, %v5413_v46  ;;  %v5792_v60 = vadd.f32 %v2342_v63, %v5405_v0  ;;  %v4221_v46 = vld [vmem:[%s4406_s26 + $0xf8] sm:$0xff]  ;;  %v421_v63 = vld [vmem:[#allocation2 + $0x118] sm:$0xff] }
 0x1eb   : > { %v5795_v44 = vadd.f32 %v2343_v61, %v5424_v25  ;;  %v5798_v47 = vadd.f32 %v2344_v6, %v5417_v34  ;;  %v2345_v20 = vmul.f32 %v5617_v17, %v4972_v10  ;;  %2948 = vperm.xlu1 %4153, %v4220_v52   ;;  %2968 = vperm.xlu0 %4152, %v4221_v46   ;;  %v7187_v21 = vld [vmem:[#allocation13_spill] sm:$0xff]  ;;  %v981_v38 = vpop.f32.mrf.mxu1  ;;  %v4223_v19 = vld [vmem:[%s4406_s26 + $0x108] sm:$0xff] }
 0x1ec   : > { %v1126_v0 = vadd.f32 %v5717_v62, %v420_v56  ;;  %v1124_v24 = vadd.f32 %v965_v40, %v418_v58  ;;  %1190 = vst.msk [vmem:[#allocation2 + $0x108] sm:$0xff] %vm321_vm1, %v1125_v37  ;;  %v2346_v25 = vmul.f32 %v5617_v17, %v4974_v7  ;;  %v2347_v34 = vmul.f32 %v5617_v17, %v4979_v1  ;;  %v5822_v61 = vpop.permute.xlu1 %2584  ;;  %v5824_v1 = vpop.permute.xlu0 %2596  ;;  %v1254_v51 = vld [vmem:[#allocation2 + $0xf0] sm:$0xff] }
 0x1ed   : > { %v2348_v2 = vmul.f32 %v5617_v17, %v7187_v21  ;;  %v1127_v10 = vadd.f32 %v4080_v27, %v421_v63  ;;  %v2349_v26 = vmul.f32 %v5617_v17, %v4988_v14  ;;  %v2350_v62 = vmul.f32 %v5617_v17, %v4990_v11  ;;  %7188 = vst [vmem:[#allocation70_spill] sm:$0xff] %v5822_v61  ;;  %v1253_v14 = vld [vmem:[#allocation2 + $0xe8] sm:$0xff]  ;;  %v1255_v6 = vld [vmem:[#allocation2 + $0xf8] sm:$0xff]  ;;  %v1252_v3 = vld [vmem:[#allocation2 + $0xe0] sm:$0xff]  ;;  %v4084_v27 = vpop.f32.mrf.mxu1 }
 0x1ee   : > { %v2351_v40 = vmul.f32 %v5617_v17, %v4995_v5  ;;  %v2352_v7 = vmul.f32 %v5617_v17, %v4997_v8  ;;  %7189 = vst [vmem:[#allocation71_spill] sm:$0xff] %v5824_v1  ;;  %1191 = vst.msk [vmem:[#allocation2 + $0x110] sm:$0xff] %vm321_vm1, %v1126_v0  ;;  %v2353_v11 = vmul.f32 %v5617_v17, %v5004_v13  ;;  %v4222_v53 = vld [vmem:[%s4406_s26 + $0xe0] sm:$0xff]  ;;  %v7217_v1 = vld [vmem:[#allocation26_spill] sm:$0xff] }
 0x1ef   : > { %1189 = vst.msk [vmem:[#allocation2 + $0x100] sm:$0xff] %vm321_vm1, %v1124_v24  ;;  %v2354_v5 = vmul.f32 %v5617_v17, %v5006_v18  ;;  %v3966_v12 = vpack.c.bf16 %v1253_v14, %v1253_v14  ;;  %1192 = vst.msk [vmem:[#allocation2 + $0x118] sm:$0xff] %vm321_vm1, %v1127_v10  ;;  %v3968_v8 = vpack.c.bf16 %v1255_v6, %v1255_v6  ;;  %2956 = vperm.xlu1 %4153, %v4222_v53   ;;  %v984_v46 = vpop.f32.mrf.mxu1  ;;  %v7190_v0 = vld [vmem:[#allocation17_spill] sm:$0xff] }
 0x1f0   : > { %v2355_v54 = vmul.f32 %v5617_v17, %v5010_v15  ;;  %2976 = vperm.xlu0 %4152, %v4223_v19   ;;  %v3965_v13 = vpack.c.bf16 %v1252_v3, %v1252_v3  ;;  %v3967_v37 = vpack.c.bf16 %v1254_v51, %v1254_v51  ;;  %v5838_v18 = vadd.f32 %v2345_v20, %v5435_v41  ;;  %v423_v15 = vld [vmem:[#allocation2 + $0x128] sm:$0xff]  ;;  %v7201_v3 = vld [vmem:[#allocation3_spill] sm:$0xff]  ;;  %v7202_v53 = vld [vmem:[#allocation77_spill] sm:$0xff] }
 0x1f1   : > { %v5841_v56 = vadd.f32 %v2346_v25, %v5428_v32  ;;  %v5844_v58 = vadd.f32 %v2347_v34, %v5443_v28  ;;  %v5847_v52 = vadd.f32 %v2348_v2, %v5439_v30  ;;  %1574 = vst.msk [vmem:[%s5273_s16 + $0x74] sm:$0xf] %vm1544_vm2, %v3966_v12  ;;  %1576 = vst.msk [vmem:[%s5273_s16 + $0x7c] sm:$0xf] %vm1544_vm2, %v3968_v8  ;;  %v7191_v41 = vld [vmem:[#allocation16_spill] sm:$0xff]  ;;  %v7192_v32 = vld [vmem:[#allocation19_spill] sm:$0xff]  ;;  %v5862_v28 = vpop.permute.xlu1 %2592  ;;  %v5864_v30 = vpop.permute.xlu0 %2604 }
 0x1f2   : > { %v5854_v24 = vadd.f32 %v2349_v26, %v7190_v0  ;;  %v5857_v20 = vadd.f32 %v2350_v62, %v7191_v41  ;;  %v5860_v63 = vadd.f32 %v2351_v40, %v7192_v32  ;;  %7193 = vst [vmem:[#allocation72_spill] sm:$0xff] %v5862_v28  ;;  %7194 = vst [vmem:[#allocation73_spill] sm:$0xff] %v5864_v30  ;;  %v7195_v34 = vld [vmem:[#allocation18_spill] sm:$0xff]  ;;  %v7196_v2 = vld [vmem:[#allocation23_spill] sm:$0xff]  ;;  %v5881_v6 = vpop.f32.mrf.mxu1 }
 0x1f3   : > { %1573 = vst.msk [vmem:[%s5273_s16 + $0x70] sm:$0xf] %vm1544_vm2, %v3965_v13  ;;  %v1129_v25 = vadd.f32 %v984_v46, %v423_v15  ;;  %1575 = vst.msk [vmem:[%s5273_s16 + $0x78] sm:$0xf] %vm1544_vm2, %v3967_v37  ;;  %v5871_v21 = vadd.f32 %v2352_v7, %v7195_v34  ;;  %v5874_v10 = vadd.f32 %v2353_v11, %v7196_v2  ;;  %v7197_v26 = vld [vmem:[#allocation22_spill] sm:$0xff]  ;;  %v7199_v40 = vld [vmem:[#allocation76_spill] sm:$0xff] }
 0x1f4   : > { %v5877_v62 = vadd.f32 %v2354_v5, %v7197_v26  ;;  %v2356_v14 = vmul.f32 %v5617_v17, %v7199_v40  ;;  %v7200_v12 = vld [vmem:[#allocation25_spill] sm:$0xff]  ;;  %v2357_v51 = vmul.f32 %v5617_v17, %v7201_v3  ;;  %v2358_v7 = vmul.f32 %v5617_v17, %v7202_v53  ;;  %v4224_v19 = vld [vmem:[%s4406_s26 + $0xf0] sm:$0xff]  ;;  %v4225_v11 = vld [vmem:[%s4406_s26 + $0x118] sm:$0xff]  ;;  %v997_v34 = vpop.f32.mrf.mxu1 }
 0x1f5   : > { %v5884_v8 = vadd.f32 %v2355_v54, %v7200_v12  ;;  %2964 = vperm.xlu1 %4153, %v4224_v19   ;;  %2984 = vperm.xlu0 %4152, %v4225_v11   ;;  %v424_v5 = vld [vmem:[#allocation2 + $0x130] sm:$0xff]  ;;  %v422_v13 = vld [vmem:[#allocation2 + $0x120] sm:$0xff]  ;;  %1194 = vst.msk [vmem:[#allocation2 + $0x128] sm:$0xff] %vm321_vm1, %v1129_v25  ;;  %v7203_v37 = vld [vmem:[#allocation4_spill] sm:$0xff]  ;;  %v5904_v53 = vpop.permute.xlu1 %2600  ;;  %v5906_v19 = vpop.permute.xlu0 %2612 }
 0x1f6   : > { %7198 = vst [vmem:[#allocation10_spill] sm:$0xff] %v5877_v62  ;;  %v2359_v15 = vmul.f32 %v5617_v17, %v7203_v37  ;;  %v7204_v46 = vld [vmem:[#allocation78_spill] sm:$0xff]  ;;  %v1130_v0 = vadd.f32 %v5800_v29, %v424_v5  ;;  %v1128_v41 = vadd.f32 %v981_v38, %v422_v13  ;;  %v7205_v2 = vld [vmem:[#allocation79_spill] sm:$0xff]  ;;  %v7206_v40 = vld [vmem:[#allocation80_spill] sm:$0xff]  ;;  %v5926_v61 = vadd.f32 %v2358_v7, %v7217_v1 }
 0x1f7   : > { %v2360_v54 = vmul.f32 %v5617_v17, %v7204_v46  ;;  %v425_v32 = vld [vmem:[#allocation2 + $0x138] sm:$0xff]  ;;  %v2361_v26 = vmul.f32 %v5617_v17, %v7205_v2  ;;  %v2362_v12 = vmul.f32 %v5617_v17, %v7206_v40  ;;  %v7207_v3 = vld [vmem:[#allocation81_spill] sm:$0xff]  ;;  %7208 = vst [vmem:[#allocation74_spill] sm:$0xff] %v5904_v53  ;;  %7209 = vst [vmem:[#allocation12_spill] sm:$0xff] %v5906_v19  ;;  %v4088_v19 = vpop.f32.mrf.mxu1 }
 0x1f8   : > { %v2363_v25 = vmul.f32 %v5617_v17, %v7207_v3  ;;  %v1257_v11 = vld [vmem:[#allocation2 + $0x108] sm:$0xff]  ;;  %v1131_v29 = vadd.f32 %v4084_v27, %v425_v32  ;;  %v7210_v38 = vld [vmem:[#allocation82_spill] sm:$0xff]  ;;  %v7211_v13 = vld [vmem:[#allocation83_spill] sm:$0xff]  ;;  %1195 = vst.msk [vmem:[#allocation2 + $0x130] sm:$0xff] %vm321_vm1, %v1130_v0 }
 0x1f9   : > { %v2364_v5 = vmul.f32 %v5617_v17, %v7210_v38  ;;  %v2365_v37 = vmul.f32 %v5617_v17, %v7211_v13  ;;  %v7212_v46 = vld [vmem:[#allocation84_spill] sm:$0xff]  ;;  %1193 = vst.msk [vmem:[#allocation2 + $0x120] sm:$0xff] %vm321_vm1, %v1128_v41  ;;  %v3970_v40 = vpack.c.bf16 %v1257_v11, %v1257_v11  ;;  %v1259_v3 = vld [vmem:[#allocation2 + $0x118] sm:$0xff]  ;;  %v1256_v53 = vld [vmem:[#allocation2 + $0x100] sm:$0xff]  ;;  %v5944_v1 = vpop.permute.xlu0 %2620 }
 0x1fa   : > { %v2366_v2 = vmul.f32 %v5617_v17, %v7212_v46  ;;  %v1258_v30 = vld [vmem:[#allocation2 + $0x110] sm:$0xff]  ;;  %v4227_v32 = vld [vmem:[%s4406_s26 + $0x128] sm:$0xff]  ;;  %1196 = vst.msk [vmem:[#allocation2 + $0x138] sm:$0xff] %vm321_vm1, %v1131_v29  ;;  %v3972_v38 = vpack.c.bf16 %v1259_v3, %v1259_v3  ;;  %v3969_v13 = vpack.c.bf16 %v1256_v53, %v1256_v53  ;;  %v7213_v0 = vld [vmem:[#allocation24_spill] sm:$0xff]  ;;  %v1000_v3 = vpop.f32.mrf.mxu1 }
 0x1fb   : > { %v4226_v27 = vld [vmem:[%s4406_s26 + $0x100] sm:$0xff]  ;;  %2992 = vperm.xlu0 %4152, %v4227_v32   ;;  %v3971_v46 = vpack.c.bf16 %v1258_v30, %v1258_v30  ;;  %v5920_v41 = vadd.f32 %v2356_v14, %v7213_v0  ;;  %v7215_v11 = vld [vmem:[#allocation27_spill] sm:$0xff]  ;;  %7218 = vst [vmem:[#allocation17_spill] sm:$0xff] %v5926_v61  ;;  %1578 = vst.msk [vmem:[%s5273_s16 + $0x84] sm:$0xf] %vm1544_vm2, %v3970_v40 }
 0x1fc   : > { %2972 = vperm.xlu1 %4153, %v4226_v27   ;;  %v5923_v28 = vadd.f32 %v2357_v51, %v7215_v11  ;;  %v7219_v27 = vld [vmem:[#allocation29_spill] sm:$0xff]  ;;  %v427_v29 = vld [vmem:[#allocation2 + $0x148] sm:$0xff]  ;;  %v7223_v30 = vld [vmem:[#allocation31_spill] sm:$0xff]  ;;  %v5942_v51 = vpop.permute.xlu1 %2608  ;;  %7228 = vst [vmem:[#allocation76_spill] sm:$0xff] %v5944_v1 }
 0x1fd   : > { %7214 = vst [vmem:[#allocation75_spill] sm:$0xff] %v5920_v41  ;;  %v5929_v31 = vadd.f32 %v2359_v15, %v7219_v27  ;;  %v7221_v32 = vld [vmem:[#allocation28_spill] sm:$0xff]  ;;  %v5937_v39 = vadd.f32 %v2361_v26, %v7223_v30  ;;  %v7225_v14 = vld [vmem:[#allocation30_spill] sm:$0xff]  ;;  %7227 = vst [vmem:[#allocation22_spill] sm:$0xff] %v5942_v51  ;;  %v1133_v7 = vadd.f32 %v1000_v3, %v427_v29 }
 0x1fe   : > { %7216 = vst [vmem:[#allocation13_spill] sm:$0xff] %v5923_v28  ;;  %v5934_v53 = vadd.f32 %v2360_v54, %v7221_v32  ;;  %v5940_v0 = vadd.f32 %v2362_v12, %v7225_v14  ;;  %1580 = vst.msk [vmem:[%s5273_s16 + $0x8c] sm:$0xf] %vm1544_vm2, %v3972_v38  ;;  %v7229_v15 = vld [vmem:[#allocation35_spill] sm:$0xff]  ;;  %v7231_v26 = vld [vmem:[#allocation32_spill] sm:$0xff]  ;;  %v5964_v38 = vpop.f32.mrf.mxu1 }
 0x1ff   : > { %7220 = vst [vmem:[#allocation16_spill] sm:$0xff] %v5929_v31  ;;  %7224 = vst [vmem:[#allocation18_spill] sm:$0xff] %v5937_v39  ;;  %v5953_v54 = vadd.f32 %v2363_v25, %v7229_v15  ;;  %v5956_v40 = vadd.f32 %v2364_v5, %v7231_v26  ;;  %v7233_v12 = vld [vmem:[#allocation37_spill] sm:$0xff]  ;;  %v7235_v27 = vld [vmem:[#allocation36_spill] sm:$0xff] }
 0x200   : > { %7222 = vst [vmem:[#allocation19_spill] sm:$0xff] %v5934_v53  ;;  %7226 = vst [vmem:[#allocation23_spill] sm:$0xff] %v5940_v0  ;;  %v5959_v11 = vadd.f32 %v2365_v37, %v7233_v12  ;;  %v5962_v32 = vadd.f32 %v2366_v2, %v7235_v27  ;;  %v428_v30 = vld [vmem:[#allocation2 + $0x150] sm:$0xff]  ;;  %v426_v14 = vld [vmem:[#allocation2 + $0x140] sm:$0xff] }
 0x201   : > { %1577 = vst.msk [vmem:[%s5273_s16 + $0x80] sm:$0xf] %vm1544_vm2, %v3969_v13  ;;  %1579 = vst.msk [vmem:[%s5273_s16 + $0x88] sm:$0xf] %vm1544_vm2, %v3971_v46  ;;  %v7237_v13 = vld [vmem:[#allocation85_spill] sm:$0xff]  ;;  %v4228_v25 = vld [vmem:[%s4406_s26 + $0x110] sm:$0xff]  ;;  %v1134_v5 = vadd.f32 %v5881_v6, %v428_v30  ;;  %v1132_v37 = vadd.f32 %v997_v34, %v426_v14 }
 0x202   : > { %7230 = vst [vmem:[#allocation25_spill] sm:$0xff] %v5953_v54  ;;  %7232 = vst [vmem:[#allocation3_spill] sm:$0xff] %v5956_v40  ;;  %v2367_v29 = vmul.f32 %v5617_v17, %v7237_v13  ;;  %v7238_v46 = vld [vmem:[#allocation117_spill] sm:$0xff]  ;;  %2980 = vperm.xlu1 %4153, %v4228_v25   ;;  %v4229_v3 = vld [vmem:[%s4406_s26 + $0x138] sm:$0xff] }
 0x203   : > { %7234 = vst [vmem:[#allocation77_spill] sm:$0xff] %v5959_v11  ;;  %7236 = vst [vmem:[#allocation4_spill] sm:$0xff] %v5962_v32  ;;  %vm1619_vm7 = vcmp.ge.s32.totalorder %v7238_v46, 16  ;;  %3000 = vperm.xlu0 %4152, %v4229_v3   ;;  %v7239_v2 = vld [vmem:[#allocation86_spill] sm:$0xff]  ;;  %v7240_v26 = vld [vmem:[#allocation87_spill] sm:$0xff]  ;;  %v1013_v11 = vpop.f32.mrf.mxu1  ;;  %vm1620_vm8 = vcmp.lt.s32.totalorder %v7238_v46, 24 }
 0x204   : > { %1198 = vst.msk [vmem:[#allocation2 + $0x148] sm:$0xff] %vm321_vm1, %v1133_v7  ;;  %v2368_v15 = vmul.f32 %v5617_v17, %v7239_v2  ;;  %v2369_v12 = vmul.f32 %v5617_v17, %v7240_v26  ;;  %v7241_v27 = vld [vmem:[#allocation88_spill] sm:$0xff]  ;;  %v7242_v32 = vld [vmem:[#allocation89_spill] sm:$0xff]  ;;  %v429_v25 = vld [vmem:[#allocation2 + $0x158] sm:$0xff]  ;;  %v5987_v2 = vpop.permute.xlu1 %2616  ;;  %v5989_v26 = vpop.permute.xlu0 %2628  ;;  %vm1624_vm10 = vcmp.ge.s32.totalorder %v7238_v46, 24 }
 0x205   : > { %v2370_v13 = vmul.f32 %v5617_v17, %v7241_v27  ;;  %v2371_v40 = vmul.f32 %v5617_v17, %v7242_v32  ;;  %v7243_v3 = vld [vmem:[#allocation90_spill] sm:$0xff]  ;;  %v7244_v34 = vld [vmem:[#allocation91_spill] sm:$0xff]  ;;  %v7245_v30 = vld [vmem:[#allocation92_spill] sm:$0xff]  ;;  %7246 = vst [vmem:[#allocation78_spill] sm:$0xff] %v5987_v2  ;;  %v1135_v27 = vadd.f32 %v4088_v19, %v429_v25 }
 0x206   : > { %v2372_v6 = vmul.f32 %v5617_v17, %v7243_v3  ;;  %v2373_v7 = vmul.f32 %v5617_v17, %v7244_v34  ;;  %v2374_v14 = vmul.f32 %v5617_v17, %v7245_v30  ;;  %7247 = vst [vmem:[#allocation79_spill] sm:$0xff] %v5989_v26  ;;  %1199 = vst.msk [vmem:[#allocation2 + $0x150] sm:$0xff] %vm321_vm1, %v1134_v5  ;;  %v1261_v32 = vld [vmem:[#allocation2 + $0x128] sm:$0xff]  ;;  %v7248_v1 = vld [vmem:[#allocation93_spill] sm:$0xff]  ;;  %v4092_v26 = vpop.f32.mrf.mxu1 }
 0x207   : > { %1197 = vst.msk [vmem:[#allocation2 + $0x140] sm:$0xff] %vm321_vm1, %v1132_v37  ;;  %v2375_v3 = vmul.f32 %v5617_v17, %v7248_v1  ;;  %v7249_v0 = vld [vmem:[#allocation94_spill] sm:$0xff]  ;;  %v7250_v54 = vld [vmem:[#allocation95_spill] sm:$0xff]  ;;  %v3974_v53 = vpack.c.bf16 %v1261_v32, %v1261_v32  ;;  %v1262_v39 = vld [vmem:[#allocation2 + $0x130] sm:$0xff] }
 0x208   : > { %v2376_v34 = vmul.f32 %v5617_v17, %v7249_v0  ;;  %v2377_v30 = vmul.f32 %v5617_v17, %v7250_v54  ;;  %v1263_v2 = vld [vmem:[#allocation2 + $0x138] sm:$0xff]  ;;  %v1260_v51 = vld [vmem:[#allocation2 + $0x120] sm:$0xff]  ;;  %v4230_v5 = vld [vmem:[%s4406_s26 + $0x120] sm:$0xff]  ;;  %1200 = vst.msk [vmem:[#allocation2 + $0x158] sm:$0xff] %vm321_vm1, %v1135_v27  ;;  %v3975_v37 = vpack.c.bf16 %v1262_v39, %v1262_v39 }
 0x209   : > { %2988 = vperm.xlu1 %4153, %v4230_v5   ;;  %v4231_v19 = vld [vmem:[%s4406_s26 + $0x148] sm:$0xff]  ;;  %v3976_v1 = vpack.c.bf16 %v1263_v2, %v1263_v2  ;;  %v3973_v0 = vpack.c.bf16 %v1260_v51, %v1260_v51  ;;  %v7251_v54 = vld [vmem:[#allocation39_spill] sm:$0xff]  ;;  %v7255_v31 = vld [vmem:[#allocation41_spill] sm:$0xff]  ;;  %1582 = vst.msk [vmem:[%s5273_s16 + $0x94] sm:$0xf] %vm1544_vm2, %v3974_v53  ;;  %v1016_v2 = vpop.f32.mrf.mxu1 }
 0x20a   : > { %3008 = vperm.xlu0 %4152, %v4231_v19   ;;  %v6004_v25 = vadd.f32 %v2367_v29, %v7251_v54  ;;  %v7253_v32 = vld [vmem:[#allocation38_spill] sm:$0xff]  ;;  %v6010_v41 = vadd.f32 %v2369_v12, %v7255_v31  ;;  %v7257_v5 = vld [vmem:[#allocation40_spill] sm:$0xff]  ;;  %v7259_v19 = vld [vmem:[#allocation43_spill] sm:$0xff]  ;;  %v6026_v54 = vpop.permute.xlu1 %2624  ;;  %v6028_v31 = vpop.permute.xlu0 %2636  ;;  %1583 = vst.msk [vmem:[%s5273_s16 + $0x98] sm:$0xf] %vm1544_vm2, %v3975_v37 }
 0x20b   : > { %v6007_v61 = vadd.f32 %v2368_v15, %v7253_v32  ;;  %v6013_v28 = vadd.f32 %v2370_v13, %v7257_v5  ;;  %v431_v27 = vld [vmem:[#allocation2 + $0x168] sm:$0xff]  ;;  %v6018_v51 = vadd.f32 %v2371_v40, %v7259_v19  ;;  %v7261_v39 = vld [vmem:[#allocation42_spill] sm:$0xff]  ;;  %v7263_v29 = vld [vmem:[#allocation45_spill] sm:$0xff]  ;;  %7265 = vst [vmem:[#allocation26_spill] sm:$0xff] %v6026_v54  ;;  %v6040_v13 = vadd.f32 %v2375_v3, %v5598_v22 }
 0x20c   : > { %7252 = vst [vmem:[#allocation80_spill] sm:$0xff] %v6004_v25  ;;  %7256 = vst [vmem:[#allocation82_spill] sm:$0xff] %v6010_v41  ;;  %v6021_v62 = vadd.f32 %v2372_v6, %v7261_v39  ;;  %v6024_v15 = vadd.f32 %v2373_v7, %v7263_v29  ;;  %v1137_v53 = vadd.f32 %v1016_v2, %v431_v27  ;;  %v7267_v40 = vld [vmem:[#allocation44_spill] sm:$0xff]  ;;  %v432_v5 = vld [vmem:[#allocation2 + $0x170] sm:$0xff] }
 0x20d   : > { %7254 = vst [vmem:[#allocation81_spill] sm:$0xff] %v6007_v61  ;;  %7258 = vst [vmem:[#allocation83_spill] sm:$0xff] %v6013_v28  ;;  %v6037_v12 = vadd.f32 %v2374_v14, %v7267_v40  ;;  %v6043_v6 = vadd.f32 %v2376_v34, %v5594_v43  ;;  %v7271_v7 = vld [vmem:[#allocation96_spill] sm:$0xff]  ;;  %v430_v19 = vld [vmem:[#allocation2 + $0x160] sm:$0xff]  ;;  %v1138_v22 = vadd.f32 %v5964_v38, %v432_v5 }
 0x20e   : > { %7260 = vst [vmem:[#allocation84_spill] sm:$0xff] %v6018_v51  ;;  %7262 = vst [vmem:[#allocation24_spill] sm:$0xff] %v6021_v62  ;;  %v2378_v32 = vmul.f32 %v5617_v17, %v7271_v7  ;;  %v4232_v37 = vld [vmem:[%s4406_s26 + $0x130] sm:$0xff]  ;;  %v4233_v14 = vld [vmem:[%s4406_s26 + $0x158] sm:$0xff]  ;;  %v1136_v3 = vadd.f32 %v1013_v11, %v430_v19 }
 0x20f   : > { %7264 = vst [vmem:[#allocation27_spill] sm:$0xff] %v6024_v15  ;;  %7266 = vst [vmem:[#allocation29_spill] sm:$0xff] %v6028_v31  ;;  %2996 = vperm.xlu1 %4153, %v4232_v37   ;;  %3016 = vperm.xlu0 %4152, %v4233_v14   ;;  %v7274_v43 = vld [vmem:[#allocation97_spill] sm:$0xff]  ;;  %v7275_v2 = vld [vmem:[#allocation98_spill] sm:$0xff] }
 0x210   : > { %1584 = vst.msk [vmem:[%s5273_s16 + $0x9c] sm:$0xf] %vm1544_vm2, %v3976_v1  ;;  %1581 = vst.msk [vmem:[%s5273_s16 + $0x90] sm:$0xf] %vm1544_vm2, %v3973_v0  ;;  %v6047_v1 = vpop.f32.mrf.mxu1  ;;  %v7272_v0 = vld [vmem:[#allocation49_spill] sm:$0xff]  ;;  %v2379_v34 = vmul.f32 %v5617_v17, %v7274_v43  ;;  %v2380_v39 = vmul.f32 %v5617_v17, %v7275_v2  ;;  %v7276_v29 = vld [vmem:[#allocation99_spill] sm:$0xff]  ;;  %v6078_v2 = vpop.permute.xlu1 %2632 }
 0x211   : > { %7268 = vst [vmem:[#allocation28_spill] sm:$0xff] %v6037_v12  ;;  %7269 = vst [vmem:[#allocation31_spill] sm:$0xff] %v6040_v13  ;;  %v6050_v27 = vadd.f32 %v2377_v30, %v7272_v0  ;;  %v2381_v40 = vmul.f32 %v5617_v17, %v7276_v29  ;;  %v7277_v30 = vld [vmem:[#allocation100_spill] sm:$0xff]  ;;  %v433_v38 = vld [vmem:[#allocation2 + $0x178] sm:$0xff]  ;;  %v6080_v29 = vpop.permute.xlu0 %2644 }
 0x212   : > { %7270 = vst [vmem:[#allocation30_spill] sm:$0xff] %v6043_v6  ;;  %1202 = vst.msk [vmem:[#allocation2 + $0x168] sm:$0xff] %vm321_vm1, %v1137_v53  ;;  %v2382_v7 = vmul.f32 %v5617_v17, %v7277_v30  ;;  %v1029_v53 = vpop.f32.mrf.mxu1  ;;  %v7280_v5 = vld [vmem:[#allocation101_spill] sm:$0xff]  ;;  %v7281_v0 = vld [vmem:[#allocation102_spill] sm:$0xff]  ;;  %v1139_v6 = vadd.f32 %v4092_v26, %v433_v38 }
 0x213   : > { %7273 = vst [vmem:[#allocation35_spill] sm:$0xff] %v6050_v27  ;;  %vm6068_vm9 = vmand %vm1619_vm7, %vm1620_vm8  ;;  %v2383_v19 = vmul.f32 %v5617_v17, %v7280_v5  ;;  %v2384_v37 = vmul.f32 %v5617_v17, %v7281_v0  ;;  %v7282_v14 = vld [vmem:[#allocation103_spill] sm:$0xff]  ;;  %v1265_v30 = vld [vmem:[#allocation2 + $0x148] sm:$0xff] }
 0x214   : > { %v2385_v43 = vmul.f32 %v5617_v17, %v7282_v14  ;;  %7283 = vst [vmem:[#allocation32_spill] sm:$0xff] %v6078_v2  ;;  %7284 = vst [vmem:[#allocation37_spill] sm:$0xff] %v6080_v29  ;;  %v7285_v27 = vld [vmem:[#allocation104_spill] sm:$0xff]  ;;  %v7286_v12 = vld [vmem:[#allocation5_spill] sm:$0xff]  ;;  %v3978_v62 = vpack.c.bf16 %v1265_v30, %v1265_v30  ;;  %v4096_v29 = vpop.f32.mrf.mxu1 }
 0x215   : > { %1203 = vst.msk [vmem:[#allocation2 + $0x170] sm:$0xff] %vm321_vm1, %v1138_v22  ;;  %1201 = vst.msk [vmem:[#allocation2 + $0x160] sm:$0xff] %vm321_vm1, %v1136_v3  ;;  %v2386_v5 = vmul.f32 %v5617_v17, %v7285_v27  ;;  %v2387_v0 = vmul.f32 %v5617_v17, %v7286_v12  ;;  %v7287_v13 = vld [vmem:[#allocation8_spill] sm:$0xff]  ;;  %v1267_v15 = vld [vmem:[#allocation2 + $0x158] sm:$0xff]  ;;  %v7288_v22 = vmov 0.0  }
 0x216   : > { %v2388_v14 = vmul.f32 %v5617_v17, %v7287_v13  ;;  %v1264_v28 = vld [vmem:[#allocation2 + $0x140] sm:$0xff]  ;;  %v1266_v51 = vld [vmem:[#allocation2 + $0x150] sm:$0xff]  ;;  %v6093_v3 = vsel %vm6068_vm9, 1.0, %v7288_v22  ;;  %v4235_v27 = vld [vmem:[%s4406_s26 + $0x168] sm:$0xff]  ;;  %1204 = vst.msk [vmem:[#allocation2 + $0x178] sm:$0xff] %vm321_vm1, %v1139_v6  ;;  %v3980_v12 = vpack.c.bf16 %v1267_v15, %v1267_v15  ;;  %v1032_v15 = vpop.f32.mrf.mxu1 }
 0x217   : > { %v4234_v26 = vld [vmem:[%s4406_s26 + $0x140] sm:$0xff]  ;;  %3024 = vperm.xlu0 %4152, %v4235_v27   ;;  %v3977_v13 = vpack.c.bf16 %v1264_v28, %v1264_v28  ;;  %v3979_v38 = vpack.c.bf16 %v1266_v51, %v1266_v51  ;;  %v7289_v30 = vld [vmem:[#allocation48_spill] sm:$0xff]  ;;  %v7291_v31 = vld [vmem:[#allocation51_spill] sm:$0xff]  ;;  %1586 = vst.msk [vmem:[%s5273_s16 + $0xa4] sm:$0xf] %vm1544_vm2, %v3978_v62 }
 0x218   : > { %3004 = vperm.xlu1 %4153, %v4234_v26   ;;  %v6099_v2 = vadd.f32 %v2378_v32, %v7289_v30  ;;  %v6102_v54 = vadd.f32 %v2379_v34, %v7291_v31  ;;  %v7292_v11 = vld [vmem:[#allocation50_spill] sm:$0xff]  ;;  %v7294_v26 = vld [vmem:[#allocation53_spill] sm:$0xff]  ;;  %v435_v6 = vld [vmem:[#allocation2 + $0x188] sm:$0xff]  ;;  %v6121_v34 = vpop.permute.xlu1 %2640  ;;  %1588 = vst.msk [vmem:[%s5273_s16 + $0xac] sm:$0xf] %vm1544_vm2, %v3980_v12  ;;  %v6143_v12 = vpop.f32.mrf.mxu1 }
 0x219   : > { %v6105_v61 = vadd.f32 %v2380_v39, %v7292_v11  ;;  %v6108_v41 = vadd.f32 %v2381_v40, %v7294_v26  ;;  %v7296_v27 = vld [vmem:[#allocation52_spill] sm:$0xff]  ;;  %v7298_v51 = vld [vmem:[#allocation55_spill] sm:$0xff]  ;;  %v7300_v32 = vld [vmem:[#allocation54_spill] sm:$0xff]  ;;  %v6123_v39 = vpop.permute.xlu0 %2652  ;;  %1585 = vst.msk [vmem:[%s5273_s16 + $0xa0] sm:$0xf] %vm1544_vm2, %v3977_v13  ;;  %v1141_v62 = vadd.f32 %v1032_v15, %v435_v6  ;;  %v6141_v11 = vadd.f32 %v2388_v14, %v5663_v55 }
 0x21a   : > { %7290 = vst [vmem:[#allocation36_spill] sm:$0xff] %v6099_v2  ;;  %v6113_v28 = vadd.f32 %v2382_v7, %v7296_v27  ;;  %v6116_v25 = vadd.f32 %v2383_v19, %v7298_v51  ;;  %v6119_v31 = vadd.f32 %v2384_v37, %v7300_v32  ;;  %1587 = vst.msk [vmem:[%s5273_s16 + $0xa8] sm:$0xf] %vm1544_vm2, %v3979_v38  ;;  %v7302_v40 = vld [vmem:[#allocation59_spill] sm:$0xff]  ;;  %v7304_v19 = vld [vmem:[#allocation56_spill] sm:$0xff] }
 0x21b   : > { %7293 = vst [vmem:[#allocation85_spill] sm:$0xff] %v6105_v61  ;;  %7295 = vst [vmem:[#allocation117_spill] sm:$0xff] %v6108_v41  ;;  %v6132_v7 = vadd.f32 %v2385_v43, %v7302_v40  ;;  %v6135_v30 = vadd.f32 %v2386_v5, %v7304_v19  ;;  %v6138_v37 = vadd.f32 %v2387_v0, %v5671_v16  ;;  %v436_v26 = vld [vmem:[#allocation2 + $0x190] sm:$0xff]  ;;  %v434_v27 = vld [vmem:[#allocation2 + $0x180] sm:$0xff] }
 0x21c   : > { %7297 = vst [vmem:[#allocation86_spill] sm:$0xff] %v6113_v28  ;;  %7299 = vst [vmem:[#allocation87_spill] sm:$0xff] %v6116_v25  ;;  %v7308_v13 = vld [vmem:[#allocation6_spill] sm:$0xff]  ;;  %v4236_v38 = vld [vmem:[%s4406_s26 + $0x150] sm:$0xff]  ;;  %v1142_v5 = vadd.f32 %v6047_v1, %v436_v26  ;;  %v1140_v15 = vadd.f32 %v1029_v53, %v434_v27 }
 0x21d   : > { %7301 = vst [vmem:[#allocation88_spill] sm:$0xff] %v6119_v31  ;;  %7303 = vst [vmem:[#allocation89_spill] sm:$0xff] %v6132_v7  ;;  %v2389_v6 = vmul.f32 %v5617_v17, %v7308_v13  ;;  %3012 = vperm.xlu1 %4153, %v4236_v38   ;;  %v4237_v43 = vld [vmem:[%s4406_s26 + $0x178] sm:$0xff]  ;;  %v7309_v16 = vld [vmem:[#allocation105_spill] sm:$0xff]  ;;  %v1045_v38 = vpop.f32.mrf.mxu1 }
 0x21e   : > { %7305 = vst [vmem:[#allocation90_spill] sm:$0xff] %v6135_v30  ;;  %7306 = vst [vmem:[#allocation91_spill] sm:$0xff] %v6138_v37  ;;  %3032 = vperm.xlu0 %4152, %v4237_v43   ;;  %v2390_v55 = vmul.f32 %v5617_v17, %v7309_v16  ;;  %v7310_v0 = vld [vmem:[#allocation7_spill] sm:$0xff]  ;;  %v7311_v51 = vld [vmem:[#allocation106_spill] sm:$0xff]  ;;  %v6165_v16 = vpop.permute.xlu1 %2648 }
 0x21f   : > { %7307 = vst [vmem:[#allocation92_spill] sm:$0xff] %v6141_v11  ;;  %1206 = vst.msk [vmem:[#allocation2 + $0x188] sm:$0xff] %vm321_vm1, %v1141_v62  ;;  %v2391_v14 = vmul.f32 %v5617_v17, %v7310_v0  ;;  %v2392_v32 = vmul.f32 %v5617_v17, %v7311_v51  ;;  %v7312_v40 = vld [vmem:[#allocation9_spill] sm:$0xff]  ;;  %v437_v13 = vld [vmem:[#allocation2 + $0x198] sm:$0xff]  ;;  %v6167_v0 = vpop.permute.xlu0 %2660  ;;  %v4100_v28 = vpop.f32.mrf.mxu1 }
 0x220   : > { %v2393_v19 = vmul.f32 %v5617_v17, %v7312_v40  ;;  %v7313_v43 = vld [vmem:[#allocation107_spill] sm:$0xff]  ;;  %v7315_v26 = vld [vmem:[#allocation108_spill] sm:$0xff]  ;;  %1207 = vst.msk [vmem:[#allocation2 + $0x190] sm:$0xff] %vm321_vm1, %v1142_v5  ;;  %1205 = vst.msk [vmem:[#allocation2 + $0x180] sm:$0xff] %vm321_vm1, %v1140_v15  ;;  %v1143_v40 = vadd.f32 %v4096_v29, %v437_v13 }
 0x221   : > { %v2394_v1 = vmul.f32 %v5617_v17, %v7313_v43  ;;  %v7314_v53 = vld [vmem:[#allocation11_spill] sm:$0xff]  ;;  %v2716_v27 = vmul.f32 %v6093_v3, %v7315_v26  ;;  %v1269_v51 = vld [vmem:[#allocation2 + $0x168] sm:$0xff]  ;;  %v7316_v11 = vld [vmem:[#allocation109_spill] sm:$0xff]  ;;  %v6187_v41 = vadd.f32 %v2391_v14, %v5691_v45 }
 0x222   : > { %v2715_v62 = vmul.f32 %v6093_v3, %v7314_v53  ;;  %v2717_v17 = vmul.f32 %v6093_v3, %v7316_v11  ;;  %v7317_v43 = vld [vmem:[#allocation110_spill] sm:$0xff]  ;;  %v7318_v30 = vld [vmem:[#allocation111_spill] sm:$0xff]  ;;  %v3982_v37 = vpack.c.bf16 %v1269_v51, %v1269_v51  ;;  %v1270_v25 = vld [vmem:[#allocation2 + $0x170] sm:$0xff]  ;;  %1208 = vst.msk [vmem:[#allocation2 + $0x198] sm:$0xff] %vm321_vm1, %v1143_v40 }
 0x223   : > { %v2719_v53 = vmul.f32 %v6093_v3, %v7317_v43  ;;  %v2718_v26 = vmul.f32 %v6093_v3, %v7318_v30  ;;  %v1271_v31 = vld [vmem:[#allocation2 + $0x178] sm:$0xff]  ;;  %v1268_v7 = vld [vmem:[#allocation2 + $0x160] sm:$0xff]  ;;  %v4238_v5 = vld [vmem:[%s4406_s26 + $0x160] sm:$0xff]  ;;  %v3983_v13 = vpack.c.bf16 %v1270_v25, %v1270_v25  ;;  %v6205_v45 = vpop.permute.xlu0 %2668 }
 0x224   : > { %3020 = vperm.xlu1 %4153, %v4238_v5   ;;  %v4239_v15 = vld [vmem:[%s4406_s26 + $0x188] sm:$0xff]  ;;  %v3984_v29 = vpack.c.bf16 %v1271_v31, %v1271_v31  ;;  %v3981_v11 = vpack.c.bf16 %v1268_v7, %v1268_v7  ;;  %v7319_v43 = vld [vmem:[#allocation61_spill] sm:$0xff]  ;;  %v7320_v51 = vld [vmem:[#allocation60_spill] sm:$0xff]  ;;  %1590 = vst.msk [vmem:[%s5273_s16 + $0xb4] sm:$0xf] %vm1544_vm2, %v3982_v37  ;;  %v1048_v31 = vpop.f32.mrf.mxu1  ;;  %v6195_v7 = vadd.f32 %v2393_v19, %v5699_v9 }
 0x225   : > { %3040 = vperm.xlu0 %4152, %v4239_v15   ;;  %v6181_v30 = vadd.f32 %v2389_v6, %v7319_v43  ;;  %v6184_v61 = vadd.f32 %v2390_v55, %v7320_v51  ;;  %v7322_v5 = vld [vmem:[#allocation62_spill] sm:$0xff]  ;;  %v439_v40 = vld [vmem:[#allocation2 + $0x1a8] sm:$0xff]  ;;  %v7325_v25 = vld [vmem:[#allocation63_spill] sm:$0xff]  ;;  %v6201_v6 = vadd.f32 %v2715_v62, %v5711_v36  ;;  %v6203_v55 = vpop.permute.xlu1 %2656  ;;  %1591 = vst.msk [vmem:[%s5273_s16 + $0xb8] sm:$0xf] %vm1544_vm2, %v3983_v13 }
 0x226   : > { %v6190_v2 = vadd.f32 %v2392_v32, %v7322_v5  ;;  %7324 = vst [vmem:[#allocation95_spill] sm:$0xff] %v6195_v7  ;;  %v6198_v15 = vadd.f32 %v2394_v1, %v7325_v25  ;;  %1592 = vst.msk [vmem:[%s5273_s16 + $0xbc] sm:$0xf] %vm1544_vm2, %v3984_v29  ;;  %v1145_v37 = vadd.f32 %v1048_v31, %v439_v40  ;;  %v7328_v32 = vld [vmem:[#allocation112_spill] sm:$0xff]  ;;  %v440_v1 = vld [vmem:[#allocation2 + $0x1b0] sm:$0xff]  ;;  %v6224_v29 = vpop.f32.mrf.mxu1 }
 0x227   : > { %7321 = vst [vmem:[#allocation93_spill] sm:$0xff] %v6184_v61  ;;  %1589 = vst.msk [vmem:[%s5273_s16 + $0xb0] sm:$0xf] %vm1544_vm2, %v3981_v11  ;;  %v6214_v9 = vadd.f32 %v2716_v27, %v5708_v57  ;;  %v6217_v14 = vadd.f32 %v2717_v17, %v5751_v48  ;;  %v6220_v36 = vadd.f32 %v2719_v53, %v5759_v35  ;;  %v438_v62 = vld [vmem:[#allocation2 + $0x1a0] sm:$0xff]  ;;  %v4241_v57 = vld [vmem:[%s4406_s26 + $0x198] sm:$0xff] }
 0x228   : > { %7323 = vst [vmem:[#allocation94_spill] sm:$0xff] %v6190_v2  ;;  %7326 = vst [vmem:[#allocation39_spill] sm:$0xff] %v6198_v15  ;;  %v2721_v19 = vmul.f32 %v6093_v3, %v7328_v32  ;;  %v6227_v11 = vadd.f32 %v2718_v26, %v5756_v4  ;;  %v4240_v13 = vld [vmem:[%s4406_s26 + $0x170] sm:$0xff]  ;;  %v1146_v48 = vadd.f32 %v6143_v12, %v440_v1  ;;  %v7329_v35 = vld [vmem:[#allocation113_spill] sm:$0xff]  ;;  %v1061_v31 = vpop.f32.mrf.mxu1 }
 0x229   : > { %7327 = vst [vmem:[#allocation38_spill] sm:$0xff] %v6220_v36  ;;  %3028 = vperm.xlu1 %4153, %v4240_v13   ;;  %3048 = vperm.xlu0 %4152, %v4241_v57   ;;  %v1144_v27 = vadd.f32 %v1045_v38, %v438_v62  ;;  %1210 = vst.msk [vmem:[#allocation2 + $0x1a8] sm:$0xff] %vm321_vm1, %v1145_v37  ;;  %v2720_v17 = vmul.f32 %v6093_v3, %v7329_v35  ;;  %v7330_v53 = vld [vmem:[#allocation114_spill] sm:$0xff]  ;;  %v7331_v51 = vld [vmem:[#allocation115_spill] sm:$0xff]  ;;  %v6247_v62 = vpop.permute.xlu1 %2664  ;;  %v6249_v13 = vpop.permute.xlu0 %2676 }
 0x22a   : > { %v2723_v43 = vmul.f32 %v6093_v3, %v7330_v53  ;;  %v2722_v5 = vmul.f32 %v6093_v3, %v7331_v51  ;;  %v7332_v4 = vld [vmem:[#allocation116_spill] sm:$0xff]  ;;  %v441_v40 = vld [vmem:[#allocation2 + $0x1b8] sm:$0xff]  ;;  %v7334_v38 = vld [vmem:[#allocation119_spill] sm:$0xff]  ;;  %1211 = vst.msk [vmem:[#allocation2 + $0x1b0] sm:$0xff] %vm321_vm1, %v1146_v48  ;;  %v4104_v61 = vpop.f32.mrf.mxu1 }
 0x22b   : > { %v2725_v26 = vmul.f32 %v6093_v3, %v7332_v4  ;;  %v7333_v25 = vld [vmem:[#allocation118_spill] sm:$0xff]  ;;  %v2727_v37 = vmul.f32 %v6093_v3, %v7334_v38  ;;  %v7335_v32 = vld [vmem:[#allocation120_spill] sm:$0xff]  ;;  %1209 = vst.msk [vmem:[#allocation2 + $0x1a0] sm:$0xff] %vm321_vm1, %v1144_v27  ;;  %v1147_v35 = vadd.f32 %v4100_v28, %v441_v40  ;;  %v7336_v53 = vld [vmem:[#allocation121_spill] sm:$0xff] }
 0x22c   : > { %v2724_v12 = vmul.f32 %v6093_v3, %v7333_v25  ;;  %v2726_v1 = vmul.f32 %v6093_v3, %v7335_v32  ;;  %v1273_v57 = vld [vmem:[#allocation2 + $0x188] sm:$0xff]  ;;  %v2729_v51 = vmul.f32 %v6093_v3, %v7336_v53  ;;  %v7337_v4 = vld [vmem:[#allocation122_spill] sm:$0xff]  ;;  %v7338_v38 = vld [vmem:[#allocation123_spill] sm:$0xff] }
 0x22d   : > { %v2728_v25 = vmul.f32 %v6093_v3, %v7337_v4  ;;  %v2731_v32 = vmul.f32 %v6093_v3, %v7338_v38  ;;  %v3986_v7 = vpack.c.bf16 %v1273_v57, %v1273_v57  ;;  %v1275_v15 = vld [vmem:[#allocation2 + $0x198] sm:$0xff]  ;;  %v1272_v2 = vld [vmem:[#allocation2 + $0x180] sm:$0xff]  ;;  %v1274_v36 = vld [vmem:[#allocation2 + $0x190] sm:$0xff]  ;;  %1212 = vst.msk [vmem:[#allocation2 + $0x1b8] sm:$0xff] %vm321_vm1, %v1147_v35  ;;  %v6263_v4 = vadd.f32 %v2721_v19, %v5765_v42  ;;  %v6285_v42 = vpop.permute.xlu1 %2672 }
 0x22e   : > { %v4242_v48 = vld [vmem:[%s4406_s26 + $0x180] sm:$0xff]  ;;  %v4243_v27 = vld [vmem:[%s4406_s26 + $0x1a8] sm:$0xff]  ;;  %v3988_v28 = vpack.c.bf16 %v1275_v15, %v1275_v15  ;;  %v3985_v40 = vpack.c.bf16 %v1272_v2, %v1272_v2  ;;  %v3987_v53 = vpack.c.bf16 %v1274_v36, %v1274_v36  ;;  %v6266_v57 = vadd.f32 %v2720_v17, %v5762_v23  ;;  %v443_v35 = vld [vmem:[#allocation2 + $0x1c8] sm:$0xff]  ;;  %v1064_v15 = vpop.f32.mrf.mxu1 }
 0x22f   : > { %3036 = vperm.xlu1 %4153, %v4242_v48   ;;  %3056 = vperm.xlu0 %4152, %v4243_v27   ;;  %v6269_v38 = vadd.f32 %v2723_v43, %v5775_v33  ;;  %v6272_v48 = vadd.f32 %v2722_v5, %v5772_v59  ;;  %1594 = vst.msk [vmem:[%s5273_s16 + $0xc4] sm:$0xf] %vm1544_vm2, %v3986_v7  ;;  %v6287_v33 = vpop.permute.xlu0 %2684  ;;  %v7343_v17 = vld [vmem:[#allocation14_spill] sm:$0xff]  ;;  %v7344_v5 = vld [vmem:[#allocation15_spill] sm:$0xff] }
 0x230   : > { %v6277_v2 = vadd.f32 %v2725_v26, %v5789_v49  ;;  %v6280_v36 = vadd.f32 %v2724_v12, %v5778_v50  ;;  %v6283_v23 = vadd.f32 %v2727_v37, %v5795_v44  ;;  %1596 = vst.msk [vmem:[%s5273_s16 + $0xcc] sm:$0xf] %vm1544_vm2, %v3988_v28  ;;  %1593 = vst.msk [vmem:[%s5273_s16 + $0xc0] sm:$0xf] %vm1544_vm2, %v3985_v40  ;;  %v6307_v19 = vpop.f32.mrf.mxu1  ;;  %v7345_v12 = vld [vmem:[#allocation20_spill] sm:$0xff]  ;;  %v4244_v37 = vld [vmem:[%s4406_s26 + $0x190] sm:$0xff] }
 0x231   : > { %v1149_v59 = vadd.f32 %v1064_v15, %v443_v35  ;;  %1595 = vst.msk [vmem:[%s5273_s16 + $0xc8] sm:$0xf] %vm1544_vm2, %v3987_v53  ;;  %v6296_v49 = vadd.f32 %v2726_v1, %v5792_v60  ;;  %v6299_v50 = vadd.f32 %v2729_v51, %v5838_v18  ;;  %v6302_v44 = vadd.f32 %v2728_v25, %v5798_v47  ;;  %v4245_v18 = vld [vmem:[%s4406_s26 + $0x1b8] sm:$0xff]  ;;  %v444_v47 = vld [vmem:[#allocation2 + $0x1d0] sm:$0xff]  ;;  %v442_v1 = vld [vmem:[#allocation2 + $0x1c0] sm:$0xff] }
 0x232   : > { %7339 = vst [vmem:[#allocation41_spill] sm:$0xff] %v6277_v2  ;;  %7340 = vst [vmem:[#allocation40_spill] sm:$0xff] %v6283_v23  ;;  %v6305_v7 = vadd.f32 %v2731_v32, %v5844_v58  ;;  %v2730_v43 = vmul.f32 %v6093_v3, %v7343_v17  ;;  %v2733_v26 = vmul.f32 %v6093_v3, %v7344_v5  ;;  %v7346_v58 = vld [vmem:[#allocation21_spill] sm:$0xff]  ;;  %v445_v40 = vld [vmem:[#allocation2 + $0x1d8] sm:$0xff]  ;;  %v1077_v53 = vpop.f32.mrf.mxu1 }
 0x233   : > { %7341 = vst [vmem:[#allocation43_spill] sm:$0xff] %v6299_v50  ;;  %v2732_v60 = vmul.f32 %v6093_v3, %v7345_v12  ;;  %3044 = vperm.xlu1 %4153, %v4244_v37   ;;  %3064 = vperm.xlu0 %4152, %v4245_v18   ;;  %1214 = vst.msk [vmem:[#allocation2 + $0x1c8] sm:$0xff] %vm321_vm1, %v1149_v59  ;;  %v2735_v51 = vmul.f32 %v6093_v3, %v7346_v58  ;;  %v7347_v25 = vld [vmem:[#allocation33_spill] sm:$0xff]  ;;  %v7348_v35 = vld [vmem:[#allocation34_spill] sm:$0xff]  ;;  %v6329_v37 = vpop.permute.xlu1 %2680  ;;  %v6331_v18 = vpop.permute.xlu0 %2692 }
 0x234   : > { %7342 = vst [vmem:[#allocation42_spill] sm:$0xff] %v6305_v7  ;;  %v2734_v32 = vmul.f32 %v6093_v3, %v7347_v25  ;;  %v1150_v27 = vadd.f32 %v6224_v29, %v444_v47  ;;  %v1148_v28 = vadd.f32 %v1061_v31, %v442_v1  ;;  %v2737_v15 = vmul.f32 %v6093_v3, %v7348_v35  ;;  %v7349_v17 = vld [vmem:[#allocation46_spill] sm:$0xff]  ;;  %v7350_v12 = vld [vmem:[#allocation47_spill] sm:$0xff]  ;;  %v1277_v58 = vld [vmem:[#allocation2 + $0x1a8] sm:$0xff]  ;;  %v4108_v23 = vpop.f32.mrf.mxu1 }
 0x235   : > { %v2736_v5 = vmul.f32 %v6093_v3, %v7349_v17  ;;  %v2739_v59 = vmul.f32 %v6093_v3, %v7350_v12  ;;  %v1151_v29 = vadd.f32 %v4104_v61, %v445_v40  ;;  %v7351_v31 = vld [vmem:[#allocation57_spill] sm:$0xff]  ;;  %v7352_v1 = vld [vmem:[#allocation58_spill] sm:$0xff]  ;;  %v7353_v35 = vld [vmem:[#allocation64_spill] sm:$0xff]  ;;  %v3990_v12 = vpack.c.bf16 %v1277_v58, %v1277_v58 }
 0x236   : > { %v2738_v47 = vmul.f32 %v6093_v3, %v7351_v31  ;;  %v2741_v25 = vmul.f32 %v6093_v3, %v7352_v1  ;;  %v2740_v17 = vmul.f32 %v6093_v3, %v7353_v35  ;;  %1215 = vst.msk [vmem:[#allocation2 + $0x1d0] sm:$0xff] %vm321_vm1, %v1150_v27  ;;  %1213 = vst.msk [vmem:[#allocation2 + $0x1c0] sm:$0xff] %vm321_vm1, %v1148_v28  ;;  %v1279_v7 = vld [vmem:[#allocation2 + $0x1b8] sm:$0xff]  ;;  %v1276_v50 = vld [vmem:[#allocation2 + $0x1a0] sm:$0xff] }
 0x237   : > { %v1278_v2 = vld [vmem:[#allocation2 + $0x1b0] sm:$0xff]  ;;  %v4247_v40 = vld [vmem:[%s4406_s26 + $0x1c8] sm:$0xff]  ;;  %1216 = vst.msk [vmem:[#allocation2 + $0x1d8] sm:$0xff] %vm321_vm1, %v1151_v29  ;;  %v3992_v31 = vpack.c.bf16 %v1279_v7, %v1279_v7  ;;  %v3989_v1 = vpack.c.bf16 %v1276_v50, %v1276_v50  ;;  %v6345_v27 = vadd.f32 %v2730_v43, %v5841_v56  ;;  %v6348_v28 = vadd.f32 %v2733_v26, %v5854_v24  ;;  %v447_v29 = vld [vmem:[#allocation2 + $0x1e8] sm:$0xff]  ;;  %v1080_v7 = vpop.f32.mrf.mxu1 }
 0x238   : > { %v4246_v61 = vld [vmem:[%s4406_s26 + $0x1a0] sm:$0xff]  ;;  %3072 = vperm.xlu0 %4152, %v4247_v40   ;;  %v3991_v35 = vpack.c.bf16 %v1278_v2, %v1278_v2  ;;  %v6351_v58 = vadd.f32 %v2732_v60, %v5847_v52  ;;  %1598 = vst.msk [vmem:[%s5273_s16 + $0xd4] sm:$0xf] %vm1544_vm2, %v3990_v12  ;;  %v6359_v50 = vadd.f32 %v2734_v32, %v5857_v20  ;;  %v6367_v52 = vpop.permute.xlu1 %2688  ;;  %v6369_v2 = vpop.permute.xlu0 %2700  ;;  %v4248_v40 = vld [vmem:[%s4406_s26 + $0x1b0] sm:$0xff]  ;;  %v7379_v46 = vld [vmem:[#allocation22_spill] sm:$0xff] }
 0x239   : > { %3052 = vperm.xlu1 %4153, %v4246_v61   ;;  %v6354_v61 = vadd.f32 %v2735_v51, %v5860_v63  ;;  %v6362_v56 = vadd.f32 %v2737_v15, %v5874_v10  ;;  %v6365_v24 = vadd.f32 %v2736_v5, %v5871_v21  ;;  %1600 = vst.msk [vmem:[%s5273_s16 + $0xdc] sm:$0xf] %vm1544_vm2, %v3992_v31  ;;  %1597 = vst.msk [vmem:[%s5273_s16 + $0xd0] sm:$0xf] %vm1544_vm2, %v3989_v1  ;;  %v7357_v10 = vld [vmem:[#allocation10_spill] sm:$0xff]  ;;  %v7359_v21 = vld [vmem:[#allocation13_spill] sm:$0xff] }
 0x23a   : > { %v1153_v63 = vadd.f32 %v1080_v7, %v447_v29  ;;  %1599 = vst.msk [vmem:[%s5273_s16 + $0xd8] sm:$0xf] %vm1544_vm2, %v3991_v35  ;;  %v6378_v20 = vadd.f32 %v2739_v59, %v5884_v8  ;;  %v6381_v43 = vadd.f32 %v2738_v47, %v7357_v10  ;;  %v6384_v26 = vadd.f32 %v2741_v25, %v7359_v21  ;;  %v7361_v60 = vld [vmem:[#allocation65_spill] sm:$0xff]  ;;  %v446_v15 = vld [vmem:[#allocation2 + $0x1e0] sm:$0xff]  ;;  %v4249_v31 = vld [vmem:[%s4406_s26 + $0x1d8] sm:$0xff] }
 0x23b   : > { %7354 = vst [vmem:[#allocation45_spill] sm:$0xff] %v6354_v61  ;;  %7355 = vst [vmem:[#allocation44_spill] sm:$0xff] %v6362_v56  ;;  %v2743_v51 = vmul.f32 %v6093_v3, %v7361_v60  ;;  %v448_v32 = vld [vmem:[#allocation2 + $0x1f0] sm:$0xff]  ;;  %v7362_v5 = vld [vmem:[#allocation75_spill] sm:$0xff]  ;;  %v1152_v59 = vadd.f32 %v1077_v53, %v446_v15 }
 0x23c   : > { %7356 = vst [vmem:[#allocation96_spill] sm:$0xff] %v6378_v20  ;;  %7358 = vst [vmem:[#allocation49_spill] sm:$0xff] %v6381_v43  ;;  %v6389_v12 = vadd.f32 %v2740_v17, %v7362_v5  ;;  %3080 = vperm.xlu0 %4152, %v4249_v31   ;;  %v1154_v8 = vadd.f32 %v6307_v19, %v448_v32  ;;  %v7364_v47 = vld [vmem:[#allocation66_spill] sm:$0xff]  ;;  %v7365_v1 = vld [vmem:[#allocation67_spill] sm:$0xff]  ;;  %v6410_v15 = vpop.permute.xlu1 %2696 }
 0x23d   : > { %7360 = vst [vmem:[#allocation97_spill] sm:$0xff] %v6384_v26  ;;  %3060 = vperm.xlu1 %4153, %v4248_v40   ;;  %1218 = vst.msk [vmem:[#allocation2 + $0x1e8] sm:$0xff] %vm321_vm1, %v1153_v63  ;;  %v2742_v25 = vmul.f32 %v6093_v3, %v7364_v47  ;;  %v2745_v35 = vmul.f32 %v6093_v3, %v7365_v1  ;;  %v7366_v29 = vld [vmem:[#allocation68_spill] sm:$0xff]  ;;  %v7367_v7 = vld [vmem:[#allocation69_spill] sm:$0xff]  ;;  %v6412_v40 = vpop.permute.xlu0 %2708 }
 0x23e   : > { %7363 = vst [vmem:[#allocation98_spill] sm:$0xff] %v6389_v12  ;;  %v2744_v17 = vmul.f32 %v6093_v3, %v7366_v29  ;;  %v2747_v10 = vmul.f32 %v6093_v3, %v7367_v7  ;;  %v449_v21 = vld [vmem:[#allocation2 + $0x1f8] sm:$0xff]  ;;  %v7369_v19 = vld [vmem:[#allocation71_spill] sm:$0xff]  ;;  %v7370_v63 = vld [vmem:[#allocation72_spill] sm:$0xff] }
 0x23f   : > { %v7368_v60 = vld [vmem:[#allocation70_spill] sm:$0xff]  ;;  %v2749_v53 = vmul.f32 %v6093_v3, %v7369_v19  ;;  %v2748_v32 = vmul.f32 %v6093_v3, %v7370_v63  ;;  %7371 = vst [vmem:[#allocation99_spill] sm:$0xff] %v6412_v40  ;;  %1219 = vst.msk [vmem:[#allocation2 + $0x1f0] sm:$0xff] %vm321_vm1, %v1154_v8  ;;  %v1281_v31 = vld [vmem:[#allocation2 + $0x1c8] sm:$0xff]  ;;  %v1155_v47 = vadd.f32 %v4108_v23, %v449_v21  ;;  %v6427_v23 = vsel %vm1624_vm10, 1.0, %v7288_v22 }
 0x240   : > { %v2746_v5 = vmul.f32 %v6093_v3, %v7368_v60  ;;  %1217 = vst.msk [vmem:[#allocation2 + $0x1e0] sm:$0xff] %vm321_vm1, %v1152_v59  ;;  %v7372_v1 = vld [vmem:[#allocation73_spill] sm:$0xff]  ;;  %v7373_v7 = vld [vmem:[#allocation74_spill] sm:$0xff]  ;;  %v7374_v19 = vld [vmem:[#allocation12_spill] sm:$0xff]  ;;  %v3994_v26 = vpack.c.bf16 %v1281_v31, %v1281_v31  ;;  %v2752_v22 = vmul.f32 %v6093_v3, %v7379_v46 }
 0x241   : > { %v2751_v29 = vmul.f32 %v6093_v3, %v7372_v1  ;;  %v2750_v60 = vmul.f32 %v6093_v3, %v7373_v7  ;;  %v2753_v63 = vmul.f32 %v6093_v3, %v7374_v19  ;;  %v1283_v20 = vld [vmem:[#allocation2 + $0x1d8] sm:$0xff]  ;;  %v1280_v56 = vld [vmem:[#allocation2 + $0x1c0] sm:$0xff]  ;;  %v1282_v40 = vld [vmem:[#allocation2 + $0x1d0] sm:$0xff]  ;;  %1220 = vst.msk [vmem:[#allocation2 + $0x1f8] sm:$0xff] %vm321_vm1, %v1155_v47 }
 0x242   : > { %v4250_v12 = vld [vmem:[%s4406_s26 + $0x1c0] sm:$0xff]  ;;  %v4251_v8 = vld [vmem:[%s4406_s26 + $0x1e8] sm:$0xff]  ;;  %v3996_v59 = vpack.c.bf16 %v1283_v20, %v1283_v20  ;;  %v3993_v21 = vpack.c.bf16 %v1280_v56, %v1280_v56  ;;  %v3995_v31 = vpack.c.bf16 %v1282_v40, %v1282_v40  ;;  %v7375_v1 = vld [vmem:[#allocation16_spill] sm:$0xff]  ;;  %1602 = vst.msk [vmem:[%s5273_s16 + $0xe4] sm:$0xf] %vm1544_vm2, %v3994_v26 }
 0x243   : > { %3068 = vperm.xlu1 %4153, %v4250_v12   ;;  %3088 = vperm.xlu0 %4152, %v4251_v8   ;;  %v6431_v7 = vadd.f32 %v2743_v51, %v7375_v1  ;;  %v7376_v19 = vld [vmem:[#allocation17_spill] sm:$0xff]  ;;  %v7377_v8 = vld [vmem:[#allocation18_spill] sm:$0xff]  ;;  %v7380_v43 = vld [vmem:[#allocation19_spill] sm:$0xff]  ;;  %v6454_v1 = vpop.permute.xlu1 %2704 }
 0x244   : > { %v6434_v12 = vadd.f32 %v2742_v25, %v7376_v19  ;;  %v6437_v61 = vadd.f32 %v2745_v35, %v7377_v8  ;;  %v6444_v47 = vadd.f32 %v2744_v17, %v7380_v43  ;;  %v7381_v20 = vld [vmem:[#allocation25_spill] sm:$0xff]  ;;  %v7383_v51 = vld [vmem:[#allocation23_spill] sm:$0xff]  ;;  %v7384_v25 = vld [vmem:[#allocation76_spill] sm:$0xff]  ;;  %1604 = vst.msk [vmem:[%s5273_s16 + $0xec] sm:$0xf] %vm1544_vm2, %v3996_v59 }
 0x245   : > { %v6447_v56 = vadd.f32 %v2747_v10, %v7381_v20  ;;  %v6450_v40 = vadd.f32 %v2746_v5, %v7383_v51  ;;  %v2755_v35 = vmul.f32 %v6093_v3, %v7384_v25  ;;  %1601 = vst.msk [vmem:[%s5273_s16 + $0xe0] sm:$0xf] %vm1544_vm2, %v3993_v21  ;;  %1603 = vst.msk [vmem:[%s5273_s16 + $0xe8] sm:$0xf] %vm1544_vm2, %v3995_v31  ;;  %v7385_v43 = vld [vmem:[#allocation77_spill] sm:$0xff]  ;;  %v7387_v17 = vld [vmem:[#allocation3_spill] sm:$0xff]  ;;  %v2845_v20 = vpop.permute.xlu0 %2844 }
 0x246   : > { %7378 = vst [vmem:[#allocation100_spill] sm:$0xff] %v6437_v61  ;;  %v6463_v26 = vadd.f32 %v2749_v53, %v7385_v43  ;;  %v6466_v10 = vadd.f32 %v2748_v32, %v7387_v17  ;;  %v7389_v5 = vld [vmem:[#allocation78_spill] sm:$0xff]  ;;  %v7390_v8 = vld [vmem:[#allocation79_spill] sm:$0xff]  ;;  %v7391_v51 = vld [vmem:[#allocation80_spill] sm:$0xff] }
 0x247   : > { %7382 = vst [vmem:[#allocation101_spill] sm:$0xff] %v6447_v56  ;;  %v2754_v19 = vmul.f32 %v6093_v3, %v7389_v5  ;;  %v2757_v46 = vmul.f32 %v6093_v3, %v7390_v8  ;;  %v6473_v25 = vadd.f32 %v2751_v29, %v7391_v51  ;;  %v7393_v59 = vld [vmem:[#allocation4_spill] sm:$0xff]  ;;  %v7395_v31 = vld [vmem:[#allocation82_spill] sm:$0xff]  ;;  %v4252_v53 = vld [vmem:[%s4406_s26 + $0x1d0] sm:$0xff] }
 0x248   : > { %7386 = vst [vmem:[#allocation102_spill] sm:$0xff] %v6463_v26  ;;  %7388 = vst [vmem:[#allocation103_spill] sm:$0xff] %v6466_v10  ;;  %v6476_v21 = vadd.f32 %v2750_v60, %v7393_v59  ;;  %v6479_v56 = vadd.f32 %v2753_v63, %v7395_v31  ;;  %3076 = vperm.xlu1 %4153, %v4252_v53   ;;  %v4253_v32 = vld [vmem:[%s4406_s26 + $0x1f8] sm:$0xff]  ;;  %v7397_v43 = vld [vmem:[#allocation81_spill] sm:$0xff]  ;;  %v3099_v53 = vmul.f32 %v6427_v23, %v2845_v20 }
 0x249   : > { %7392 = vst [vmem:[#allocation104_spill] sm:$0xff] %v6473_v25  ;;  %3096 = vperm.xlu0 %4152, %v4253_v32   ;;  %v6484_v17 = vadd.f32 %v2752_v22, %v7397_v43  ;;  %v7399_v5 = vld [vmem:[#allocation26_spill] sm:$0xff]  ;;  %v7400_v26 = vld [vmem:[#allocation29_spill] sm:$0xff]  ;;  %v7401_v51 = vld [vmem:[#allocation32_spill] sm:$0xff]  ;;  %v2760_v22 = vmul.f32 %v6093_v3, %v6121_v34  ;;  %v6500_v32 = vpop.permute.xlu1 %2712  ;;  %v2762_v20 = vmul.f32 %v6093_v3, %v6165_v16 }
 0x24a   : > { %7394 = vst [vmem:[#allocation5_spill] sm:$0xff] %v6476_v21  ;;  %7396 = vst [vmem:[#allocation8_spill] sm:$0xff] %v6479_v56  ;;  %v2756_v8 = vmul.f32 %v6093_v3, %v7399_v5  ;;  %v2759_v29 = vmul.f32 %v6093_v3, %v7400_v26  ;;  %v2758_v60 = vmul.f32 %v6093_v3, %v7401_v51  ;;  %v7402_v59 = vld [vmem:[#allocation84_spill] sm:$0xff]  ;;  %v7404_v63 = vld [vmem:[#allocation37_spill] sm:$0xff] }
 0x24b   : > { %7398 = vst [vmem:[#allocation48_spill] sm:$0xff] %v6484_v17  ;;  %v6493_v25 = vadd.f32 %v2755_v35, %v7402_v59  ;;  %v2761_v31 = vmul.f32 %v6093_v3, %v7404_v63  ;;  %7405 = vst [vmem:[#allocation50_spill] sm:$0xff] %v6500_v32  ;;  %v1285_v43 = vld [vmem:[#allocation2 + $0x1e8] sm:$0xff]  ;;  %v7406_v5 = vld [vmem:[#allocation83_spill] sm:$0xff]  ;;  %v2763_v35 = vmul.f32 %v6093_v3, %v6123_v39  ;;  %v2857_v59 = vpop.permute.xlu0 %2856 }
 0x24c   : > { %v6503_v26 = vadd.f32 %v2754_v19, %v7406_v5  ;;  %v7408_v56 = vld [vmem:[#allocation27_spill] sm:$0xff]  ;;  %v3998_v63 = vpack.c.bf16 %v1285_v43, %v1285_v43  ;;  %v1286_v34 = vld [vmem:[#allocation2 + $0x1f0] sm:$0xff]  ;;  %v2765_v19 = vmul.f32 %v6093_v3, %v6167_v0  ;;  %v7410_v32 = vld [vmem:[#allocation24_spill] sm:$0xff] }
 0x24d   : > { %7403 = vst [vmem:[#allocation51_spill] sm:$0xff] %v6493_v25  ;;  %v6506_v51 = vadd.f32 %v2757_v46, %v7408_v56  ;;  %v1287_v25 = vld [vmem:[#allocation2 + $0x1f8] sm:$0xff]  ;;  %v1284_v17 = vld [vmem:[#allocation2 + $0x1e0] sm:$0xff]  ;;  %v4254_v5 = vld [vmem:[%s4406_s26 + $0x1e0] sm:$0xff]  ;;  %v3999_v16 = vpack.c.bf16 %v1286_v34, %v1286_v34  ;;  %v2773_v34 = vmul.f32 %v6093_v3, %v6331_v18 }
 0x24e   : > { %7407 = vst [vmem:[#allocation53_spill] sm:$0xff] %v6503_v26  ;;  %3084 = vperm.xlu1 %4153, %v4254_v5   ;;  %v4000_v56 = vpack.c.bf16 %v1287_v25, %v1287_v25  ;;  %v3997_v46 = vpack.c.bf16 %v1284_v17, %v1284_v17  ;;  %v7411_v39 = vld [vmem:[#allocation31_spill] sm:$0xff]  ;;  %v7412_v26 = vld [vmem:[#allocation28_spill] sm:$0xff]  ;;  %1606 = vst.msk [vmem:[%s5273_s16 + $0xf4] sm:$0xf] %vm1544_vm2, %v3998_v63  ;;  %v3163_v25 = vadd.f32 %v3099_v53, %v6201_v6 }
 0x24f   : > { %7409 = vst [vmem:[#allocation52_spill] sm:$0xff] %v6506_v51  ;;  %v6516_v51 = vadd.f32 %v2756_v8, %v7410_v32  ;;  %v6519_v43 = vadd.f32 %v2759_v29, %v7411_v39  ;;  %v6522_v21 = vadd.f32 %v2758_v60, %v7412_v26  ;;  %v7413_v61 = vld [vmem:[#allocation35_spill] sm:$0xff]  ;;  %v7414_v0 = vld [vmem:[#allocation30_spill] sm:$0xff]  ;;  %v3102_v17 = vmul.f32 %v6427_v23, %v2857_v59  ;;  %v2865_v6 = vpop.permute.xlu0 %2864  ;;  %v7416_v32 = vld [vmem:[#allocation117_spill] sm:$0xff] }
 0x250   : > { %v6527_v10 = vadd.f32 %v2761_v31, %v7413_v61  ;;  %v6530_v5 = vadd.f32 %v2760_v22, %v7414_v0  ;;  %1608 = vst.msk [vmem:[%s5273_s16 + $0xfc] sm:$0xf] %vm1544_vm2, %v4000_v56  ;;  %1605 = vst.msk [vmem:[%s5273_s16 + $0xf0] sm:$0xf] %vm1544_vm2, %v3997_v46  ;;  %v6539_v8 = vadd.f32 %v2763_v35, %v6102_v54  ;;  %v2849_v31 = vpop.permute.xlu1 %2848  ;;  %v7415_v22 = vld [vmem:[#allocation36_spill] sm:$0xff]  ;;  %v4255_v35 = vld [vmem:[%s4406_s26 + $0x1f0] sm:$0xff] }
 0x251   : > { %v2764_v29 = vmul.f32 %v6093_v3, %v6203_v55  ;;  %v2767_v61 = vmul.f32 %v6093_v3, %v6205_v45  ;;  %v2766_v60 = vmul.f32 %v6093_v3, %v6247_v62  ;;  %1607 = vst.msk [vmem:[%s5273_s16 + $0xf8] sm:$0xf] %vm1544_vm2, %v3999_v16  ;;  %v6550_v53 = vadd.f32 %v2762_v20, %v7415_v22  ;;  %v4256_v20 = vld [vmem:[#allocation2] sm:$0xff]  ;;  %v7417_v46 = vld [vmem:[#allocation85_spill] sm:$0xff] }
 0x252   : > { %v6553_v26 = vadd.f32 %v2765_v19, %v7416_v32  ;;  %v2769_v54 = vmul.f32 %v6093_v3, %v6249_v13  ;;  %v3100_v55 = vmul.f32 %v6427_v23, %v2849_v31  ;;  %3092 = vperm.xlu1 %4153, %v4255_v35   ;;  %v2768_v45 = vmul.f32 %v6093_v3, %v6285_v42  ;;  %v7418_v42 = vld [vmem:[#allocation87_spill] sm:$0xff] }
 0x253   : > { %v2771_v62 = vmul.f32 %v6093_v3, %v6287_v33  ;;  %v2770_v59 = vmul.f32 %v6093_v3, %v6329_v37  ;;  %v3104_v63 = vmul.f32 %v6427_v23, %v2865_v6  ;;  %v3227_v13 = vmul.f32 %v4256_v20, %v3163_v25  ;;  %v7419_v33 = vld [vmem:[#allocation86_spill] sm:$0xff]  ;;  %v2873_v18 = vpop.permute.xlu0 %2872  ;;  %v7420_v6 = vld [vmem:[#allocation89_spill] sm:$0xff] }
 0x254   : > { %v3166_v19 = vadd.f32 %v3102_v17, %v6227_v11  ;;  %v3164_v56 = vadd.f32 %v3100_v55, %v6214_v9  ;;  %v6571_v39 = vadd.f32 %v2764_v29, %v7417_v46  ;;  %v6574_v16 = vadd.f32 %v2767_v61, %v7418_v42  ;;  %v2853_v31 = vpop.permute.xlu1 %2852  ;;  %v4257_v11 = vld [vmem:[#allocation2 + $0x8] sm:$0xff]  ;;  %v7423_v55 = vld [vmem:[#allocation90_spill] sm:$0xff] }
 0x255   : > { %v6577_v0 = vadd.f32 %v2766_v60, %v7419_v33  ;;  %v2772_v37 = vmul.f32 %v6093_v3, %v6367_v52  ;;  %v6582_v25 = vadd.f32 %v2769_v54, %v7420_v6  ;;  %v2775_v9 = vmul.f32 %v6093_v3, %v6369_v2  ;;  %v7421_v61 = vld [vmem:[#allocation88_spill] sm:$0xff]  ;;  %v7422_v60 = vld [vmem:[#allocation91_spill] sm:$0xff]  ;;  %v4258_v2 = vld [vmem:[#allocation2 + $0x18] sm:$0xff] }
 0x256   : > { %v3228_v17 = vmul.f32 %v4257_v11, %v3164_v56  ;;  %v3101_v29 = vmul.f32 %v6427_v23, %v2853_v31  ;;  %v6588_v22 = vadd.f32 %v2768_v45, %v7421_v61  ;;  %v6591_v32 = vadd.f32 %v2771_v62, %v7422_v60  ;;  %v7425_v33 = vld [vmem:[#allocation92_spill] sm:$0xff] }
 0x257   : > { %v6594_v52 = vadd.f32 %v2770_v59, %v7423_v55  ;;  %v3168_v35 = vadd.f32 %v3104_v63, %v6266_v57  ;;  %v6598_v54 = vadd.f32 %v2773_v34, %v6181_v30  ;;  %v3424_v46 = vmul.f32 %v4256_v20, %v3227_v13  ;;  %v2881_v61 = vpop.permute.xlu0 %2880 }
 0x258   : > { %v3230_v42 = vmul.f32 %v4258_v2, %v3166_v19  ;;  %v3425_v56 = vmul.f32 %v4257_v11, %v3228_v17  ;;  %v6601_v31 = vadd.f32 %v2772_v37, %v7425_v33  ;;  %v3292_v45 = vsel %vm321_vm1, %v3228_v17, 0.0  ;;  %v2861_v59 = vpop.permute.xlu1 %2860 }
 0x259   : > { %7424 = vst [vmem:[#allocation55_spill] sm:$0xff] %v6598_v54  ;;  %v3165_v62 = vadd.f32 %v3101_v29, %v6217_v14  ;;  %v3106_v6 = vmul.f32 %v6427_v23, %v2873_v18  ;;  %v6607_v57 = vadd.f32 %v2775_v9, %v6187_v41  ;;  %v6611_v30 = vmul.f32 %v6093_v3, %v6410_v15  ;;  %v4259_v14 = vld [vmem:[#allocation2 + $0x28] sm:$0xff]  ;;  %v4260_v18 = vld [vmem:[#allocation2 + $0x10] sm:$0xff]  ;;  %v7427_v29 = vld [vmem:[#allocation38_spill] sm:$0xff] }
 0x25a   : > { %v3103_v63 = vmul.f32 %v6427_v23, %v2861_v59  ;;  %v3108_v34 = vmul.f32 %v6427_v23, %v2881_v61  ;;  %v3291_v20 = vsel %vm321_vm1, %v3227_v13, 0.0  ;;  %v3489_v19 = vsel %vm321_vm1, %v3425_v56, 0.0 }
 0x25b   : > { %7426 = vst [vmem:[#allocation54_spill] sm:$0xff] %v6607_v57  ;;  %v3232_v37 = vmul.f32 %v4259_v14, %v3168_v35  ;;  %v3229_v11 = vmul.f32 %v4260_v18, %v3165_v62  ;;  %v3488_v17 = vsel %vm321_vm1, %v3424_v46, 0.0  ;;  %v3427_v41 = vmul.f32 %v4258_v2, %v3230_v42  ;;  %v2889_v61 = vpop.permute.xlu0 %2888  ;;  %v4261_v35 = vld [vmem:[#allocation2 + $0x20] sm:$0xff] }
 0x25c   : > { %v3293_v9 = vadd.f32 %v3292_v45, %v3291_v20  ;;  %v3167_v60 = vadd.f32 %v3103_v63, %v7427_v29  ;;  %v3170_v33 = vadd.f32 %v3106_v6, %v6272_v48  ;;  %v3172_v59 = vadd.f32 %v3108_v34, %v6280_v36  ;;  %v2869_v13 = vpop.permute.xlu1 %2868  ;;  %v4262_v34 = vld [vmem:[#allocation2 + $0x38] sm:$0xff] }
 0x25d   : > { %v3294_v15 = vsel %vm321_vm1, %v3229_v11, 0.0  ;;  %v3426_v55 = vmul.f32 %v4260_v18, %v3229_v11  ;;  %v3490_v56 = vadd.f32 %v3489_v19, %v3488_v17  ;;  %v3105_v62 = vmul.f32 %v6427_v23, %v2869_v13  ;;  %v4263_v11 = vld [vmem:[#allocation2 + $0x48] sm:$0xff]  ;;  %v4264_v13 = vld [vmem:[#allocation2 + $0x30] sm:$0xff] }
 0x25e   : > { %v3295_v57 = vadd.f32 %v3294_v15, %v3293_v9  ;;  %v3231_v54 = vmul.f32 %v4261_v35, %v3167_v60  ;;  %v3296_v46 = vsel %vm321_vm1, %v3230_v42, 0.0  ;;  %v3429_v2 = vmul.f32 %v4259_v14, %v3232_v37 }
 0x25f   : > { %v3491_v45 = vsel %vm321_vm1, %v3426_v55, 0.0  ;;  %v3110_v63 = vmul.f32 %v6427_v23, %v2889_v61  ;;  %v3493_v6 = vsel %vm321_vm1, %v3427_v41, 0.0  ;;  %v3234_v19 = vmul.f32 %v4262_v34, %v3170_v33  ;;  %v2897_v42 = vpop.permute.xlu0 %2896 }
 0x260   : > { %v3492_v20 = vadd.f32 %v3491_v45, %v3490_v56  ;;  %v3297_v18 = vadd.f32 %v3296_v46, %v3295_v57  ;;  %v3298_v48 = vsel %vm321_vm1, %v3231_v54, 0.0  ;;  %v3428_v36 = vmul.f32 %v4261_v35, %v3231_v54  ;;  %v2877_v29 = vpop.permute.xlu1 %2876 }
 0x261   : > { %v3236_v17 = vmul.f32 %v4263_v11, %v3172_v59  ;;  %v3169_v9 = vadd.f32 %v3105_v62, %v6263_v4  ;;  %v3107_v55 = vmul.f32 %v6427_v23, %v2877_v29  ;;  %v3300_v57 = vsel %vm321_vm1, %v3232_v37, 0.0 }
 0x262   : > { %v3299_v14 = vadd.f32 %v3298_v48, %v3297_v18  ;;  %v3494_v60 = vadd.f32 %v3493_v6, %v3492_v20  ;;  %v3495_v15 = vsel %vm321_vm1, %v3428_v36, 0.0  ;;  %v3174_v41 = vadd.f32 %v3110_v63, %v6296_v49  ;;  %v4265_v49 = vld [vmem:[#allocation2 + $0x40] sm:$0xff] }
 0x263   : > { %v3233_v54 = vmul.f32 %v4264_v13, %v3169_v9  ;;  %v3112_v33 = vmul.f32 %v6427_v23, %v2897_v42  ;;  %v3497_v59 = vsel %vm321_vm1, %v3429_v2, 0.0  ;;  %v3171_v56 = vadd.f32 %v3107_v55, %v6269_v38  ;;  %v2905_v37 = vpop.permute.xlu0 %2904  ;;  %v4266_v2 = vld [vmem:[#allocation2 + $0x58] sm:$0xff]  ;;  %v7429_v55 = vld [vmem:[#allocation41_spill] sm:$0xff] }
 0x264   : > { %v3496_v61 = vadd.f32 %v3495_v15, %v3494_v60  ;;  %v3301_v4 = vadd.f32 %v3300_v57, %v3299_v14  ;;  %v3304_v35 = vsel %vm321_vm1, %v3234_v19, 0.0  ;;  %v3431_v62 = vmul.f32 %v4262_v34, %v3234_v19  ;;  %v2885_v20 = vpop.permute.xlu1 %2884  ;;  %v7428_v60 = vld [vmem:[#allocation93_spill] sm:$0xff] }
 0x265   : > { %v3302_v46 = vsel %vm321_vm1, %v3233_v54, 0.0  ;;  %v3430_v45 = vmul.f32 %v4264_v13, %v3233_v54  ;;  %v3433_v18 = vmul.f32 %v4263_v11, %v3236_v17  ;;  %v3235_v63 = vmul.f32 %v4265_v49, %v3171_v56 }
 0x266   : > { %v3303_v48 = vadd.f32 %v3302_v46, %v3301_v4  ;;  %v3498_v36 = vadd.f32 %v3497_v59, %v3496_v61  ;;  %v3238_v9 = vmul.f32 %v4266_v2, %v3174_v41  ;;  %v3176_v29 = vadd.f32 %v3112_v33, %v6302_v44  ;;  %v4268_v46 = vld [vmem:[#allocation2 + $0x50] sm:$0xff] }
 0x267   : > { %v3499_v6 = vsel %vm321_vm1, %v3430_v45, 0.0  ;;  %v3109_v38 = vmul.f32 %v6427_v23, %v2885_v20  ;;  %v3306_v19 = vsel %vm321_vm1, %v3235_v63, 0.0  ;;  %v3432_v14 = vmul.f32 %v4265_v49, %v3235_v63  ;;  %v2913_v41 = vpop.permute.xlu0 %2912 }
 0x268   : > { %v3500_v42 = vadd.f32 %v3499_v6, %v3498_v36  ;;  %v3305_v34 = vadd.f32 %v3304_v35, %v3303_v48  ;;  %v6644_v11 = vadd.f32 %v6611_v30, %v7428_v60  ;;  %v3501_v15 = vsel %vm321_vm1, %v3431_v62, 0.0  ;;  %v2893_v54 = vpop.permute.xlu1 %2892  ;;  %v4267_v30 = vld [vmem:[#allocation2 + $0x68] sm:$0xff] }
 0x269   : > { %v3173_v57 = vadd.f32 %v3109_v38, %v7429_v55  ;;  %v3114_v13 = vmul.f32 %v6427_v23, %v2905_v37  ;;  %v3503_v59 = vsel %vm321_vm1, %v3432_v14, 0.0  ;;  %v3111_v61 = vmul.f32 %v6427_v23, %v2893_v54  ;;  %v7430_v37 = vld [vmem:[#allocation40_spill] sm:$0xff] }
 0x26a   : > { %v3307_v44 = vadd.f32 %v3306_v19, %v3305_v34  ;;  %v3502_v33 = vadd.f32 %v3501_v15, %v3500_v42  ;;  %v3308_v4 = vsel %vm321_vm1, %v3236_v17, 0.0  ;;  %v3505_v56 = vsel %vm321_vm1, %v3433_v18, 0.0  ;;  %v4269_v19 = vld [vmem:[#allocation2 + $0x60] sm:$0xff] }
 0x26b   : > { %v3240_v35 = vmul.f32 %v4267_v30, %v3176_v29  ;;  %v3237_v62 = vmul.f32 %v4268_v46, %v3173_v57  ;;  %v3435_v45 = vmul.f32 %v4266_v2, %v3238_v9  ;;  %v3175_v36 = vadd.f32 %v3111_v61, %v7430_v37  ;;  %v2921_v17 = vpop.permute.xlu0 %2920  ;;  %v4271_v37 = vld [vmem:[#allocation2 + $0x70] sm:$0xff] }
 0x26c   : > { %v3504_v20 = vadd.f32 %v3503_v59, %v3502_v33  ;;  %v3309_v48 = vadd.f32 %v3308_v4, %v3307_v44  ;;  %v3178_v6 = vadd.f32 %v3114_v13, %v6345_v27  ;;  %v3116_v38 = vmul.f32 %v6427_v23, %v2913_v41  ;;  %v2901_v42 = vpop.permute.xlu1 %2900  ;;  %v4270_v41 = vld [vmem:[#allocation2 + $0x78] sm:$0xff]  ;;  %v7431_v59 = vld [vmem:[#allocation43_spill] sm:$0xff] }
 0x26d   : > { %v3310_v49 = vsel %vm321_vm1, %v3237_v62, 0.0  ;;  %v3434_v63 = vmul.f32 %v4268_v46, %v3237_v62  ;;  %v3312_v18 = vsel %vm321_vm1, %v3238_v9, 0.0  ;;  %v3239_v14 = vmul.f32 %v4269_v19, %v3175_v36 }
 0x26e   : > { %v3311_v34 = vadd.f32 %v3310_v49, %v3309_v48  ;;  %v3506_v29 = vadd.f32 %v3505_v56, %v3504_v20  ;;  %v3437_v2 = vmul.f32 %v4267_v30, %v3240_v35  ;;  %v3113_v15 = vmul.f32 %v6427_v23, %v2901_v42 }
 0x26f   : > { %v3507_v60 = vsel %vm321_vm1, %v3434_v63, 0.0  ;;  %v3118_v55 = vmul.f32 %v6427_v23, %v2921_v17  ;;  %v3509_v57 = vsel %vm321_vm1, %v3435_v45, 0.0  ;;  %v3314_v54 = vsel %vm321_vm1, %v3239_v14, 0.0  ;;  %v2929_v56 = vpop.permute.xlu0 %2928 }
 0x270   : > { %v3508_v27 = vadd.f32 %v3507_v60, %v3506_v29  ;;  %v3313_v13 = vadd.f32 %v3312_v18, %v3311_v34  ;;  %v3242_v44 = vmul.f32 %v4270_v41, %v3178_v6  ;;  %v3436_v9 = vmul.f32 %v4269_v19, %v3239_v14  ;;  %v2909_v4 = vpop.permute.xlu1 %2908  ;;  %v7432_v6 = vld [vmem:[#allocation42_spill] sm:$0xff] }
 0x271   : > { %v3180_v33 = vadd.f32 %v3116_v38, %v6351_v58  ;;  %v3177_v61 = vadd.f32 %v3113_v15, %v7431_v59  ;;  %v3316_v30 = vsel %vm321_vm1, %v3240_v35, 0.0  ;;  %v3115_v20 = vmul.f32 %v6427_v23, %v2909_v4  ;;  %v4272_v35 = vld [vmem:[#allocation2 + $0x88] sm:$0xff] }
 0x272   : > { %v3315_v46 = vadd.f32 %v3314_v54, %v3313_v13  ;;  %v3510_v62 = vadd.f32 %v3509_v57, %v3508_v27  ;;  %v3513_v45 = vsel %vm321_vm1, %v3437_v2, 0.0  ;;  %v3511_v48 = vsel %vm321_vm1, %v3436_v9, 0.0  ;;  %v4273_v57 = vld [vmem:[#allocation2 + $0x98] sm:$0xff]  ;;  %v4274_v13 = vld [vmem:[#allocation2 + $0x80] sm:$0xff] }
 0x273   : > { %v3241_v36 = vmul.f32 %v4271_v37, %v3177_v61  ;;  %v3182_v49 = vadd.f32 %v3118_v55, %v6359_v50  ;;  %v3179_v38 = vadd.f32 %v3115_v20, %v7432_v6  ;;  %v3120_v42 = vmul.f32 %v6427_v23, %v2929_v56  ;;  %v2937_v14 = vpop.permute.xlu0 %2936  ;;  %v4275_v6 = vld [vmem:[#allocation2 + $0xa8] sm:$0xff] }
 0x274   : > { %v3512_v63 = vadd.f32 %v3511_v48, %v3510_v62  ;;  %v3317_v58 = vadd.f32 %v3316_v30, %v3315_v46  ;;  %v3439_v17 = vmul.f32 %v4270_v41, %v3242_v44  ;;  %v3244_v18 = vmul.f32 %v4272_v35, %v3180_v33  ;;  %v2917_v19 = vpop.permute.xlu1 %2916  ;;  %v7433_v48 = vld [vmem:[#allocation49_spill] sm:$0xff] }
 0x275   : > { %v3318_v34 = vsel %vm321_vm1, %v3241_v36, 0.0  ;;  %v3438_v29 = vmul.f32 %v4271_v37, %v3241_v36  ;;  %v2776_v2 = vmul.f32 %v6093_v3, %v6454_v1  ;;  %v3320_v60 = vsel %vm321_vm1, %v3242_v44, 0.0 }
 0x276   : > { %v3319_v50 = vadd.f32 %v3318_v34, %v3317_v58  ;;  %v3514_v15 = vadd.f32 %v3513_v45, %v3512_v63  ;;  %v3246_v27 = vmul.f32 %v4273_v57, %v3182_v49  ;;  %v3243_v54 = vmul.f32 %v4274_v13, %v3179_v38  ;;  %v7434_v34 = vld [vmem:[#allocation94_spill] sm:$0xff] }
 0x277   : > { %v3515_v55 = vsel %vm321_vm1, %v3438_v29, 0.0  ;;  %v3117_v41 = vmul.f32 %v6427_v23, %v2917_v19  ;;  %v3184_v59 = vadd.f32 %v3120_v42, %v6365_v24  ;;  %v3122_v61 = vmul.f32 %v6427_v23, %v2937_v14  ;;  %v2945_v46 = vpop.permute.xlu0 %2944  ;;  %v4276_v42 = vld [vmem:[#allocation2 + $0x90] sm:$0xff] }
 0x278   : > { %v3516_v9 = vadd.f32 %v3515_v55, %v3514_v15  ;;  %v3321_v33 = vadd.f32 %v3320_v60, %v3319_v50  ;;  %v3517_v1 = vsel %vm321_vm1, %v3439_v17, 0.0  ;;  %v3441_v4 = vmul.f32 %v4272_v35, %v3244_v18  ;;  %v2925_v30 = vpop.permute.xlu1 %2924  ;;  %v7435_v19 = vld [vmem:[#allocation45_spill] sm:$0xff] }
 0x279   : > { %v3322_v44 = vsel %vm321_vm1, %v3243_v54, 0.0  ;;  %v3440_v56 = vmul.f32 %v4274_v13, %v3243_v54  ;;  %v3181_v45 = vadd.f32 %v3117_v41, %v6348_v28  ;;  %v3186_v37 = vadd.f32 %v3122_v61, %v7433_v48  ;;  %v4277_v13 = vld [vmem:[#allocation2 + $0xb8] sm:$0xff] }
 0x27a   : > { %v3323_v62 = vadd.f32 %v3322_v44, %v3321_v33  ;;  %v3518_v20 = vadd.f32 %v3517_v1, %v3516_v9  ;;  %v3324_v36 = vsel %vm321_vm1, %v3244_v18, 0.0  ;;  %v3443_v49 = vmul.f32 %v4273_v57, %v3246_v27  ;;  %v4278_v33 = vld [vmem:[#allocation2 + $0xa0] sm:$0xff] }
 0x27b   : > { %v3519_v24 = vsel %vm321_vm1, %v3440_v56, 0.0  ;;  %v3119_v63 = vmul.f32 %v6427_v23, %v2925_v30  ;;  %v3248_v38 = vmul.f32 %v4275_v6, %v3184_v59  ;;  %v3245_v17 = vmul.f32 %v4276_v42, %v3181_v45  ;;  %v2953_v50 = vpop.permute.xlu0 %2952 }
 0x27c   : > { %v3520_v58 = vadd.f32 %v3519_v24, %v3518_v20  ;;  %v3325_v35 = vadd.f32 %v3324_v36, %v3323_v62  ;;  %v6688_v29 = vadd.f32 %v2776_v2, %v7434_v34  ;;  %v3521_v28 = vsel %vm321_vm1, %v3441_v4, 0.0  ;;  %v2933_v60 = vpop.permute.xlu1 %2932  ;;  %v7436_v62 = vld [vmem:[#allocation98_spill] sm:$0xff]  ;;  %v4279_v34 = vld [vmem:[#allocation2 + $0xb0] sm:$0xff] }
 0x27d   : > { %v3183_v14 = vadd.f32 %v3119_v63, %v7435_v19  ;;  %v3124_v18 = vmul.f32 %v6427_v23, %v2945_v46  ;;  %v3326_v15 = vsel %vm321_vm1, %v3245_v17, 0.0  ;;  %v3442_v55 = vmul.f32 %v4276_v42, %v3245_v17 }
 0x27e   : > { %v3522_v57 = vadd.f32 %v3521_v28, %v3520_v58  ;;  %v3250_v54 = vmul.f32 %v4277_v13, %v3186_v37  ;;  %v3328_v41 = vsel %vm321_vm1, %v3246_v27, 0.0  ;;  %v3525_v9 = vsel %vm321_vm1, %v3443_v49, 0.0  ;;  %v7437_v49 = vld [vmem:[#allocation44_spill] sm:$0xff] }
 0x27f   : > { %v3327_v2 = vadd.f32 %v3326_v15, %v3325_v35  ;;  %v3247_v59 = vmul.f32 %v4278_v33, %v3183_v14  ;;  %v3445_v61 = vmul.f32 %v4275_v6, %v3248_v38  ;;  %v3523_v1 = vsel %vm321_vm1, %v3442_v55, 0.0  ;;  %v2961_v27 = vpop.permute.xlu0 %2960 }
 0x280   : > { %v3121_v4 = vmul.f32 %v6427_v23, %v2933_v60  ;;  %v3126_v44 = vmul.f32 %v6427_v23, %v2953_v50  ;;  %v3524_v56 = vadd.f32 %v3523_v1, %v3522_v57  ;;  %v3188_v20 = vadd.f32 %v3124_v18, %v7436_v62  ;;  %v2941_v45 = vpop.permute.xlu1 %2940  ;;  %v7438_v50 = vld [vmem:[#allocation96_spill] sm:$0xff] }
 0x281   : > { %v3329_v30 = vadd.f32 %v3328_v41, %v3327_v2  ;;  %v3330_v46 = vsel %vm321_vm1, %v3247_v59, 0.0  ;;  %v3332_v48 = vsel %vm321_vm1, %v3248_v38, 0.0  ;;  %v3447_v37 = vmul.f32 %v4277_v13, %v3250_v54  ;;  %v4280_v38 = vld [vmem:[#allocation2 + $0xc8] sm:$0xff]  ;;  %v4281_v41 = vld [vmem:[#allocation2 + $0xd8] sm:$0xff] }
 0x282   : > { %v3444_v36 = vmul.f32 %v4278_v33, %v3247_v59  ;;  %v3185_v24 = vadd.f32 %v3121_v4, %v7437_v49  ;;  %v3526_v58 = vadd.f32 %v3525_v9, %v3524_v56  ;;  %v3190_v6 = vadd.f32 %v3126_v44, %v6434_v12  ;;  %v4282_v44 = vld [vmem:[#allocation2 + $0xc0] sm:$0xff] }
 0x283   : > { %v3331_v63 = vadd.f32 %v3330_v46, %v3329_v30  ;;  %v3123_v42 = vmul.f32 %v6427_v23, %v2941_v45  ;;  %v3529_v17 = vsel %vm321_vm1, %v3445_v61, 0.0  ;;  %v3128_v19 = vmul.f32 %v6427_v23, %v2961_v27  ;;  %v2969_v57 = vpop.permute.xlu0 %2968  ;;  %v7439_v46 = vld [vmem:[#allocation97_spill] sm:$0xff] }
 0x284   : > { %v3527_v35 = vsel %vm321_vm1, %v3444_v36, 0.0  ;;  %v3249_v28 = vmul.f32 %v4279_v34, %v3185_v24  ;;  %v3252_v18 = vmul.f32 %v4280_v38, %v3188_v20  ;;  %v2949_v55 = vpop.permute.xlu1 %2948  ;;  %v3254_v9 = vmul.f32 %v4281_v41, %v3190_v6 }
 0x285   : > { %v3528_v14 = vadd.f32 %v3527_v35, %v3526_v58  ;;  %v3333_v60 = vadd.f32 %v3332_v48, %v3331_v63  ;;  %v3187_v15 = vadd.f32 %v3123_v42, %v7438_v50  ;;  %v3125_v2 = vmul.f32 %v6427_v23, %v2949_v55  ;;  %v4283_v42 = vld [vmem:[#allocation2 + $0xd0] sm:$0xff] }
 0x286   : > { %v3334_v12 = vsel %vm321_vm1, %v3249_v28, 0.0  ;;  %v3446_v13 = vmul.f32 %v4279_v34, %v3249_v28  ;;  %v3336_v33 = vsel %vm321_vm1, %v3250_v54, 0.0  ;;  %v3533_v59 = vsel %vm321_vm1, %v3447_v37, 0.0  ;;  %v4284_v34 = vld [vmem:[#allocation2 + $0xe8] sm:$0xff] }
 0x287   : > { %v3335_v61 = vadd.f32 %v3334_v12, %v3333_v60  ;;  %v3530_v1 = vadd.f32 %v3529_v17, %v3528_v14  ;;  %v3251_v56 = vmul.f32 %v4282_v44, %v3187_v15  ;;  %v3192_v30 = vadd.f32 %v3128_v19, %v6444_v47  ;;  %v2977_v54 = vpop.permute.xlu0 %2976  ;;  %v4285_v12 = vld [vmem:[#allocation2 + $0xf8] sm:$0xff] }
 0x288   : > { %v3531_v4 = vsel %vm321_vm1, %v3446_v13, 0.0  ;;  %v3189_v62 = vadd.f32 %v3125_v2, %v7439_v46  ;;  %v3340_v20 = vsel %vm321_vm1, %v3252_v18, 0.0  ;;  %v3130_v48 = vmul.f32 %v6427_v23, %v2969_v57  ;;  %v2957_v36 = vpop.permute.xlu1 %2956 }
 0x289   : > { %v3532_v45 = vadd.f32 %v3531_v4, %v3530_v1  ;;  %v3337_v27 = vadd.f32 %v3336_v33, %v3335_v61  ;;  %v3449_v49 = vmul.f32 %v4280_v38, %v3252_v18  ;;  %v3451_v37 = vmul.f32 %v4281_v41, %v3254_v9  ;;  %v7440_v61 = vld [vmem:[#allocation103_spill] sm:$0xff] }
 0x28a   : > { %v3338_v24 = vsel %vm321_vm1, %v3251_v56, 0.0  ;;  %v3448_v63 = vmul.f32 %v4282_v44, %v3251_v56  ;;  %v3253_v17 = vmul.f32 %v4283_v42, %v3189_v62  ;;  %v3194_v47 = vadd.f32 %v3130_v48, %v6450_v40 }
 0x28b   : > { %v3339_v58 = vadd.f32 %v3338_v24, %v3337_v27  ;;  %v3534_v6 = vadd.f32 %v3533_v59, %v3532_v45  ;;  %v3256_v28 = vmul.f32 %v4284_v34, %v3192_v30  ;;  %v3127_v19 = vmul.f32 %v6427_v23, %v2957_v36  ;;  %v2985_v55 = vpop.permute.xlu0 %2984  ;;  %v4286_v30 = vld [vmem:[#allocation2 + $0xe0] sm:$0xff]  ;;  %v7441_v45 = vld [vmem:[#allocation100_spill] sm:$0xff] }
 0x28c   : > { %v3535_v35 = vsel %vm321_vm1, %v3448_v63, 0.0  ;;  %v3132_v14 = vmul.f32 %v6427_v23, %v2977_v54  ;;  %v3342_v18 = vsel %vm321_vm1, %v3253_v17, 0.0  ;;  %v3450_v50 = vmul.f32 %v4283_v42, %v3253_v17  ;;  %v2965_v15 = vpop.permute.xlu1 %2964  ;;  %v4288_v42 = vld [vmem:[#allocation2 + $0xf0] sm:$0xff] }
 0x28d   : > { %v3536_v60 = vadd.f32 %v3535_v35, %v3534_v6  ;;  %v3341_v38 = vadd.f32 %v3340_v20, %v3339_v58  ;;  %v3537_v57 = vsel %vm321_vm1, %v3449_v49, 0.0  ;;  %v3258_v13 = vmul.f32 %v4285_v12, %v3194_v47 }
 0x28e   : > { %v3191_v40 = vadd.f32 %v3127_v19, %v6431_v7  ;;  %v3129_v41 = vmul.f32 %v6427_v23, %v2965_v15  ;;  %v3539_v59 = vsel %vm321_vm1, %v3450_v50, 0.0  ;;  %v3196_v1 = vadd.f32 %v3132_v14, %v7440_v61 }
 0x28f   : > { %v3343_v2 = vadd.f32 %v3342_v18, %v3341_v38  ;;  %v3538_v33 = vadd.f32 %v3537_v57, %v3536_v60  ;;  %v3344_v4 = vsel %vm321_vm1, %v3254_v9, 0.0  ;;  %v3541_v44 = vsel %vm321_vm1, %v3451_v37, 0.0  ;;  %v2993_v36 = vpop.permute.xlu0 %2992  ;;  %v4287_v37 = vld [vmem:[#allocation2 + $0x108] sm:$0xff]  ;;  %v7442_v38 = vld [vmem:[#allocation5_spill] sm:$0xff] }
 0x290   : > { %v3453_v56 = vmul.f32 %v4284_v34, %v3256_v28  ;;  %v3255_v46 = vmul.f32 %v4286_v30, %v3191_v40  ;;  %v3193_v27 = vadd.f32 %v3129_v41, %v7441_v45  ;;  %v3134_v7 = vmul.f32 %v6427_v23, %v2985_v55  ;;  %v2973_v48 = vpop.permute.xlu1 %2972  ;;  %v7443_v40 = vld [vmem:[#allocation101_spill] sm:$0xff] }
 0x291   : > { %v3540_v62 = vadd.f32 %v3539_v59, %v3538_v33  ;;  %v3345_v20 = vadd.f32 %v3344_v4, %v3343_v2  ;;  %v3348_v54 = vsel %vm321_vm1, %v3256_v28, 0.0  ;;  %v3455_v49 = vmul.f32 %v4285_v12, %v3258_v13  ;;  %v4289_v4 = vld [vmem:[#allocation2 + $0x100] sm:$0xff] }
 0x292   : > { %v3346_v24 = vsel %vm321_vm1, %v3255_v46, 0.0  ;;  %v3452_v63 = vmul.f32 %v4286_v30, %v3255_v46  ;;  %v3260_v6 = vmul.f32 %v4287_v37, %v3196_v1  ;;  %v3257_v17 = vmul.f32 %v4288_v42, %v3193_v27  ;;  %v7445_v27 = vld [vmem:[#allocation102_spill] sm:$0xff] }
 0x293   : > { %v3347_v9 = vadd.f32 %v3346_v24, %v3345_v20  ;;  %v3542_v58 = vadd.f32 %v3541_v44, %v3540_v62  ;;  %v3545_v47 = vsel %vm321_vm1, %v3453_v56, 0.0  ;;  %v3131_v34 = vmul.f32 %v6427_v23, %v2973_v48  ;;  %v3001_v15 = vpop.permute.xlu0 %3000  ;;  %v7444_v56 = vld [vmem:[#allocation48_spill] sm:$0xff]  ;;  %v7446_v24 = vld [vmem:[#allocation53_spill] sm:$0xff] }
 0x294   : > { %v3543_v35 = vsel %vm321_vm1, %v3452_v63, 0.0  ;;  %v3136_v19 = vmul.f32 %v6427_v23, %v2993_v36  ;;  %v3350_v60 = vsel %vm321_vm1, %v3257_v17, 0.0  ;;  %v3198_v18 = vadd.f32 %v3134_v7, %v7442_v38  ;;  %v2981_v50 = vpop.permute.xlu1 %2980 }
 0x295   : > { %v3544_v14 = vadd.f32 %v3543_v35, %v3542_v58  ;;  %v3349_v28 = vadd.f32 %v3348_v54, %v3347_v9  ;;  %v3352_v55 = vsel %vm321_vm1, %v3258_v13, 0.0  ;;  %v3549_v57 = vsel %vm321_vm1, %v3455_v49, 0.0  ;;  %v4290_v13 = vld [vmem:[#allocation2 + $0x118] sm:$0xff]  ;;  %v4291_v35 = vld [vmem:[#allocation2 + $0x128] sm:$0xff] }
 0x296   : > { %v3454_v12 = vmul.f32 %v4288_v42, %v3257_v17  ;;  %v3195_v41 = vadd.f32 %v3131_v34, %v7443_v40  ;;  %v3457_v2 = vmul.f32 %v4287_v37, %v3260_v6  ;;  %v3133_v61 = vmul.f32 %v6427_v23, %v2981_v50 }
 0x297   : > { %v3351_v33 = vadd.f32 %v3350_v60, %v3349_v28  ;;  %v3546_v59 = vadd.f32 %v3545_v47, %v3544_v14  ;;  %v3200_v30 = vadd.f32 %v3136_v19, %v7444_v56  ;;  %v3138_v46 = vmul.f32 %v6427_v23, %v3001_v15  ;;  %v3009_v36 = vpop.permute.xlu0 %3008  ;;  %v4292_v19 = vld [vmem:[#allocation2 + $0x110] sm:$0xff]  ;;  %v7447_v28 = vld [vmem:[#allocation104_spill] sm:$0xff] }
 0x298   : > { %v3547_v1 = vsel %vm321_vm1, %v3454_v12, 0.0  ;;  %v3259_v44 = vmul.f32 %v4289_v4, %v3195_v41  ;;  %v3262_v20 = vmul.f32 %v4290_v13, %v3198_v18  ;;  %v3197_v7 = vadd.f32 %v3133_v61, %v7445_v27  ;;  %v2989_v48 = vpop.permute.xlu1 %2988  ;;  %v4293_v41 = vld [vmem:[#allocation2 + $0x138] sm:$0xff]  ;;  %v4294_v61 = vld [vmem:[#allocation2 + $0x120] sm:$0xff] }
 0x299   : > { %v3548_v62 = vadd.f32 %v3547_v1, %v3546_v59  ;;  %v3353_v45 = vadd.f32 %v3352_v55, %v3351_v33  ;;  %v3202_v63 = vadd.f32 %v3138_v46, %v7446_v24  ;;  %v3135_v9 = vmul.f32 %v6427_v23, %v2989_v48 }
 0x29a   : > { %v3354_v54 = vsel %vm321_vm1, %v3259_v44, 0.0  ;;  %v3456_v49 = vmul.f32 %v4289_v4, %v3259_v44  ;;  %v3356_v58 = vsel %vm321_vm1, %v3260_v6, 0.0  ;;  %v3553_v37 = vsel %vm321_vm1, %v3457_v2, 0.0 }
 0x29b   : > { %v3355_v42 = vadd.f32 %v3354_v54, %v3353_v45  ;;  %v3550_v17 = vadd.f32 %v3549_v57, %v3548_v62  ;;  %v3264_v34 = vmul.f32 %v4291_v35, %v3200_v30  ;;  %v3261_v14 = vmul.f32 %v4292_v19, %v3197_v7  ;;  %v3017_v6 = vpop.permute.xlu0 %3016 }
 0x29c   : > { %v3551_v47 = vsel %vm321_vm1, %v3456_v49, 0.0  ;;  %v3199_v60 = vadd.f32 %v3135_v9, %v7447_v28  ;;  %v3360_v38 = vsel %vm321_vm1, %v3262_v20, 0.0  ;;  %v3140_v15 = vmul.f32 %v6427_v23, %v3009_v36  ;;  %v2997_v55 = vpop.permute.xlu1 %2996  ;;  %v4295_v36 = vld [vmem:[#allocation2 + $0x148] sm:$0xff] }
 0x29d   : > { %v3552_v18 = vadd.f32 %v3551_v47, %v3550_v17  ;;  %v3357_v50 = vadd.f32 %v3356_v58, %v3355_v42  ;;  %v3459_v12 = vmul.f32 %v4290_v13, %v3262_v20  ;;  %v3358_v40 = vsel %vm321_vm1, %v3261_v14, 0.0  ;;  %v7448_v49 = vld [vmem:[#allocation8_spill] sm:$0xff]  ;;  %v4296_v47 = vld [vmem:[#allocation2 + $0x130] sm:$0xff] }
 0x29e   : > { %v3458_v57 = vmul.f32 %v4292_v19, %v3261_v14  ;;  %v3266_v2 = vmul.f32 %v4293_v41, %v3202_v63  ;;  %v3263_v1 = vmul.f32 %v4294_v61, %v3199_v60  ;;  %v3204_v4 = vadd.f32 %v3140_v15, %v6516_v51  ;;  %v7449_v60 = vld [vmem:[#allocation51_spill] sm:$0xff] }
 0x29f   : > { %v3359_v33 = vadd.f32 %v3358_v40, %v3357_v50  ;;  %v3554_v59 = vadd.f32 %v3553_v37, %v3552_v18  ;;  %v3461_v44 = vmul.f32 %v4291_v35, %v3264_v34  ;;  %v3137_v30 = vmul.f32 %v6427_v23, %v2997_v55  ;;  %v3025_v7 = vpop.permute.xlu0 %3024 }
 0x2a0   : > { %v3555_v56 = vsel %vm321_vm1, %v3458_v57, 0.0  ;;  %v3142_v46 = vmul.f32 %v6427_v23, %v3017_v6  ;;  %v3362_v20 = vsel %vm321_vm1, %v3263_v1, 0.0  ;;  %v3460_v45 = vmul.f32 %v4294_v61, %v3263_v1  ;;  %v3005_v27 = vpop.permute.xlu1 %3004  ;;  %v4298_v61 = vld [vmem:[#allocation2 + $0x158] sm:$0xff] }
 0x2a1   : > { %v3556_v62 = vadd.f32 %v3555_v56, %v3554_v59  ;;  %v3361_v13 = vadd.f32 %v3360_v38, %v3359_v33  ;;  %v3557_v48 = vsel %vm321_vm1, %v3459_v12, 0.0  ;;  %v3268_v54 = vmul.f32 %v4295_v36, %v3204_v4  ;;  %v4297_v33 = vld [vmem:[#allocation2 + $0x140] sm:$0xff] }
 0x2a2   : > { %v3201_v51 = vadd.f32 %v3137_v30, %v7448_v49  ;;  %v3139_v24 = vmul.f32 %v6427_v23, %v3005_v27  ;;  %v3463_v63 = vmul.f32 %v4293_v41, %v3266_v2  ;;  %v3559_v37 = vsel %vm321_vm1, %v3460_v45, 0.0 }
 0x2a3   : > { %v3363_v9 = vadd.f32 %v3362_v20, %v3361_v13  ;;  %v3558_v58 = vadd.f32 %v3557_v48, %v3556_v62  ;;  %v3364_v42 = vsel %vm321_vm1, %v3264_v34, 0.0  ;;  %v3561_v17 = vsel %vm321_vm1, %v3461_v44, 0.0  ;;  %v3033_v15 = vpop.permute.xlu0 %3032 }
 0x2a4   : > { %v3265_v35 = vmul.f32 %v4296_v47, %v3201_v51  ;;  %v3206_v19 = vadd.f32 %v3142_v46, %v6522_v21  ;;  %v3203_v38 = vadd.f32 %v3139_v24, %v7449_v60  ;;  %v3144_v18 = vmul.f32 %v6427_v23, %v3025_v7  ;;  %v3013_v50 = vpop.permute.xlu1 %3012  ;;  %v7450_v7 = vld [vmem:[#allocation52_spill] sm:$0xff] }
 0x2a5   : > { %v3560_v14 = vadd.f32 %v3559_v37, %v3558_v58  ;;  %v3365_v28 = vadd.f32 %v3364_v42, %v3363_v9  ;;  %v3368_v55 = vsel %vm321_vm1, %v3266_v2, 0.0  ;;  %v3465_v6 = vmul.f32 %v4295_v36, %v3268_v54  ;;  %v4299_v58 = vld [vmem:[#allocation2 + $0x150] sm:$0xff] }
 0x2a6   : > { %v3366_v12 = vsel %vm321_vm1, %v3265_v35, 0.0  ;;  %v3462_v34 = vmul.f32 %v4296_v47, %v3265_v35  ;;  %v3565_v40 = vsel %vm321_vm1, %v3463_v63, 0.0  ;;  %v3267_v21 = vmul.f32 %v4297_v33, %v3203_v38 }
 0x2a7   : > { %v3367_v57 = vadd.f32 %v3366_v12, %v3365_v28  ;;  %v3562_v41 = vadd.f32 %v3561_v17, %v3560_v14  ;;  %v3270_v1 = vmul.f32 %v4298_v61, %v3206_v19  ;;  %v3141_v4 = vmul.f32 %v6427_v23, %v3013_v50  ;;  %v3041_v13 = vpop.permute.xlu0 %3040 }
 0x2a8   : > { %v3563_v59 = vsel %vm321_vm1, %v3462_v34, 0.0  ;;  %v3146_v44 = vmul.f32 %v6427_v23, %v3033_v15  ;;  %v3370_v30 = vsel %vm321_vm1, %v3267_v21, 0.0  ;;  %v3208_v46 = vadd.f32 %v3144_v18, %v6530_v5  ;;  %v3021_v62 = vpop.permute.xlu1 %3020 }
 0x2a9   : > { %v3564_v56 = vadd.f32 %v3563_v59, %v3562_v41  ;;  %v3369_v2 = vadd.f32 %v3368_v55, %v3367_v57  ;;  %v3372_v20 = vsel %vm321_vm1, %v3268_v54, 0.0  ;;  %v3569_v45 = vsel %vm321_vm1, %v3465_v6, 0.0  ;;  %v4300_v54 = vld [vmem:[#allocation2 + $0x168] sm:$0xff]  ;;  %v4301_v55 = vld [vmem:[#allocation2 + $0x178] sm:$0xff] }
 0x2aa   : > { %v3464_v27 = vmul.f32 %v4297_v33, %v3267_v21  ;;  %v3205_v48 = vadd.f32 %v3141_v4, %v7450_v7  ;;  %v3210_v51 = vadd.f32 %v3146_v44, %v6550_v53  ;;  %v3143_v24 = vmul.f32 %v6427_v23, %v3021_v62 }
 0x2ab   : > { %v3371_v36 = vadd.f32 %v3370_v30, %v3369_v2  ;;  %v3566_v49 = vadd.f32 %v3565_v40, %v3564_v56  ;;  %v3467_v63 = vmul.f32 %v4298_v61, %v3270_v1  ;;  %v3148_v37 = vmul.f32 %v6427_v23, %v3041_v13  ;;  %v3049_v14 = vpop.permute.xlu0 %3048  ;;  %v4303_v56 = vld [vmem:[#allocation2 + $0x188] sm:$0xff]  ;;  %v4304_v13 = vld [vmem:[#allocation2 + $0x170] sm:$0xff] }
 0x2ac   : > { %v3567_v9 = vsel %vm321_vm1, %v3464_v27, 0.0  ;;  %v3269_v5 = vmul.f32 %v4299_v58, %v3205_v48  ;;  %v3272_v17 = vmul.f32 %v4300_v54, %v3208_v46  ;;  %v3207_v35 = vadd.f32 %v3143_v24, %v6519_v43  ;;  %v3029_v19 = vpop.permute.xlu1 %3028  ;;  %v4302_v43 = vld [vmem:[#allocation2 + $0x160] sm:$0xff] }
 0x2ad   : > { %v3568_v42 = vadd.f32 %v3567_v9, %v3566_v49  ;;  %v3373_v47 = vadd.f32 %v3372_v20, %v3371_v36  ;;  %v3212_v60 = vadd.f32 %v3148_v37, %v6571_v39  ;;  %v3145_v38 = vmul.f32 %v6427_v23, %v3029_v19  ;;  %v4305_v19 = vld [vmem:[#allocation2 + $0x198] sm:$0xff] }
 0x2ae   : > { %v3374_v28 = vsel %vm321_vm1, %v3269_v5, 0.0  ;;  %v3466_v53 = vmul.f32 %v4299_v58, %v3269_v5  ;;  %v3376_v18 = vsel %vm321_vm1, %v3270_v1, 0.0  ;;  %v3274_v6 = vmul.f32 %v4301_v55, %v3210_v51 }
 0x2af   : > { %v3375_v50 = vadd.f32 %v3374_v28, %v3373_v47  ;;  %v3570_v15 = vadd.f32 %v3569_v45, %v3568_v42  ;;  %v3573_v12 = vsel %vm321_vm1, %v3467_v63, 0.0  ;;  %v3271_v40 = vmul.f32 %v4302_v43, %v3207_v35  ;;  %v3057_v61 = vpop.permute.xlu0 %3056  ;;  %v4306_v28 = vld [vmem:[#allocation2 + $0x180] sm:$0xff] }
 0x2b0   : > { %v3571_v34 = vsel %vm321_vm1, %v3466_v53, 0.0  ;;  %v3209_v57 = vadd.f32 %v3145_v38, %v6527_v10  ;;  %v3380_v41 = vsel %vm321_vm1, %v3272_v17, 0.0  ;;  %v3150_v21 = vmul.f32 %v6427_v23, %v3049_v14  ;;  %v3037_v59 = vpop.permute.xlu1 %3036 }
 0x2b1   : > { %v3572_v33 = vadd.f32 %v3571_v34, %v3570_v15  ;;  %v3377_v39 = vadd.f32 %v3376_v18, %v3375_v50  ;;  %v3469_v1 = vmul.f32 %v4300_v54, %v3272_v17  ;;  %v3378_v4 = vsel %vm321_vm1, %v3271_v40, 0.0 }
 0x2b2   : > { %v3468_v44 = vmul.f32 %v4302_v43, %v3271_v40  ;;  %v3276_v2 = vmul.f32 %v4303_v56, %v3212_v60  ;;  %v3471_v30 = vmul.f32 %v4301_v55, %v3274_v6  ;;  %v3273_v20 = vmul.f32 %v4304_v13, %v3209_v57 }
 0x2b3   : > { %v3379_v46 = vadd.f32 %v3378_v4, %v3377_v39  ;;  %v3574_v62 = vadd.f32 %v3573_v12, %v3572_v33  ;;  %v3214_v45 = vadd.f32 %v3150_v21, %v6577_v0  ;;  %v3147_v27 = vmul.f32 %v6427_v23, %v3037_v59  ;;  %v3065_v63 = vpop.permute.xlu0 %3064 }
 0x2b4   : > { %v3575_v10 = vsel %vm321_vm1, %v3468_v44, 0.0  ;;  %v3152_v7 = vmul.f32 %v6427_v23, %v3057_v61  ;;  %v3382_v49 = vsel %vm321_vm1, %v3273_v20, 0.0  ;;  %v3470_v51 = vmul.f32 %v4304_v13, %v3273_v20  ;;  %v3045_v24 = vpop.permute.xlu1 %3044  ;;  %v4308_v61 = vld [vmem:[#allocation2 + $0x1a8] sm:$0xff] }
 0x2b5   : > { %v3576_v48 = vadd.f32 %v3575_v10, %v3574_v62  ;;  %v3381_v36 = vadd.f32 %v3380_v41, %v3379_v46  ;;  %v3577_v9 = vsel %vm321_vm1, %v3469_v1, 0.0  ;;  %v3473_v58 = vmul.f32 %v4303_v56, %v3276_v2  ;;  %v4307_v41 = vld [vmem:[#allocation2 + $0x190] sm:$0xff]  ;;  %v4309_v46 = vld [vmem:[#allocation2 + $0x1b8] sm:$0xff] }
 0x2b6   : > { %v3211_v5 = vadd.f32 %v3147_v27, %v6539_v8  ;;  %v3149_v37 = vmul.f32 %v6427_v23, %v3045_v24  ;;  %v3579_v54 = vsel %vm321_vm1, %v3470_v51, 0.0  ;;  %v3154_v17 = vmul.f32 %v6427_v23, %v3065_v63 }
 0x2b7   : > { %v3383_v42 = vadd.f32 %v3382_v49, %v3381_v36  ;;  %v3578_v0 = vadd.f32 %v3577_v9, %v3576_v48  ;;  %v3384_v47 = vsel %vm321_vm1, %v3274_v6, 0.0  ;;  %v3581_v35 = vsel %vm321_vm1, %v3471_v30, 0.0  ;;  %v3073_v15 = vpop.permute.xlu0 %3072  ;;  %v4310_v36 = vld [vmem:[#allocation2 + $0x1a0] sm:$0xff] }
 0x2b8   : > { %v3278_v14 = vmul.f32 %v4305_v19, %v3214_v45  ;;  %v3275_v53 = vmul.f32 %v4306_v28, %v3211_v5  ;;  %v3216_v8 = vadd.f32 %v3152_v7, %v6588_v22  ;;  %v3213_v18 = vadd.f32 %v3149_v37, %v6553_v26  ;;  %v3053_v50 = vpop.permute.xlu1 %3052 }
 0x2b9   : > { %v3580_v60 = vadd.f32 %v3579_v54, %v3578_v0  ;;  %v3385_v38 = vadd.f32 %v3384_v47, %v3383_v42  ;;  %v3388_v55 = vsel %vm321_vm1, %v3276_v2, 0.0  ;;  %v3218_v6 = vadd.f32 %v3154_v17, %v6594_v52 }
 0x2ba   : > { %v3386_v12 = vsel %vm321_vm1, %v3275_v53, 0.0  ;;  %v3472_v34 = vmul.f32 %v4306_v28, %v3275_v53  ;;  %v3585_v43 = vsel %vm321_vm1, %v3473_v58, 0.0  ;;  %v3277_v33 = vmul.f32 %v4307_v41, %v3213_v18  ;;  %v4312_v28 = vld [vmem:[#allocation2 + $0x1b0] sm:$0xff] }
 0x2bb   : > { %v3387_v40 = vadd.f32 %v3386_v12, %v3385_v38  ;;  %v3582_v57 = vadd.f32 %v3581_v35, %v3580_v60  ;;  %v3475_v39 = vmul.f32 %v4305_v19, %v3278_v14  ;;  %v3151_v26 = vmul.f32 %v6427_v23, %v3053_v50  ;;  %v3081_v56 = vpop.permute.xlu0 %3080  ;;  %v4311_v35 = vld [vmem:[#allocation2 + $0x1c8] sm:$0xff]  ;;  %v7451_v38 = vld [vmem:[#allocation50_spill] sm:$0xff] }
 0x2bc   : > { %v3583_v22 = vsel %vm321_vm1, %v3472_v34, 0.0  ;;  %v3156_v21 = vmul.f32 %v6427_v23, %v3073_v15  ;;  %v3280_v1 = vmul.f32 %v4308_v61, %v3216_v8  ;;  %v3390_v44 = vsel %vm321_vm1, %v3277_v33, 0.0  ;;  %v3061_v52 = vpop.permute.xlu1 %3060 }
 0x2bd   : > { %v3584_v59 = vadd.f32 %v3583_v22, %v3582_v57  ;;  %v3389_v4 = vadd.f32 %v3388_v55, %v3387_v40  ;;  %v3392_v2 = vsel %vm321_vm1, %v3278_v14, 0.0  ;;  %v3474_v30 = vmul.f32 %v4307_v41, %v3277_v33 }
 0x2be   : > { %v3282_v62 = vmul.f32 %v4309_v46, %v3218_v6  ;;  %v3215_v13 = vadd.f32 %v3151_v26, %v6574_v16  ;;  %v3220_v45 = vadd.f32 %v3156_v21, %v6601_v31  ;;  %v3153_v27 = vmul.f32 %v6427_v23, %v3061_v52  ;;  %v4314_v26 = vld [vmem:[#allocation2 + $0x1d8] sm:$0xff] }
 0x2bf   : > { %v3391_v20 = vadd.f32 %v3390_v44, %v3389_v4  ;;  %v3586_v10 = vadd.f32 %v3585_v43, %v3584_v59  ;;  %v3589_v7 = vsel %vm321_vm1, %v3475_v39, 0.0  ;;  %v3587_v48 = vsel %vm321_vm1, %v3474_v30, 0.0  ;;  %v3089_v5 = vpop.permute.xlu0 %3088 }
 0x2c0   : > { %v3279_v49 = vmul.f32 %v4310_v36, %v3215_v13  ;;  %v3158_v51 = vmul.f32 %v6427_v23, %v3081_v56  ;;  %v3477_v24 = vmul.f32 %v4308_v61, %v3280_v1  ;;  %v3217_v58 = vadd.f32 %v3153_v27, %v6582_v25  ;;  %v3069_v16 = vpop.permute.xlu1 %3068  ;;  %v7453_v13 = vld [vmem:[#allocation99_spill] sm:$0xff] }
 0x2c1   : > { %v3588_v63 = vadd.f32 %v3587_v48, %v3586_v10  ;;  %v3393_v9 = vadd.f32 %v3392_v2, %v3391_v20  ;;  %v3396_v37 = vsel %vm321_vm1, %v3280_v1, 0.0  ;;  %v3155_v0 = vmul.f32 %v6427_v23, %v3069_v16  ;;  %v7452_v2 = vld [vmem:[#allocation55_spill] sm:$0xff] }
 0x2c2   : > { %v3394_v31 = vsel %vm321_vm1, %v3279_v49, 0.0  ;;  %v3476_v42 = vmul.f32 %v4310_v36, %v3279_v49  ;;  %v3479_v54 = vmul.f32 %v4309_v46, %v3282_v62  ;;  %v3284_v19 = vmul.f32 %v4311_v35, %v3220_v45 }
 0x2c3   : > { %v3395_v17 = vadd.f32 %v3394_v31, %v3393_v9  ;;  %v3590_v47 = vadd.f32 %v3589_v7, %v3588_v63  ;;  %v3281_v53 = vmul.f32 %v4312_v28, %v3217_v58  ;;  %v3222_v25 = vadd.f32 %v3158_v51, %v6644_v11  ;;  %v7454_v7 = vld [vmem:[#allocation39_spill] sm:$0xff]  ;;  %v7455_v58 = vld [vmem:[#allocation54_spill] sm:$0xff] }
 0x2c4   : > { %v3591_v14 = vsel %vm321_vm1, %v3476_v42, 0.0  ;;  %v3219_v60 = vadd.f32 %v3155_v0, %v6591_v32  ;;  %v2778_v8 = vmul.f32 %v6093_v3, %v7451_v38  ;;  %v3593_v18 = vsel %vm321_vm1, %v3477_v24, 0.0  ;;  %v3077_v55 = vpop.permute.xlu1 %3076  ;;  %v4313_v32 = vld [vmem:[#allocation2 + $0x1c0] sm:$0xff]  ;;  %v3097_v33 = vpop.permute.xlu0 %3096 }
 0x2c5   : > { %v3592_v50 = vadd.f32 %v3591_v14, %v3590_v47  ;;  %v3397_v15 = vadd.f32 %v3396_v37, %v3395_v17  ;;  %v3400_v12 = vsel %vm321_vm1, %v3282_v62, 0.0  ;;  %v3398_v34 = vsel %vm321_vm1, %v3281_v53, 0.0  ;;  %v4316_v37 = vld [vmem:[#allocation2 + $0x1e8] sm:$0xff]  ;;  %v4317_v47 = vld [vmem:[#allocation2 + $0x1e0] sm:$0xff] }
 0x2c6   : > { %v3478_v6 = vmul.f32 %v4312_v28, %v3281_v53  ;;  %v3160_v43 = vmul.f32 %v6427_v23, %v3089_v5  ;;  %v3597_v40 = vsel %vm321_vm1, %v3479_v54, 0.0  ;;  %v3283_v41 = vmul.f32 %v4313_v32, %v3219_v60 }
 0x2c7   : > { %v3399_v11 = vadd.f32 %v3398_v34, %v3397_v15  ;;  %v3594_v57 = vadd.f32 %v3593_v18, %v3592_v50  ;;  %v3481_v39 = vmul.f32 %v4311_v35, %v3284_v19  ;;  %v3286_v21 = vmul.f32 %v4314_v26, %v3222_v25  ;;  %v4318_v15 = vld [vmem:[#allocation2 + $0x1f8] sm:$0xff] }
 0x2c8   : > { %v3595_v22 = vsel %vm321_vm1, %v3478_v6, 0.0  ;;  %v3157_v59 = vmul.f32 %v6427_v23, %v3077_v55  ;;  %v3402_v4 = vsel %vm321_vm1, %v3283_v41, 0.0  ;;  %v3480_v44 = vmul.f32 %v4313_v32, %v3283_v41 }
 0x2c9   : > { %v3596_v61 = vadd.f32 %v3595_v22, %v3594_v57  ;;  %v3401_v1 = vadd.f32 %v3400_v12, %v3399_v11  ;;  %v3085_v52 = vpop.permute.xlu1 %3084  ;;  %v3224_v56 = vadd.f32 %v3160_v43, %v6688_v29  ;;  %v3162_v46 = vmul.f32 %v6427_v23, %v3097_v33  ;;  %v4315_v29 = vld [vmem:[#allocation2 + $0x1d0] sm:$0xff] }
 0x2ca   : > { %v3221_v30 = vadd.f32 %v3157_v59, %v7452_v2  ;;  %v3159_v62 = vmul.f32 %v6427_v23, %v3085_v52  ;;  %v2777_v20 = vmul.f32 %v6093_v3, %v7453_v13  ;;  %v3599_v27 = vsel %vm321_vm1, %v3480_v44, 0.0  ;;  %v4319_v57 = vld [vmem:[#allocation2 + $0x1f0] sm:$0xff] }
 0x2cb   : > { %v3403_v10 = vadd.f32 %v3402_v4, %v3401_v1  ;;  %v3598_v45 = vadd.f32 %v3597_v40, %v3596_v61  ;;  %v2842_v48 = vadd.f32 %v2778_v8, %v7454_v7  ;;  %v3404_v36 = vsel %vm321_vm1, %v3284_v19, 0.0  ;;  %v7456_v19 = vld [vmem:[#allocation95_spill] sm:$0xff] }
 0x2cc   : > { %v3601_v49 = vsel %vm321_vm1, %v3481_v39, 0.0  ;;  %v3285_v51 = vmul.f32 %v4315_v29, %v3221_v30  ;;  %v3483_v24 = vmul.f32 %v4314_v26, %v3286_v21  ;;  %v3223_v16 = vadd.f32 %v3159_v62, %v7455_v58 }
 0x2cd   : > { %v3600_v63 = vadd.f32 %v3599_v27, %v3598_v45  ;;  %v3405_v9 = vadd.f32 %v3404_v36, %v3403_v10  ;;  %v3093_v5 = vpop.permute.xlu1 %3092  ;;  %v3288_v3 = vmul.f32 %v4316_v37, %v3224_v56  ;;  %v3226_v0 = vadd.f32 %v3162_v46, %v2842_v48 }
 0x2ce   : > { %v3406_v31 = vsel %vm321_vm1, %v3285_v51, 0.0  ;;  %v3482_v42 = vmul.f32 %v4315_v29, %v3285_v51  ;;  %v3287_v35 = vmul.f32 %v4317_v47, %v3223_v16  ;;  %v2841_v14 = vadd.f32 %v2777_v20, %v7456_v19 }
 0x2cf   : > { %v3407_v54 = vadd.f32 %v3406_v31, %v3405_v9  ;;  %v3602_v17 = vadd.f32 %v3601_v49, %v3600_v63  ;;  %v3408_v28 = vsel %vm321_vm1, %v3286_v21, 0.0  ;;  %v3161_v25 = vmul.f32 %v6427_v23, %v3093_v5 }
 0x2d0   : > { %v3603_v53 = vsel %vm321_vm1, %v3482_v42, 0.0  ;;  %v3605_v60 = vsel %vm321_vm1, %v3483_v24, 0.0  ;;  %v3410_v18 = vsel %vm321_vm1, %v3287_v35, 0.0  ;;  %v3485_v50 = vmul.f32 %v4316_v37, %v3288_v3 }
 0x2d1   : > { %v3604_v38 = vadd.f32 %v3603_v53, %v3602_v17  ;;  %v3409_v8 = vadd.f32 %v3408_v28, %v3407_v54  ;;  %v3290_v55 = vmul.f32 %v4318_v15, %v3226_v0  ;;  %v3484_v12 = vmul.f32 %v4317_v47, %v3287_v35 }
 0x2d2   : > { %v3225_v34 = vadd.f32 %v3161_v25, %v2841_v14  ;;  %v3412_v40 = vsel %vm321_vm1, %v3288_v3, 0.0  ;;  %v3609_v33 = vsel %vm321_vm1, %v3485_v50, 0.0  ;;  %v7457_v20 = vlaneseq }
 0x2d3   : > { %v3411_v6 = vadd.f32 %v3410_v18, %v3409_v8  ;;  %v3606_v43 = vadd.f32 %v3605_v60, %v3604_v38  ;;  %v3607_v11 = vsel %vm321_vm1, %v3484_v12, 0.0  ;;  %v3487_v39 = vmul.f32 %v4318_v15, %v3290_v55 }
 0x2d4   : > { %v3289_v23 = vmul.f32 %v4319_v57, %v3225_v34  ;;  %v3416_v61 = vsel %vm321_vm1, %v3290_v55, 0.0  ;;  %v3622_v10 = vshrl.u32 %v7457_v20, 7 }
 0x2d5   : > { %v3608_v32 = vadd.f32 %v3607_v11, %v3606_v43  ;;  %v3413_v41 = vadd.f32 %v3412_v40, %v3411_v6  ;;  %v3613_v52 = vsel %vm321_vm1, %v3487_v39, 0.0 }
 0x2d6   : > { %v3414_v22 = vsel %vm321_vm1, %v3289_v23, 0.0  ;;  %v3486_v26 = vmul.f32 %v4319_v57, %v3289_v23  ;;  %vm3623_vm11 = vcmp.eq.s32.totalorder %v3622_v10, 0 }
 0x2d7   : > { %v3415_v21 = vadd.f32 %v3414_v22, %v3413_v41  ;;  %v3610_v59 = vadd.f32 %v3609_v33, %v3608_v32 }
 0x2d8   : > { %v3611_v1 = vsel %vm321_vm1, %v3486_v26, 0.0 }
 0x2d9   : > { %v3417_v4 = vadd.f32 %v3416_v61, %v3415_v21  ;;  %v3612_v44 = vadd.f32 %v3611_v1, %v3610_v59 }
 0x2db   : > { %v3418_v56 = vrot.slane %v3417_v4, 4  ;;  %v3614_v2 = vadd.f32 %v3613_v52, %v3612_v44 }
 0x2dd   : > { %v3419_v30 = vadd.f32 %v3418_v56, %v3417_v4  ;;  %v3615_v46 = vrot.slane %v3614_v2, 4 }
 0x2df   : > { %v3420_v62 = vrot.slane %v3419_v30, 2  ;;  %v3616_v13 = vadd.f32 %v3615_v46, %v3614_v2 }
 0x2e1   : > { %v3421_v45 = vadd.f32 %v3420_v62, %v3419_v30  ;;  %v3617_v27 = vrot.slane %v3616_v13, 2 }
 0x2e3   : > { %v3422_v7 = vrot.slane %v3421_v45, 1  ;;  %v3618_v48 = vadd.f32 %v3617_v27, %v3616_v13 }
 0x2e5   : > { %v3423_v36 = vadd.f32 %v3422_v7, %v3421_v45  ;;  %v3619_v49 = vrot.slane %v3618_v48, 1 }
 0x2e7   : > { %v3620_v29 = vadd.f32 %v3619_v49, %v3618_v48  ;;  %v3624_v51 = vsel %vm3623_vm11, %v3423_v36, 0.0 }
 0x2e8   : > { %3625 = vst.msk [vmem:[%s311_s24] sm:$0xff] %vm321_vm1, %v3624_v51 }
 0x2e9   : > { %v3626_v24 = vsel %vm3623_vm11, %v3620_v29, 0.0 }
 0x2ea   : > { %3627 = vst.msk [vmem:[%s315_s27] sm:$0xff] %vm321_vm1, %v3626_v24 }
 0x2eb PF: > { %s16_s20 = sadd.s32 1, %s4342_s20   ;;  %s7458_s18 = smov %s4338_s19 }
 0x2ec   : > { %p13_p6 = scmp.ge.s32.totalorder %s16_s20, 4   ;;  %s7459_s19 = smov %s7461_s21 }
 0x2ee   :  { %15 = sbr.rel (!%p13_p6) target bundleno = 2 (0x2), region = 100 }

// kernel: generator_forward.17
= control target key start
LH: loop header
LB: loop body
LE: loop exit
PB: predicated region body
PF: predicated region fallthrough
CT: control target
= control target key end

     0   :  { %s1875_s12 = smov 0   ;;  %s1877_s13 = smov 0   ;;  %s2383_s0 = inlined_call_operand.vmem [shape: bf16[2560,32], index: 0, kind: input, shape index: {}]   ;;  %s2384_s1 = inlined_call_operand.vmem [shape: bf16[32,12], index: 1, kind: input, shape index: {}]   ;;  %s2385_s2 = inlined_call_operand.vmem [shape: f32[1,12], index: 2, kind: input, shape index: {}]   ;;  %s2386_s3 = inlined_call_operand.vmem [shape: f32[2560,12], index: 3, kind: output, shape index: {}]  }
   0x1   :  { %s1879_s14 = smov 0  }
   0x2 LB: > { %s25_s15 = sadd.s32 1, %s1848_s13  ;;  %p1462_p0 = scmp.ge.s32.totalorder %s1852_s14, 1  ;;  %s1852_s14 = sphi %s1879_s14, %s13_s14   ;;  %s1848_s13 = sphi %s1877_s13, %s2388_s13   ;;  %s1844_s12 = sphi %s1875_s12, %s2387_s12  }
   0x3   : > { %p27_p1 = scmp.ge.s32.totalorder %s25_s15, 5  ;;  %p166_p2 = scmp.lt.s32.totalorder %s1852_s14, 6 }
   0x5   : > { %s2390_s15 = smov (%p27_p1, %s25_s15), 0  ;;  %p167_p3 = pnand %p1462_p0, %p166_p2 }
   0x6   : > { %s1463_s18 = sshll.u32 (!%p167_p3), %s1844_s12, 6 }
   0x7   : > { %170 = sbr.rel (%p167_p3) target bundleno = 304 (0x130), region = 32  ;;  %p199_p4 = scmp.lt.s32.totalorder (!%p167_p3), %s1463_s18, 319 }
   0xc   : > { %v1667_v0 = vld [vmem:[%s2384_s1 + $0x8] sm:$0xff]   ;;  %v1899_v1 = vld [vmem:[%s2384_s1] sm:$0xff]   ;;  %vm224_vm0 = vcmask 97280   ;;  %s2392_s18 = smov (!%p199_p4, %s1463_s18), 319  ;;  %v1854_v2 = vmov 0.0   ;;  %vm593_vm1 = vcmask 261120  }
   0xd   : > { %1570 = vmatprep.subr.bf16.mxu0 %v1667_v0  ;;  %1638 = vmatprep.subr.bf16.mxu1 %v1667_v0  ;;  %227 = vst.msk [vmem:[#allocation2 + $0x10] sm:$0xff] %vm224_vm0, %v1854_v2  ;;  %225 = vst.msk [vmem:[#allocation2] sm:$0xff] %vm224_vm0, %v1854_v2  ;;  %s1464_s21 = sshll.u32 %s2392_s18, 2  ;;  %v2113_v60 = vld [vmem:[%s2385_s2] ss:$0 sm:$0xff]  ;;  %s1466_s27 = sshll.u32 %s2392_s18, 3 }
   0xe   : > { %1571 = vmatpush3.bf16.msra.mxu0 %v1667_v0  ;;  %1640 = vmatpush3.bf16.msra.mxu1 %v1667_v0  ;;  %226 = vst.msk [vmem:[#allocation2 + $0x8] sm:$0xff] %vm224_vm0, %v1854_v2  ;;  %228 = vst.msk [vmem:[#allocation2 + $0x18] sm:$0xff] %vm224_vm0, %v1854_v2  ;;  %s2037_s24 = scalar_lea.vmem %s2383_s0, %s1464_s21  ;;  %s2148_s30 = scalar_lea.vmem %s2386_s3, %s1466_s27 }
   0xf   : > { %229 = vst.msk [vmem:[#allocation2 + $0x20] sm:$0xff] %vm224_vm0, %v1854_v2  ;;  %230 = vst.msk [vmem:[#allocation2 + $0x28] sm:$0xff] %vm224_vm0, %v1854_v2  ;;  %1572 = vmatprep.subr.bf16.mxu0 %v1899_v1  ;;  %1639 = vmatprep.subr.bf16.mxu1 %v1899_v1  ;;  %v1669_v3 = vld [vmem:[%s2037_s24] sm:$0xff]   ;;  %v1671_v5 = vld [vmem:[%s2037_s24 + $0x8] sm:$0xff]  }
  0x10   : > { %231 = vst.msk [vmem:[#allocation2 + $0x30] sm:$0xff] %vm224_vm0, %v1854_v2  ;;  %232 = vst.msk [vmem:[#allocation2 + $0x38] sm:$0xff] %vm224_vm0, %v1854_v2  ;;  %v1670_v4 = vld [vmem:[%s2037_s24 + $0x80] sm:$0xff]   ;;  %1574 = vmatprep.mubr.msk.bf16.mxu0 %vm593_vm1, %v1669_v3  ;;  %v1672_v6 = vld [vmem:[%s2037_s24 + $0x88] sm:$0xff]  }
  0x11   : > { %233 = vst.msk [vmem:[#allocation2 + $0x40] sm:$0xff] %vm224_vm0, %v1854_v2  ;;  %234 = vst.msk [vmem:[#allocation2 + $0x48] sm:$0xff] %vm224_vm0, %v1854_v2  ;;  %1606 = vmatprep.mubr.msk.bf16.mxu1 %vm593_vm1, %v1670_v4  ;;  %v1673_v7 = vld [vmem:[%s2037_s24 + $0x10] sm:$0xff]   ;;  %v1675_v9 = vld [vmem:[%s2037_s24 + $0x18] sm:$0xff]  }
  0x12   : > { %235 = vst.msk [vmem:[#allocation2 + $0x50] sm:$0xff] %vm224_vm0, %v1854_v2  ;;  %236 = vst.msk [vmem:[#allocation2 + $0x58] sm:$0xff] %vm224_vm0, %v1854_v2  ;;  %1573 = vmatpush3.bf16.msra.mxu0 %v1899_v1  ;;  %1641 = vmatpush3.bf16.msra.mxu1 %v1899_v1  ;;  %v1674_v8 = vld [vmem:[%s2037_s24 + $0x90] sm:$0xff]   ;;  %v1676_v10 = vld [vmem:[%s2037_s24 + $0x98] sm:$0xff]  }
  0x13   : > { %237 = vst.msk [vmem:[#allocation2 + $0x60] sm:$0xff] %vm224_vm0, %v1854_v2  ;;  %238 = vst.msk [vmem:[#allocation2 + $0x68] sm:$0xff] %vm224_vm0, %v1854_v2  ;;  %v1677_v11 = vld [vmem:[%s2037_s24 + $0x20] sm:$0xff]   ;;  %v1679_v13 = vld [vmem:[%s2037_s24 + $0x28] sm:$0xff]  }
  0x14   : > { %239 = vst.msk [vmem:[#allocation2 + $0x70] sm:$0xff] %vm224_vm0, %v1854_v2  ;;  %240 = vst.msk [vmem:[#allocation2 + $0x78] sm:$0xff] %vm224_vm0, %v1854_v2  ;;  %v1678_v12 = vld [vmem:[%s2037_s24 + $0xa0] sm:$0xff]   ;;  %v1680_v14 = vld [vmem:[%s2037_s24 + $0xa8] sm:$0xff]  }
  0x15   : > { %241 = vst.msk [vmem:[#allocation2 + $0x80] sm:$0xff] %vm224_vm0, %v1854_v2  ;;  %242 = vst.msk [vmem:[#allocation2 + $0x88] sm:$0xff] %vm224_vm0, %v1854_v2  ;;  %1575 = vmatmul.mubr.msk.bf16.vlgmr.msra.gmra.mxu0 %vm593_vm1, %v1671_v5  ;;  %1607 = vmatmul.mubr.msk.bf16.vlgmr.msra.gmra.mxu1 %vm593_vm1, %v1672_v6  ;;  %v1681_v15 = vld [vmem:[%s2037_s24 + $0x30] sm:$0xff]   ;;  %v1683_v17 = vld [vmem:[%s2037_s24 + $0x38] sm:$0xff]  }
  0x16   : > { %243 = vst.msk [vmem:[#allocation2 + $0x90] sm:$0xff] %vm224_vm0, %v1854_v2  ;;  %244 = vst.msk [vmem:[#allocation2 + $0x98] sm:$0xff] %vm224_vm0, %v1854_v2  ;;  %1578 = vmatprep.mubr.msk.bf16.mxu0 %vm593_vm1, %v1673_v7  ;;  %1610 = vmatprep.mubr.msk.bf16.mxu1 %vm593_vm1, %v1674_v8  ;;  %v1682_v16 = vld [vmem:[%s2037_s24 + $0xb0] sm:$0xff]   ;;  %v1684_v18 = vld [vmem:[%s2037_s24 + $0xb8] sm:$0xff]  }
  0x17   : > { %245 = vst.msk [vmem:[#allocation2 + $0xa0] sm:$0xff] %vm224_vm0, %v1854_v2  ;;  %246 = vst.msk [vmem:[#allocation2 + $0xa8] sm:$0xff] %vm224_vm0, %v1854_v2  ;;  %v1685_v19 = vld [vmem:[%s2037_s24 + $0x40] sm:$0xff]   ;;  %v1687_v21 = vld [vmem:[%s2037_s24 + $0x48] sm:$0xff]  }
  0x18   : > { %247 = vst.msk [vmem:[#allocation2 + $0xb0] sm:$0xff] %vm224_vm0, %v1854_v2  ;;  %248 = vst.msk [vmem:[#allocation2 + $0xb8] sm:$0xff] %vm224_vm0, %v1854_v2  ;;  %v1686_v20 = vld [vmem:[%s2037_s24 + $0xc0] sm:$0xff]   ;;  %v1688_v22 = vld [vmem:[%s2037_s24 + $0xc8] sm:$0xff]  }
  0x19   : > { %249 = vst.msk [vmem:[#allocation2 + $0xc0] sm:$0xff] %vm224_vm0, %v1854_v2  ;;  %250 = vst.msk [vmem:[#allocation2 + $0xc8] sm:$0xff] %vm224_vm0, %v1854_v2  ;;  %v1689_v23 = vld [vmem:[%s2037_s24 + $0x50] sm:$0xff]   ;;  %v1691_v25 = vld [vmem:[%s2037_s24 + $0x58] sm:$0xff]  }
  0x1a   : > { %251 = vst.msk [vmem:[#allocation2 + $0xd0] sm:$0xff] %vm224_vm0, %v1854_v2  ;;  %252 = vst.msk [vmem:[#allocation2 + $0xd8] sm:$0xff] %vm224_vm0, %v1854_v2  ;;  %v1690_v24 = vld [vmem:[%s2037_s24 + $0xd0] sm:$0xff]   ;;  %v1692_v26 = vld [vmem:[%s2037_s24 + $0xd8] sm:$0xff]  }
  0x1b   : > { %253 = vst.msk [vmem:[#allocation2 + $0xe0] sm:$0xff] %vm224_vm0, %v1854_v2  ;;  %254 = vst.msk [vmem:[#allocation2 + $0xe8] sm:$0xff] %vm224_vm0, %v1854_v2  ;;  %v1693_v27 = vld [vmem:[%s2037_s24 + $0x60] sm:$0xff]   ;;  %v1695_v29 = vld [vmem:[%s2037_s24 + $0x68] sm:$0xff]  }
  0x1c   : > { %255 = vst.msk [vmem:[#allocation2 + $0xf0] sm:$0xff] %vm224_vm0, %v1854_v2  ;;  %256 = vst.msk [vmem:[#allocation2 + $0xf8] sm:$0xff] %vm224_vm0, %v1854_v2  ;;  %v1694_v28 = vld [vmem:[%s2037_s24 + $0xe0] sm:$0xff]   ;;  %v1696_v30 = vld [vmem:[%s2037_s24 + $0xe8] sm:$0xff]  }
  0x1d   : > { %257 = vst.msk [vmem:[#allocation2 + $0x100] sm:$0xff] %vm224_vm0, %v1854_v2  ;;  %258 = vst.msk [vmem:[#allocation2 + $0x108] sm:$0xff] %vm224_vm0, %v1854_v2  ;;  %1579 = vmatmul.mubr.msk.bf16.gmra.mxu0 %vm593_vm1, %v1675_v9  ;;  %1611 = vmatmul.mubr.msk.bf16.gmra.mxu1 %vm593_vm1, %v1676_v10  ;;  %v1697_v31 = vld [vmem:[%s2037_s24 + $0x70] sm:$0xff]   ;;  %v1699_v33 = vld [vmem:[%s2037_s24 + $0x78] sm:$0xff]  }
  0x1e   : > { %259 = vst.msk [vmem:[#allocation2 + $0x110] sm:$0xff] %vm224_vm0, %v1854_v2  ;;  %260 = vst.msk [vmem:[#allocation2 + $0x118] sm:$0xff] %vm224_vm0, %v1854_v2  ;;  %1582 = vmatprep.mubr.msk.bf16.mxu0 %vm593_vm1, %v1677_v11  ;;  %1614 = vmatprep.mubr.msk.bf16.mxu1 %vm593_vm1, %v1678_v12  ;;  %v1698_v32 = vld [vmem:[%s2037_s24 + $0xf0] sm:$0xff]   ;;  %v1700_v34 = vld [vmem:[%s2037_s24 + $0xf8] sm:$0xff]  }
  0x1f   : > { %261 = vst.msk [vmem:[#allocation2 + $0x120] sm:$0xff] %vm224_vm0, %v1854_v2  ;;  %262 = vst.msk [vmem:[#allocation2 + $0x128] sm:$0xff] %vm224_vm0, %v1854_v2  ;;  %v291_v35 = vld [vmem:[#allocation2 + $0x10] sm:$0xff]  ;;  %v289_v38 = vld [vmem:[#allocation2] sm:$0xff] }
  0x20   : > { %263 = vst.msk [vmem:[#allocation2 + $0x130] sm:$0xff] %vm224_vm0, %v1854_v2  ;;  %264 = vst.msk [vmem:[#allocation2 + $0x138] sm:$0xff] %vm224_vm0, %v1854_v2  ;;  %v292_v44 = vld [vmem:[#allocation2 + $0x18] sm:$0xff]  ;;  %v290_v50 = vld [vmem:[#allocation2 + $0x8] sm:$0xff] }
  0x21   : > { %265 = vst.msk [vmem:[#allocation2 + $0x140] sm:$0xff] %vm224_vm0, %v1854_v2  ;;  %266 = vst.msk [vmem:[#allocation2 + $0x148] sm:$0xff] %vm224_vm0, %v1854_v2  ;;  %v295_v56 = vld [vmem:[#allocation2 + $0x30] sm:$0xff]  ;;  %v293_v63 = vld [vmem:[#allocation2 + $0x20] sm:$0xff] }
  0x22   : > { %267 = vst.msk [vmem:[#allocation2 + $0x150] sm:$0xff] %vm224_vm0, %v1854_v2  ;;  %268 = vst.msk [vmem:[#allocation2 + $0x158] sm:$0xff] %vm224_vm0, %v1854_v2  ;;  %v296_v6 = vld [vmem:[#allocation2 + $0x38] sm:$0xff] }
  0x23   : > { %269 = vst.msk [vmem:[#allocation2 + $0x160] sm:$0xff] %vm224_vm0, %v1854_v2  ;;  %270 = vst.msk [vmem:[#allocation2 + $0x168] sm:$0xff] %vm224_vm0, %v1854_v2 }
  0x24   : > { %271 = vst.msk [vmem:[#allocation2 + $0x170] sm:$0xff] %vm224_vm0, %v1854_v2  ;;  %272 = vst.msk [vmem:[#allocation2 + $0x178] sm:$0xff] %vm224_vm0, %v1854_v2  ;;  %v321_v41 = vld [vmem:[#allocation2 + $0x100] sm:$0xff]  ;;  %v322_v53 = vld [vmem:[#allocation2 + $0x108] sm:$0xff] }
  0x25   : > { %273 = vst.msk [vmem:[#allocation2 + $0x180] sm:$0xff] %vm224_vm0, %v1854_v2  ;;  %274 = vst.msk [vmem:[#allocation2 + $0x188] sm:$0xff] %vm224_vm0, %v1854_v2  ;;  %1583 = vmatmul.mubr.msk.bf16.gmra.mxu0 %vm593_vm1, %v1679_v13  ;;  %1615 = vmatmul.mubr.msk.bf16.gmra.mxu1 %vm593_vm1, %v1680_v14  ;;  %v323_v36 = vld [vmem:[#allocation2 + $0x110] sm:$0xff]  ;;  %v324_v47 = vld [vmem:[#allocation2 + $0x118] sm:$0xff] }
  0x26   : > { %275 = vst.msk [vmem:[#allocation2 + $0x190] sm:$0xff] %vm224_vm0, %v1854_v2  ;;  %276 = vst.msk [vmem:[#allocation2 + $0x198] sm:$0xff] %vm224_vm0, %v1854_v2  ;;  %1586 = vmatprep.mubr.msk.bf16.mxu0 %vm593_vm1, %v1681_v15  ;;  %1618 = vmatprep.mubr.msk.bf16.mxu1 %vm593_vm1, %v1682_v16  ;;  %v294_v16 = vld [vmem:[#allocation2 + $0x28] sm:$0xff] }
  0x27   : > { %277 = vst.msk [vmem:[#allocation2 + $0x1a0] sm:$0xff] %vm224_vm0, %v1854_v2  ;;  %278 = vst.msk [vmem:[#allocation2 + $0x1a8] sm:$0xff] %vm224_vm0, %v1854_v2  ;;  %v327_v59 = vld [vmem:[#allocation2 + $0x130] sm:$0xff]  ;;  %v328_v11 = vld [vmem:[#allocation2 + $0x138] sm:$0xff] }
  0x28   : > { %279 = vst.msk [vmem:[#allocation2 + $0x1b0] sm:$0xff] %vm224_vm0, %v1854_v2  ;;  %280 = vst.msk [vmem:[#allocation2 + $0x1b8] sm:$0xff] %vm224_vm0, %v1854_v2 }
  0x29   : > { %281 = vst.msk [vmem:[#allocation2 + $0x1c0] sm:$0xff] %vm224_vm0, %v1854_v2  ;;  %282 = vst.msk [vmem:[#allocation2 + $0x1c8] sm:$0xff] %vm224_vm0, %v1854_v2 }
  0x2a   : > { %283 = vst.msk [vmem:[#allocation2 + $0x1d0] sm:$0xff] %vm224_vm0, %v1854_v2  ;;  %284 = vst.msk [vmem:[#allocation2 + $0x1d8] sm:$0xff] %vm224_vm0, %v1854_v2 }
  0x2b   : > { %285 = vst.msk [vmem:[#allocation2 + $0x1e0] sm:$0xff] %vm224_vm0, %v1854_v2  ;;  %286 = vst.msk [vmem:[#allocation2 + $0x1e8] sm:$0xff] %vm224_vm0, %v1854_v2 }
  0x2c   : > { %287 = vst.msk [vmem:[#allocation2 + $0x1f0] sm:$0xff] %vm224_vm0, %v1854_v2  ;;  %288 = vst.msk [vmem:[#allocation2 + $0x1f8] sm:$0xff] %vm224_vm0, %v1854_v2  ;;  %v325_v2 = vld [vmem:[#allocation2 + $0x120] sm:$0xff] }
  0x2d   : > { %1587 = vmatmul.mubr.msk.bf16.gmra.mxu0 %vm593_vm1, %v1683_v17  ;;  %1619 = vmatmul.mubr.msk.bf16.gmra.mxu1 %vm593_vm1, %v1684_v18 }
  0x2e   : > { %1590 = vmatprep.mubr.msk.bf16.mxu0 %vm593_vm1, %v1685_v19  ;;  %1622 = vmatprep.mubr.msk.bf16.mxu1 %vm593_vm1, %v1686_v20 }
  0x35   : > { %1591 = vmatmul.mubr.msk.bf16.gmra.mxu0 %vm593_vm1, %v1687_v21  ;;  %1623 = vmatmul.mubr.msk.bf16.gmra.mxu1 %vm593_vm1, %v1688_v22  ;;  %v326_v21 = vld [vmem:[#allocation2 + $0x128] sm:$0xff] }
  0x36   : > { %1594 = vmatprep.mubr.msk.bf16.mxu0 %vm593_vm1, %v1689_v23  ;;  %1626 = vmatprep.mubr.msk.bf16.mxu1 %vm593_vm1, %v1690_v24 }
  0x3d   : > { %1595 = vmatmul.mubr.msk.bf16.gmra.mxu0 %vm593_vm1, %v1691_v25  ;;  %1627 = vmatmul.mubr.msk.bf16.gmra.mxu1 %vm593_vm1, %v1692_v26  ;;  %v299_v26 = vld [vmem:[#allocation2 + $0x50] sm:$0xff] }
  0x3e   : > { %1598 = vmatprep.mubr.msk.bf16.mxu0 %vm593_vm1, %v1693_v27  ;;  %1630 = vmatprep.mubr.msk.bf16.mxu1 %vm593_vm1, %v1694_v28 }
  0x45   : > { %1599 = vmatmul.mubr.msk.bf16.gmra.mxu0 %vm593_vm1, %v1695_v29  ;;  %1631 = vmatmul.mubr.msk.bf16.gmra.mxu1 %vm593_vm1, %v1696_v30 }
  0x46   : > { %1602 = vmatprep.mubr.msk.bf16.mxu0 %vm593_vm1, %v1697_v31  ;;  %1634 = vmatprep.mubr.msk.bf16.mxu1 %vm593_vm1, %v1698_v32  ;;  %v331_v31 = vld [vmem:[#allocation2 + $0x150] sm:$0xff] }
  0x4d   : > { %1603 = vmatmul.mubr.msk.bf16.gmra.mxu0 %vm593_vm1, %v1699_v33  ;;  %1635 = vmatmul.mubr.msk.bf16.gmra.mxu1 %vm593_vm1, %v1700_v34 }
  0xd5   : > { %v1576_v37 = vpop.f32.mrf.mxu0  ;;  %v1608_v40 = vpop.f32.mrf.mxu1 }
  0xd6   : > { %v981_v39 = vadd.f32 %v1576_v37, %v291_v35  ;;  %v1013_v42 = vadd.f32 %v1608_v40, %v323_v36  ;;  %v297_v36 = vld [vmem:[#allocation2 + $0x40] sm:$0xff] }
  0xd7   : > { %v724_v43 = vpop.f32.mrf.mxu0  ;;  %v852_v46 = vpop.f32.mrf.mxu1 }
  0xd8   : > { %1046 = vst.msk [vmem:[#allocation2 + $0x10] sm:$0xff] %vm224_vm0, %v981_v39  ;;  %v979_v45 = vadd.f32 %v724_v43, %v289_v38  ;;  %1078 = vst.msk [vmem:[#allocation2 + $0x110] sm:$0xff] %vm224_vm0, %v1013_v42  ;;  %v1011_v48 = vadd.f32 %v852_v46, %v321_v41  ;;  %v329_v41 = vld [vmem:[#allocation2 + $0x140] sm:$0xff]  ;;  %v300_v46 = vld [vmem:[#allocation2 + $0x58] sm:$0xff] }
  0xd9   : > { %v1577_v49 = vpop.f32.mrf.mxu0  ;;  %v1609_v52 = vpop.f32.mrf.mxu1 }
  0xda   : > { %1044 = vst.msk [vmem:[#allocation2] sm:$0xff] %vm224_vm0, %v979_v45  ;;  %v982_v51 = vadd.f32 %v1577_v49, %v292_v44  ;;  %1076 = vst.msk [vmem:[#allocation2 + $0x100] sm:$0xff] %vm224_vm0, %v1011_v48  ;;  %v1014_v54 = vadd.f32 %v1609_v52, %v324_v47 }
  0xdb   : > { %v727_v55 = vpop.f32.mrf.mxu0  ;;  %v855_v58 = vpop.f32.mrf.mxu1 }
  0xdc   : > { %1047 = vst.msk [vmem:[#allocation2 + $0x18] sm:$0xff] %vm224_vm0, %v982_v51  ;;  %v980_v57 = vadd.f32 %v727_v55, %v290_v50  ;;  %1079 = vst.msk [vmem:[#allocation2 + $0x118] sm:$0xff] %vm224_vm0, %v1014_v54  ;;  %v1012_v61 = vadd.f32 %v855_v58, %v322_v53  ;;  %v332_v51 = vld [vmem:[#allocation2 + $0x158] sm:$0xff] }
  0xdd   : > { %v1580_v62 = vpop.f32.mrf.mxu0  ;;  %v1612_v1 = vpop.f32.mrf.mxu1 }
  0xde   : > { %1045 = vst.msk [vmem:[#allocation2 + $0x8] sm:$0xff] %vm224_vm0, %v980_v57  ;;  %v985_v0 = vadd.f32 %v1580_v62, %v295_v56  ;;  %1077 = vst.msk [vmem:[#allocation2 + $0x108] sm:$0xff] %vm224_vm0, %v1012_v61  ;;  %v1017_v4 = vadd.f32 %v1612_v1, %v327_v59  ;;  %v298_v56 = vld [vmem:[#allocation2 + $0x48] sm:$0xff] }
  0xdf   : > { %v1113_v3 = vld [vmem:[#allocation2 + $0x10] sm:$0xff]  ;;  %v740_v5 = vpop.f32.mrf.mxu0  ;;  %v868_v10 = vpop.f32.mrf.mxu1  ;;  %v330_v62 = vld [vmem:[#allocation2 + $0x148] sm:$0xff] }
  0xe0   : > { %v1184_v7 = vadd.f32 %v2113_v60, %v1113_v3  ;;  %v1145_v8 = vld [vmem:[#allocation2 + $0x110] sm:$0xff]  ;;  %1050 = vst.msk [vmem:[#allocation2 + $0x30] sm:$0xff] %vm224_vm0, %v985_v0  ;;  %v983_v9 = vadd.f32 %v740_v5, %v293_v63  ;;  %1082 = vst.msk [vmem:[#allocation2 + $0x130] sm:$0xff] %vm224_vm0, %v1017_v4  ;;  %v1015_v14 = vadd.f32 %v868_v10, %v325_v2 }
  0xe1   : > { %v1216_v12 = vadd.f32 %v2113_v60, %v1145_v8  ;;  %v1111_v13 = vld [vmem:[#allocation2] sm:$0xff]  ;;  %v1581_v15 = vpop.f32.mrf.mxu0  ;;  %v1613_v20 = vpop.f32.mrf.mxu1  ;;  %v303_v3 = vld [vmem:[#allocation2 + $0x70] sm:$0xff] }
  0xe2   : > { %1701 = vtanh.f32 %v1184_v7  ;;  %v1182_v17 = vadd.f32 %v2113_v60, %v1111_v13  ;;  %v1143_v18 = vld [vmem:[#allocation2 + $0x100] sm:$0xff]  ;;  %1048 = vst.msk [vmem:[#allocation2 + $0x20] sm:$0xff] %vm224_vm0, %v983_v9  ;;  %v986_v19 = vadd.f32 %v1581_v15, %v296_v6  ;;  %1080 = vst.msk [vmem:[#allocation2 + $0x120] sm:$0xff] %vm224_vm0, %v1015_v14  ;;  %v1018_v24 = vadd.f32 %v1613_v20, %v328_v11  ;;  %v335_v8 = vld [vmem:[#allocation2 + $0x170] sm:$0xff] }
  0xe3   : > { %1703 = vtanh.f32 %v1216_v12  ;;  %v1214_v22 = vadd.f32 %v2113_v60, %v1143_v18  ;;  %v1114_v23 = vld [vmem:[#allocation2 + $0x18] sm:$0xff]  ;;  %v743_v25 = vpop.f32.mrf.mxu0  ;;  %v871_v30 = vpop.f32.mrf.mxu1  ;;  %v301_v13 = vld [vmem:[#allocation2 + $0x60] sm:$0xff] }
  0xe4   : > { %1705 = vtanh.f32 %v1182_v17  ;;  %v1185_v27 = vadd.f32 %v2113_v60, %v1114_v23  ;;  %v1146_v28 = vld [vmem:[#allocation2 + $0x118] sm:$0xff]  ;;  %1051 = vst.msk [vmem:[#allocation2 + $0x38] sm:$0xff] %vm224_vm0, %v986_v19  ;;  %v984_v29 = vadd.f32 %v743_v25, %v294_v16  ;;  %1083 = vst.msk [vmem:[#allocation2 + $0x138] sm:$0xff] %vm224_vm0, %v1018_v24  ;;  %v1016_v34 = vadd.f32 %v871_v30, %v326_v21  ;;  %v333_v18 = vld [vmem:[#allocation2 + $0x160] sm:$0xff] }
  0xe5   : > { %1707 = vtanh.f32 %v1214_v22  ;;  %v1217_v32 = vadd.f32 %v2113_v60, %v1146_v28  ;;  %v1112_v33 = vld [vmem:[#allocation2 + $0x8] sm:$0xff]  ;;  %v1584_v35 = vpop.f32.mrf.mxu0  ;;  %v1616_v40 = vpop.f32.mrf.mxu1  ;;  %v304_v24 = vld [vmem:[#allocation2 + $0x78] sm:$0xff] }
  0xe6   : > { %1709 = vtanh.f32 %v1185_v27  ;;  %v1183_v37 = vadd.f32 %v2113_v60, %v1112_v33  ;;  %v1144_v38 = vld [vmem:[#allocation2 + $0x108] sm:$0xff]  ;;  %1049 = vst.msk [vmem:[#allocation2 + $0x28] sm:$0xff] %vm224_vm0, %v984_v29  ;;  %v989_v39 = vadd.f32 %v1584_v35, %v299_v26  ;;  %1081 = vst.msk [vmem:[#allocation2 + $0x128] sm:$0xff] %vm224_vm0, %v1016_v34  ;;  %v1021_v44 = vadd.f32 %v1616_v40, %v331_v31  ;;  %v336_v30 = vld [vmem:[#allocation2 + $0x178] sm:$0xff] }
  0xe7   : > { %1711 = vtanh.f32 %v1217_v32  ;;  %v1215_v42 = vadd.f32 %v2113_v60, %v1144_v38  ;;  %v1117_v43 = vld [vmem:[#allocation2 + $0x30] sm:$0xff]  ;;  %v756_v45 = vpop.f32.mrf.mxu0  ;;  %v884_v50 = vpop.f32.mrf.mxu1 }
  0xe8   : > { %1713 = vtanh.f32 %v1183_v37  ;;  %v1188_v47 = vadd.f32 %v2113_v60, %v1117_v43  ;;  %v1149_v48 = vld [vmem:[#allocation2 + $0x130] sm:$0xff]  ;;  %1054 = vst.msk [vmem:[#allocation2 + $0x50] sm:$0xff] %vm224_vm0, %v989_v39  ;;  %v987_v49 = vadd.f32 %v756_v45, %v297_v36  ;;  %1086 = vst.msk [vmem:[#allocation2 + $0x150] sm:$0xff] %vm224_vm0, %v1021_v44  ;;  %v1019_v54 = vadd.f32 %v884_v50, %v329_v41  ;;  %v302_v36 = vld [vmem:[#allocation2 + $0x68] sm:$0xff] }
  0xe9   : > { %1715 = vtanh.f32 %v1215_v42  ;;  %v1220_v52 = vadd.f32 %v2113_v60, %v1149_v48  ;;  %v1115_v53 = vld [vmem:[#allocation2 + $0x20] sm:$0xff]  ;;  %v1585_v55 = vpop.f32.mrf.mxu0  ;;  %v1617_v61 = vpop.f32.mrf.mxu1  ;;  %v334_v42 = vld [vmem:[#allocation2 + $0x168] sm:$0xff]  ;;  %v307_v48 = vld [vmem:[#allocation2 + $0x90] sm:$0xff] }
  0xea   : > { %1717 = vtanh.f32 %v1188_v47  ;;  %v1186_v57 = vadd.f32 %v2113_v60, %v1115_v53  ;;  %v1147_v58 = vld [vmem:[#allocation2 + $0x120] sm:$0xff]  ;;  %1052 = vst.msk [vmem:[#allocation2 + $0x40] sm:$0xff] %vm224_vm0, %v987_v49  ;;  %v990_v59 = vadd.f32 %v1585_v55, %v300_v46  ;;  %1084 = vst.msk [vmem:[#allocation2 + $0x140] sm:$0xff] %vm224_vm0, %v1019_v54  ;;  %v1022_v1 = vadd.f32 %v1617_v61, %v332_v51  ;;  %v339_v54 = vld [vmem:[#allocation2 + $0x190] sm:$0xff] }
  0xeb   : > { %1719 = vtanh.f32 %v1220_v52  ;;  %v1218_v63 = vadd.f32 %v2113_v60, %v1147_v58  ;;  %v1118_v0 = vld [vmem:[#allocation2 + $0x38] sm:$0xff]  ;;  %v759_v2 = vpop.f32.mrf.mxu0  ;;  %v887_v7 = vpop.f32.mrf.mxu1  ;;  %v305_v61 = vld [vmem:[#allocation2 + $0x80] sm:$0xff] }
  0xec   : > { %1721 = vtanh.f32 %v1186_v57  ;;  %v1189_v4 = vadd.f32 %v2113_v60, %v1118_v0  ;;  %v1150_v5 = vld [vmem:[#allocation2 + $0x138] sm:$0xff]  ;;  %1055 = vst.msk [vmem:[#allocation2 + $0x58] sm:$0xff] %vm224_vm0, %v990_v59  ;;  %v988_v6 = vadd.f32 %v759_v2, %v298_v56  ;;  %1087 = vst.msk [vmem:[#allocation2 + $0x158] sm:$0xff] %vm224_vm0, %v1022_v1  ;;  %v1020_v11 = vadd.f32 %v887_v7, %v330_v62 }
  0xed   : > { %1723 = vtanh.f32 %v1218_v63  ;;  %v1221_v9 = vadd.f32 %v2113_v60, %v1150_v5  ;;  %v1116_v10 = vld [vmem:[#allocation2 + $0x28] sm:$0xff]  ;;  %v1588_v12 = vpop.f32.mrf.mxu0  ;;  %v1620_v17 = vpop.f32.mrf.mxu1 }
  0xee   : > { %1725 = vtanh.f32 %v1189_v4  ;;  %v1187_v14 = vadd.f32 %v2113_v60, %v1116_v10  ;;  %v1148_v15 = vld [vmem:[#allocation2 + $0x128] sm:$0xff]  ;;  %1053 = vst.msk [vmem:[#allocation2 + $0x48] sm:$0xff] %vm224_vm0, %v988_v6  ;;  %v993_v16 = vadd.f32 %v1588_v12, %v303_v3  ;;  %1085 = vst.msk [vmem:[#allocation2 + $0x148] sm:$0xff] %vm224_vm0, %v1020_v11  ;;  %v1025_v22 = vadd.f32 %v1620_v17, %v335_v8  ;;  %v337_v3 = vld [vmem:[#allocation2 + $0x180] sm:$0xff] }
  0xef   : > { %v1702_v19 = vpop.eup %1701  ;;  %1727 = vtanh.f32 %v1221_v9  ;;  %v1219_v20 = vadd.f32 %v2113_v60, %v1148_v15  ;;  %v1121_v21 = vld [vmem:[#allocation2 + $0x50] sm:$0xff]  ;;  %v772_v23 = vpop.f32.mrf.mxu0  ;;  %v308_v9 = vld [vmem:[#allocation2 + $0x98] sm:$0xff] }
  0xf0   : > { %v1704_v25 = vpop.eup %1703  ;;  %1312 = vst.msk [vmem:[%s2148_s30 + $0x10] sm:$0xff] %vm224_vm0, %v1702_v19  ;;  %1729 = vtanh.f32 %v1187_v14  ;;  %v1192_v26 = vadd.f32 %v2113_v60, %v1121_v21  ;;  %v1153_v27 = vld [vmem:[#allocation2 + $0x150] sm:$0xff]  ;;  %1058 = vst.msk [vmem:[#allocation2 + $0x70] sm:$0xff] %vm224_vm0, %v993_v16  ;;  %v991_v28 = vadd.f32 %v772_v23, %v301_v13  ;;  %v900_v29 = vpop.f32.mrf.mxu1  ;;  %v340_v15 = vld [vmem:[#allocation2 + $0x198] sm:$0xff] }
  0xf1   : > { %v1706_v31 = vpop.eup %1705  ;;  %1344 = vst.msk [vmem:[%s2148_s30 + $0x110] sm:$0xff] %vm224_vm0, %v1704_v25  ;;  %1731 = vtanh.f32 %v1219_v20  ;;  %v1224_v32 = vadd.f32 %v2113_v60, %v1153_v27  ;;  %v1119_v33 = vld [vmem:[#allocation2 + $0x40] sm:$0xff]  ;;  %1090 = vst.msk [vmem:[#allocation2 + $0x170] sm:$0xff] %vm224_vm0, %v1025_v22  ;;  %v1023_v34 = vadd.f32 %v900_v29, %v333_v18  ;;  %v1589_v35 = vpop.f32.mrf.mxu0  ;;  %v306_v21 = vld [vmem:[#allocation2 + $0x88] sm:$0xff] }
  0xf2   : > { %v1708_v37 = vpop.eup %1707  ;;  %1310 = vst.msk [vmem:[%s2148_s30] sm:$0xff] %vm224_vm0, %v1706_v31  ;;  %1733 = vtanh.f32 %v1192_v26  ;;  %v1190_v38 = vadd.f32 %v2113_v60, %v1119_v33  ;;  %v1151_v39 = vld [vmem:[#allocation2 + $0x140] sm:$0xff]  ;;  %1056 = vst.msk [vmem:[#allocation2 + $0x60] sm:$0xff] %vm224_vm0, %v991_v28  ;;  %v994_v40 = vadd.f32 %v1589_v35, %v304_v24  ;;  %v1621_v41 = vpop.f32.mrf.mxu1  ;;  %v338_v27 = vld [vmem:[#allocation2 + $0x188] sm:$0xff] }
  0xf3   : > { %v1710_v43 = vpop.eup %1709  ;;  %1342 = vst.msk [vmem:[%s2148_s30 + $0x100] sm:$0xff] %vm224_vm0, %v1708_v37  ;;  %1735 = vtanh.f32 %v1224_v32  ;;  %v1222_v44 = vadd.f32 %v2113_v60, %v1151_v39  ;;  %v1122_v45 = vld [vmem:[#allocation2 + $0x58] sm:$0xff]  ;;  %1088 = vst.msk [vmem:[#allocation2 + $0x160] sm:$0xff] %vm224_vm0, %v1023_v34  ;;  %v1026_v46 = vadd.f32 %v1621_v41, %v336_v30  ;;  %v775_v47 = vpop.f32.mrf.mxu0  ;;  %v311_v33 = vld [vmem:[#allocation2 + $0xb0] sm:$0xff] }
  0xf4   : > { %v1712_v49 = vpop.eup %1711  ;;  %1313 = vst.msk [vmem:[%s2148_s30 + $0x18] sm:$0xff] %vm224_vm0, %v1710_v43  ;;  %1737 = vtanh.f32 %v1190_v38  ;;  %v1193_v50 = vadd.f32 %v2113_v60, %v1122_v45  ;;  %v1154_v51 = vld [vmem:[#allocation2 + $0x158] sm:$0xff]  ;;  %1059 = vst.msk [vmem:[#allocation2 + $0x78] sm:$0xff] %vm224_vm0, %v994_v40  ;;  %v992_v52 = vadd.f32 %v775_v47, %v302_v36  ;;  %v903_v53 = vpop.f32.mrf.mxu1  ;;  %v343_v39 = vld [vmem:[#allocation2 + $0x1b0] sm:$0xff] }
  0xf5   : > { %v1714_v55 = vpop.eup %1713  ;;  %1345 = vst.msk [vmem:[%s2148_s30 + $0x118] sm:$0xff] %vm224_vm0, %v1712_v49  ;;  %1739 = vtanh.f32 %v1222_v44  ;;  %v1225_v56 = vadd.f32 %v2113_v60, %v1154_v51  ;;  %v1120_v57 = vld [vmem:[#allocation2 + $0x48] sm:$0xff]  ;;  %1091 = vst.msk [vmem:[#allocation2 + $0x178] sm:$0xff] %vm224_vm0, %v1026_v46  ;;  %v1024_v58 = vadd.f32 %v903_v53, %v334_v42  ;;  %v1592_v59 = vpop.f32.mrf.mxu0  ;;  %v309_v45 = vld [vmem:[#allocation2 + $0xa0] sm:$0xff] }
  0xf6   : > { %v1716_v62 = vpop.eup %1715  ;;  %1311 = vst.msk [vmem:[%s2148_s30 + $0x8] sm:$0xff] %vm224_vm0, %v1714_v55  ;;  %1741 = vtanh.f32 %v1193_v50  ;;  %v1191_v63 = vadd.f32 %v2113_v60, %v1120_v57  ;;  %v1152_v0 = vld [vmem:[#allocation2 + $0x148] sm:$0xff]  ;;  %1057 = vst.msk [vmem:[#allocation2 + $0x68] sm:$0xff] %vm224_vm0, %v992_v52  ;;  %v997_v1 = vadd.f32 %v1592_v59, %v307_v48  ;;  %v1624_v2 = vpop.f32.mrf.mxu1  ;;  %v341_v51 = vld [vmem:[#allocation2 + $0x1a0] sm:$0xff] }
  0xf7   : > { %v1718_v4 = vpop.eup %1717  ;;  %1343 = vst.msk [vmem:[%s2148_s30 + $0x108] sm:$0xff] %vm224_vm0, %v1716_v62  ;;  %1743 = vtanh.f32 %v1225_v56  ;;  %v1223_v5 = vadd.f32 %v2113_v60, %v1152_v0  ;;  %v1125_v6 = vld [vmem:[#allocation2 + $0x70] sm:$0xff]  ;;  %1089 = vst.msk [vmem:[#allocation2 + $0x168] sm:$0xff] %vm224_vm0, %v1024_v58  ;;  %v1029_v7 = vadd.f32 %v1624_v2, %v339_v54  ;;  %v788_v8 = vpop.f32.mrf.mxu0  ;;  %v312_v57 = vld [vmem:[#allocation2 + $0xb8] sm:$0xff] }
  0xf8   : > { %v1720_v10 = vpop.eup %1719  ;;  %1316 = vst.msk [vmem:[%s2148_s30 + $0x30] sm:$0xff] %vm224_vm0, %v1718_v4  ;;  %1745 = vtanh.f32 %v1191_v63  ;;  %v1196_v11 = vadd.f32 %v2113_v60, %v1125_v6  ;;  %v1157_v12 = vld [vmem:[#allocation2 + $0x170] sm:$0xff]  ;;  %1062 = vst.msk [vmem:[#allocation2 + $0x90] sm:$0xff] %vm224_vm0, %v997_v1  ;;  %v995_v13 = vadd.f32 %v788_v8, %v305_v61  ;;  %v916_v14 = vpop.f32.mrf.mxu1  ;;  %v344_v0 = vld [vmem:[#allocation2 + $0x1b8] sm:$0xff] }
  0xf9   : > { %v1722_v16 = vpop.eup %1721  ;;  %1348 = vst.msk [vmem:[%s2148_s30 + $0x130] sm:$0xff] %vm224_vm0, %v1720_v10  ;;  %1747 = vtanh.f32 %v1223_v5  ;;  %v1228_v17 = vadd.f32 %v2113_v60, %v1157_v12  ;;  %v1123_v18 = vld [vmem:[#allocation2 + $0x60] sm:$0xff]  ;;  %1094 = vst.msk [vmem:[#allocation2 + $0x190] sm:$0xff] %vm224_vm0, %v1029_v7  ;;  %v1027_v19 = vadd.f32 %v916_v14, %v337_v3  ;;  %v1593_v20 = vpop.f32.mrf.mxu0  ;;  %v310_v6 = vld [vmem:[#allocation2 + $0xa8] sm:$0xff] }
  0xfa   : > { %v1724_v22 = vpop.eup %1723  ;;  %1314 = vst.msk [vmem:[%s2148_s30 + $0x20] sm:$0xff] %vm224_vm0, %v1722_v16  ;;  %1749 = vtanh.f32 %v1196_v11  ;;  %v1194_v23 = vadd.f32 %v2113_v60, %v1123_v18  ;;  %v1155_v24 = vld [vmem:[#allocation2 + $0x160] sm:$0xff]  ;;  %1060 = vst.msk [vmem:[#allocation2 + $0x80] sm:$0xff] %vm224_vm0, %v995_v13  ;;  %v998_v25 = vadd.f32 %v1593_v20, %v308_v9  ;;  %v1625_v26 = vpop.f32.mrf.mxu1  ;;  %v342_v12 = vld [vmem:[#allocation2 + $0x1a8] sm:$0xff] }
  0xfb   : > { %v1726_v28 = vpop.eup %1725  ;;  %1346 = vst.msk [vmem:[%s2148_s30 + $0x120] sm:$0xff] %vm224_vm0, %v1724_v22  ;;  %1751 = vtanh.f32 %v1228_v17  ;;  %v1226_v29 = vadd.f32 %v2113_v60, %v1155_v24  ;;  %v1126_v30 = vld [vmem:[#allocation2 + $0x78] sm:$0xff]  ;;  %1092 = vst.msk [vmem:[#allocation2 + $0x180] sm:$0xff] %vm224_vm0, %v1027_v19  ;;  %v1030_v31 = vadd.f32 %v1625_v26, %v340_v15  ;;  %v791_v32 = vpop.f32.mrf.mxu0  ;;  %v315_v18 = vld [vmem:[#allocation2 + $0xd0] sm:$0xff] }
  0xfc   : > { %v1728_v34 = vpop.eup %1727  ;;  %1317 = vst.msk [vmem:[%s2148_s30 + $0x38] sm:$0xff] %vm224_vm0, %v1726_v28  ;;  %1753 = vtanh.f32 %v1194_v23  ;;  %v1197_v35 = vadd.f32 %v2113_v60, %v1126_v30  ;;  %v1158_v36 = vld [vmem:[#allocation2 + $0x178] sm:$0xff]  ;;  %1063 = vst.msk [vmem:[#allocation2 + $0x98] sm:$0xff] %vm224_vm0, %v998_v25  ;;  %v996_v37 = vadd.f32 %v791_v32, %v306_v21  ;;  %v919_v38 = vpop.f32.mrf.mxu1  ;;  %v347_v24 = vld [vmem:[#allocation2 + $0x1d0] sm:$0xff] }
  0xfd   : > { %v1730_v40 = vpop.eup %1729  ;;  %1349 = vst.msk [vmem:[%s2148_s30 + $0x138] sm:$0xff] %vm224_vm0, %v1728_v34  ;;  %1755 = vtanh.f32 %v1226_v29  ;;  %v1229_v41 = vadd.f32 %v2113_v60, %v1158_v36  ;;  %v1124_v42 = vld [vmem:[#allocation2 + $0x68] sm:$0xff]  ;;  %1095 = vst.msk [vmem:[#allocation2 + $0x198] sm:$0xff] %vm224_vm0, %v1030_v31  ;;  %v1028_v43 = vadd.f32 %v919_v38, %v338_v27  ;;  %v1596_v44 = vpop.f32.mrf.mxu0  ;;  %v313_v30 = vld [vmem:[#allocation2 + $0xc0] sm:$0xff] }
  0xfe   : > { %v1732_v46 = vpop.eup %1731  ;;  %1315 = vst.msk [vmem:[%s2148_s30 + $0x28] sm:$0xff] %vm224_vm0, %v1730_v40  ;;  %1757 = vtanh.f32 %v1197_v35  ;;  %v1195_v47 = vadd.f32 %v2113_v60, %v1124_v42  ;;  %v1156_v48 = vld [vmem:[#allocation2 + $0x168] sm:$0xff]  ;;  %1061 = vst.msk [vmem:[#allocation2 + $0x88] sm:$0xff] %vm224_vm0, %v996_v37  ;;  %v1001_v49 = vadd.f32 %v1596_v44, %v311_v33  ;;  %v1628_v50 = vpop.f32.mrf.mxu1  ;;  %v345_v36 = vld [vmem:[#allocation2 + $0x1c0] sm:$0xff] }
  0xff   : > { %v1734_v52 = vpop.eup %1733  ;;  %1347 = vst.msk [vmem:[%s2148_s30 + $0x128] sm:$0xff] %vm224_vm0, %v1732_v46  ;;  %1759 = vtanh.f32 %v1229_v41  ;;  %v1227_v53 = vadd.f32 %v2113_v60, %v1156_v48  ;;  %v1129_v54 = vld [vmem:[#allocation2 + $0x90] sm:$0xff]  ;;  %1093 = vst.msk [vmem:[#allocation2 + $0x188] sm:$0xff] %vm224_vm0, %v1028_v43  ;;  %v1033_v55 = vadd.f32 %v1628_v50, %v343_v39  ;;  %v804_v56 = vpop.f32.mrf.mxu0  ;;  %v316_v42 = vld [vmem:[#allocation2 + $0xd8] sm:$0xff] }
 0x100   : > { %v1736_v58 = vpop.eup %1735  ;;  %1320 = vst.msk [vmem:[%s2148_s30 + $0x50] sm:$0xff] %vm224_vm0, %v1734_v52  ;;  %1761 = vtanh.f32 %v1195_v47  ;;  %v1200_v59 = vadd.f32 %v2113_v60, %v1129_v54  ;;  %v1161_v61 = vld [vmem:[#allocation2 + $0x190] sm:$0xff]  ;;  %1066 = vst.msk [vmem:[#allocation2 + $0xb0] sm:$0xff] %vm224_vm0, %v1001_v49  ;;  %v999_v62 = vadd.f32 %v804_v56, %v309_v45  ;;  %v932_v63 = vpop.f32.mrf.mxu1  ;;  %v348_v48 = vld [vmem:[#allocation2 + $0x1d8] sm:$0xff] }
 0x101   : > { %v1738_v1 = vpop.eup %1737  ;;  %1352 = vst.msk [vmem:[%s2148_s30 + $0x150] sm:$0xff] %vm224_vm0, %v1736_v58  ;;  %1763 = vtanh.f32 %v1227_v53  ;;  %v1232_v2 = vadd.f32 %v2113_v60, %v1161_v61  ;;  %v1127_v3 = vld [vmem:[#allocation2 + $0x80] sm:$0xff]  ;;  %1098 = vst.msk [vmem:[#allocation2 + $0x1b0] sm:$0xff] %vm224_vm0, %v1033_v55  ;;  %v1031_v4 = vadd.f32 %v932_v63, %v341_v51  ;;  %v1597_v5 = vpop.f32.mrf.mxu0  ;;  %v314_v54 = vld [vmem:[#allocation2 + $0xc8] sm:$0xff] }
 0x102   : > { %v1740_v7 = vpop.eup %1739  ;;  %1318 = vst.msk [vmem:[%s2148_s30 + $0x40] sm:$0xff] %vm224_vm0, %v1738_v1  ;;  %1765 = vtanh.f32 %v1200_v59  ;;  %v1198_v8 = vadd.f32 %v2113_v60, %v1127_v3  ;;  %v1159_v9 = vld [vmem:[#allocation2 + $0x180] sm:$0xff]  ;;  %1064 = vst.msk [vmem:[#allocation2 + $0xa0] sm:$0xff] %vm224_vm0, %v999_v62  ;;  %v1002_v10 = vadd.f32 %v1597_v5, %v312_v57  ;;  %v1629_v11 = vpop.f32.mrf.mxu1  ;;  %v346_v61 = vld [vmem:[#allocation2 + $0x1c8] sm:$0xff] }
 0x103   : > { %v1742_v13 = vpop.eup %1741  ;;  %1350 = vst.msk [vmem:[%s2148_s30 + $0x140] sm:$0xff] %vm224_vm0, %v1740_v7  ;;  %1767 = vtanh.f32 %v1232_v2  ;;  %v1230_v14 = vadd.f32 %v2113_v60, %v1159_v9  ;;  %v1130_v15 = vld [vmem:[#allocation2 + $0x98] sm:$0xff]  ;;  %1096 = vst.msk [vmem:[#allocation2 + $0x1a0] sm:$0xff] %vm224_vm0, %v1031_v4  ;;  %v1034_v16 = vadd.f32 %v1629_v11, %v344_v0  ;;  %v807_v17 = vpop.f32.mrf.mxu0  ;;  %v319_v3 = vld [vmem:[#allocation2 + $0xf0] sm:$0xff] }
 0x104   : > { %v1744_v19 = vpop.eup %1743  ;;  %1321 = vst.msk [vmem:[%s2148_s30 + $0x58] sm:$0xff] %vm224_vm0, %v1742_v13  ;;  %1769 = vtanh.f32 %v1198_v8  ;;  %v1201_v20 = vadd.f32 %v2113_v60, %v1130_v15  ;;  %v1162_v21 = vld [vmem:[#allocation2 + $0x198] sm:$0xff]  ;;  %1067 = vst.msk [vmem:[#allocation2 + $0xb8] sm:$0xff] %vm224_vm0, %v1002_v10  ;;  %v1000_v22 = vadd.f32 %v807_v17, %v310_v6  ;;  %v935_v23 = vpop.f32.mrf.mxu1  ;;  %v351_v9 = vld [vmem:[#allocation2 + $0x1f0] sm:$0xff] }
 0x105   : > { %v1746_v25 = vpop.eup %1745  ;;  %1353 = vst.msk [vmem:[%s2148_s30 + $0x158] sm:$0xff] %vm224_vm0, %v1744_v19  ;;  %1771 = vtanh.f32 %v1230_v14  ;;  %v1233_v26 = vadd.f32 %v2113_v60, %v1162_v21  ;;  %v1128_v27 = vld [vmem:[#allocation2 + $0x88] sm:$0xff]  ;;  %1099 = vst.msk [vmem:[#allocation2 + $0x1b8] sm:$0xff] %vm224_vm0, %v1034_v16  ;;  %v1032_v28 = vadd.f32 %v935_v23, %v342_v12  ;;  %v1600_v29 = vpop.f32.mrf.mxu0  ;;  %v317_v15 = vld [vmem:[#allocation2 + $0xe0] sm:$0xff] }
 0x106   : > { %v1748_v31 = vpop.eup %1747  ;;  %1319 = vst.msk [vmem:[%s2148_s30 + $0x48] sm:$0xff] %vm224_vm0, %v1746_v25  ;;  %1773 = vtanh.f32 %v1201_v20  ;;  %v1199_v32 = vadd.f32 %v2113_v60, %v1128_v27  ;;  %v1160_v33 = vld [vmem:[#allocation2 + $0x188] sm:$0xff]  ;;  %1065 = vst.msk [vmem:[#allocation2 + $0xa8] sm:$0xff] %vm224_vm0, %v1000_v22  ;;  %v1005_v34 = vadd.f32 %v1600_v29, %v315_v18  ;;  %v1632_v35 = vpop.f32.mrf.mxu1  ;;  %v349_v21 = vld [vmem:[#allocation2 + $0x1e0] sm:$0xff] }
 0x107   : > { %v1750_v37 = vpop.eup %1749  ;;  %1351 = vst.msk [vmem:[%s2148_s30 + $0x148] sm:$0xff] %vm224_vm0, %v1748_v31  ;;  %1775 = vtanh.f32 %v1233_v26  ;;  %v1231_v38 = vadd.f32 %v2113_v60, %v1160_v33  ;;  %v1133_v39 = vld [vmem:[#allocation2 + $0xb0] sm:$0xff]  ;;  %1097 = vst.msk [vmem:[#allocation2 + $0x1a8] sm:$0xff] %vm224_vm0, %v1032_v28  ;;  %v1037_v40 = vadd.f32 %v1632_v35, %v347_v24  ;;  %v820_v41 = vpop.f32.mrf.mxu0  ;;  %v320_v27 = vld [vmem:[#allocation2 + $0xf8] sm:$0xff] }
 0x108   : > { %v1752_v43 = vpop.eup %1751  ;;  %1324 = vst.msk [vmem:[%s2148_s30 + $0x70] sm:$0xff] %vm224_vm0, %v1750_v37  ;;  %1777 = vtanh.f32 %v1199_v32  ;;  %v1204_v44 = vadd.f32 %v2113_v60, %v1133_v39  ;;  %v1165_v45 = vld [vmem:[#allocation2 + $0x1b0] sm:$0xff]  ;;  %1070 = vst.msk [vmem:[#allocation2 + $0xd0] sm:$0xff] %vm224_vm0, %v1005_v34  ;;  %v1003_v46 = vadd.f32 %v820_v41, %v313_v30  ;;  %v948_v47 = vpop.f32.mrf.mxu1  ;;  %v352_v33 = vld [vmem:[#allocation2 + $0x1f8] sm:$0xff] }
 0x109   : > { %v1754_v49 = vpop.eup %1753  ;;  %1356 = vst.msk [vmem:[%s2148_s30 + $0x170] sm:$0xff] %vm224_vm0, %v1752_v43  ;;  %1779 = vtanh.f32 %v1231_v38  ;;  %v1236_v50 = vadd.f32 %v2113_v60, %v1165_v45  ;;  %v1131_v51 = vld [vmem:[#allocation2 + $0xa0] sm:$0xff]  ;;  %1102 = vst.msk [vmem:[#allocation2 + $0x1d0] sm:$0xff] %vm224_vm0, %v1037_v40  ;;  %v1035_v52 = vadd.f32 %v948_v47, %v345_v36  ;;  %v1601_v53 = vpop.f32.mrf.mxu0  ;;  %v318_v39 = vld [vmem:[#allocation2 + $0xe8] sm:$0xff] }
 0x10a   : > { %v1756_v55 = vpop.eup %1755  ;;  %1322 = vst.msk [vmem:[%s2148_s30 + $0x60] sm:$0xff] %vm224_vm0, %v1754_v49  ;;  %1781 = vtanh.f32 %v1204_v44  ;;  %v1202_v56 = vadd.f32 %v2113_v60, %v1131_v51  ;;  %v1163_v57 = vld [vmem:[#allocation2 + $0x1a0] sm:$0xff]  ;;  %1068 = vst.msk [vmem:[#allocation2 + $0xc0] sm:$0xff] %vm224_vm0, %v1003_v46  ;;  %v1006_v58 = vadd.f32 %v1601_v53, %v316_v42  ;;  %v1633_v59 = vpop.f32.mrf.mxu1  ;;  %v350_v45 = vld [vmem:[#allocation2 + $0x1e8] sm:$0xff] }
 0x10b   : > { %v1758_v62 = vpop.eup %1757  ;;  %1354 = vst.msk [vmem:[%s2148_s30 + $0x160] sm:$0xff] %vm224_vm0, %v1756_v55  ;;  %1783 = vtanh.f32 %v1236_v50  ;;  %v1234_v63 = vadd.f32 %v2113_v60, %v1163_v57  ;;  %v1134_v0 = vld [vmem:[#allocation2 + $0xb8] sm:$0xff]  ;;  %1100 = vst.msk [vmem:[#allocation2 + $0x1c0] sm:$0xff] %vm224_vm0, %v1035_v52  ;;  %v1038_v1 = vadd.f32 %v1633_v59, %v348_v48  ;;  %v823_v2 = vpop.f32.mrf.mxu0 }
 0x10c   : > { %v1760_v4 = vpop.eup %1759  ;;  %1325 = vst.msk [vmem:[%s2148_s30 + $0x78] sm:$0xff] %vm224_vm0, %v1758_v62  ;;  %1785 = vtanh.f32 %v1202_v56  ;;  %v1205_v5 = vadd.f32 %v2113_v60, %v1134_v0  ;;  %v1166_v6 = vld [vmem:[#allocation2 + $0x1b8] sm:$0xff]  ;;  %1071 = vst.msk [vmem:[#allocation2 + $0xd8] sm:$0xff] %vm224_vm0, %v1006_v58  ;;  %v1004_v7 = vadd.f32 %v823_v2, %v314_v54  ;;  %v951_v8 = vpop.f32.mrf.mxu1 }
 0x10d   : > { %v1762_v10 = vpop.eup %1761  ;;  %1357 = vst.msk [vmem:[%s2148_s30 + $0x178] sm:$0xff] %vm224_vm0, %v1760_v4  ;;  %1787 = vtanh.f32 %v1234_v63  ;;  %v1237_v11 = vadd.f32 %v2113_v60, %v1166_v6  ;;  %v1132_v12 = vld [vmem:[#allocation2 + $0xa8] sm:$0xff]  ;;  %1103 = vst.msk [vmem:[#allocation2 + $0x1d8] sm:$0xff] %vm224_vm0, %v1038_v1  ;;  %v1036_v13 = vadd.f32 %v951_v8, %v346_v61  ;;  %v1604_v14 = vpop.f32.mrf.mxu0 }
 0x10e   : > { %v1764_v16 = vpop.eup %1763  ;;  %1323 = vst.msk [vmem:[%s2148_s30 + $0x68] sm:$0xff] %vm224_vm0, %v1762_v10  ;;  %1789 = vtanh.f32 %v1205_v5  ;;  %v1203_v17 = vadd.f32 %v2113_v60, %v1132_v12  ;;  %v1164_v18 = vld [vmem:[#allocation2 + $0x1a8] sm:$0xff]  ;;  %1069 = vst.msk [vmem:[#allocation2 + $0xc8] sm:$0xff] %vm224_vm0, %v1004_v7  ;;  %v1009_v19 = vadd.f32 %v1604_v14, %v319_v3  ;;  %v1636_v20 = vpop.f32.mrf.mxu1 }
 0x10f   : > { %v1766_v22 = vpop.eup %1765  ;;  %1355 = vst.msk [vmem:[%s2148_s30 + $0x168] sm:$0xff] %vm224_vm0, %v1764_v16  ;;  %1791 = vtanh.f32 %v1237_v11  ;;  %v1235_v23 = vadd.f32 %v2113_v60, %v1164_v18  ;;  %v1137_v24 = vld [vmem:[#allocation2 + $0xd0] sm:$0xff]  ;;  %1101 = vst.msk [vmem:[#allocation2 + $0x1c8] sm:$0xff] %vm224_vm0, %v1036_v13  ;;  %v1041_v25 = vadd.f32 %v1636_v20, %v351_v9  ;;  %v836_v26 = vpop.f32.mrf.mxu0 }
 0x110   : > { %v1768_v28 = vpop.eup %1767  ;;  %1328 = vst.msk [vmem:[%s2148_s30 + $0x90] sm:$0xff] %vm224_vm0, %v1766_v22  ;;  %1793 = vtanh.f32 %v1203_v17  ;;  %v1208_v29 = vadd.f32 %v2113_v60, %v1137_v24  ;;  %v1169_v30 = vld [vmem:[#allocation2 + $0x1d0] sm:$0xff]  ;;  %1074 = vst.msk [vmem:[#allocation2 + $0xf0] sm:$0xff] %vm224_vm0, %v1009_v19  ;;  %v1007_v31 = vadd.f32 %v836_v26, %v317_v15  ;;  %v964_v32 = vpop.f32.mrf.mxu1 }
 0x111   : > { %v1770_v34 = vpop.eup %1769  ;;  %1360 = vst.msk [vmem:[%s2148_s30 + $0x190] sm:$0xff] %vm224_vm0, %v1768_v28  ;;  %1795 = vtanh.f32 %v1235_v23  ;;  %v1240_v35 = vadd.f32 %v2113_v60, %v1169_v30  ;;  %v1135_v36 = vld [vmem:[#allocation2 + $0xc0] sm:$0xff]  ;;  %1106 = vst.msk [vmem:[#allocation2 + $0x1f0] sm:$0xff] %vm224_vm0, %v1041_v25  ;;  %v1039_v37 = vadd.f32 %v964_v32, %v349_v21  ;;  %v1605_v38 = vpop.f32.mrf.mxu0  ;;  %v1829_v25 = vld [vmem:[%s2385_s2] ss:$0 sm:$0xff] }
 0x112   : > { %v1772_v40 = vpop.eup %1771  ;;  %1326 = vst.msk [vmem:[%s2148_s30 + $0x80] sm:$0xff] %vm224_vm0, %v1770_v34  ;;  %1797 = vtanh.f32 %v1208_v29  ;;  %v1206_v41 = vadd.f32 %v2113_v60, %v1135_v36  ;;  %v1167_v42 = vld [vmem:[#allocation2 + $0x1c0] sm:$0xff]  ;;  %1072 = vst.msk [vmem:[#allocation2 + $0xe0] sm:$0xff] %vm224_vm0, %v1007_v31  ;;  %v1010_v43 = vadd.f32 %v1605_v38, %v320_v27  ;;  %v1637_v44 = vpop.f32.mrf.mxu1 }
 0x113   : > { %v1774_v46 = vpop.eup %1773  ;;  %1358 = vst.msk [vmem:[%s2148_s30 + $0x180] sm:$0xff] %vm224_vm0, %v1772_v40  ;;  %1799 = vtanh.f32 %v1240_v35  ;;  %v1238_v47 = vadd.f32 %v2113_v60, %v1167_v42  ;;  %v1138_v48 = vld [vmem:[#allocation2 + $0xd8] sm:$0xff]  ;;  %1104 = vst.msk [vmem:[#allocation2 + $0x1e0] sm:$0xff] %vm224_vm0, %v1039_v37  ;;  %v1042_v49 = vadd.f32 %v1637_v44, %v352_v33  ;;  %v839_v50 = vpop.f32.mrf.mxu0 }
 0x114   : > { %v1776_v51 = vpop.eup %1775  ;;  %1329 = vst.msk [vmem:[%s2148_s30 + $0x98] sm:$0xff] %vm224_vm0, %v1774_v46  ;;  %1801 = vtanh.f32 %v1206_v41  ;;  %v1209_v52 = vadd.f32 %v2113_v60, %v1138_v48  ;;  %v1170_v53 = vld [vmem:[#allocation2 + $0x1d8] sm:$0xff]  ;;  %1075 = vst.msk [vmem:[#allocation2 + $0xf8] sm:$0xff] %vm224_vm0, %v1010_v43  ;;  %v1008_v54 = vadd.f32 %v839_v50, %v318_v39  ;;  %v967_v55 = vpop.f32.mrf.mxu1 }
 0x115   : > { %v1778_v56 = vpop.eup %1777  ;;  %1361 = vst.msk [vmem:[%s2148_s30 + $0x198] sm:$0xff] %vm224_vm0, %v1776_v51  ;;  %1803 = vtanh.f32 %v1238_v47  ;;  %v1241_v57 = vadd.f32 %v2113_v60, %v1170_v53  ;;  %v1136_v58 = vld [vmem:[#allocation2 + $0xc8] sm:$0xff]  ;;  %1107 = vst.msk [vmem:[#allocation2 + $0x1f8] sm:$0xff] %vm224_vm0, %v1042_v49  ;;  %v1040_v59 = vadd.f32 %v967_v55, %v350_v45 }
 0x116   : > { %v1780_v61 = vpop.eup %1779  ;;  %1327 = vst.msk [vmem:[%s2148_s30 + $0x88] sm:$0xff] %vm224_vm0, %v1778_v56  ;;  %1805 = vtanh.f32 %v1209_v52  ;;  %v1207_v62 = vadd.f32 %v2113_v60, %v1136_v58  ;;  %v1168_v63 = vld [vmem:[#allocation2 + $0x1c8] sm:$0xff]  ;;  %1073 = vst.msk [vmem:[#allocation2 + $0xe8] sm:$0xff] %vm224_vm0, %v1008_v54 }
 0x117   : > { %v1782_v0 = vpop.eup %1781  ;;  %1359 = vst.msk [vmem:[%s2148_s30 + $0x188] sm:$0xff] %vm224_vm0, %v1780_v61  ;;  %1807 = vtanh.f32 %v1241_v57  ;;  %v1239_v1 = vadd.f32 %v2113_v60, %v1168_v63  ;;  %v1141_v2 = vld [vmem:[#allocation2 + $0xf0] sm:$0xff]  ;;  %1105 = vst.msk [vmem:[#allocation2 + $0x1e8] sm:$0xff] %vm224_vm0, %v1040_v59 }
 0x118   : > { %v1784_v3 = vpop.eup %1783  ;;  %1332 = vst.msk [vmem:[%s2148_s30 + $0xb0] sm:$0xff] %vm224_vm0, %v1782_v0  ;;  %1809 = vtanh.f32 %v1207_v62  ;;  %v1212_v4 = vadd.f32 %v2113_v60, %v1141_v2  ;;  %v1173_v5 = vld [vmem:[#allocation2 + $0x1f0] sm:$0xff] }
 0x119   : > { %v1786_v6 = vpop.eup %1785  ;;  %1364 = vst.msk [vmem:[%s2148_s30 + $0x1b0] sm:$0xff] %vm224_vm0, %v1784_v3  ;;  %1811 = vtanh.f32 %v1239_v1  ;;  %v1244_v7 = vadd.f32 %v2113_v60, %v1173_v5  ;;  %v1139_v8 = vld [vmem:[#allocation2 + $0xe0] sm:$0xff] }
 0x11a   : > { %v1788_v9 = vpop.eup %1787  ;;  %1330 = vst.msk [vmem:[%s2148_s30 + $0xa0] sm:$0xff] %vm224_vm0, %v1786_v6  ;;  %1813 = vtanh.f32 %v1212_v4  ;;  %v1210_v10 = vadd.f32 %v2113_v60, %v1139_v8  ;;  %v1171_v11 = vld [vmem:[#allocation2 + $0x1e0] sm:$0xff] }
 0x11b   : > { %v1790_v12 = vpop.eup %1789  ;;  %1362 = vst.msk [vmem:[%s2148_s30 + $0x1a0] sm:$0xff] %vm224_vm0, %v1788_v9  ;;  %1815 = vtanh.f32 %v1244_v7  ;;  %v1242_v13 = vadd.f32 %v2113_v60, %v1171_v11  ;;  %v1142_v14 = vld [vmem:[#allocation2 + $0xf8] sm:$0xff] }
 0x11c   : > { %v1792_v15 = vpop.eup %1791  ;;  %1333 = vst.msk [vmem:[%s2148_s30 + $0xb8] sm:$0xff] %vm224_vm0, %v1790_v12  ;;  %1817 = vtanh.f32 %v1210_v10  ;;  %v1213_v16 = vadd.f32 %v2113_v60, %v1142_v14  ;;  %v1174_v17 = vld [vmem:[#allocation2 + $0x1f8] sm:$0xff] }
 0x11d   : > { %v1794_v18 = vpop.eup %1793  ;;  %1365 = vst.msk [vmem:[%s2148_s30 + $0x1b8] sm:$0xff] %vm224_vm0, %v1792_v15  ;;  %1819 = vtanh.f32 %v1242_v13  ;;  %v1245_v19 = vadd.f32 %v2113_v60, %v1174_v17  ;;  %v1140_v20 = vld [vmem:[#allocation2 + $0xe8] sm:$0xff] }
 0x11e   : > { %v1796_v21 = vpop.eup %1795  ;;  %1331 = vst.msk [vmem:[%s2148_s30 + $0xa8] sm:$0xff] %vm224_vm0, %v1794_v18  ;;  %1821 = vtanh.f32 %v1213_v16  ;;  %v1211_v22 = vadd.f32 %v2113_v60, %v1140_v20  ;;  %v1172_v23 = vld [vmem:[#allocation2 + $0x1e8] sm:$0xff] }
 0x11f   : > { %v1798_v24 = vpop.eup %1797  ;;  %1363 = vst.msk [vmem:[%s2148_s30 + $0x1a8] sm:$0xff] %vm224_vm0, %v1796_v21  ;;  %1823 = vtanh.f32 %v1245_v19  ;;  %v1243_v26 = vadd.f32 %v1829_v25, %v1172_v23 }
 0x120   : > { %v1800_v27 = vpop.eup %1799  ;;  %1336 = vst.msk [vmem:[%s2148_s30 + $0xd0] sm:$0xff] %vm224_vm0, %v1798_v24  ;;  %1825 = vtanh.f32 %v1211_v22 }
 0x121   : > { %v1802_v60 = vpop.eup %1801  ;;  %1368 = vst.msk [vmem:[%s2148_s30 + $0x1d0] sm:$0xff] %vm224_vm0, %v1800_v27  ;;  %1827 = vtanh.f32 %v1243_v26 }
 0x122   : > { %v1804_v28 = vpop.eup %1803  ;;  %1334 = vst.msk [vmem:[%s2148_s30 + $0xc0] sm:$0xff] %vm224_vm0, %v1802_v60 }
 0x123   : > { %v1806_v29 = vpop.eup %1805  ;;  %1366 = vst.msk [vmem:[%s2148_s30 + $0x1c0] sm:$0xff] %vm224_vm0, %v1804_v28 }
 0x124   : > { %v1808_v30 = vpop.eup %1807  ;;  %1337 = vst.msk [vmem:[%s2148_s30 + $0xd8] sm:$0xff] %vm224_vm0, %v1806_v29 }
 0x125   : > { %v1810_v31 = vpop.eup %1809  ;;  %1369 = vst.msk [vmem:[%s2148_s30 + $0x1d8] sm:$0xff] %vm224_vm0, %v1808_v30 }
 0x126   : > { %v1812_v32 = vpop.eup %1811  ;;  %1335 = vst.msk [vmem:[%s2148_s30 + $0xc8] sm:$0xff] %vm224_vm0, %v1810_v31 }
 0x127   : > { %v1814_v33 = vpop.eup %1813  ;;  %1367 = vst.msk [vmem:[%s2148_s30 + $0x1c8] sm:$0xff] %vm224_vm0, %v1812_v32 }
 0x128   : > { %v1816_v34 = vpop.eup %1815  ;;  %1340 = vst.msk [vmem:[%s2148_s30 + $0xf0] sm:$0xff] %vm224_vm0, %v1814_v33 }
 0x129   : > { %v1818_v35 = vpop.eup %1817  ;;  %1372 = vst.msk [vmem:[%s2148_s30 + $0x1f0] sm:$0xff] %vm224_vm0, %v1816_v34 }
 0x12a   : > { %v1820_v36 = vpop.eup %1819  ;;  %1338 = vst.msk [vmem:[%s2148_s30 + $0xe0] sm:$0xff] %vm224_vm0, %v1818_v35 }
 0x12b   : > { %v1822_v37 = vpop.eup %1821  ;;  %1370 = vst.msk [vmem:[%s2148_s30 + $0x1e0] sm:$0xff] %vm224_vm0, %v1820_v36 }
 0x12c   : > { %v1824_v38 = vpop.eup %1823  ;;  %1341 = vst.msk [vmem:[%s2148_s30 + $0xf8] sm:$0xff] %vm224_vm0, %v1822_v37 }
 0x12d   : > { %v1826_v39 = vpop.eup %1825  ;;  %1373 = vst.msk [vmem:[%s2148_s30 + $0x1f8] sm:$0xff] %vm224_vm0, %v1824_v38 }
 0x12e   : > { %v1828_v40 = vpop.eup %1827  ;;  %1339 = vst.msk [vmem:[%s2148_s30 + $0xe8] sm:$0xff] %vm224_vm0, %v1826_v39 }
 0x12f   : > { %1371 = vst.msk [vmem:[%s2148_s30 + $0x1e8] sm:$0xff] %vm224_vm0, %v1828_v40 }
 0x130 PF: > { %s13_s14 = sadd.s32 1, %s1852_s14   ;;  %s2387_s12 = smov %s1848_s13 }
 0x131   : > { %p10_p5 = scmp.ge.s32.totalorder %s13_s14, 7   ;;  %s2388_s13 = smov %s2390_s15 }
 0x133   :  { %12 = sbr.rel (!%p10_p5) target bundleno = 2 (0x2), region = 73 }

</bundles_post_ra>
